<compile_context>
chip_gen: v5e
topology: v5e:2x2
jax: 0.10.0
libtpu: 0.0.40
codegen_flags: <defaults>
</compile_context>

<pallas_src>
import functools
import math

import jax
import jax.numpy as jnp
from jax.experimental import pallas as pl
from jax.experimental.pallas import tpu as pltpu


# Explicit scoped-VMEM budget: comfortably above the largest per-call working
# set (~7 MiB for the dense kernel) and well under v7x's 64 MiB physical VMEM.
_VMEM_LIMIT = 32 * 1024 * 1024


def _mosaic_params():
    return pltpu.CompilerParams(
        dimension_semantics=("parallel",),      # shard row tiles across TCs (v7x)
        vmem_limit_bytes=_VMEM_LIMIT,
    )


# ----------------------- Pallas kernels (hot path) -----------------------

def _matmul_bias_relu_kernel(x_ref, w_ref, b_ref, o_ref, *, apply_relu):
    # o = [relu](x @ w + b); x/w bf16, accumulate f32 on the MXU.
    y = jnp.dot(x_ref[...], w_ref[...], preferred_element_type=jnp.float32)
    y = y + b_ref[...]                      # (1, N) broadcasts over rows
    if apply_relu:
        y = jnp.maximum(y, 0.0)
    o_ref[...] = y.astype(o_ref.dtype)


def matmul_bias_relu(x, w, b, *, apply_relu, block_m, out_dtype=jnp.float32):
    """(M, K) @ (K, N) + b with optional ReLU.

    Grid over M row tiles (double-buffered, pipelined); w and b use a constant
    index_map so they are DMA'd once and stay resident in VMEM."""
    M, K = x.shape
    K2, N = w.shape
    assert K == K2
    bm = min(block_m, M)
    kernel = functools.partial(_matmul_bias_relu_kernel, apply_relu=apply_relu)
    return pl.pallas_call(
        kernel,
        out_shape=jax.ShapeDtypeStruct((M, N), out_dtype),
        grid=(pl.cdiv(M, bm),),
        in_specs=[
            pl.BlockSpec((bm, K), lambda i: (i, 0)),
            pl.BlockSpec((K, N), lambda i: (0, 0)),    # resident weight
            pl.BlockSpec((1, N), lambda i: (0, 0)),    # resident bias
        ],
        out_specs=pl.BlockSpec((bm, N), lambda i: (i, 0)),
        compiler_params=_mosaic_params(),
    )(x, w, b.reshape(1, N))


def _conv2_pool_kernel(x_ref, w_ref, b_ref, o_ref):
    # x_ref: (4, bm, K) -- the 4 pool-tap im2col matrices for this row tile.
    # o_ref: (bm, N)    -- 2x2 max-pooled conv2 activations (post bias+ReLU).
    w = w_ref[...]
    b = b_ref[...]
    acc = jnp.dot(x_ref[0], w, preferred_element_type=jnp.float32) + b
    for k in range(1, 4):                   # static unroll: 4 MXU matmuls
        acc = jnp.maximum(
            acc, jnp.dot(x_ref[k], w, preferred_element_type=jnp.float32) + b)
    # relu(max(z_k)) == max(relu(z_k)) since ReLU is monotone.
    o_ref[...] = jnp.maximum(acc, 0.0).astype(o_ref.dtype)


def conv2_maxpool(x_taps, w, b, *, block_m, out_dtype=jnp.bfloat16):
    """Fused conv2-as-matmul + ReLU + 2x2 maxpool.

    x_taps: (4, M, K) bf16 with M = B*12*12 pooled positions and K = 9*32.
    Tap k holds the conv2 im2col row for offset (k//2, k%2) inside that
    pooling window.  Output: (M, N) pooled activations."""
    _, M, K = x_taps.shape
    K2, N = w.shape
    assert K == K2
    bm = min(block_m, M)
    return pl.pallas_call(
        _conv2_pool_kernel,
        out_shape=jax.ShapeDtypeStruct((M, N), out_dtype),
        grid=(pl.cdiv(M, bm),),
        in_specs=[
            pl.BlockSpec((4, bm, K), lambda i: (0, i, 0)),
            pl.BlockSpec((K, N), lambda i: (0, 0)),    # resident weight
            pl.BlockSpec((1, N), lambda i: (0, 0)),    # resident bias
        ],
        out_specs=pl.BlockSpec((bm, N), lambda i: (i, 0)),
        compiler_params=_mosaic_params(),
    )(x_taps, w, b.reshape(1, N))


def _dense_stack_kernel(x_ref, w1_ref, b1_ref, w2_ref, b2_ref, o_ref):
    # relu(x @ W1 + b1) kept in VMEM, immediately consumed by the second dot.
    h = jnp.dot(x_ref[...], w1_ref[...], preferred_element_type=jnp.float32)
    h = jnp.maximum(h + b1_ref[...], 0.0)
    y = jnp.dot(h.astype(w2_ref.dtype), w2_ref[...],
                preferred_element_type=jnp.float32) + b2_ref[...]
    o_ref[...] = y.astype(o_ref.dtype)


def dense_stack(x, w1, b1, w2, b2, *, block_m):
    """Fused dense1 + ReLU + dense2 (logits). Grid over batch-row tiles."""
    M, K1 = x.shape
    K1b, N1 = w1.shape
    N1b, N2 = w2.shape
    assert K1 == K1b and N1 == N1b
    bm = min(block_m, M)
    return pl.pallas_call(
        _dense_stack_kernel,
        out_shape=jax.ShapeDtypeStruct((M, N2), jnp.float32),
        grid=(pl.cdiv(M, bm),),
        in_specs=[
            pl.BlockSpec((bm, K1), lambda i: (i, 0)),
            pl.BlockSpec((K1, N1), lambda i: (0, 0)),  # resident 9216x128 weight
            pl.BlockSpec((1, N1), lambda i: (0, 0)),
            pl.BlockSpec((N1, N2), lambda i: (0, 0)),  # resident 128x10 weight
            pl.BlockSpec((1, N2), lambda i: (0, 0)),
        ],
        out_specs=pl.BlockSpec((bm, N2), lambda i: (i, 0)),
        compiler_params=_mosaic_params(),
    )(x, w1, b1.reshape(1, N1), w2, b2.reshape(1, N2))


# --------------------------- parameters ----------------------------------

def init_torch_params(key):
    """Parameters in the torch layer layouts (Conv2d OIHW, Linear (out, in))."""
    ks = jax.random.split(key, 8)

    def u(k, shape, fan_in):
        bound = 1.0 / math.sqrt(fan_in)
        return jax.random.uniform(k, shape, jnp.float32, -bound, bound)

    return {
        "cnn1_w": u(ks[0], (32, 1, 3, 3), 9),
        "cnn1_b": u(ks[1], (32,), 9),
        "cnn2_w": u(ks[2], (64, 32, 3, 3), 288),
        "cnn2_b": u(ks[3], (64,), 288),
        "dense1_w": u(ks[4], (128, 9216), 9216),
        "dense1_b": u(ks[5], (128,), 9216),
        "dense2_w": u(ks[6], (10, 128), 128),
        "dense2_b": u(ks[7], (10,), 128),
    }


def prepare_params(tp):
    """One-time conversion of torch-layout params to kernel layouts:
    im2col weight matrices, dense weights pre-transposed to (K, N), dense1's
    input rows permuted from torch's NCHW-flatten order (c*144 + h*12 + w) to
    our pooled (h*768 + w*64 + c) order, matmul operands cast to bf16."""
    # conv1: (32,1,3,3) -> (kh*kw*ic, oc) = (9, 32), K zero-padded 9 -> 16.
    w1 = jnp.transpose(tp["cnn1_w"], (2, 3, 1, 0)).reshape(9, 32)
    w1 = jnp.pad(w1, ((0, 7), (0, 0)))
    # conv2: (64,32,3,3) -> (kh*kw*ic, oc) = (288, 64).
    w2 = jnp.transpose(tp["cnn2_w"], (2, 3, 1, 0)).reshape(288, 64)
    # dense1: permute rows so results match torch.nn.Flatten on NCHW exactly.
    d1 = tp["dense1_w"].reshape(128, 64, 12, 12)              # (n, c, h, w)
    d1 = jnp.transpose(d1, (2, 3, 1, 0)).reshape(9216, 128)   # (h, w, c) -> n
    d2 = jnp.transpose(tp["dense2_w"], (1, 0))                # (128, 10)
    return {
        "w1": w1.astype(jnp.bfloat16), "b1": tp["cnn1_b"].astype(jnp.float32),
        "w2": w2.astype(jnp.bfloat16), "b2": tp["cnn2_b"].astype(jnp.float32),
        "d1": d1.astype(jnp.bfloat16), "db1": tp["dense1_b"].astype(jnp.float32),
        "d2": d2.astype(jnp.bfloat16), "db2": tp["dense2_b"].astype(jnp.float32),
    }


# --------------------------- forward pass ---------------------------------

@jax.jit
def cnn_forward(params, x_nchw):
    # x: (B, 1, 28, 28) float32, NCHW (torch convention).
    B = x_nchw.shape[0]
    x = x_nchw.reshape(B, 28, 28)                              # C == 1

    # ---- conv1 (3x3, 1->32) + ReLU: tiny 9-tap im2col + tiled matmul ----
    p1 = jnp.stack([x[:, i:i + 26, j:j + 26]
                    for i in range(3) for j in range(3)], axis=-1)  # (B,26,26,9)
    p1 = jnp.pad(p1, ((0, 0), (0, 0), (0, 0), (0, 7)))              # K 9 -> 16
    x1 = p1.reshape(B * 676, 16).astype(jnp.bfloat16)
    y1 = matmul_bias_relu(x1, params["w1"], params["b1"],
                          apply_relu=True, block_m=4096,
                          out_dtype=jnp.bfloat16)                   # (B*676, 32)

    # ---- conv2 (3x3, 32->64) + ReLU + 2x2 maxpool, fused in one kernel ----
    # Lay the conv2 im2col out as 4 pool-tap matrices whose rows are pooled
    # output positions (b, H, W); the kernel computes max_k relu(tap_k@W2+b2).
    y1 = y1.reshape(B, 26, 26, 32)
    p2 = jnp.concatenate([y1[:, i:i + 24, j:j + 24, :]
                          for i in range(3) for j in range(3)],
                         axis=-1)                        # (B, 24, 24, 288)
    p2 = p2.reshape(B, 12, 2, 12, 2, 288)                # h'=2H+dy, w'=2W+dx
    p2 = jnp.transpose(p2, (2, 4, 0, 1, 3, 5))           # (dy, dx, B, H, W, K)
    x2 = p2.reshape(4, B * 144, 288)
    pooled = conv2_maxpool(x2, params["w2"], params["b2"],
                           block_m=576)                             # (B*144, 64)

    # TODO(synk): Dropout2d(0.25)/Dropout(0.5) are identity in eval/inference
    # mode; training-mode RNG masking is not implemented here.

    # ---- flatten + dense1 + ReLU + dense2 (single fused kernel) ----
    xf = pooled.reshape(B, 9216)        # feature order (h, w, c); d1 rows match
    logits = dense_stack(xf, params["d1"], params["db1"],
                         params["d2"], params["db2"], block_m=128)  # (B, 10)
    return logits


if __name__ == "__main__":
    key = jax.random.PRNGKey(0)
    pkey, xkey = jax.random.split(key)
    torch_params = init_torch_params(pkey)
    params = prepare_params(torch_params)      # one-time layout/dtype prep
    # 28x28x1 input is forced by Linear(9216, 128); batch kept small.
    x = jax.random.normal(xkey, (2, 1, 28, 28), jnp.float32)
    logits = cnn_forward(params, x)
    jax.block_until_ready(logits)
    assert logits.shape == (2, 10) and logits.dtype == jnp.float32
    print("KERNEL_OK")
</pallas_src>

<mosaic_0001>
module attributes {stable_mosaic.version = 11 : i64} {
  func.func @_matmul_bias_relu_kernel(%arg0: i32, %arg1: memref<1352x16xbf16, #tpu.memory_space<vmem>>, %arg2: memref<16x32xbf16, #tpu.memory_space<vmem>>, %arg3: memref<1x32xf32, #tpu.memory_space<vmem>>, %arg4: memref<1352x32xbf16, #tpu.memory_space<vmem>>) attributes {dimension_semantics = [#tpu.dimension_semantics<parallel>], iteration_bounds = array<i64: 1>, scalar_prefetch = 0 : i64, scratch_operands = 0 : i64, tpu.core_type = #tpu.core_type<tc>, window_params = [{transform_indices = @transform_0, window_bounds = array<i64: 1352, 16>}, {pipeline_mode = #tpu.pipeline_mode<synchronous>, transform_indices = @transform_1, window_bounds = array<i64: 16, 32>}, {pipeline_mode = #tpu.pipeline_mode<synchronous>, transform_indices = @transform_2, window_bounds = array<i64: 1, 32>}, {transform_indices = @transform_3, window_bounds = array<i64: 1352, 32>}]} {
    %c0 = arith.constant 0 : index
    %c0_0 = arith.constant 0 : index
    %0 = vector.load %arg1[%c0, %c0_0] : memref<1352x16xbf16, #tpu.memory_space<vmem>>, vector<1352x16xbf16>
    %c0_1 = arith.constant 0 : index
    %c0_2 = arith.constant 0 : index
    %1 = vector.load %arg2[%c0_1, %c0_2] : memref<16x32xbf16, #tpu.memory_space<vmem>>, vector<16x32xbf16>
    %cst = arith.constant dense<0.000000e+00> : vector<1352x32xf32>
    %2 = tpu.matmul %0, %1, %cst {dimension_numbers = #tpu.dot_dimension_numbers<[1], [0], [0], [1], [0, 0, 1, 1], [], []>} : vector<1352x16xbf16>, vector<16x32xbf16>, vector<1352x32xf32> -> vector<1352x32xf32>
    %c0_3 = arith.constant 0 : index
    %c0_4 = arith.constant 0 : index
    %3 = vector.load %arg3[%c0_3, %c0_4] : memref<1x32xf32, #tpu.memory_space<vmem>>, vector<1x32xf32>
    %4 = vector.broadcast %3 : vector<1x32xf32> to vector<1352x32xf32>
    %5 = arith.addf %2, %4 : vector<1352x32xf32>
    %cst_5 = arith.constant 0.000000e+00 : f32
    %6 = vector.broadcast %cst_5 : f32 to vector<1352x32xf32>
    %7 = arith.maximumf %5, %6 : vector<1352x32xf32>
    %8 = arith.truncf %7 : vector<1352x32xf32> to vector<1352x32xbf16>
    %c0_6 = arith.constant 0 : index
    %c0_7 = arith.constant 0 : index
    %9 = vector.load %arg4[%c0_6, %c0_7] : memref<1352x32xbf16, #tpu.memory_space<vmem>>, vector<1352x32xbf16>
    tpu.vector_store %arg4[%c0_6, %c0_7], %8 {strides = array<i32>} : memref<1352x32xbf16, #tpu.memory_space<vmem>>, vector<1352x32xbf16>,
    return
  }
  func.func @transform_0(%arg0: i32) -> (i32, i32) {
    %c0_i32 = arith.constant 0 : i32
    %c0_i32_0 = arith.constant 0 : i32
    return %arg0, %c0_i32 : i32, i32
  }
  func.func @transform_1(%arg0: i32) -> (i32, i32) {
    %c0_i32 = arith.constant 0 : i32
    %c0_i32_0 = arith.constant 0 : i32
    %c0_i32_1 = arith.constant 0 : i32
    return %c0_i32, %c0_i32_0 : i32, i32
  }
  func.func @transform_2(%arg0: i32) -> (i32, i32) {
    %c0_i32 = arith.constant 0 : i32
    %c0_i32_0 = arith.constant 0 : i32
    %c0_i32_1 = arith.constant 0 : i32
    return %c0_i32, %c0_i32_0 : i32, i32
  }
  func.func @transform_3(%arg0: i32) -> (i32, i32) {
    %c0_i32 = arith.constant 0 : i32
    %c0_i32_0 = arith.constant 0 : i32
    return %arg0, %c0_i32 : i32, i32
  }
}

module attributes {stable_mosaic.version = 11 : i64} {
  func.func @_conv2_pool_kernel(%arg0: i32, %arg1: memref<4x288x288xbf16, #tpu.memory_space<vmem>>, %arg2: memref<288x64xbf16, #tpu.memory_space<vmem>>, %arg3: memref<1x64xf32, #tpu.memory_space<vmem>>, %arg4: memref<288x64xbf16, #tpu.memory_space<vmem>>) attributes {dimension_semantics = [#tpu.dimension_semantics<parallel>], iteration_bounds = array<i64: 1>, scalar_prefetch = 0 : i64, scratch_operands = 0 : i64, tpu.core_type = #tpu.core_type<tc>, window_params = [{transform_indices = @transform_0, window_bounds = array<i64: 4, 288, 288>}, {pipeline_mode = #tpu.pipeline_mode<synchronous>, transform_indices = @transform_1, window_bounds = array<i64: 288, 64>}, {pipeline_mode = #tpu.pipeline_mode<synchronous>, transform_indices = @transform_2, window_bounds = array<i64: 1, 64>}, {transform_indices = @transform_3, window_bounds = array<i64: 288, 64>}]} {
    %c0 = arith.constant 0 : index
    %c0_0 = arith.constant 0 : index
    %0 = vector.load %arg2[%c0, %c0_0] : memref<288x64xbf16, #tpu.memory_space<vmem>>, vector<288x64xbf16>
    %c0_1 = arith.constant 0 : index
    %c0_2 = arith.constant 0 : index
    %1 = vector.load %arg3[%c0_1, %c0_2] : memref<1x64xf32, #tpu.memory_space<vmem>>, vector<1x64xf32>
    %c0_3 = arith.constant 0 : index
    %c0_4 = arith.constant 0 : index
    %c0_5 = arith.constant 0 : index
    %2 = vector.load %arg1[%c0_3, %c0_4, %c0_5] : memref<4x288x288xbf16, #tpu.memory_space<vmem>>, vector<1x288x288xbf16>
    %3 = vector.shape_cast %2 : vector<1x288x288xbf16> to vector<288x288xbf16>
    %cst = arith.constant dense<0.000000e+00> : vector<288x64xf32>
    %4 = tpu.matmul %3, %0, %cst {dimension_numbers = #tpu.dot_dimension_numbers<[1], [0], [0], [1], [0, 0, 1, 1], [], []>} : vector<288x288xbf16>, vector<288x64xbf16>, vector<288x64xf32> -> vector<288x64xf32>
    %5 = vector.broadcast %1 : vector<1x64xf32> to vector<288x64xf32>
    %6 = arith.addf %4, %5 : vector<288x64xf32>
    %c1 = arith.constant 1 : index
    %c0_6 = arith.constant 0 : index
    %c0_7 = arith.constant 0 : index
    %7 = vector.load %arg1[%c1, %c0_6, %c0_7] : memref<4x288x288xbf16, #tpu.memory_space<vmem>>, vector<1x288x288xbf16>
    %8 = vector.shape_cast %7 : vector<1x288x288xbf16> to vector<288x288xbf16>
    %cst_8 = arith.constant dense<0.000000e+00> : vector<288x64xf32>
    %9 = tpu.matmul %8, %0, %cst_8 {dimension_numbers = #tpu.dot_dimension_numbers<[1], [0], [0], [1], [0, 0, 1, 1], [], []>} : vector<288x288xbf16>, vector<288x64xbf16>, vector<288x64xf32> -> vector<288x64xf32>
    %10 = vector.broadcast %1 : vector<1x64xf32> to vector<288x64xf32>
    %11 = arith.addf %9, %10 : vector<288x64xf32>
    %12 = arith.maximumf %6, %11 : vector<288x64xf32>
    %c2 = arith.constant 2 : index
    %c0_9 = arith.constant 0 : index
    %c0_10 = arith.constant 0 : index
    %13 = vector.load %arg1[%c2, %c0_9, %c0_10] : memref<4x288x288xbf16, #tpu.memory_space<vmem>>, vector<1x288x288xbf16>
    %14 = vector.shape_cast %13 : vector<1x288x288xbf16> to vector<288x288xbf16>
    %cst_11 = arith.constant dense<0.000000e+00> : vector<288x64xf32>
    %15 = tpu.matmul %14, %0, %cst_11 {dimension_numbers = #tpu.dot_dimension_numbers<[1], [0], [0], [1], [0, 0, 1, 1], [], []>} : vector<288x288xbf16>, vector<288x64xbf16>, vector<288x64xf32> -> vector<288x64xf32>
    %16 = vector.broadcast %1 : vector<1x64xf32> to vector<288x64xf32>
    %17 = arith.addf %15, %16 : vector<288x64xf32>
    %18 = arith.maximumf %12, %17 : vector<288x64xf32>
    %c3 = arith.constant 3 : index
    %c0_12 = arith.constant 0 : index
    %c0_13 = arith.constant 0 : index
    %19 = vector.load %arg1[%c3, %c0_12, %c0_13] : memref<4x288x288xbf16, #tpu.memory_space<vmem>>, vector<1x288x288xbf16>
    %20 = vector.shape_cast %19 : vector<1x288x288xbf16> to vector<288x288xbf16>
    %cst_14 = arith.constant dense<0.000000e+00> : vector<288x64xf32>
    %21 = tpu.matmul %20, %0, %cst_14 {dimension_numbers = #tpu.dot_dimension_numbers<[1], [0], [0], [1], [0, 0, 1, 1], [], []>} : vector<288x288xbf16>, vector<288x64xbf16>, vector<288x64xf32> -> vector<288x64xf32>
    %22 = vector.broadcast %1 : vector<1x64xf32> to vector<288x64xf32>
    %23 = arith.addf %21, %22 : vector<288x64xf32>
    %24 = arith.maximumf %18, %23 : vector<288x64xf32>
    %cst_15 = arith.constant 0.000000e+00 : f32
    %25 = vector.broadcast %cst_15 : f32 to vector<288x64xf32>
    %26 = arith.maximumf %24, %25 : vector<288x64xf32>
    %27 = arith.truncf %26 : vector<288x64xf32> to vector<288x64xbf16>
    %c0_16 = arith.constant 0 : index
    %c0_17 = arith.constant 0 : index
    %28 = vector.load %arg4[%c0_16, %c0_17] : memref<288x64xbf16, #tpu.memory_space<vmem>>, vector<288x64xbf16>
    tpu.vector_store %arg4[%c0_16, %c0_17], %27 {strides = array<i32>} : memref<288x64xbf16, #tpu.memory_space<vmem>>, vector<288x64xbf16>,
    return
  }
  func.func @transform_0(%arg0: i32) -> (i32, i32, i32) {
    %c0_i32 = arith.constant 0 : i32
    %c0_i32_0 = arith.constant 0 : i32
    %c0_i32_1 = arith.constant 0 : i32
    return %c0_i32, %arg0, %c0_i32_0 : i32, i32, i32
  }
  func.func @transform_1(%arg0: i32) -> (i32, i32) {
    %c0_i32 = arith.constant 0 : i32
    %c0_i32_0 = arith.constant 0 : i32
    %c0_i32_1 = arith.constant 0 : i32
    return %c0_i32, %c0_i32_0 : i32, i32
  }
  func.func @transform_2(%arg0: i32) -> (i32, i32) {
    %c0_i32 = arith.constant 0 : i32
    %c0_i32_0 = arith.constant 0 : i32
    %c0_i32_1 = arith.constant 0 : i32
    return %c0_i32, %c0_i32_0 : i32, i32
  }
  func.func @transform_3(%arg0: i32) -> (i32, i32) {
    %c0_i32 = arith.constant 0 : i32
    %c0_i32_0 = arith.constant 0 : i32
    return %arg0, %c0_i32 : i32, i32
  }
}

module attributes {stable_mosaic.version = 11 : i64} {
  func.func @_dense_stack_kernel(%arg0: i32, %arg1: memref<2x9216xbf16, #tpu.memory_space<vmem>>, %arg2: memref<9216x128xbf16, #tpu.memory_space<vmem>>, %arg3: memref<1x128xf32, #tpu.memory_space<vmem>>, %arg4: memref<128x10xbf16, #tpu.memory_space<vmem>>, %arg5: memref<1x10xf32, #tpu.memory_space<vmem>>, %arg6: memref<2x10xf32, #tpu.memory_space<vmem>>) attributes {dimension_semantics = [#tpu.dimension_semantics<parallel>], iteration_bounds = array<i64: 1>, scalar_prefetch = 0 : i64, scratch_operands = 0 : i64, tpu.core_type = #tpu.core_type<tc>, window_params = [{transform_indices = @transform_0, window_bounds = array<i64: 2, 9216>}, {pipeline_mode = #tpu.pipeline_mode<synchronous>, transform_indices = @transform_1, window_bounds = array<i64: 9216, 128>}, {pipeline_mode = #tpu.pipeline_mode<synchronous>, transform_indices = @transform_2, window_bounds = array<i64: 1, 128>}, {pipeline_mode = #tpu.pipeline_mode<synchronous>, transform_indices = @transform_3, window_bounds = array<i64: 128, 10>}, {pipeline_mode = #tpu.pipeline_mode<synchronous>, transform_indices = @transform_4, window_bounds = array<i64: 1, 10>}, {transform_indices = @transform_5, window_bounds = array<i64: 2, 10>}]} {
    %c0 = arith.constant 0 : index
    %c0_0 = arith.constant 0 : index
    %0 = vector.load %arg1[%c0, %c0_0] : memref<2x9216xbf16, #tpu.memory_space<vmem>>, vector<2x9216xbf16>
    %c0_1 = arith.constant 0 : index
    %c0_2 = arith.constant 0 : index
    %1 = vector.load %arg2[%c0_1, %c0_2] : memref<9216x128xbf16, #tpu.memory_space<vmem>>, vector<9216x128xbf16>
    %cst = arith.constant dense<0.000000e+00> : vector<2x128xf32>
    %2 = tpu.matmul %0, %1, %cst {dimension_numbers = #tpu.dot_dimension_numbers<[1], [0], [0], [1], [0, 0, 1, 1], [], []>} : vector<2x9216xbf16>, vector<9216x128xbf16>, vector<2x128xf32> -> vector<2x128xf32>
    %c0_3 = arith.constant 0 : index
    %c0_4 = arith.constant 0 : index
    %3 = vector.load %arg3[%c0_3, %c0_4] : memref<1x128xf32, #tpu.memory_space<vmem>>, vector<1x128xf32>
    %4 = vector.broadcast %3 : vector<1x128xf32> to vector<2x128xf32>
    %5 = arith.addf %2, %4 : vector<2x128xf32>
    %cst_5 = arith.constant 0.000000e+00 : f32
    %6 = vector.broadcast %cst_5 : f32 to vector<2x128xf32>
    %7 = arith.maximumf %5, %6 : vector<2x128xf32>
    %8 = arith.truncf %7 : vector<2x128xf32> to vector<2x128xbf16>
    %c0_6 = arith.constant 0 : index
    %c0_7 = arith.constant 0 : index
    %9 = vector.load %arg4[%c0_6, %c0_7] : memref<128x10xbf16, #tpu.memory_space<vmem>>, vector<128x10xbf16>
    %cst_8 = arith.constant dense<0.000000e+00> : vector<2x10xf32>
    %10 = tpu.matmul %8, %9, %cst_8 {dimension_numbers = #tpu.dot_dimension_numbers<[1], [0], [0], [1], [0, 0, 1, 1], [], []>} : vector<2x128xbf16>, vector<128x10xbf16>, vector<2x10xf32> -> vector<2x10xf32>
    %c0_9 = arith.constant 0 : index
    %c0_10 = arith.constant 0 : index
    %11 = vector.load %arg5[%c0_9, %c0_10] : memref<1x10xf32, #tpu.memory_space<vmem>>, vector<1x10xf32>
    %12 = vector.broadcast %11 : vector<1x10xf32> to vector<2x10xf32>
    %13 = arith.addf %10, %12 : vector<2x10xf32>
    %c0_11 = arith.constant 0 : index
    %c0_12 = arith.constant 0 : index
    %14 = vector.load %arg6[%c0_11, %c0_12] : memref<2x10xf32, #tpu.memory_space<vmem>>, vector<2x10xf32>
    tpu.vector_store %arg6[%c0_11, %c0_12], %13 {strides = array<i32>} : memref<2x10xf32, #tpu.memory_space<vmem>>, vector<2x10xf32>,
    return
  }
  func.func @transform_0(%arg0: i32) -> (i32, i32) {
    %c0_i32 = arith.constant 0 : i32
    %c0_i32_0 = arith.constant 0 : i32
    return %arg0, %c0_i32 : i32, i32
  }
  func.func @transform_1(%arg0: i32) -> (i32, i32) {
    %c0_i32 = arith.constant 0 : i32
    %c0_i32_0 = arith.constant 0 : i32
    %c0_i32_1 = arith.constant 0 : i32
    return %c0_i32, %c0_i32_0 : i32, i32
  }
  func.func @transform_2(%arg0: i32) -> (i32, i32) {
    %c0_i32 = arith.constant 0 : i32
    %c0_i32_0 = arith.constant 0 : i32
    %c0_i32_1 = arith.constant 0 : i32
    return %c0_i32, %c0_i32_0 : i32, i32
  }
  func.func @transform_3(%arg0: i32) -> (i32, i32) {
    %c0_i32 = arith.constant 0 : i32
    %c0_i32_0 = arith.constant 0 : i32
    %c0_i32_1 = arith.constant 0 : i32
    return %c0_i32, %c0_i32_0 : i32, i32
  }
  func.func @transform_4(%arg0: i32) -> (i32, i32) {
    %c0_i32 = arith.constant 0 : i32
    %c0_i32_0 = arith.constant 0 : i32
    %c0_i32_1 = arith.constant 0 : i32
    return %c0_i32, %c0_i32_0 : i32, i32
  }
  func.func @transform_5(%arg0: i32) -> (i32, i32) {
    %c0_i32 = arith.constant 0 : i32
    %c0_i32_0 = arith.constant 0 : i32
    return %arg0, %c0_i32 : i32, i32
  }
}

</mosaic_0001>

<bundles_post_ra>
// kernel: cnn_forward.3
= control target key start
LH: loop header
LB: loop body
LE: loop exit
PB: predicated region body
PF: predicated region fallthrough
CT: control target
= control target key end

     0   :  { %8 = vsyncpa [#allocation3], 0  ;;  %s3642_s0 = inlined_call_operand.vmem [shape: bf16[1352,16], index: 0, kind: input, shape index: {}]   ;;  %s3643_s1 = inlined_call_operand.hbm [shape: bf16[16,32], index: 1, kind: input, shape index: {}]   ;;  %s3644_s2 = inlined_call_operand.hbm [shape: f32[1,32], index: 2, kind: input, shape index: {}]   ;;  %s3645_s3 = inlined_call_operand.vmem [shape: bf16[1352,32], index: 3, kind: output, shape index: {}]  }
   0x1   :  { %s16_s14 = sshll.u32 %s3643_s1, 4  ;;  %s17_s14 = int_to_ptr.hbm [resolvable:$true] %s16_s14 }
   0x2   :  { %9 = vsyncpa [#allocation5], 0  ;;  %s2423_s15 = smov [#allocation2]   ;;  %s30_s19 = sshll.u32 %s3644_s2, 4  ;;  %s31_s19 = int_to_ptr.hbm [resolvable:$true] %s30_s19 }
   0x3   :  { %s18_s16 = sshll.u32 %s2423_s15, 4  ;;  %s2424_s20 = smov 64   ;;  %s19_s16 = int_to_ptr.vmem [resolvable:$true] %s18_s16 }
   0x4   :  { %s2425_s21 = smov 4   ;;  %s2426_s22 = smov [#allocation4]  }
   0x5   :  { %24 = dma.hbm_to_vmem [thread:$0]  %s17_s14, 128, %s19_s16, [#allocation3], %s2424_s20, %s2424_s20, %s2425_s21  }
   0x6   :  { %s32_s23 = sshll.u32 %s2426_s22, 4  ;;  %s33_s23 = int_to_ptr.vmem [resolvable:$true] %s32_s23 }
   0x7   :  { %35 = dma.hbm_to_vmem [thread:$0]  %s31_s19, 16, %s33_s23, [#allocation5]  }
   0x8   :  { %2419 = dma.done.wait [#allocation3], 128  }
   0x9   :  { %2420 = vsyncadd [#allocation3], 4294967168 }
   0xa   :  { %2421 = dma.done.wait [#allocation5], 16  }
   0xb   :  { %2422 = vsyncadd [#allocation5], 4294967280  ;;  %v2361_v0 = vld [vmem:[#allocation2] sm:$0xff]  ;;  %v2299_v2 = vld [vmem:[%s3642_s0 + $0xb0] sm:$0xff]  ;;  %vm649_vm0 = vcmask 130048   ;;  %vm1676_vm1 = vcmask 257024  }
   0xc   :  { %v2277_v1 = vld [vmem:[%s3642_s0] sm:$0xff]  ;;  %912 = vmatpush.bf16.msra.mxu0 %v2361_v0  ;;  %2362 = vmatpush.bf16.msra.mxu1 %v2361_v0  ;;  %v2343_v4 = vld [vmem:[%s3642_s0 + $0x210] sm:$0xff]  ;;  %v2278_v5 = vld [vmem:[%s3642_s0 + $0x8] sm:$0xff] }
   0xd   :  { %v2321_v3 = vld [vmem:[%s3642_s0 + $0x160] sm:$0xff]  ;;  %2363 = vmatpush.bf16.msra.mxu2 %v2361_v0  ;;  %2364 = vmatpush.bf16.msra.mxu3 %v2361_v0  ;;  %v2300_v6 = vld [vmem:[%s3642_s0 + $0xb8] sm:$0xff]  ;;  %v2322_v7 = vld [vmem:[%s3642_s0 + $0x168] sm:$0xff] }
   0xe   :  { %v2344_v8 = vld [vmem:[%s3642_s0 + $0x218] sm:$0xff]  ;;  %v2279_v9 = vld [vmem:[%s3642_s0 + $0x10] sm:$0xff]  ;;  %v2301_v10 = vld [vmem:[%s3642_s0 + $0xc0] sm:$0xff] }
   0xf   :  { %2192 = vmatmul.msk.bf16.vlgmr.msra.gmra.mxu0 %vm649_vm0, %v2277_v1  ;;  %2214 = vmatmul.msk.bf16.vlgmr.msra.gmra.mxu1 %vm649_vm0, %v2299_v2  ;;  %v2323_v11 = vld [vmem:[%s3642_s0 + $0x170] sm:$0xff]  ;;  %v2345_v12 = vld [vmem:[%s3642_s0 + $0x220] sm:$0xff]  ;;  %v2280_v13 = vld [vmem:[%s3642_s0 + $0x18] sm:$0xff] }
  0x10   :  { %2236 = vmatmul.msk.bf16.vlgmr.msra.gmra.mxu2 %vm649_vm0, %v2321_v3  ;;  %2258 = vmatmul.msk.bf16.vlgmr.msra.gmra.mxu3 %vm649_vm0, %v2343_v4  ;;  %v2302_v14 = vld [vmem:[%s3642_s0 + $0xc8] sm:$0xff]  ;;  %v2324_v15 = vld [vmem:[%s3642_s0 + $0x178] sm:$0xff]  ;;  %v2281_v17 = vld [vmem:[%s3642_s0 + $0x20] sm:$0xff] }
  0x11   :  { %v2346_v16 = vld [vmem:[%s3642_s0 + $0x228] sm:$0xff]  ;;  %v2303_v18 = vld [vmem:[%s3642_s0 + $0xd0] sm:$0xff]  ;;  %v2325_v19 = vld [vmem:[%s3642_s0 + $0x180] sm:$0xff] }
  0x12   :  { %v2347_v20 = vld [vmem:[%s3642_s0 + $0x230] sm:$0xff]  ;;  %v2282_v21 = vld [vmem:[%s3642_s0 + $0x28] sm:$0xff]  ;;  %v2304_v22 = vld [vmem:[%s3642_s0 + $0xd8] sm:$0xff] }
  0x13   :  { %v2326_v23 = vld [vmem:[%s3642_s0 + $0x188] sm:$0xff]  ;;  %v2283_v24 = vld [vmem:[%s3642_s0 + $0x30] sm:$0xff]  ;;  %v2305_v25 = vld [vmem:[%s3642_s0 + $0xe0] sm:$0xff] }
  0x14   :  { %v2327_v26 = vld [vmem:[%s3642_s0 + $0x190] sm:$0xff]  ;;  %v2348_v27 = vld [vmem:[%s3642_s0 + $0x238] sm:$0xff]  ;;  %v2306_v29 = vld [vmem:[%s3642_s0 + $0xe8] sm:$0xff] }
  0x15   :  { %v2284_v28 = vld [vmem:[%s3642_s0 + $0x38] sm:$0xff]  ;;  %v2349_v31 = vld [vmem:[%s3642_s0 + $0x240] sm:$0xff]  ;;  %v2577_v32 = vld [vmem:[#allocation4] ss:$0 sm:$0xff] }
  0x16   :  { %v2328_v30 = vld [vmem:[%s3642_s0 + $0x198] sm:$0xff]  ;;  %v2285_v33 = vld [vmem:[%s3642_s0 + $0x40] sm:$0xff]  ;;  %v2307_v34 = vld [vmem:[%s3642_s0 + $0xf0] sm:$0xff] }
  0x17   :  { %v2329_v37 = vld [vmem:[%s3642_s0 + $0x1a0] sm:$0xff]  ;;  %v2350_v40 = vld [vmem:[%s3642_s0 + $0x248] sm:$0xff]  ;;  %v2308_v59 = vld [vmem:[%s3642_s0 + $0xf8] sm:$0xff] }
  0x18   :  { %v2286_v58 = vld [vmem:[%s3642_s0 + $0x48] sm:$0xff]  ;;  %v2351_v2 = vld [vmem:[%s3642_s0 + $0x250] sm:$0xff] }
  0x19   :  { %v2330_v63 = vld [vmem:[%s3642_s0 + $0x1a8] sm:$0xff] }
  0x1f   :  { %2193 = vmatmul.msk.bf16.gmra.mxu0 %vm649_vm0, %v2278_v5  ;;  %2215 = vmatmul.msk.bf16.gmra.mxu1 %vm649_vm0, %v2300_v6 }
  0x20   :  { %2237 = vmatmul.msk.bf16.gmra.mxu2 %vm649_vm0, %v2322_v7  ;;  %2259 = vmatmul.msk.bf16.gmra.mxu3 %vm649_vm0, %v2344_v8 }
  0x2f   :  { %2194 = vmatmul.msk.bf16.gmra.mxu0 %vm649_vm0, %v2279_v9  ;;  %2216 = vmatmul.msk.bf16.gmra.mxu1 %vm649_vm0, %v2301_v10 }
  0x30   :  { %2238 = vmatmul.msk.bf16.gmra.mxu2 %vm649_vm0, %v2323_v11  ;;  %2260 = vmatmul.msk.bf16.gmra.mxu3 %vm649_vm0, %v2345_v12 }
  0x3f   :  { %2195 = vmatmul.msk.bf16.gmra.mxu0 %vm649_vm0, %v2280_v13  ;;  %2217 = vmatmul.msk.bf16.gmra.mxu1 %vm649_vm0, %v2302_v14 }
  0x40   :  { %2239 = vmatmul.msk.bf16.gmra.mxu2 %vm649_vm0, %v2324_v15  ;;  %2261 = vmatmul.msk.bf16.gmra.mxu3 %vm649_vm0, %v2346_v16 }
  0x4f   :  { %2196 = vmatmul.msk.bf16.gmra.mxu0 %vm649_vm0, %v2281_v17  ;;  %2218 = vmatmul.msk.bf16.gmra.mxu1 %vm649_vm0, %v2303_v18 }
  0x50   :  { %2240 = vmatmul.msk.bf16.gmra.mxu2 %vm649_vm0, %v2325_v19  ;;  %2262 = vmatmul.msk.bf16.gmra.mxu3 %vm649_vm0, %v2347_v20 }
  0x5f   :  { %2197 = vmatmul.msk.bf16.gmra.mxu0 %vm649_vm0, %v2282_v21  ;;  %2219 = vmatmul.msk.bf16.gmra.mxu1 %vm649_vm0, %v2304_v22 }
  0x60   :  { %2241 = vmatmul.msk.bf16.gmra.mxu2 %vm649_vm0, %v2326_v23  ;;  %2263 = vmatmul.msk.bf16.gmra.mxu3 %vm649_vm0, %v2348_v27  ;;  %v2287_v27 = vld [vmem:[%s3642_s0 + $0x50] sm:$0xff] }
  0x6f   :  { %2198 = vmatmul.msk.bf16.gmra.mxu0 %vm649_vm0, %v2283_v24  ;;  %2220 = vmatmul.msk.bf16.gmra.mxu1 %vm649_vm0, %v2305_v25 }
  0x70   :  { %2242 = vmatmul.msk.bf16.gmra.mxu2 %vm649_vm0, %v2327_v26  ;;  %2264 = vmatmul.msk.bf16.gmra.mxu3 %vm649_vm0, %v2349_v31 }
  0x7f   :  { %2199 = vmatmul.msk.bf16.gmra.mxu0 %vm649_vm0, %v2284_v28  ;;  %2221 = vmatmul.msk.bf16.gmra.mxu1 %vm649_vm0, %v2306_v29  ;;  %v2309_v28 = vld [vmem:[%s3642_s0 + $0x100] sm:$0xff] }
  0x80   :  { %2243 = vmatmul.msk.bf16.gmra.mxu2 %vm649_vm0, %v2328_v30  ;;  %2265 = vmatmul.msk.bf16.gmra.mxu3 %vm649_vm0, %v2350_v40 }
  0x8c   :  { %v914_v35 = vpop.f32.mrf.mxu0  ;;  %v1024_v36 = vpop.f32.mrf.mxu1 }
  0x8d   :  { %v915_v38 = vadd.f32 %v2577_v32, %v914_v35  ;;  %v1025_v39 = vadd.f32 %v2577_v32, %v1024_v36 }
  0x8f   :  { %v1338_v41 = vmax.f32 %v915_v38, 0.0  ;;  %v1382_v42 = vmax.f32 %v1025_v39, 0.0  ;;  %2200 = vmatmul.msk.bf16.gmra.mxu0 %vm649_vm0, %v2285_v33  ;;  %2222 = vmatmul.msk.bf16.gmra.mxu1 %vm649_vm0, %v2307_v34  ;;  %v2331_v34 = vld [vmem:[%s3642_s0 + $0x1b0] sm:$0xff]  ;;  %v2352_v38 = vld [vmem:[%s3642_s0 + $0x258] sm:$0xff] }
  0x90   :  { %2244 = vmatmul.msk.bf16.gmra.mxu2 %vm649_vm0, %v2329_v37  ;;  %2266 = vmatmul.msk.bf16.gmra.mxu3 %vm649_vm0, %v2351_v2 }
  0x91   :  { %v1507_v43 = vpack.c.bf16 %v1338_v41, %v1338_v41  ;;  %v1551_v44 = vpack.c.bf16 %v1382_v42, %v1382_v42 }
  0x93   :  { %1677 = vst.msk [vmem:[%s3645_s3] sm:$0xf] %vm1676_vm1, %v1507_v43  ;;  %v1134_v45 = vpop.f32.mrf.mxu2  ;;  %v1244_v9 = vpop.f32.mrf.mxu3 }
  0x94   :  { %1721 = vst.msk [vmem:[%s3645_s3 + $0xb0] sm:$0xf] %vm1676_vm1, %v1551_v44  ;;  %v1135_v46 = vadd.f32 %v2577_v32, %v1134_v45  ;;  %v916_v47 = vpop.f32.mrf.mxu0  ;;  %v1026_v48 = vpop.f32.mrf.mxu1  ;;  %v1245_v14 = vadd.f32 %v2577_v32, %v1244_v9 }
  0x95   :  { %v917_v49 = vadd.f32 %v2577_v32, %v916_v47  ;;  %v1027_v50 = vadd.f32 %v2577_v32, %v1026_v48 }
  0x96   :  { %v1426_v51 = vmax.f32 %v1135_v46, 0.0  ;;  %v1470_v18 = vmax.f32 %v1245_v14, 0.0 }
  0x97   :  { %v1339_v52 = vmax.f32 %v917_v49, 0.0  ;;  %v1383_v53 = vmax.f32 %v1027_v50, 0.0 }
  0x98   :  { %v1595_v54 = vpack.c.bf16 %v1426_v51, %v1426_v51  ;;  %v1639_v24 = vpack.c.bf16 %v1470_v18, %v1470_v18 }
  0x99   :  { %v1508_v55 = vpack.c.bf16 %v1339_v52, %v1339_v52  ;;  %v1552_v56 = vpack.c.bf16 %v1383_v53, %v1383_v53 }
  0x9a   :  { %1765 = vst.msk [vmem:[%s3645_s3 + $0x160] sm:$0xf] %vm1676_vm1, %v1595_v54 }
  0x9b   :  { %1678 = vst.msk [vmem:[%s3645_s3 + $0x4] sm:$0xf] %vm1676_vm1, %v1508_v55  ;;  %v1136_v57 = vpop.f32.mrf.mxu2  ;;  %v1246_v25 = vpop.f32.mrf.mxu3 }
  0x9c   :  { %1722 = vst.msk [vmem:[%s3645_s3 + $0xb4] sm:$0xf] %vm1676_vm1, %v1552_v56  ;;  %v1137_v60 = vadd.f32 %v2577_v32, %v1136_v57  ;;  %v919_v61 = vpop.f32.mrf.mxu0  ;;  %v1029_v62 = vpop.f32.mrf.mxu1  ;;  %v1247_v29 = vadd.f32 %v2577_v32, %v1246_v25 }
  0x9d   :  { %v920_v0 = vadd.f32 %v2577_v32, %v919_v61  ;;  %v1030_v1 = vadd.f32 %v2577_v32, %v1029_v62  ;;  %1809 = vst.msk [vmem:[%s3645_s3 + $0x210] sm:$0xf] %vm1676_vm1, %v1639_v24 }
  0x9e   :  { %v1427_v3 = vmax.f32 %v1137_v60, 0.0  ;;  %v1471_v37 = vmax.f32 %v1247_v29, 0.0 }
  0x9f   :  { %v1340_v4 = vmax.f32 %v920_v0, 0.0  ;;  %v1384_v5 = vmax.f32 %v1030_v1, 0.0  ;;  %2201 = vmatmul.msk.bf16.gmra.mxu0 %vm649_vm0, %v2286_v58  ;;  %2223 = vmatmul.msk.bf16.gmra.mxu1 %vm649_vm0, %v2308_v59  ;;  %v2288_v0 = vld [vmem:[%s3642_s0 + $0x58] sm:$0xff]  ;;  %v2310_v1 = vld [vmem:[%s3642_s0 + $0x108] sm:$0xff] }
  0xa0   :  { %v1596_v6 = vpack.c.bf16 %v1427_v3, %v1427_v3  ;;  %2245 = vmatmul.msk.bf16.gmra.mxu2 %vm649_vm0, %v2330_v63  ;;  %v1640_v42 = vpack.c.bf16 %v1471_v37, %v1471_v37  ;;  %2267 = vmatmul.msk.bf16.gmra.mxu3 %vm649_vm0, %v2352_v38  ;;  %v2289_v37 = vld [vmem:[%s3642_s0 + $0x60] sm:$0xff]  ;;  %v2311_v38 = vld [vmem:[%s3642_s0 + $0x110] sm:$0xff] }
  0xa1   :  { %v1509_v7 = vpack.c.bf16 %v1340_v4, %v1340_v4  ;;  %v1553_v8 = vpack.c.bf16 %v1384_v5, %v1384_v5 }
  0xa2   :  { %1766 = vst.msk [vmem:[%s3645_s3 + $0x164] sm:$0xf] %vm1676_vm1, %v1596_v6  ;;  %v2332_v6 = vld [vmem:[%s3642_s0 + $0x1b8] sm:$0xff] }
  0xa3   :  { %1679 = vst.msk [vmem:[%s3645_s3 + $0x8] sm:$0xf] %vm1676_vm1, %v1509_v7  ;;  %v1139_v10 = vpop.f32.mrf.mxu2  ;;  %v1249_v46 = vpop.f32.mrf.mxu3 }
  0xa4   :  { %1723 = vst.msk [vmem:[%s3645_s3 + $0xb8] sm:$0xf] %vm1676_vm1, %v1553_v8  ;;  %v1140_v11 = vadd.f32 %v2577_v32, %v1139_v10  ;;  %v921_v12 = vpop.f32.mrf.mxu0  ;;  %v1031_v13 = vpop.f32.mrf.mxu1  ;;  %v1250_v51 = vadd.f32 %v2577_v32, %v1249_v46  ;;  %v2353_v10 = vld [vmem:[%s3642_s0 + $0x260] sm:$0xff] }
  0xa5   :  { %v922_v15 = vadd.f32 %v2577_v32, %v921_v12  ;;  %v1032_v16 = vadd.f32 %v2577_v32, %v1031_v13  ;;  %1810 = vst.msk [vmem:[%s3645_s3 + $0x214] sm:$0xf] %vm1676_vm1, %v1640_v42 }
  0xa6   :  { %v1428_v17 = vmax.f32 %v1140_v11, 0.0  ;;  %v1472_v55 = vmax.f32 %v1250_v51, 0.0 }
  0xa7   :  { %v1341_v19 = vmax.f32 %v922_v15, 0.0  ;;  %v1385_v20 = vmax.f32 %v1032_v16, 0.0 }
  0xa8   :  { %v1597_v21 = vpack.c.bf16 %v1428_v17, %v1428_v17  ;;  %v1641_v61 = vpack.c.bf16 %v1472_v55, %v1472_v55 }
  0xa9   :  { %v1510_v22 = vpack.c.bf16 %v1341_v19, %v1341_v19  ;;  %v1554_v23 = vpack.c.bf16 %v1385_v20, %v1385_v20 }
  0xaa   :  { %1767 = vst.msk [vmem:[%s3645_s3 + $0x168] sm:$0xf] %vm1676_vm1, %v1597_v21 }
  0xab   :  { %1680 = vst.msk [vmem:[%s3645_s3 + $0xc] sm:$0xf] %vm1676_vm1, %v1510_v22  ;;  %v1141_v26 = vpop.f32.mrf.mxu2  ;;  %v1251_v62 = vpop.f32.mrf.mxu3 }
  0xac   :  { %1724 = vst.msk [vmem:[%s3645_s3 + $0xbc] sm:$0xf] %vm1676_vm1, %v1554_v23  ;;  %v1142_v30 = vadd.f32 %v2577_v32, %v1141_v26  ;;  %v924_v31 = vpop.f32.mrf.mxu0  ;;  %v1034_v33 = vpop.f32.mrf.mxu1  ;;  %v1252_v2 = vadd.f32 %v2577_v32, %v1251_v62 }
  0xad   :  { %v925_v35 = vadd.f32 %v2577_v32, %v924_v31  ;;  %v1035_v36 = vadd.f32 %v2577_v32, %v1034_v33  ;;  %1811 = vst.msk [vmem:[%s3645_s3 + $0x218] sm:$0xf] %vm1676_vm1, %v1641_v61 }
  0xae   :  { %v1429_v39 = vmax.f32 %v1142_v30, 0.0  ;;  %v1473_v9 = vmax.f32 %v1252_v2, 0.0 }
  0xaf   :  { %v1342_v40 = vmax.f32 %v925_v35, 0.0  ;;  %v1386_v41 = vmax.f32 %v1035_v36, 0.0  ;;  %2202 = vmatmul.msk.bf16.gmra.mxu0 %vm649_vm0, %v2287_v27  ;;  %2224 = vmatmul.msk.bf16.gmra.mxu1 %vm649_vm0, %v2309_v28 }
  0xb0   :  { %v1598_v43 = vpack.c.bf16 %v1429_v39, %v1429_v39  ;;  %2246 = vmatmul.msk.bf16.gmra.mxu2 %vm649_vm0, %v2331_v34  ;;  %v1642_v14 = vpack.c.bf16 %v1473_v9, %v1473_v9  ;;  %2268 = vmatmul.msk.bf16.gmra.mxu3 %vm649_vm0, %v2353_v10  ;;  %v2290_v9 = vld [vmem:[%s3642_s0 + $0x68] sm:$0xff]  ;;  %v2312_v10 = vld [vmem:[%s3642_s0 + $0x118] sm:$0xff] }
  0xb1   :  { %v1511_v44 = vpack.c.bf16 %v1342_v40, %v1342_v40  ;;  %v1555_v45 = vpack.c.bf16 %v1386_v41, %v1386_v41 }
  0xb2   :  { %1768 = vst.msk [vmem:[%s3645_s3 + $0x16c] sm:$0xf] %vm1676_vm1, %v1598_v43  ;;  %v2333_v43 = vld [vmem:[%s3642_s0 + $0x1c0] sm:$0xff] }
  0xb3   :  { %1681 = vst.msk [vmem:[%s3645_s3 + $0x10] sm:$0xf] %vm1676_vm1, %v1511_v44  ;;  %v1144_v47 = vpop.f32.mrf.mxu2  ;;  %v1254_v18 = vpop.f32.mrf.mxu3 }
  0xb4   :  { %1725 = vst.msk [vmem:[%s3645_s3 + $0xc0] sm:$0xf] %vm1676_vm1, %v1555_v45  ;;  %v1145_v48 = vadd.f32 %v2577_v32, %v1144_v47  ;;  %v926_v49 = vpop.f32.mrf.mxu0  ;;  %v1036_v50 = vpop.f32.mrf.mxu1  ;;  %v1255_v23 = vadd.f32 %v2577_v32, %v1254_v18  ;;  %v2354_v47 = vld [vmem:[%s3642_s0 + $0x268] sm:$0xff] }
  0xb5   :  { %v927_v52 = vadd.f32 %v2577_v32, %v926_v49  ;;  %v1037_v53 = vadd.f32 %v2577_v32, %v1036_v50  ;;  %1812 = vst.msk [vmem:[%s3645_s3 + $0x21c] sm:$0xf] %vm1676_vm1, %v1642_v14 }
  0xb6   :  { %v1430_v54 = vmax.f32 %v1145_v48, 0.0  ;;  %v1474_v27 = vmax.f32 %v1255_v23, 0.0 }
  0xb7   :  { %v1343_v56 = vmax.f32 %v927_v52, 0.0  ;;  %v1387_v57 = vmax.f32 %v1037_v53, 0.0 }
  0xb8   :  { %v1599_v58 = vpack.c.bf16 %v1430_v54, %v1430_v54  ;;  %v1643_v34 = vpack.c.bf16 %v1474_v27, %v1474_v27 }
  0xb9   :  { %v1512_v59 = vpack.c.bf16 %v1343_v56, %v1343_v56  ;;  %v1556_v60 = vpack.c.bf16 %v1387_v57, %v1387_v57 }
  0xba   :  { %1769 = vst.msk [vmem:[%s3645_s3 + $0x170] sm:$0xf] %vm1676_vm1, %v1599_v58 }
  0xbb   :  { %1682 = vst.msk [vmem:[%s3645_s3 + $0x14] sm:$0xf] %vm1676_vm1, %v1512_v59  ;;  %v1146_v63 = vpop.f32.mrf.mxu2  ;;  %v1256_v35 = vpop.f32.mrf.mxu3 }
  0xbc   :  { %1726 = vst.msk [vmem:[%s3645_s3 + $0xc4] sm:$0xf] %vm1676_vm1, %v1556_v60  ;;  %v1147_v3 = vadd.f32 %v2577_v32, %v1146_v63  ;;  %v929_v4 = vpop.f32.mrf.mxu0  ;;  %v1039_v5 = vpop.f32.mrf.mxu1  ;;  %v1257_v39 = vadd.f32 %v2577_v32, %v1256_v35 }
  0xbd   :  { %v930_v7 = vadd.f32 %v2577_v32, %v929_v4  ;;  %v1040_v8 = vadd.f32 %v2577_v32, %v1039_v5  ;;  %1813 = vst.msk [vmem:[%s3645_s3 + $0x220] sm:$0xf] %vm1676_vm1, %v1643_v34 }
  0xbe   :  { %v1431_v11 = vmax.f32 %v1147_v3, 0.0  ;;  %v1475_v46 = vmax.f32 %v1257_v39, 0.0 }
  0xbf   :  { %v1344_v12 = vmax.f32 %v930_v7, 0.0  ;;  %v1388_v13 = vmax.f32 %v1040_v8, 0.0  ;;  %2203 = vmatmul.msk.bf16.gmra.mxu0 %vm649_vm0, %v2288_v0  ;;  %2225 = vmatmul.msk.bf16.gmra.mxu1 %vm649_vm0, %v2310_v1 }
  0xc0   :  { %v1600_v15 = vpack.c.bf16 %v1431_v11, %v1431_v11  ;;  %2247 = vmatmul.msk.bf16.gmra.mxu2 %vm649_vm0, %v2332_v6  ;;  %v1644_v51 = vpack.c.bf16 %v1475_v46, %v1475_v46  ;;  %2269 = vmatmul.msk.bf16.gmra.mxu3 %vm649_vm0, %v2354_v47  ;;  %v2291_v46 = vld [vmem:[%s3642_s0 + $0x70] sm:$0xff]  ;;  %v2313_v47 = vld [vmem:[%s3642_s0 + $0x120] sm:$0xff] }
  0xc1   :  { %v1513_v16 = vpack.c.bf16 %v1344_v12, %v1344_v12  ;;  %v1557_v17 = vpack.c.bf16 %v1388_v13, %v1388_v13 }
  0xc2   :  { %1770 = vst.msk [vmem:[%s3645_s3 + $0x174] sm:$0xf] %vm1676_vm1, %v1600_v15  ;;  %v2334_v15 = vld [vmem:[%s3642_s0 + $0x1c8] sm:$0xff] }
  0xc3   :  { %1683 = vst.msk [vmem:[%s3645_s3 + $0x18] sm:$0xf] %vm1676_vm1, %v1513_v16  ;;  %v1149_v19 = vpop.f32.mrf.mxu2  ;;  %v1259_v55 = vpop.f32.mrf.mxu3 }
  0xc4   :  { %1727 = vst.msk [vmem:[%s3645_s3 + $0xc8] sm:$0xf] %vm1676_vm1, %v1557_v17  ;;  %v1150_v20 = vadd.f32 %v2577_v32, %v1149_v19  ;;  %v931_v21 = vpop.f32.mrf.mxu0  ;;  %v1041_v22 = vpop.f32.mrf.mxu1  ;;  %v1260_v60 = vadd.f32 %v2577_v32, %v1259_v55  ;;  %v2355_v19 = vld [vmem:[%s3642_s0 + $0x270] sm:$0xff] }
  0xc5   :  { %v932_v24 = vadd.f32 %v2577_v32, %v931_v21  ;;  %v1042_v25 = vadd.f32 %v2577_v32, %v1041_v22  ;;  %1814 = vst.msk [vmem:[%s3645_s3 + $0x224] sm:$0xf] %vm1676_vm1, %v1644_v51 }
  0xc6   :  { %v1432_v26 = vmax.f32 %v1150_v20, 0.0  ;;  %v1476_v0 = vmax.f32 %v1260_v60, 0.0 }
  0xc7   :  { %v1345_v28 = vmax.f32 %v932_v24, 0.0  ;;  %v1389_v29 = vmax.f32 %v1042_v25, 0.0 }
  0xc8   :  { %v1601_v30 = vpack.c.bf16 %v1432_v26, %v1432_v26  ;;  %v1645_v6 = vpack.c.bf16 %v1476_v0, %v1476_v0 }
  0xc9   :  { %v1514_v31 = vpack.c.bf16 %v1345_v28, %v1345_v28  ;;  %v1558_v33 = vpack.c.bf16 %v1389_v29, %v1389_v29 }
  0xca   :  { %1771 = vst.msk [vmem:[%s3645_s3 + $0x178] sm:$0xf] %vm1676_vm1, %v1601_v30 }
  0xcb   :  { %1684 = vst.msk [vmem:[%s3645_s3 + $0x1c] sm:$0xf] %vm1676_vm1, %v1514_v31  ;;  %v1151_v36 = vpop.f32.mrf.mxu2  ;;  %v1261_v7 = vpop.f32.mrf.mxu3 }
  0xcc   :  { %1728 = vst.msk [vmem:[%s3645_s3 + $0xcc] sm:$0xf] %vm1676_vm1, %v1558_v33  ;;  %v1152_v40 = vadd.f32 %v2577_v32, %v1151_v36  ;;  %v934_v41 = vpop.f32.mrf.mxu0  ;;  %v1044_v42 = vpop.f32.mrf.mxu1  ;;  %v1262_v11 = vadd.f32 %v2577_v32, %v1261_v7 }
  0xcd   :  { %v935_v44 = vadd.f32 %v2577_v32, %v934_v41  ;;  %v1045_v45 = vadd.f32 %v2577_v32, %v1044_v42  ;;  %1815 = vst.msk [vmem:[%s3645_s3 + $0x228] sm:$0xf] %vm1676_vm1, %v1645_v6 }
  0xce   :  { %v1433_v48 = vmax.f32 %v1152_v40, 0.0  ;;  %v1477_v18 = vmax.f32 %v1262_v11, 0.0 }
  0xcf   :  { %v1346_v49 = vmax.f32 %v935_v44, 0.0  ;;  %v1390_v50 = vmax.f32 %v1045_v45, 0.0  ;;  %2204 = vmatmul.msk.bf16.gmra.mxu0 %vm649_vm0, %v2289_v37  ;;  %2226 = vmatmul.msk.bf16.gmra.mxu1 %vm649_vm0, %v2311_v38 }
  0xd0   :  { %v1602_v52 = vpack.c.bf16 %v1433_v48, %v1433_v48  ;;  %2248 = vmatmul.msk.bf16.gmra.mxu2 %vm649_vm0, %v2333_v43  ;;  %v1646_v23 = vpack.c.bf16 %v1477_v18, %v1477_v18  ;;  %2270 = vmatmul.msk.bf16.gmra.mxu3 %vm649_vm0, %v2355_v19  ;;  %v2314_v18 = vld [vmem:[%s3642_s0 + $0x128] sm:$0xff] }
  0xd1   :  { %v1515_v53 = vpack.c.bf16 %v1346_v49, %v1346_v49  ;;  %v1559_v54 = vpack.c.bf16 %v1390_v50, %v1390_v50 }
  0xd2   :  { %1772 = vst.msk [vmem:[%s3645_s3 + $0x17c] sm:$0xf] %vm1676_vm1, %v1602_v52  ;;  %v2335_v52 = vld [vmem:[%s3642_s0 + $0x1d0] sm:$0xff] }
  0xd3   :  { %1685 = vst.msk [vmem:[%s3645_s3 + $0x20] sm:$0xf] %vm1676_vm1, %v1515_v53  ;;  %v1154_v56 = vpop.f32.mrf.mxu2  ;;  %v1264_v27 = vpop.f32.mrf.mxu3 }
  0xd4   :  { %1729 = vst.msk [vmem:[%s3645_s3 + $0xd0] sm:$0xf] %vm1676_vm1, %v1559_v54  ;;  %v1155_v57 = vadd.f32 %v2577_v32, %v1154_v56  ;;  %v936_v58 = vpop.f32.mrf.mxu0  ;;  %v1046_v59 = vpop.f32.mrf.mxu1  ;;  %v1265_v33 = vadd.f32 %v2577_v32, %v1264_v27  ;;  %v2356_v56 = vld [vmem:[%s3642_s0 + $0x278] sm:$0xff]  ;;  %v2357_v27 = vld [vmem:[%s3642_s0 + $0x280] sm:$0xff] }
  0xd5   :  { %v937_v61 = vadd.f32 %v2577_v32, %v936_v58  ;;  %v1047_v62 = vadd.f32 %v2577_v32, %v1046_v59  ;;  %1816 = vst.msk [vmem:[%s3645_s3 + $0x22c] sm:$0xf] %vm1676_vm1, %v1646_v23  ;;  %v2336_v23 = vld [vmem:[%s3642_s0 + $0x1d8] sm:$0xff] }
  0xd6   :  { %v1434_v63 = vmax.f32 %v1155_v57, 0.0  ;;  %v1478_v37 = vmax.f32 %v1265_v33, 0.0 }
  0xd7   :  { %v1347_v1 = vmax.f32 %v937_v61, 0.0  ;;  %v1391_v2 = vmax.f32 %v1047_v62, 0.0 }
  0xd8   :  { %v1603_v3 = vpack.c.bf16 %v1434_v63, %v1434_v63  ;;  %v1647_v43 = vpack.c.bf16 %v1478_v37, %v1478_v37 }
  0xd9   :  { %v1516_v4 = vpack.c.bf16 %v1347_v1, %v1347_v1  ;;  %v1560_v5 = vpack.c.bf16 %v1391_v2, %v1391_v2 }
  0xda   :  { %1773 = vst.msk [vmem:[%s3645_s3 + $0x180] sm:$0xf] %vm1676_vm1, %v1603_v3 }
  0xdb   :  { %1686 = vst.msk [vmem:[%s3645_s3 + $0x24] sm:$0xf] %vm1676_vm1, %v1516_v4  ;;  %v1156_v8 = vpop.f32.mrf.mxu2  ;;  %v1266_v44 = vpop.f32.mrf.mxu3 }
  0xdc   :  { %1730 = vst.msk [vmem:[%s3645_s3 + $0xd4] sm:$0xf] %vm1676_vm1, %v1560_v5  ;;  %v1157_v12 = vadd.f32 %v2577_v32, %v1156_v8  ;;  %v939_v13 = vpop.f32.mrf.mxu0  ;;  %v1049_v14 = vpop.f32.mrf.mxu1  ;;  %v1267_v48 = vadd.f32 %v2577_v32, %v1266_v44 }
  0xdd   :  { %v940_v16 = vadd.f32 %v2577_v32, %v939_v13  ;;  %v1050_v17 = vadd.f32 %v2577_v32, %v1049_v14  ;;  %1817 = vst.msk [vmem:[%s3645_s3 + $0x230] sm:$0xf] %vm1676_vm1, %v1647_v43 }
  0xde   :  { %v1435_v20 = vmax.f32 %v1157_v12, 0.0  ;;  %v1479_v55 = vmax.f32 %v1267_v48, 0.0 }
  0xdf   :  { %v1348_v21 = vmax.f32 %v940_v16, 0.0  ;;  %v1392_v22 = vmax.f32 %v1050_v17, 0.0  ;;  %2205 = vmatmul.msk.bf16.gmra.mxu0 %vm649_vm0, %v2290_v9  ;;  %2227 = vmatmul.msk.bf16.gmra.mxu1 %vm649_vm0, %v2312_v10  ;;  %v2292_v17 = vld [vmem:[%s3642_s0 + $0x78] sm:$0xff] }
  0xe0   :  { %v1604_v24 = vpack.c.bf16 %v1435_v20, %v1435_v20  ;;  %2249 = vmatmul.msk.bf16.gmra.mxu2 %vm649_vm0, %v2334_v15  ;;  %v1648_v60 = vpack.c.bf16 %v1479_v55, %v1479_v55  ;;  %2271 = vmatmul.msk.bf16.gmra.mxu3 %vm649_vm0, %v2356_v56  ;;  %v2315_v55 = vld [vmem:[%s3642_s0 + $0x130] sm:$0xff] }
  0xe1   :  { %v1517_v25 = vpack.c.bf16 %v1348_v21, %v1348_v21  ;;  %v1561_v26 = vpack.c.bf16 %v1392_v22, %v1392_v22 }
  0xe2   :  { %1774 = vst.msk [vmem:[%s3645_s3 + $0x184] sm:$0xf] %vm1676_vm1, %v1604_v24 }
  0xe3   :  { %1687 = vst.msk [vmem:[%s3645_s3 + $0x28] sm:$0xf] %vm1676_vm1, %v1517_v25  ;;  %v1159_v28 = vpop.f32.mrf.mxu2  ;;  %v1269_v1 = vpop.f32.mrf.mxu3 }
  0xe4   :  { %1731 = vst.msk [vmem:[%s3645_s3 + $0xd8] sm:$0xf] %vm1676_vm1, %v1561_v26  ;;  %v1160_v29 = vadd.f32 %v2577_v32, %v1159_v28  ;;  %v941_v30 = vpop.f32.mrf.mxu0  ;;  %v1051_v31 = vpop.f32.mrf.mxu1  ;;  %v1270_v5 = vadd.f32 %v2577_v32, %v1269_v1 }
  0xe5   :  { %v942_v34 = vadd.f32 %v2577_v32, %v941_v30  ;;  %v1052_v35 = vadd.f32 %v2577_v32, %v1051_v31  ;;  %1818 = vst.msk [vmem:[%s3645_s3 + $0x234] sm:$0xf] %vm1676_vm1, %v1648_v60  ;;  %v2337_v60 = vld [vmem:[%s3642_s0 + $0x1e0] sm:$0xff] }
  0xe6   :  { %v1436_v36 = vmax.f32 %v1160_v29, 0.0  ;;  %v1480_v9 = vmax.f32 %v1270_v5, 0.0 }
  0xe7   :  { %v1349_v38 = vmax.f32 %v942_v34, 0.0  ;;  %v1393_v39 = vmax.f32 %v1052_v35, 0.0 }
  0xe8   :  { %v1605_v40 = vpack.c.bf16 %v1436_v36, %v1436_v36  ;;  %v1649_v15 = vpack.c.bf16 %v1480_v9, %v1480_v9 }
  0xe9   :  { %v1518_v41 = vpack.c.bf16 %v1349_v38, %v1349_v38  ;;  %v1562_v42 = vpack.c.bf16 %v1393_v39, %v1393_v39 }
  0xea   :  { %1775 = vst.msk [vmem:[%s3645_s3 + $0x188] sm:$0xf] %vm1676_vm1, %v1605_v40 }
  0xeb   :  { %1688 = vst.msk [vmem:[%s3645_s3 + $0x2c] sm:$0xf] %vm1676_vm1, %v1518_v41  ;;  %v1161_v45 = vpop.f32.mrf.mxu2  ;;  %v1271_v19 = vpop.f32.mrf.mxu3 }
  0xec   :  { %1732 = vst.msk [vmem:[%s3645_s3 + $0xdc] sm:$0xf] %vm1676_vm1, %v1562_v42  ;;  %v1162_v49 = vadd.f32 %v2577_v32, %v1161_v45  ;;  %v944_v50 = vpop.f32.mrf.mxu0  ;;  %v1054_v51 = vpop.f32.mrf.mxu1  ;;  %v1272_v24 = vadd.f32 %v2577_v32, %v1271_v19 }
  0xed   :  { %v945_v53 = vadd.f32 %v2577_v32, %v944_v50  ;;  %v1055_v54 = vadd.f32 %v2577_v32, %v1054_v51  ;;  %1819 = vst.msk [vmem:[%s3645_s3 + $0x238] sm:$0xf] %vm1676_vm1, %v1649_v15 }
  0xee   :  { %v1437_v57 = vmax.f32 %v1162_v49, 0.0  ;;  %v1481_v29 = vmax.f32 %v1272_v24, 0.0 }
  0xef   :  { %v1350_v58 = vmax.f32 %v945_v53, 0.0  ;;  %v1394_v59 = vmax.f32 %v1055_v54, 0.0  ;;  %2206 = vmatmul.msk.bf16.gmra.mxu0 %vm649_vm0, %v2291_v46  ;;  %2228 = vmatmul.msk.bf16.gmra.mxu1 %vm649_vm0, %v2313_v47  ;;  %v2293_v54 = vld [vmem:[%s3642_s0 + $0x80] sm:$0xff] }
  0xf0   :  { %v1606_v61 = vpack.c.bf16 %v1437_v57, %v1437_v57  ;;  %2250 = vmatmul.msk.bf16.gmra.mxu2 %vm649_vm0, %v2335_v52  ;;  %2272 = vmatmul.msk.bf16.gmra.mxu3 %vm649_vm0, %v2357_v27  ;;  %v1650_v36 = vpack.c.bf16 %v1481_v29, %v1481_v29  ;;  %v2316_v27 = vld [vmem:[%s3642_s0 + $0x138] sm:$0xff] }
  0xf1   :  { %v1519_v62 = vpack.c.bf16 %v1350_v58, %v1350_v58  ;;  %v1563_v63 = vpack.c.bf16 %v1394_v59, %v1394_v59 }
  0xf2   :  { %1776 = vst.msk [vmem:[%s3645_s3 + $0x18c] sm:$0xf] %vm1676_vm1, %v1606_v61 }
  0xf3   :  { %1689 = vst.msk [vmem:[%s3645_s3 + $0x30] sm:$0xf] %vm1676_vm1, %v1519_v62  ;;  %v1164_v0 = vpop.f32.mrf.mxu2  ;;  %v1274_v38 = vpop.f32.mrf.mxu3 }
  0xf4   :  { %1733 = vst.msk [vmem:[%s3645_s3 + $0xe0] sm:$0xf] %vm1676_vm1, %v1563_v63  ;;  %v1165_v2 = vadd.f32 %v2577_v32, %v1164_v0  ;;  %v946_v3 = vpop.f32.mrf.mxu0  ;;  %v1056_v4 = vpop.f32.mrf.mxu1  ;;  %v1275_v42 = vadd.f32 %v2577_v32, %v1274_v38  ;;  %v2358_v0 = vld [vmem:[%s3642_s0 + $0x288] sm:$0xff] }
  0xf5   :  { %v947_v6 = vadd.f32 %v2577_v32, %v946_v3  ;;  %v1057_v7 = vadd.f32 %v2577_v32, %v1056_v4  ;;  %1820 = vst.msk [vmem:[%s3645_s3 + $0x23c] sm:$0xf] %vm1676_vm1, %v1650_v36 }
  0xf6   :  { %v1438_v8 = vmax.f32 %v1165_v2, 0.0  ;;  %v1482_v46 = vmax.f32 %v1275_v42, 0.0 }
  0xf7   :  { %v1351_v10 = vmax.f32 %v947_v6, 0.0  ;;  %v1395_v11 = vmax.f32 %v1057_v7, 0.0 }
  0xf8   :  { %v1607_v12 = vpack.c.bf16 %v1438_v8, %v1438_v8  ;;  %v1651_v52 = vpack.c.bf16 %v1482_v46, %v1482_v46 }
  0xf9   :  { %v1520_v13 = vpack.c.bf16 %v1351_v10, %v1351_v10  ;;  %v1564_v14 = vpack.c.bf16 %v1395_v11, %v1395_v11 }
  0xfa   :  { %1777 = vst.msk [vmem:[%s3645_s3 + $0x190] sm:$0xf] %vm1676_vm1, %v1607_v12 }
  0xfb   :  { %1690 = vst.msk [vmem:[%s3645_s3 + $0x34] sm:$0xf] %vm1676_vm1, %v1520_v13  ;;  %v1166_v16 = vpop.f32.mrf.mxu2  ;;  %v1276_v56 = vpop.f32.mrf.mxu3 }
  0xfc   :  { %1734 = vst.msk [vmem:[%s3645_s3 + $0xe4] sm:$0xf] %vm1676_vm1, %v1564_v14  ;;  %v1167_v20 = vadd.f32 %v2577_v32, %v1166_v16  ;;  %v949_v21 = vpop.f32.mrf.mxu0  ;;  %v1059_v22 = vpop.f32.mrf.mxu1  ;;  %v1277_v61 = vadd.f32 %v2577_v32, %v1276_v56 }
  0xfd   :  { %v950_v25 = vadd.f32 %v2577_v32, %v949_v21  ;;  %v1060_v26 = vadd.f32 %v2577_v32, %v1059_v22  ;;  %1821 = vst.msk [vmem:[%s3645_s3 + $0x240] sm:$0xf] %vm1676_vm1, %v1651_v52 }
  0xfe   :  { %v1439_v28 = vmax.f32 %v1167_v20, 0.0  ;;  %v1483_v2 = vmax.f32 %v1277_v61, 0.0 }
  0xff   :  { %v1352_v30 = vmax.f32 %v950_v25, 0.0  ;;  %v1396_v31 = vmax.f32 %v1060_v26, 0.0  ;;  %2207 = vmatmul.msk.bf16.gmra.mxu0 %vm649_vm0, %v2292_v17  ;;  %2229 = vmatmul.msk.bf16.gmra.mxu1 %vm649_vm0, %v2314_v18  ;;  %v2294_v26 = vld [vmem:[%s3642_s0 + $0x88] sm:$0xff] }
 0x100   :  { %v1608_v33 = vpack.c.bf16 %v1439_v28, %v1439_v28  ;;  %2251 = vmatmul.msk.bf16.gmra.mxu2 %vm649_vm0, %v2336_v23  ;;  %2273 = vmatmul.msk.bf16.gmra.mxu3 %vm649_vm0, %v2358_v0  ;;  %v1652_v8 = vpack.c.bf16 %v1483_v2, %v1483_v2  ;;  %v2317_v0 = vld [vmem:[%s3642_s0 + $0x140] sm:$0xff] }
 0x101   :  { %v1521_v34 = vpack.c.bf16 %v1352_v30, %v1352_v30  ;;  %v1565_v35 = vpack.c.bf16 %v1396_v31, %v1396_v31 }
 0x102   :  { %1778 = vst.msk [vmem:[%s3645_s3 + $0x194] sm:$0xf] %vm1676_vm1, %v1608_v33  ;;  %v2338_v33 = vld [vmem:[%s3642_s0 + $0x1e8] sm:$0xff] }
 0x103   :  { %1691 = vst.msk [vmem:[%s3645_s3 + $0x38] sm:$0xf] %vm1676_vm1, %v1521_v34  ;;  %v1169_v37 = vpop.f32.mrf.mxu2  ;;  %v1279_v10 = vpop.f32.mrf.mxu3 }
 0x104   :  { %1735 = vst.msk [vmem:[%s3645_s3 + $0xe8] sm:$0xf] %vm1676_vm1, %v1565_v35  ;;  %v1170_v39 = vadd.f32 %v2577_v32, %v1169_v37  ;;  %v951_v40 = vpop.f32.mrf.mxu0  ;;  %v1061_v41 = vpop.f32.mrf.mxu1  ;;  %v1280_v14 = vadd.f32 %v2577_v32, %v1279_v10  ;;  %v2359_v37 = vld [vmem:[%s3642_s0 + $0x290] sm:$0xff] }
 0x105   :  { %v952_v43 = vadd.f32 %v2577_v32, %v951_v40  ;;  %v1062_v44 = vadd.f32 %v2577_v32, %v1061_v41  ;;  %1822 = vst.msk [vmem:[%s3645_s3 + $0x244] sm:$0xf] %vm1676_vm1, %v1652_v8 }
 0x106   :  { %v1440_v45 = vmax.f32 %v1170_v39, 0.0  ;;  %v1484_v18 = vmax.f32 %v1280_v14, 0.0 }
 0x107   :  { %v1353_v47 = vmax.f32 %v952_v43, 0.0  ;;  %v1397_v48 = vmax.f32 %v1062_v44, 0.0 }
 0x108   :  { %v1609_v49 = vpack.c.bf16 %v1440_v45, %v1440_v45  ;;  %v1653_v24 = vpack.c.bf16 %v1484_v18, %v1484_v18 }
 0x109   :  { %v1522_v50 = vpack.c.bf16 %v1353_v47, %v1353_v47  ;;  %v1566_v51 = vpack.c.bf16 %v1397_v48, %v1397_v48 }
 0x10a   :  { %1779 = vst.msk [vmem:[%s3645_s3 + $0x198] sm:$0xf] %vm1676_vm1, %v1609_v49 }
 0x10b   :  { %1692 = vst.msk [vmem:[%s3645_s3 + $0x3c] sm:$0xf] %vm1676_vm1, %v1522_v50  ;;  %v1171_v53 = vpop.f32.mrf.mxu2  ;;  %v1281_v28 = vpop.f32.mrf.mxu3 }
 0x10c   :  { %1736 = vst.msk [vmem:[%s3645_s3 + $0xec] sm:$0xf] %vm1676_vm1, %v1566_v51  ;;  %v1172_v57 = vadd.f32 %v2577_v32, %v1171_v53  ;;  %v954_v58 = vpop.f32.mrf.mxu0  ;;  %v1064_v59 = vpop.f32.mrf.mxu1  ;;  %v1282_v34 = vadd.f32 %v2577_v32, %v1281_v28 }
 0x10d   :  { %v955_v62 = vadd.f32 %v2577_v32, %v954_v58  ;;  %v1065_v63 = vadd.f32 %v2577_v32, %v1064_v59  ;;  %1823 = vst.msk [vmem:[%s3645_s3 + $0x248] sm:$0xf] %vm1676_vm1, %v1653_v24 }
 0x10e   :  { %v1441_v1 = vmax.f32 %v1172_v57, 0.0  ;;  %v1485_v39 = vmax.f32 %v1282_v34, 0.0 }
 0x10f   :  { %v1354_v3 = vmax.f32 %v955_v62, 0.0  ;;  %v1398_v4 = vmax.f32 %v1065_v63, 0.0  ;;  %2208 = vmatmul.msk.bf16.gmra.mxu0 %vm649_vm0, %v2293_v54  ;;  %2230 = vmatmul.msk.bf16.gmra.mxu1 %vm649_vm0, %v2315_v55  ;;  %v2295_v63 = vld [vmem:[%s3642_s0 + $0x90] sm:$0xff] }
 0x110   :  { %v1610_v5 = vpack.c.bf16 %v1441_v1, %v1441_v1  ;;  %2252 = vmatmul.msk.bf16.gmra.mxu2 %vm649_vm0, %v2337_v60  ;;  %2274 = vmatmul.msk.bf16.gmra.mxu3 %vm649_vm0, %v2359_v37  ;;  %v1654_v45 = vpack.c.bf16 %v1485_v39, %v1485_v39  ;;  %v2318_v37 = vld [vmem:[%s3642_s0 + $0x148] sm:$0xff] }
 0x111   :  { %v1523_v6 = vpack.c.bf16 %v1354_v3, %v1354_v3  ;;  %v1567_v7 = vpack.c.bf16 %v1398_v4, %v1398_v4 }
 0x112   :  { %1780 = vst.msk [vmem:[%s3645_s3 + $0x19c] sm:$0xf] %vm1676_vm1, %v1610_v5  ;;  %v2339_v5 = vld [vmem:[%s3642_s0 + $0x1f0] sm:$0xff] }
 0x113   :  { %1693 = vst.msk [vmem:[%s3645_s3 + $0x40] sm:$0xf] %vm1676_vm1, %v1523_v6  ;;  %v1174_v9 = vpop.f32.mrf.mxu2  ;;  %v1284_v47 = vpop.f32.mrf.mxu3 }
 0x114   :  { %1737 = vst.msk [vmem:[%s3645_s3 + $0xf0] sm:$0xf] %vm1676_vm1, %v1567_v7  ;;  %v1175_v11 = vadd.f32 %v2577_v32, %v1174_v9  ;;  %v956_v12 = vpop.f32.mrf.mxu0  ;;  %v1066_v13 = vpop.f32.mrf.mxu1  ;;  %v1285_v51 = vadd.f32 %v2577_v32, %v1284_v47  ;;  %v2360_v9 = vld [vmem:[%s3642_s0 + $0x298] sm:$0xff] }
 0x115   :  { %v957_v15 = vadd.f32 %v2577_v32, %v956_v12  ;;  %v1067_v16 = vadd.f32 %v2577_v32, %v1066_v13  ;;  %1824 = vst.msk [vmem:[%s3645_s3 + $0x24c] sm:$0xf] %vm1676_vm1, %v1654_v45 }
 0x116   :  { %v1442_v17 = vmax.f32 %v1175_v11, 0.0  ;;  %v1486_v55 = vmax.f32 %v1285_v51, 0.0 }
 0x117   :  { %v1355_v19 = vmax.f32 %v957_v15, 0.0  ;;  %v1399_v20 = vmax.f32 %v1067_v16, 0.0 }
 0x118   :  { %v1611_v21 = vpack.c.bf16 %v1442_v17, %v1442_v17  ;;  %v1655_v61 = vpack.c.bf16 %v1486_v55, %v1486_v55 }
 0x119   :  { %v1524_v22 = vpack.c.bf16 %v1355_v19, %v1355_v19  ;;  %v1568_v23 = vpack.c.bf16 %v1399_v20, %v1399_v20 }
 0x11a   :  { %1781 = vst.msk [vmem:[%s3645_s3 + $0x1a0] sm:$0xf] %vm1676_vm1, %v1611_v21 }
 0x11b   :  { %1694 = vst.msk [vmem:[%s3645_s3 + $0x44] sm:$0xf] %vm1676_vm1, %v1524_v22  ;;  %v1176_v25 = vpop.f32.mrf.mxu2  ;;  %v1286_v1 = vpop.f32.mrf.mxu3 }
 0x11c   :  { %1738 = vst.msk [vmem:[%s3645_s3 + $0xf4] sm:$0xf] %vm1676_vm1, %v1568_v23  ;;  %v1177_v29 = vadd.f32 %v2577_v32, %v1176_v25  ;;  %v959_v30 = vpop.f32.mrf.mxu0  ;;  %v1069_v31 = vpop.f32.mrf.mxu1  ;;  %v1287_v6 = vadd.f32 %v2577_v32, %v1286_v1 }
 0x11d   :  { %v960_v35 = vadd.f32 %v2577_v32, %v959_v30  ;;  %v1070_v36 = vadd.f32 %v2577_v32, %v1069_v31  ;;  %1825 = vst.msk [vmem:[%s3645_s3 + $0x250] sm:$0xf] %vm1676_vm1, %v1655_v61 }
 0x11e   :  { %v1443_v38 = vmax.f32 %v1177_v29, 0.0  ;;  %v1487_v11 = vmax.f32 %v1287_v6, 0.0 }
 0x11f   :  { %v1356_v40 = vmax.f32 %v960_v35, 0.0  ;;  %v1400_v41 = vmax.f32 %v1070_v36, 0.0  ;;  %2209 = vmatmul.msk.bf16.gmra.mxu0 %vm649_vm0, %v2294_v26  ;;  %2231 = vmatmul.msk.bf16.gmra.mxu1 %vm649_vm0, %v2316_v27  ;;  %v2296_v36 = vld [vmem:[%s3642_s0 + $0x98] sm:$0xff] }
 0x120   :  { %v1612_v42 = vpack.c.bf16 %v1443_v38, %v1443_v38  ;;  %2253 = vmatmul.msk.bf16.gmra.mxu2 %vm649_vm0, %v2338_v33  ;;  %2275 = vmatmul.msk.bf16.gmra.mxu3 %vm649_vm0, %v2360_v9  ;;  %v1656_v17 = vpack.c.bf16 %v1487_v11, %v1487_v11  ;;  %v2319_v11 = vld [vmem:[%s3642_s0 + $0x150] sm:$0xff] }
 0x121   :  { %v1525_v43 = vpack.c.bf16 %v1356_v40, %v1356_v40  ;;  %v1569_v44 = vpack.c.bf16 %v1400_v41, %v1400_v41  ;;  %v3180_v40 = vld [vmem:[#allocation4] ss:$0 sm:$0xff] }
 0x122   :  { %1782 = vst.msk [vmem:[%s3645_s3 + $0x1a4] sm:$0xf] %vm1676_vm1, %v1612_v42 }
 0x123   :  { %1695 = vst.msk [vmem:[%s3645_s3 + $0x48] sm:$0xf] %vm1676_vm1, %v1525_v43  ;;  %v1179_v46 = vpop.f32.mrf.mxu2  ;;  %v1289_v19 = vpop.f32.mrf.mxu3 }
 0x124   :  { %1739 = vst.msk [vmem:[%s3645_s3 + $0xf8] sm:$0xf] %vm1676_vm1, %v1569_v44  ;;  %v1180_v48 = vadd.f32 %v2577_v32, %v1179_v46  ;;  %v961_v49 = vpop.f32.mrf.mxu0  ;;  %v1071_v50 = vpop.f32.mrf.mxu1  ;;  %v1290_v23 = vadd.f32 %v2577_v32, %v1289_v19  ;;  %v2340_v44 = vld [vmem:[%s3642_s0 + $0x1f8] sm:$0xff] }
 0x125   :  { %v962_v52 = vadd.f32 %v2577_v32, %v961_v49  ;;  %v1072_v53 = vadd.f32 %v2577_v32, %v1071_v50  ;;  %1826 = vst.msk [vmem:[%s3645_s3 + $0x254] sm:$0xf] %vm1676_vm1, %v1656_v17 }
 0x126   :  { %v1444_v54 = vmax.f32 %v1180_v48, 0.0  ;;  %v1488_v27 = vmax.f32 %v1290_v23, 0.0 }
 0x127   :  { %v1357_v56 = vmax.f32 %v962_v52, 0.0  ;;  %v1401_v57 = vmax.f32 %v1072_v53, 0.0 }
 0x128   :  { %v1613_v58 = vpack.c.bf16 %v1444_v54, %v1444_v54  ;;  %v1657_v34 = vpack.c.bf16 %v1488_v27, %v1488_v27 }
 0x129   :  { %v1526_v59 = vpack.c.bf16 %v1357_v56, %v1357_v56  ;;  %v1570_v60 = vpack.c.bf16 %v1401_v57, %v1401_v57 }
 0x12a   :  { %1783 = vst.msk [vmem:[%s3645_s3 + $0x1a8] sm:$0xf] %vm1676_vm1, %v1613_v58 }
 0x12b   :  { %1696 = vst.msk [vmem:[%s3645_s3 + $0x4c] sm:$0xf] %vm1676_vm1, %v1526_v59  ;;  %v1181_v62 = vpop.f32.mrf.mxu2  ;;  %v1291_v38 = vpop.f32.mrf.mxu3 }
 0x12c   :  { %1740 = vst.msk [vmem:[%s3645_s3 + $0xfc] sm:$0xf] %vm1676_vm1, %v1570_v60  ;;  %v1182_v2 = vadd.f32 %v2577_v32, %v1181_v62  ;;  %v964_v3 = vpop.f32.mrf.mxu0  ;;  %v1074_v4 = vpop.f32.mrf.mxu1  ;;  %v1292_v45 = vadd.f32 %v3180_v40, %v1291_v38 }
 0x12d   :  { %v965_v7 = vadd.f32 %v2577_v32, %v964_v3  ;;  %v1075_v8 = vadd.f32 %v2577_v32, %v1074_v4  ;;  %1827 = vst.msk [vmem:[%s3645_s3 + $0x258] sm:$0xf] %vm1676_vm1, %v1657_v34 }
 0x12e   :  { %v1445_v10 = vmax.f32 %v1182_v2, 0.0  ;;  %v1489_v50 = vmax.f32 %v1292_v45, 0.0 }
 0x12f   :  { %v1358_v12 = vmax.f32 %v965_v7, 0.0  ;;  %v1402_v13 = vmax.f32 %v1075_v8, 0.0  ;;  %2210 = vmatmul.msk.bf16.gmra.mxu0 %vm649_vm0, %v2295_v63  ;;  %2232 = vmatmul.msk.bf16.gmra.mxu1 %vm649_vm0, %v2317_v0 }
 0x130   :  { %v1614_v14 = vpack.c.bf16 %v1445_v10, %v1445_v10  ;;  %2254 = vmatmul.msk.bf16.gmra.mxu2 %vm649_vm0, %v2339_v5  ;;  %v1658_v56 = vpack.c.bf16 %v1489_v50, %v1489_v50  ;;  %v2297_v10 = vld [vmem:[%s3642_s0 + $0xa0] sm:$0xff] }
 0x131   :  { %v1527_v15 = vpack.c.bf16 %v1358_v12, %v1358_v12  ;;  %v1571_v16 = vpack.c.bf16 %v1402_v13, %v1402_v13 }
 0x132   :  { %1784 = vst.msk [vmem:[%s3645_s3 + $0x1ac] sm:$0xf] %vm1676_vm1, %v1614_v14 }
 0x133   :  { %1697 = vst.msk [vmem:[%s3645_s3 + $0x50] sm:$0xf] %vm1676_vm1, %v1527_v15  ;;  %v1184_v18 = vpop.f32.mrf.mxu2  ;;  %v1294_v58 = vpop.f32.mrf.mxu3 }
 0x134   :  { %1741 = vst.msk [vmem:[%s3645_s3 + $0x100] sm:$0xf] %vm1676_vm1, %v1571_v16  ;;  %v1185_v20 = vadd.f32 %v2577_v32, %v1184_v18  ;;  %v966_v21 = vpop.f32.mrf.mxu0  ;;  %v1076_v22 = vpop.f32.mrf.mxu1  ;;  %v1295_v62 = vadd.f32 %v3180_v40, %v1294_v58  ;;  %v2341_v16 = vld [vmem:[%s3642_s0 + $0x200] sm:$0xff] }
 0x135   :  { %v967_v24 = vadd.f32 %v2577_v32, %v966_v21  ;;  %v1077_v25 = vadd.f32 %v2577_v32, %v1076_v22  ;;  %v213_v32 = vld [vmem:[%s3642_s0 + $0x2a0] sm:$0xf]  ;;  %1828 = vst.msk [vmem:[%s3645_s3 + $0x25c] sm:$0xf] %vm1676_vm1, %v1658_v56 }
 0x136   :  { %v1446_v26 = vmax.f32 %v1185_v20, 0.0  ;;  %v557_v39 = vunpack.c.l.b16 %v213_v32  ;;  %v1490_v2 = vmax.f32 %v1295_v62, 0.0 }
 0x137   :  { %v1359_v28 = vmax.f32 %v967_v24, 0.0  ;;  %v1403_v29 = vmax.f32 %v1077_v25, 0.0 }
 0x138   :  { %v1615_v30 = vpack.c.bf16 %v1446_v26, %v1446_v26  ;;  %v642_v48 = vpack.c.b16 %v557_v39, %v557_v39  ;;  %v1659_v8 = vpack.c.bf16 %v1490_v2, %v1490_v2 }
 0x139   :  { %v1528_v31 = vpack.c.bf16 %v1359_v28, %v1359_v28  ;;  %v1572_v33 = vpack.c.bf16 %v1403_v29, %v1403_v29 }
 0x13a   :  { %1785 = vst.msk [vmem:[%s3645_s3 + $0x1b0] sm:$0xf] %vm1676_vm1, %v1615_v30  ;;  %2276 = vmatmul.msk.bf16.gmra.mxu3 %vm649_vm0, %v642_v48 }
 0x13b   :  { %1698 = vst.msk [vmem:[%s3645_s3 + $0x54] sm:$0xf] %vm1676_vm1, %v1528_v31  ;;  %v1186_v35 = vpop.f32.mrf.mxu2  ;;  %v1296_v12 = vpop.f32.mrf.mxu3 }
 0x13c   :  { %1742 = vst.msk [vmem:[%s3645_s3 + $0x104] sm:$0xf] %vm1676_vm1, %v1572_v33  ;;  %v1187_v41 = vadd.f32 %v3180_v40, %v1186_v35  ;;  %v969_v42 = vpop.f32.mrf.mxu0  ;;  %v1079_v43 = vpop.f32.mrf.mxu1  ;;  %v1297_v17 = vadd.f32 %v3180_v40, %v1296_v12 }
 0x13d   :  { %v970_v46 = vadd.f32 %v3180_v40, %v969_v42  ;;  %v1080_v47 = vadd.f32 %v3180_v40, %v1079_v43  ;;  %1829 = vst.msk [vmem:[%s3645_s3 + $0x260] sm:$0xf] %vm1676_vm1, %v1659_v8 }
 0x13e   :  { %v1447_v49 = vmax.f32 %v1187_v41, 0.0  ;;  %v1491_v21 = vmax.f32 %v1297_v17, 0.0 }
 0x13f   :  { %v1360_v51 = vmax.f32 %v970_v46, 0.0  ;;  %v1404_v52 = vmax.f32 %v1080_v47, 0.0  ;;  %2211 = vmatmul.msk.bf16.gmra.mxu0 %vm649_vm0, %v2296_v36  ;;  %2233 = vmatmul.msk.bf16.gmra.mxu1 %vm649_vm0, %v2318_v37  ;;  %v2298_v46 = vld [vmem:[%s3642_s0 + $0xa8] sm:$0xff]  ;;  %v2320_v47 = vld [vmem:[%s3642_s0 + $0x158] sm:$0xff] }
 0x140   :  { %v1616_v53 = vpack.c.bf16 %v1447_v49, %v1447_v49  ;;  %2255 = vmatmul.msk.bf16.gmra.mxu2 %vm649_vm0, %v2340_v44  ;;  %v1660_v27 = vpack.c.bf16 %v1491_v21, %v1491_v21 }
 0x141   :  { %v1529_v54 = vpack.c.bf16 %v1360_v51, %v1360_v51  ;;  %v1573_v55 = vpack.c.bf16 %v1404_v52, %v1404_v52  ;;  %v2342_v52 = vld [vmem:[%s3642_s0 + $0x208] sm:$0xff] }
 0x142   :  { %1786 = vst.msk [vmem:[%s3645_s3 + $0x1b4] sm:$0xf] %vm1676_vm1, %v1616_v53 }
 0x143   :  { %1699 = vst.msk [vmem:[%s3645_s3 + $0x58] sm:$0xf] %vm1676_vm1, %v1529_v54  ;;  %v1189_v57 = vpop.f32.mrf.mxu2  ;;  %v1299_v29 = vpop.f32.mrf.mxu3 }
 0x144   :  { %1743 = vst.msk [vmem:[%s3645_s3 + $0x108] sm:$0xf] %vm1676_vm1, %v1573_v55  ;;  %v1190_v59 = vadd.f32 %v3180_v40, %v1189_v57  ;;  %v971_v60 = vpop.f32.mrf.mxu0  ;;  %v1081_v61 = vpop.f32.mrf.mxu1  ;;  %v1300_v34 = vadd.f32 %v3180_v40, %v1299_v29 }
 0x145   :  { %v972_v63 = vadd.f32 %v3180_v40, %v971_v60  ;;  %v1082_v0 = vadd.f32 %v3180_v40, %v1081_v61  ;;  %1830 = vst.msk [vmem:[%s3645_s3 + $0x264] sm:$0xf] %vm1676_vm1, %v1660_v27 }
 0x146   :  { %v1448_v1 = vmax.f32 %v1190_v59, 0.0  ;;  %v1492_v37 = vmax.f32 %v1300_v34, 0.0 }
 0x147   :  { %v1361_v3 = vmax.f32 %v972_v63, 0.0  ;;  %v1405_v4 = vmax.f32 %v1082_v0, 0.0 }
 0x148   :  { %v1617_v5 = vpack.c.bf16 %v1448_v1, %v1448_v1  ;;  %v1661_v44 = vpack.c.bf16 %v1492_v37, %v1492_v37 }
 0x149   :  { %v1530_v6 = vpack.c.bf16 %v1361_v3, %v1361_v3  ;;  %v1574_v7 = vpack.c.bf16 %v1405_v4, %v1405_v4 }
 0x14a   :  { %1787 = vst.msk [vmem:[%s3645_s3 + $0x1b8] sm:$0xf] %vm1676_vm1, %v1617_v5 }
 0x14b   :  { %1700 = vst.msk [vmem:[%s3645_s3 + $0x5c] sm:$0xf] %vm1676_vm1, %v1530_v6  ;;  %v1191_v9 = vpop.f32.mrf.mxu2  ;;  %v1301_v48 = vpop.f32.mrf.mxu3 }
 0x14c   :  { %1744 = vst.msk [vmem:[%s3645_s3 + $0x10c] sm:$0xf] %vm1676_vm1, %v1574_v7  ;;  %v1192_v13 = vadd.f32 %v3180_v40, %v1191_v9  ;;  %v974_v14 = vpop.f32.mrf.mxu0  ;;  %v1084_v15 = vpop.f32.mrf.mxu1  ;;  %v1302_v53 = vadd.f32 %v3180_v40, %v1301_v48 }
 0x14d   :  { %v975_v18 = vadd.f32 %v3180_v40, %v974_v14  ;;  %v1085_v19 = vadd.f32 %v3180_v40, %v1084_v15  ;;  %1831 = vst.msk [vmem:[%s3645_s3 + $0x268] sm:$0xf] %vm1676_vm1, %v1661_v44 }
 0x14e   :  { %v1449_v20 = vmax.f32 %v1192_v13, 0.0  ;;  %v1493_v57 = vmax.f32 %v1302_v53, 0.0 }
 0x14f   :  { %v1362_v22 = vmax.f32 %v975_v18, 0.0  ;;  %v1406_v23 = vmax.f32 %v1085_v19, 0.0  ;;  %2212 = vmatmul.msk.bf16.gmra.mxu0 %vm649_vm0, %v2297_v10  ;;  %2234 = vmatmul.msk.bf16.gmra.mxu1 %vm649_vm0, %v2319_v11 }
 0x150   :  { %v1618_v24 = vpack.c.bf16 %v1449_v20, %v1449_v20  ;;  %2256 = vmatmul.msk.bf16.gmra.mxu2 %vm649_vm0, %v2341_v16  ;;  %v1662_v63 = vpack.c.bf16 %v1493_v57, %v1493_v57 }
 0x151   :  { %v1531_v25 = vpack.c.bf16 %v1362_v22, %v1362_v22  ;;  %v1575_v26 = vpack.c.bf16 %v1406_v23, %v1406_v23 }
 0x152   :  { %1788 = vst.msk [vmem:[%s3645_s3 + $0x1bc] sm:$0xf] %vm1676_vm1, %v1618_v24 }
 0x153   :  { %1701 = vst.msk [vmem:[%s3645_s3 + $0x60] sm:$0xf] %vm1676_vm1, %v1531_v25  ;;  %v1194_v28 = vpop.f32.mrf.mxu2  ;;  %v1304_v1 = vpop.f32.mrf.mxu3 }
 0x154   :  { %1745 = vst.msk [vmem:[%s3645_s3 + $0x110] sm:$0xf] %vm1676_vm1, %v1575_v26  ;;  %v1195_v30 = vadd.f32 %v3180_v40, %v1194_v28  ;;  %v976_v31 = vpop.f32.mrf.mxu0  ;;  %v1086_v33 = vpop.f32.mrf.mxu1  ;;  %v1305_v5 = vadd.f32 %v3180_v40, %v1304_v1 }
 0x155   :  { %v977_v32 = vadd.f32 %v3180_v40, %v976_v31  ;;  %v1087_v35 = vadd.f32 %v3180_v40, %v1086_v33  ;;  %1832 = vst.msk [vmem:[%s3645_s3 + $0x26c] sm:$0xf] %vm1676_vm1, %v1662_v63 }
 0x156   :  { %v1450_v36 = vmax.f32 %v1195_v30, 0.0  ;;  %v1494_v9 = vmax.f32 %v1305_v5, 0.0 }
 0x157   :  { %v1363_v38 = vmax.f32 %v977_v32, 0.0  ;;  %v1407_v39 = vmax.f32 %v1087_v35, 0.0 }
 0x158   :  { %v1619_v41 = vpack.c.bf16 %v1450_v36, %v1450_v36  ;;  %v1663_v15 = vpack.c.bf16 %v1494_v9, %v1494_v9 }
 0x159   :  { %v1532_v42 = vpack.c.bf16 %v1363_v38, %v1363_v38  ;;  %v1576_v43 = vpack.c.bf16 %v1407_v39, %v1407_v39 }
 0x15a   :  { %1789 = vst.msk [vmem:[%s3645_s3 + $0x1c0] sm:$0xf] %vm1676_vm1, %v1619_v41 }
 0x15b   :  { %1702 = vst.msk [vmem:[%s3645_s3 + $0x64] sm:$0xf] %vm1676_vm1, %v1532_v42  ;;  %v1196_v45 = vpop.f32.mrf.mxu2  ;;  %v1306_v17 = vpop.f32.mrf.mxu3 }
 0x15c   :  { %1746 = vst.msk [vmem:[%s3645_s3 + $0x114] sm:$0xf] %vm1676_vm1, %v1576_v43  ;;  %v1197_v49 = vadd.f32 %v3180_v40, %v1196_v45  ;;  %v979_v50 = vpop.f32.mrf.mxu0  ;;  %v1089_v51 = vpop.f32.mrf.mxu1  ;;  %v1307_v21 = vadd.f32 %v3180_v40, %v1306_v17 }
 0x15d   :  { %v980_v54 = vadd.f32 %v3180_v40, %v979_v50  ;;  %v1090_v55 = vadd.f32 %v3180_v40, %v1089_v51  ;;  %1833 = vst.msk [vmem:[%s3645_s3 + $0x270] sm:$0xf] %vm1676_vm1, %v1663_v15 }
 0x15e   :  { %v1451_v56 = vmax.f32 %v1197_v49, 0.0  ;;  %v1495_v25 = vmax.f32 %v1307_v21, 0.0 }
 0x15f   :  { %v1364_v58 = vmax.f32 %v980_v54, 0.0  ;;  %v1408_v59 = vmax.f32 %v1090_v55, 0.0  ;;  %2213 = vmatmul.msk.bf16.gmra.mxu0 %vm649_vm0, %v2298_v46  ;;  %2235 = vmatmul.msk.bf16.gmra.mxu1 %vm649_vm0, %v2320_v47 }
 0x160   :  { %v1620_v60 = vpack.c.bf16 %v1451_v56, %v1451_v56  ;;  %2257 = vmatmul.msk.bf16.gmra.mxu2 %vm649_vm0, %v2342_v52  ;;  %v1664_v31 = vpack.c.bf16 %v1495_v25, %v1495_v25 }
 0x161   :  { %v1533_v61 = vpack.c.bf16 %v1364_v58, %v1364_v58  ;;  %v1577_v62 = vpack.c.bf16 %v1408_v59, %v1408_v59 }
 0x162   :  { %1790 = vst.msk [vmem:[%s3645_s3 + $0x1c4] sm:$0xf] %vm1676_vm1, %v1620_v60 }
 0x163   :  { %1703 = vst.msk [vmem:[%s3645_s3 + $0x68] sm:$0xf] %vm1676_vm1, %v1533_v61  ;;  %v1199_v0 = vpop.f32.mrf.mxu2  ;;  %v1309_v34 = vpop.f32.mrf.mxu3 }
 0x164   :  { %1747 = vst.msk [vmem:[%s3645_s3 + $0x118] sm:$0xf] %vm1676_vm1, %v1577_v62  ;;  %v1200_v2 = vadd.f32 %v3180_v40, %v1199_v0  ;;  %v981_v3 = vpop.f32.mrf.mxu0  ;;  %v1091_v4 = vpop.f32.mrf.mxu1  ;;  %v1310_v37 = vadd.f32 %v3180_v40, %v1309_v34 }
 0x165   :  { %v982_v6 = vadd.f32 %v3180_v40, %v981_v3  ;;  %v1092_v7 = vadd.f32 %v3180_v40, %v1091_v4  ;;  %1834 = vst.msk [vmem:[%s3645_s3 + $0x274] sm:$0xf] %vm1676_vm1, %v1664_v31 }
 0x166   :  { %v1452_v8 = vmax.f32 %v1200_v2, 0.0  ;;  %v1496_v42 = vmax.f32 %v1310_v37, 0.0 }
 0x167   :  { %v1365_v10 = vmax.f32 %v982_v6, 0.0  ;;  %v1409_v11 = vmax.f32 %v1092_v7, 0.0 }
 0x168   :  { %v1621_v12 = vpack.c.bf16 %v1452_v8, %v1452_v8  ;;  %v1665_v48 = vpack.c.bf16 %v1496_v42, %v1496_v42 }
 0x169   :  { %v1534_v13 = vpack.c.bf16 %v1365_v10, %v1365_v10  ;;  %v1578_v14 = vpack.c.bf16 %v1409_v11, %v1409_v11 }
 0x16a   :  { %1791 = vst.msk [vmem:[%s3645_s3 + $0x1c8] sm:$0xf] %vm1676_vm1, %v1621_v12 }
 0x16b   :  { %1704 = vst.msk [vmem:[%s3645_s3 + $0x6c] sm:$0xf] %vm1676_vm1, %v1534_v13  ;;  %v1201_v16 = vpop.f32.mrf.mxu2  ;;  %v1311_v50 = vpop.f32.mrf.mxu3 }
 0x16c   :  { %1748 = vst.msk [vmem:[%s3645_s3 + $0x11c] sm:$0xf] %vm1676_vm1, %v1578_v14  ;;  %v1202_v18 = vadd.f32 %v3180_v40, %v1201_v16  ;;  %v984_v19 = vpop.f32.mrf.mxu0  ;;  %v1094_v20 = vpop.f32.mrf.mxu1  ;;  %v1312_v54 = vadd.f32 %v3180_v40, %v1311_v50 }
 0x16d   :  { %v985_v22 = vadd.f32 %v3180_v40, %v984_v19  ;;  %v1095_v23 = vadd.f32 %v3180_v40, %v1094_v20  ;;  %1835 = vst.msk [vmem:[%s3645_s3 + $0x278] sm:$0xf] %vm1676_vm1, %v1665_v48 }
 0x16e   :  { %v1453_v24 = vmax.f32 %v1202_v18, 0.0  ;;  %v1497_v58 = vmax.f32 %v1312_v54, 0.0 }
 0x16f   :  { %v1366_v26 = vmax.f32 %v985_v22, 0.0  ;;  %v1410_v27 = vmax.f32 %v1095_v23, 0.0 }
 0x170   :  { %v1622_v28 = vpack.c.bf16 %v1453_v24, %v1453_v24  ;;  %v1666_v0 = vpack.c.bf16 %v1497_v58, %v1497_v58 }
 0x171   :  { %v1535_v29 = vpack.c.bf16 %v1366_v26, %v1366_v26  ;;  %v1579_v30 = vpack.c.bf16 %v1410_v27, %v1410_v27 }
 0x172   :  { %1792 = vst.msk [vmem:[%s3645_s3 + $0x1cc] sm:$0xf] %vm1676_vm1, %v1622_v28 }
 0x173   :  { %1705 = vst.msk [vmem:[%s3645_s3 + $0x70] sm:$0xf] %vm1676_vm1, %v1535_v29  ;;  %v1204_v33 = vpop.f32.mrf.mxu2  ;;  %v1314_v2 = vpop.f32.mrf.mxu3 }
 0x174   :  { %1749 = vst.msk [vmem:[%s3645_s3 + $0x120] sm:$0xf] %vm1676_vm1, %v1579_v30  ;;  %v1205_v32 = vadd.f32 %v3180_v40, %v1204_v33  ;;  %v986_v35 = vpop.f32.mrf.mxu0  ;;  %v1096_v36 = vpop.f32.mrf.mxu1  ;;  %v1315_v6 = vadd.f32 %v3180_v40, %v1314_v2 }
 0x175   :  { %v987_v38 = vadd.f32 %v3180_v40, %v986_v35  ;;  %v1097_v39 = vadd.f32 %v3180_v40, %v1096_v36  ;;  %1836 = vst.msk [vmem:[%s3645_s3 + $0x27c] sm:$0xf] %vm1676_vm1, %v1666_v0 }
 0x176   :  { %v1454_v41 = vmax.f32 %v1205_v32, 0.0  ;;  %v1498_v10 = vmax.f32 %v1315_v6, 0.0 }
 0x177   :  { %v1367_v43 = vmax.f32 %v987_v38, 0.0  ;;  %v1411_v44 = vmax.f32 %v1097_v39, 0.0 }
 0x178   :  { %v1623_v45 = vpack.c.bf16 %v1454_v41, %v1454_v41  ;;  %v1667_v16 = vpack.c.bf16 %v1498_v10, %v1498_v10 }
 0x179   :  { %v1536_v46 = vpack.c.bf16 %v1367_v43, %v1367_v43  ;;  %v1580_v47 = vpack.c.bf16 %v1411_v44, %v1411_v44 }
 0x17a   :  { %1793 = vst.msk [vmem:[%s3645_s3 + $0x1d0] sm:$0xf] %vm1676_vm1, %v1623_v45 }
 0x17b   :  { %1706 = vst.msk [vmem:[%s3645_s3 + $0x74] sm:$0xf] %vm1676_vm1, %v1536_v46  ;;  %v1206_v49 = vpop.f32.mrf.mxu2  ;;  %v1316_v18 = vpop.f32.mrf.mxu3 }
 0x17c   :  { %1750 = vst.msk [vmem:[%s3645_s3 + $0x124] sm:$0xf] %vm1676_vm1, %v1580_v47  ;;  %v1207_v51 = vadd.f32 %v3180_v40, %v1206_v49  ;;  %v989_v52 = vpop.f32.mrf.mxu0  ;;  %v1099_v53 = vpop.f32.mrf.mxu1  ;;  %v1317_v22 = vadd.f32 %v3180_v40, %v1316_v18 }
 0x17d   :  { %v990_v55 = vadd.f32 %v3180_v40, %v989_v52  ;;  %v1100_v56 = vadd.f32 %v3180_v40, %v1099_v53  ;;  %1837 = vst.msk [vmem:[%s3645_s3 + $0x280] sm:$0xf] %vm1676_vm1, %v1667_v16 }
 0x17e   :  { %v1455_v57 = vmax.f32 %v1207_v51, 0.0  ;;  %v1499_v26 = vmax.f32 %v1317_v22, 0.0 }
 0x17f   :  { %v1368_v59 = vmax.f32 %v990_v55, 0.0  ;;  %v1412_v60 = vmax.f32 %v1100_v56, 0.0 }
 0x180   :  { %v1624_v61 = vpack.c.bf16 %v1455_v57, %v1455_v57  ;;  %v1668_v33 = vpack.c.bf16 %v1499_v26, %v1499_v26 }
 0x181   :  { %v1537_v62 = vpack.c.bf16 %v1368_v59, %v1368_v59  ;;  %v1581_v63 = vpack.c.bf16 %v1412_v60, %v1412_v60 }
 0x182   :  { %1794 = vst.msk [vmem:[%s3645_s3 + $0x1d4] sm:$0xf] %vm1676_vm1, %v1624_v61 }
 0x183   :  { %1707 = vst.msk [vmem:[%s3645_s3 + $0x78] sm:$0xf] %vm1676_vm1, %v1537_v62  ;;  %v1209_v1 = vpop.f32.mrf.mxu2  ;;  %v1319_v32 = vpop.f32.mrf.mxu3 }
 0x184   :  { %1751 = vst.msk [vmem:[%s3645_s3 + $0x128] sm:$0xf] %vm1676_vm1, %v1581_v63  ;;  %v1210_v3 = vadd.f32 %v3180_v40, %v1209_v1  ;;  %v991_v4 = vpop.f32.mrf.mxu0  ;;  %v1101_v5 = vpop.f32.mrf.mxu1  ;;  %v1320_v38 = vadd.f32 %v3180_v40, %v1319_v32 }
 0x185   :  { %v992_v7 = vadd.f32 %v3180_v40, %v991_v4  ;;  %v1102_v8 = vadd.f32 %v3180_v40, %v1101_v5  ;;  %1838 = vst.msk [vmem:[%s3645_s3 + $0x284] sm:$0xf] %vm1676_vm1, %v1668_v33 }
 0x186   :  { %v1456_v9 = vmax.f32 %v1210_v3, 0.0  ;;  %v1500_v43 = vmax.f32 %v1320_v38, 0.0 }
 0x187   :  { %v1369_v11 = vmax.f32 %v992_v7, 0.0  ;;  %v1413_v12 = vmax.f32 %v1102_v8, 0.0 }
 0x188   :  { %v1625_v13 = vpack.c.bf16 %v1456_v9, %v1456_v9  ;;  %v1669_v49 = vpack.c.bf16 %v1500_v43, %v1500_v43 }
 0x189   :  { %v1538_v14 = vpack.c.bf16 %v1369_v11, %v1369_v11  ;;  %v1582_v15 = vpack.c.bf16 %v1413_v12, %v1413_v12 }
 0x18a   :  { %1795 = vst.msk [vmem:[%s3645_s3 + $0x1d8] sm:$0xf] %vm1676_vm1, %v1625_v13 }
 0x18b   :  { %1708 = vst.msk [vmem:[%s3645_s3 + $0x7c] sm:$0xf] %vm1676_vm1, %v1538_v14  ;;  %v1211_v17 = vpop.f32.mrf.mxu2  ;;  %v1321_v51 = vpop.f32.mrf.mxu3 }
 0x18c   :  { %1752 = vst.msk [vmem:[%s3645_s3 + $0x12c] sm:$0xf] %vm1676_vm1, %v1582_v15  ;;  %v1212_v19 = vadd.f32 %v3180_v40, %v1211_v17  ;;  %v994_v20 = vpop.f32.mrf.mxu0  ;;  %v1104_v21 = vpop.f32.mrf.mxu1  ;;  %v1322_v55 = vadd.f32 %v3180_v40, %v1321_v51 }
 0x18d   :  { %v995_v23 = vadd.f32 %v3180_v40, %v994_v20  ;;  %v1105_v24 = vadd.f32 %v3180_v40, %v1104_v21  ;;  %1839 = vst.msk [vmem:[%s3645_s3 + $0x288] sm:$0xf] %vm1676_vm1, %v1669_v49 }
 0x18e   :  { %v1457_v25 = vmax.f32 %v1212_v19, 0.0  ;;  %v1501_v59 = vmax.f32 %v1322_v55, 0.0 }
 0x18f   :  { %v1370_v27 = vmax.f32 %v995_v23, 0.0  ;;  %v1414_v28 = vmax.f32 %v1105_v24, 0.0 }
 0x190   :  { %v1626_v29 = vpack.c.bf16 %v1457_v25, %v1457_v25  ;;  %v1670_v1 = vpack.c.bf16 %v1501_v59, %v1501_v59 }
 0x191   :  { %v1539_v30 = vpack.c.bf16 %v1370_v27, %v1370_v27  ;;  %v1583_v31 = vpack.c.bf16 %v1414_v28, %v1414_v28 }
 0x192   :  { %1796 = vst.msk [vmem:[%s3645_s3 + $0x1dc] sm:$0xf] %vm1676_vm1, %v1626_v29 }
 0x193   :  { %1709 = vst.msk [vmem:[%s3645_s3 + $0x80] sm:$0xf] %vm1676_vm1, %v1539_v30  ;;  %v1214_v34 = vpop.f32.mrf.mxu2  ;;  %v1324_v3 = vpop.f32.mrf.mxu3 }
 0x194   :  { %1753 = vst.msk [vmem:[%s3645_s3 + $0x130] sm:$0xf] %vm1676_vm1, %v1583_v31  ;;  %v1215_v35 = vadd.f32 %v3180_v40, %v1214_v34  ;;  %v996_v36 = vpop.f32.mrf.mxu0  ;;  %v1106_v37 = vpop.f32.mrf.mxu1  ;;  %v1325_v7 = vadd.f32 %v3180_v40, %v1324_v3 }
 0x195   :  { %v997_v39 = vadd.f32 %v3180_v40, %v996_v36  ;;  %v1107_v41 = vadd.f32 %v3180_v40, %v1106_v37  ;;  %1840 = vst.msk [vmem:[%s3645_s3 + $0x28c] sm:$0xf] %vm1676_vm1, %v1670_v1 }
 0x196   :  { %v1458_v42 = vmax.f32 %v1215_v35, 0.0  ;;  %v1502_v11 = vmax.f32 %v1325_v7, 0.0 }
 0x197   :  { %v1371_v44 = vmax.f32 %v997_v39, 0.0  ;;  %v1415_v45 = vmax.f32 %v1107_v41, 0.0 }
 0x198   :  { %v1627_v46 = vpack.c.bf16 %v1458_v42, %v1458_v42  ;;  %v1671_v17 = vpack.c.bf16 %v1502_v11, %v1502_v11 }
 0x199   :  { %v1540_v47 = vpack.c.bf16 %v1371_v44, %v1371_v44  ;;  %v1584_v48 = vpack.c.bf16 %v1415_v45, %v1415_v45 }
 0x19a   :  { %1797 = vst.msk [vmem:[%s3645_s3 + $0x1e0] sm:$0xf] %vm1676_vm1, %v1627_v46 }
 0x19b   :  { %1710 = vst.msk [vmem:[%s3645_s3 + $0x84] sm:$0xf] %vm1676_vm1, %v1540_v47  ;;  %v1216_v50 = vpop.f32.mrf.mxu2  ;;  %v1326_v19 = vpop.f32.mrf.mxu3 }
 0x19c   :  { %1754 = vst.msk [vmem:[%s3645_s3 + $0x134] sm:$0xf] %vm1676_vm1, %v1584_v48  ;;  %v1217_v52 = vadd.f32 %v3180_v40, %v1216_v50  ;;  %v999_v53 = vpop.f32.mrf.mxu0  ;;  %v1109_v54 = vpop.f32.mrf.mxu1  ;;  %v1327_v23 = vadd.f32 %v3180_v40, %v1326_v19 }
 0x19d   :  { %v1000_v56 = vadd.f32 %v3180_v40, %v999_v53  ;;  %v1110_v57 = vadd.f32 %v3180_v40, %v1109_v54  ;;  %1841 = vst.msk [vmem:[%s3645_s3 + $0x290] sm:$0xf] %vm1676_vm1, %v1671_v17 }
 0x19e   :  { %v1459_v58 = vmax.f32 %v1217_v52, 0.0  ;;  %v1503_v27 = vmax.f32 %v1327_v23, 0.0 }
 0x19f   :  { %v1372_v60 = vmax.f32 %v1000_v56, 0.0  ;;  %v1416_v61 = vmax.f32 %v1110_v57, 0.0 }
 0x1a0   :  { %v1628_v62 = vpack.c.bf16 %v1459_v58, %v1459_v58  ;;  %v1672_v34 = vpack.c.bf16 %v1503_v27, %v1503_v27 }
 0x1a1   :  { %v1541_v63 = vpack.c.bf16 %v1372_v60, %v1372_v60  ;;  %v1585_v0 = vpack.c.bf16 %v1416_v61, %v1416_v61 }
 0x1a2   :  { %1798 = vst.msk [vmem:[%s3645_s3 + $0x1e4] sm:$0xf] %vm1676_vm1, %v1628_v62 }
 0x1a3   :  { %1711 = vst.msk [vmem:[%s3645_s3 + $0x88] sm:$0xf] %vm1676_vm1, %v1541_v63  ;;  %v1219_v2 = vpop.f32.mrf.mxu2  ;;  %v1329_v35 = vpop.f32.mrf.mxu3 }
 0x1a4   :  { %1755 = vst.msk [vmem:[%s3645_s3 + $0x138] sm:$0xf] %vm1676_vm1, %v1585_v0  ;;  %v1220_v4 = vadd.f32 %v3180_v40, %v1219_v2  ;;  %v1001_v5 = vpop.f32.mrf.mxu0  ;;  %v1111_v6 = vpop.f32.mrf.mxu1  ;;  %v1330_v39 = vadd.f32 %v3180_v40, %v1329_v35 }
 0x1a5   :  { %v1002_v8 = vadd.f32 %v3180_v40, %v1001_v5  ;;  %v1112_v9 = vadd.f32 %v3180_v40, %v1111_v6  ;;  %1842 = vst.msk [vmem:[%s3645_s3 + $0x294] sm:$0xf] %vm1676_vm1, %v1672_v34 }
 0x1a6   :  { %v1460_v10 = vmax.f32 %v1220_v4, 0.0  ;;  %v1504_v44 = vmax.f32 %v1330_v39, 0.0 }
 0x1a7   :  { %v1373_v12 = vmax.f32 %v1002_v8, 0.0  ;;  %v1417_v13 = vmax.f32 %v1112_v9, 0.0 }
 0x1a8   :  { %v1629_v14 = vpack.c.bf16 %v1460_v10, %v1460_v10  ;;  %v1673_v50 = vpack.c.bf16 %v1504_v44, %v1504_v44 }
 0x1a9   :  { %v1542_v15 = vpack.c.bf16 %v1373_v12, %v1373_v12  ;;  %v1586_v16 = vpack.c.bf16 %v1417_v13, %v1417_v13 }
 0x1aa   :  { %1799 = vst.msk [vmem:[%s3645_s3 + $0x1e8] sm:$0xf] %vm1676_vm1, %v1629_v14 }
 0x1ab   :  { %1712 = vst.msk [vmem:[%s3645_s3 + $0x8c] sm:$0xf] %vm1676_vm1, %v1542_v15  ;;  %v1221_v18 = vpop.f32.mrf.mxu2  ;;  %v1331_v52 = vpop.f32.mrf.mxu3 }
 0x1ac   :  { %1756 = vst.msk [vmem:[%s3645_s3 + $0x13c] sm:$0xf] %vm1676_vm1, %v1586_v16  ;;  %v1222_v20 = vadd.f32 %v3180_v40, %v1221_v18  ;;  %v1004_v21 = vpop.f32.mrf.mxu0  ;;  %v1114_v22 = vpop.f32.mrf.mxu1  ;;  %v1332_v56 = vadd.f32 %v3180_v40, %v1331_v52 }
 0x1ad   :  { %v1005_v24 = vadd.f32 %v3180_v40, %v1004_v21  ;;  %v1115_v25 = vadd.f32 %v3180_v40, %v1114_v22  ;;  %1843 = vst.msk [vmem:[%s3645_s3 + $0x298] sm:$0xf] %vm1676_vm1, %v1673_v50 }
 0x1ae   :  { %v1461_v26 = vmax.f32 %v1222_v20, 0.0  ;;  %v1505_v60 = vmax.f32 %v1332_v56, 0.0 }
 0x1af   :  { %v1374_v28 = vmax.f32 %v1005_v24, 0.0  ;;  %v1418_v29 = vmax.f32 %v1115_v25, 0.0 }
 0x1b0   :  { %v1630_v30 = vpack.c.bf16 %v1461_v26, %v1461_v26  ;;  %v1674_v2 = vpack.c.bf16 %v1505_v60, %v1505_v60 }
 0x1b1   :  { %v1543_v31 = vpack.c.bf16 %v1374_v28, %v1374_v28  ;;  %v1587_v33 = vpack.c.bf16 %v1418_v29, %v1418_v29 }
 0x1b2   :  { %1800 = vst.msk [vmem:[%s3645_s3 + $0x1ec] sm:$0xf] %vm1676_vm1, %v1630_v30 }
 0x1b3   :  { %1713 = vst.msk [vmem:[%s3645_s3 + $0x90] sm:$0xf] %vm1676_vm1, %v1543_v31  ;;  %v1224_v32 = vpop.f32.mrf.mxu2 }
 0x1b4   :  { %1757 = vst.msk [vmem:[%s3645_s3 + $0x140] sm:$0xf] %vm1676_vm1, %v1587_v33  ;;  %v1225_v36 = vadd.f32 %v3180_v40, %v1224_v32  ;;  %v1006_v37 = vpop.f32.mrf.mxu0  ;;  %v1116_v38 = vpop.f32.mrf.mxu1 }
 0x1b5   :  { %v1007_v41 = vadd.f32 %v3180_v40, %v1006_v37  ;;  %v1117_v42 = vadd.f32 %v3180_v40, %v1116_v38  ;;  %1844 = vst.msk [vmem:[%s3645_s3 + $0x29c] sm:$0xf] %vm1676_vm1, %v1674_v2 }
 0x1b6   :  { %v1462_v43 = vmax.f32 %v1225_v36, 0.0 }
 0x1b7   :  { %v1375_v45 = vmax.f32 %v1007_v41, 0.0  ;;  %v1419_v46 = vmax.f32 %v1117_v42, 0.0 }
 0x1b8   :  { %v1631_v47 = vpack.c.bf16 %v1462_v43, %v1462_v43 }
 0x1b9   :  { %v1544_v48 = vpack.c.bf16 %v1375_v45, %v1375_v45  ;;  %v1588_v49 = vpack.c.bf16 %v1419_v46, %v1419_v46 }
 0x1ba   :  { %1801 = vst.msk [vmem:[%s3645_s3 + $0x1f0] sm:$0xf] %vm1676_vm1, %v1631_v47 }
 0x1bb   :  { %1714 = vst.msk [vmem:[%s3645_s3 + $0x94] sm:$0xf] %vm1676_vm1, %v1544_v48  ;;  %v1226_v51 = vpop.f32.mrf.mxu2 }
 0x1bc   :  { %1758 = vst.msk [vmem:[%s3645_s3 + $0x144] sm:$0xf] %vm1676_vm1, %v1588_v49  ;;  %v1227_v53 = vadd.f32 %v3180_v40, %v1226_v51  ;;  %v1009_v54 = vpop.f32.mrf.mxu0  ;;  %v1119_v55 = vpop.f32.mrf.mxu1 }
 0x1bd   :  { %v1010_v57 = vadd.f32 %v3180_v40, %v1009_v54  ;;  %v1120_v58 = vadd.f32 %v3180_v40, %v1119_v55  ;;  %v1334_v4 = vpop.f32.mrf.mxu3 }
 0x1be   :  { %v1463_v59 = vmax.f32 %v1227_v53, 0.0  ;;  %v1335_v8 = vadd.f32 %v3180_v40, %v1334_v4 }
 0x1bf   :  { %v1376_v61 = vmax.f32 %v1010_v57, 0.0  ;;  %v1420_v62 = vmax.f32 %v1120_v58, 0.0 }
 0x1c0   :  { %v1632_v63 = vpack.c.bf16 %v1463_v59, %v1463_v59  ;;  %v1506_v12 = vmax.f32 %v1335_v8, 0.0 }
 0x1c1   :  { %v1545_v0 = vpack.c.bf16 %v1376_v61, %v1376_v61  ;;  %v1589_v1 = vpack.c.bf16 %v1420_v62, %v1420_v62 }
 0x1c2   :  { %1802 = vst.msk [vmem:[%s3645_s3 + $0x1f4] sm:$0xf] %vm1676_vm1, %v1632_v63  ;;  %v1675_v18 = vpack.c.bf16 %v1506_v12, %v1506_v12 }
 0x1c3   :  { %1715 = vst.msk [vmem:[%s3645_s3 + $0x98] sm:$0xf] %vm1676_vm1, %v1545_v0  ;;  %v1229_v3 = vpop.f32.mrf.mxu2 }
 0x1c4   :  { %1759 = vst.msk [vmem:[%s3645_s3 + $0x148] sm:$0xf] %vm1676_vm1, %v1589_v1  ;;  %v1230_v5 = vadd.f32 %v3180_v40, %v1229_v3  ;;  %v1011_v6 = vpop.f32.mrf.mxu0  ;;  %v1121_v7 = vpop.f32.mrf.mxu1 }
 0x1c5   :  { %v1012_v9 = vadd.f32 %v3180_v40, %v1011_v6  ;;  %v1122_v10 = vadd.f32 %v3180_v40, %v1121_v7  ;;  %v1336_v20 = vpop.f32.mrf.mxu3  ;;  %1845 = vst.msk [vmem:[%s3645_s3 + $0x2a0] sm:$0xf] %vm1676_vm1, %v1675_v18 }
 0x1c6   :  { %v1464_v11 = vmax.f32 %v1230_v5, 0.0 }
 0x1c7   :  { %v1377_v13 = vmax.f32 %v1012_v9, 0.0  ;;  %v1421_v14 = vmax.f32 %v1122_v10, 0.0 }
 0x1c8   :  { %v1633_v15 = vpack.c.bf16 %v1464_v11, %v1464_v11 }
 0x1c9   :  { %v1546_v16 = vpack.c.bf16 %v1377_v13, %v1377_v13  ;;  %v1590_v17 = vpack.c.bf16 %v1421_v14, %v1421_v14 }
 0x1ca   :  { %1803 = vst.msk [vmem:[%s3645_s3 + $0x1f8] sm:$0xf] %vm1676_vm1, %v1633_v15 }
 0x1cb   :  { %1716 = vst.msk [vmem:[%s3645_s3 + $0x9c] sm:$0xf] %vm1676_vm1, %v1546_v16  ;;  %v1231_v19 = vpop.f32.mrf.mxu2 }
 0x1cc   :  { %1760 = vst.msk [vmem:[%s3645_s3 + $0x14c] sm:$0xf] %vm1676_vm1, %v1590_v17  ;;  %v1232_v21 = vadd.f32 %v3180_v40, %v1231_v19  ;;  %v1014_v22 = vpop.f32.mrf.mxu0  ;;  %v1124_v23 = vpop.f32.mrf.mxu1 }
 0x1cd   :  { %v1015_v24 = vadd.f32 %v3180_v40, %v1014_v22  ;;  %v1125_v25 = vadd.f32 %v3180_v40, %v1124_v23 }
 0x1ce   :  { %v1465_v26 = vmax.f32 %v1232_v21, 0.0 }
 0x1cf   :  { %v1378_v27 = vmax.f32 %v1015_v24, 0.0  ;;  %v1422_v28 = vmax.f32 %v1125_v25, 0.0 }
 0x1d0   :  { %v1634_v29 = vpack.c.bf16 %v1465_v26, %v1465_v26 }
 0x1d1   :  { %v1547_v30 = vpack.c.bf16 %v1378_v27, %v1378_v27  ;;  %v1591_v31 = vpack.c.bf16 %v1422_v28, %v1422_v28 }
 0x1d2   :  { %1804 = vst.msk [vmem:[%s3645_s3 + $0x1fc] sm:$0xf] %vm1676_vm1, %v1634_v29 }
 0x1d3   :  { %1717 = vst.msk [vmem:[%s3645_s3 + $0xa0] sm:$0xf] %vm1676_vm1, %v1547_v30  ;;  %v1234_v33 = vpop.f32.mrf.mxu2 }
 0x1d4   :  { %1761 = vst.msk [vmem:[%s3645_s3 + $0x150] sm:$0xf] %vm1676_vm1, %v1591_v31  ;;  %v1235_v34 = vadd.f32 %v3180_v40, %v1234_v33  ;;  %v1016_v32 = vpop.f32.mrf.mxu0  ;;  %v1126_v35 = vpop.f32.mrf.mxu1 }
 0x1d5   :  { %v1017_v36 = vadd.f32 %v3180_v40, %v1016_v32  ;;  %v1127_v37 = vadd.f32 %v3180_v40, %v1126_v35 }
 0x1d6   :  { %v1466_v38 = vmax.f32 %v1235_v34, 0.0 }
 0x1d7   :  { %v1379_v39 = vmax.f32 %v1017_v36, 0.0  ;;  %v1423_v41 = vmax.f32 %v1127_v37, 0.0 }
 0x1d8   :  { %v1635_v42 = vpack.c.bf16 %v1466_v38, %v1466_v38 }
 0x1d9   :  { %v1548_v43 = vpack.c.bf16 %v1379_v39, %v1379_v39  ;;  %v1592_v44 = vpack.c.bf16 %v1423_v41, %v1423_v41 }
 0x1da   :  { %1805 = vst.msk [vmem:[%s3645_s3 + $0x200] sm:$0xf] %vm1676_vm1, %v1635_v42 }
 0x1db   :  { %1718 = vst.msk [vmem:[%s3645_s3 + $0xa4] sm:$0xf] %vm1676_vm1, %v1548_v43  ;;  %v1236_v45 = vpop.f32.mrf.mxu2 }
 0x1dc   :  { %1762 = vst.msk [vmem:[%s3645_s3 + $0x154] sm:$0xf] %vm1676_vm1, %v1592_v44  ;;  %v1237_v46 = vadd.f32 %v3180_v40, %v1236_v45  ;;  %v1019_v47 = vpop.f32.mrf.mxu0  ;;  %v1129_v48 = vpop.f32.mrf.mxu1 }
 0x1dd   :  { %v1020_v49 = vadd.f32 %v3180_v40, %v1019_v47  ;;  %v1130_v50 = vadd.f32 %v3180_v40, %v1129_v48 }
 0x1de   :  { %v1467_v51 = vmax.f32 %v1237_v46, 0.0 }
 0x1df   :  { %v1380_v52 = vmax.f32 %v1020_v49, 0.0  ;;  %v1424_v53 = vmax.f32 %v1130_v50, 0.0 }
 0x1e0   :  { %v1636_v54 = vpack.c.bf16 %v1467_v51, %v1467_v51 }
 0x1e1   :  { %v1549_v55 = vpack.c.bf16 %v1380_v52, %v1380_v52  ;;  %v1593_v56 = vpack.c.bf16 %v1424_v53, %v1424_v53 }
 0x1e2   :  { %1806 = vst.msk [vmem:[%s3645_s3 + $0x204] sm:$0xf] %vm1676_vm1, %v1636_v54 }
 0x1e3   :  { %1719 = vst.msk [vmem:[%s3645_s3 + $0xa8] sm:$0xf] %vm1676_vm1, %v1549_v55  ;;  %v1239_v57 = vpop.f32.mrf.mxu2 }
 0x1e4   :  { %1763 = vst.msk [vmem:[%s3645_s3 + $0x158] sm:$0xf] %vm1676_vm1, %v1593_v56  ;;  %v1240_v58 = vadd.f32 %v3180_v40, %v1239_v57  ;;  %v1021_v59 = vpop.f32.mrf.mxu0  ;;  %v1131_v60 = vpop.f32.mrf.mxu1 }
 0x1e5   :  { %v1022_v61 = vadd.f32 %v3180_v40, %v1021_v59  ;;  %v1132_v62 = vadd.f32 %v3180_v40, %v1131_v60 }
 0x1e6   :  { %v1468_v63 = vmax.f32 %v1240_v58, 0.0 }
 0x1e7   :  { %v1381_v0 = vmax.f32 %v1022_v61, 0.0  ;;  %v1425_v1 = vmax.f32 %v1132_v62, 0.0 }
 0x1e8   :  { %v1637_v2 = vpack.c.bf16 %v1468_v63, %v1468_v63 }
 0x1e9   :  { %v1550_v3 = vpack.c.bf16 %v1381_v0, %v1381_v0  ;;  %v1594_v4 = vpack.c.bf16 %v1425_v1, %v1425_v1 }
 0x1ea   :  { %1807 = vst.msk [vmem:[%s3645_s3 + $0x208] sm:$0xf] %vm1676_vm1, %v1637_v2 }
 0x1eb   :  { %1720 = vst.msk [vmem:[%s3645_s3 + $0xac] sm:$0xf] %vm1676_vm1, %v1550_v3  ;;  %v1241_v5 = vpop.f32.mrf.mxu2 }
 0x1ec   :  { %1764 = vst.msk [vmem:[%s3645_s3 + $0x15c] sm:$0xf] %vm1676_vm1, %v1594_v4  ;;  %v1242_v6 = vadd.f32 %v3180_v40, %v1241_v5 }
 0x1ee   :  { %v1469_v7 = vmax.f32 %v1242_v6, 0.0 }
 0x1f0   :  { %v1638_v8 = vpack.c.bf16 %v1469_v7, %v1469_v7 }
 0x1f2   :  { %1808 = vst.msk [vmem:[%s3645_s3 + $0x20c] sm:$0xf] %vm1676_vm1, %v1638_v8 }
 0x1f3   :  { %1850 = vsyncpa [#allocation3], 1 }
 0x1f4   :  { %1851 = vsyncpa [#allocation5], 1 }

// kernel: cnn_forward.4
= control target key start
LH: loop header
LB: loop body
LE: loop exit
PB: predicated region body
PF: predicated region fallthrough
CT: control target
= control target key end

     0   :  { %vm505_vm0 = vcmask 261120   ;;  %vm3119_vm1 = vcmask 519168   ;;  %s7065_s1 = inlined_call_operand.vmem [shape: bf16[288,64], index: 1, kind: input, shape index: {}]   ;;  %s7066_s0 = inlined_call_operand.vmem [shape: bf16[4,288,288], index: 0, kind: input, shape index: {}]   ;;  %s7067_s2 = inlined_call_operand.vmem [shape: f32[1,64], index: 2, kind: input, shape index: {}]   ;;  %s7068_s3 = inlined_call_operand.vmem [shape: bf16[288,64], index: 3, kind: output, shape index: {}]  }
   0x1   :  { %v4645_v0 = vld [vmem:[%s7065_s1 + $0x38] sm:$0xff]  ;;  %v4655_v2 = vld [vmem:[%s7065_s1 + $0x88] sm:$0xff]  ;;  %v4662_v3 = vld [vmem:[%s7065_s1 + $0x30] sm:$0xff] }
   0x2   :  { %v4650_v1 = vld [vmem:[%s7065_s1 + $0x78] sm:$0xff]  ;;  %560 = vmatpush.bf16.msra.mxu0 %v4645_v0  ;;  %v4667_v4 = vld [vmem:[%s7065_s1 + $0x70] sm:$0xff]  ;;  %764 = vmatpush.bf16.msra.mxu2 %v4655_v2  ;;  %v4674_v5 = vld [vmem:[%s7065_s1 + $0x80] sm:$0xff] }
   0x3   :  { %659 = vmatpush.bf16.msra.mxu1 %v4650_v1  ;;  %1254 = vmatpush.bf16.msra.mxu3 %v4645_v0  ;;  %v3170_v6 = vld [vmem:[%s7066_s0 + $0x8] sm:$0xf]  ;;  %v4404_v7 = vld [vmem:[%s7066_s0 + $0x10] sm:$0xf0]  ;;  %v4702_v11 = vld [vmem:[%s7065_s1 + $0x20] sm:$0xff] }
   0x4   :  { %v3171_v8 = vor.u32 %v4404_v7, %v3170_v6  ;;  %v4687_v9 = vld [vmem:[%s7065_s1 + $0x28] sm:$0xff]  ;;  %v4709_v12 = vld [vmem:[%s7065_s1 + $0x60] sm:$0xff]  ;;  %v4716_v13 = vld [vmem:[%s7065_s1 + $0x18] sm:$0xff] }
   0x5   :  { %v4694_v10 = vld [vmem:[%s7065_s1 + $0x68] sm:$0xff]  ;;  %v4723_v14 = vld [vmem:[%s7065_s1 + $0x58] sm:$0xff]  ;;  %v4730_v15 = vld [vmem:[%s7065_s1 + $0x10] sm:$0xff] }
   0x6   :  { %561 = vmatpush.bf16.msra.mxu0 %v4662_v3  ;;  %765 = vmatpush.bf16.msra.mxu2 %v4674_v5  ;;  %v4737_v16 = vld [vmem:[%s7065_s1 + $0x50] sm:$0xff]  ;;  %v3182_v17 = vld [vmem:[%s7066_s0 + $0x20] sm:$0xf]  ;;  %v4407_v18 = vld [vmem:[%s7066_s0 + $0x28] sm:$0xf0] }
   0x7   :  { %660 = vmatpush.bf16.msra.mxu1 %v4667_v4  ;;  %1255 = vmatpush.bf16.msra.mxu3 %v4662_v3  ;;  %v3183_v19 = vor.u32 %v4407_v18, %v3182_v17  ;;  %v4750_v20 = vld [vmem:[%s7065_s1 + $0x8] sm:$0xff]  ;;  %v4763_v22 = vld [vmem:[%s7065_s1] sm:$0xff]  ;;  %v3164_v27 = vld [vmem:[%s7066_s0 + $0xc] sm:$0xf0] }
   0x8   :  { %v4757_v21 = vld [vmem:[%s7065_s1 + $0x48] sm:$0xff]  ;;  %v4768_v23 = vld [vmem:[%s7065_s1 + $0x40] sm:$0xff]  ;;  %v3540_v28 = vld [vmem:[%s7066_s0 + $0x1b0] sm:$0xf] }
   0x9   :  { %3448 = vmatmul.msk.bf16.vlgmr.msra.gmra.mxu2 %vm505_vm0, %v3171_v8  ;;  %v3162_v24 = vld [vmem:[%s7066_s0] sm:$0xf]  ;;  %v4403_v25 = vld [vmem:[%s7066_s0 + $0x8] sm:$0xf0]  ;;  %v4402_v26 = vld [vmem:[%s7066_s0 + $0x4] sm:$0xf] }
   0xa   :  { %1353 = vmatpush.bf16.msrb.mxu2 %v4650_v1  ;;  %562 = vmatpush.bf16.msra.mxu0 %v4687_v9  ;;  %v4457_v29 = vld [vmem:[%s7066_s0 + $0x1b8] sm:$0xf0]  ;;  %v3163_v30 = vor.u32 %v4403_v25, %v3162_v24  ;;  %v3167_v31 = vor.u32 %v4402_v26, %v3164_v27  ;;  %v3194_v33 = vld [vmem:[%s7066_s0 + $0x38] sm:$0xf]  ;;  %v4410_v34 = vld [vmem:[%s7066_s0 + $0x40] sm:$0xf0] }
   0xb   :  { %661 = vmatpush.bf16.msra.mxu1 %v4694_v10  ;;  %1256 = vmatpush.bf16.msra.mxu3 %v4687_v9  ;;  %v3541_v32 = vor.u32 %v4457_v29, %v3540_v28  ;;  %v3195_v35 = vor.u32 %v4410_v34, %v3194_v33  ;;  %v3174_v36 = vld [vmem:[%s7066_s0 + $0x18] sm:$0xf]  ;;  %v4406_v37 = vld [vmem:[%s7066_s0 + $0x20] sm:$0xf0]  ;;  %v4405_v38 = vld [vmem:[%s7066_s0 + $0x1c] sm:$0xf] }
   0xc   :  { %v3176_v39 = vld [vmem:[%s7066_s0 + $0x24] sm:$0xf0]  ;;  %v4460_v41 = vld [vmem:[%s7066_s0 + $0x1d0] sm:$0xf0]  ;;  %v3175_v42 = vor.u32 %v4406_v37, %v3174_v36  ;;  %v3206_v45 = vld [vmem:[%s7066_s0 + $0x50] sm:$0xf] }
   0xd   :  { %v3552_v40 = vld [vmem:[%s7066_s0 + $0x1c8] sm:$0xf]  ;;  %v3179_v43 = vor.u32 %v4405_v38, %v3176_v39  ;;  %v4413_v46 = vld [vmem:[%s7066_s0 + $0x58] sm:$0xf0]  ;;  %v3186_v48 = vld [vmem:[%s7066_s0 + $0x30] sm:$0xf] }
   0xe   :  { %1354 = vmatpush.bf16.msrb.mxu2 %v4667_v4  ;;  %563 = vmatpush.bf16.msra.mxu0 %v4702_v11  ;;  %v3553_v44 = vor.u32 %v4460_v41, %v3552_v40  ;;  %v3207_v47 = vor.u32 %v4413_v46, %v3206_v45  ;;  %v4409_v49 = vld [vmem:[%s7066_s0 + $0x38] sm:$0xf0]  ;;  %v4408_v50 = vld [vmem:[%s7066_s0 + $0x34] sm:$0xf]  ;;  %v3188_v51 = vld [vmem:[%s7066_s0 + $0x3c] sm:$0xf0] }
   0xf   :  { %662 = vmatpush.bf16.msra.mxu1 %v4709_v12  ;;  %1257 = vmatpush.bf16.msra.mxu3 %v4702_v11  ;;  %v3564_v52 = vld [vmem:[%s7066_s0 + $0x1e0] sm:$0xf]  ;;  %v4463_v53 = vld [vmem:[%s7066_s0 + $0x1e8] sm:$0xf0]  ;;  %v3187_v54 = vor.u32 %v4409_v49, %v3186_v48  ;;  %v3191_v55 = vor.u32 %v4408_v50, %v3188_v51  ;;  %v3218_v57 = vld [vmem:[%s7066_s0 + $0x68] sm:$0xf] }
  0x10   :  { %v3565_v56 = vor.u32 %v4463_v53, %v3564_v52  ;;  %v4416_v58 = vld [vmem:[%s7066_s0 + $0x70] sm:$0xf0]  ;;  %v3198_v60 = vld [vmem:[%s7066_s0 + $0x48] sm:$0xf]  ;;  %v4411_v62 = vld [vmem:[%s7066_s0 + $0x4c] sm:$0xf] }
  0x11   :  { %v3219_v59 = vor.u32 %v4416_v58, %v3218_v57  ;;  %v4412_v61 = vld [vmem:[%s7066_s0 + $0x50] sm:$0xf0]  ;;  %v3200_v63 = vld [vmem:[%s7066_s0 + $0x54] sm:$0xf0]  ;;  %v4419_v6 = vld [vmem:[%s7066_s0 + $0x88] sm:$0xf0] }
  0x12   :  { %1355 = vmatpush.bf16.msrb.mxu2 %v4694_v10  ;;  %564 = vmatpush.bf16.msra.mxu0 %v4716_v13  ;;  %v3210_v8 = vld [vmem:[%s7066_s0 + $0x60] sm:$0xf]  ;;  %v3242_v17 = vld [vmem:[%s7066_s0 + $0x98] sm:$0xf]  ;;  %v4422_v18 = vld [vmem:[%s7066_s0 + $0xa0] sm:$0xf0] }
  0x13   :  { %663 = vmatpush.bf16.msra.mxu1 %v4723_v14  ;;  %1258 = vmatpush.bf16.msra.mxu3 %v4716_v13  ;;  %v3600_v24 = vld [vmem:[%s7066_s0 + $0x228] sm:$0xf]  ;;  %v4472_v25 = vld [vmem:[%s7066_s0 + $0x230] sm:$0xf0]  ;;  %v3254_v29 = vld [vmem:[%s7066_s0 + $0xb0] sm:$0xf] }
  0x14   :  { %v3601_v28 = vor.u32 %v4472_v25, %v3600_v24  ;;  %v4421_v33 = vld [vmem:[%s7066_s0 + $0x98] sm:$0xf0]  ;;  %v4420_v34 = vld [vmem:[%s7066_s0 + $0x94] sm:$0xf]  ;;  %v3612_v36 = vld [vmem:[%s7066_s0 + $0x240] sm:$0xf] }
  0x15   :  { %v4475_v37 = vld [vmem:[%s7066_s0 + $0x248] sm:$0xf0]  ;;  %v3266_v41 = vld [vmem:[%s7066_s0 + $0xc8] sm:$0xf]  ;;  %v4424_v45 = vld [vmem:[%s7066_s0 + $0xb0] sm:$0xf0] }
  0x16   :  { %1356 = vmatpush.bf16.msrb.mxu2 %v4709_v12  ;;  %565 = vmatpush.bf16.msra.mxu0 %v4730_v15  ;;  %v3613_v40 = vor.u32 %v4475_v37, %v3612_v36  ;;  %v4423_v46 = vld [vmem:[%s7066_s0 + $0xac] sm:$0xf]  ;;  %v3624_v48 = vld [vmem:[%s7066_s0 + $0x258] sm:$0xf]  ;;  %v4478_v49 = vld [vmem:[%s7066_s0 + $0x260] sm:$0xf0] }
  0x17   :  { %664 = vmatpush.bf16.msra.mxu1 %v4737_v16  ;;  %1259 = vmatpush.bf16.msra.mxu3 %v4730_v15  ;;  %v3625_v53 = vor.u32 %v4478_v49, %v3624_v48  ;;  %v5020_v58 = vld [vmem:[%s7067_s2] ss:$0 sm:$0xff]  ;;  %v3648_v24 = vld [vmem:[%s7066_s0 + $0x288] sm:$0xf]  ;;  %v4484_v25 = vld [vmem:[%s7066_s0 + $0x290] sm:$0xf0] }
  0x18   :  { %v3302_v36 = vld [vmem:[%s7066_s0 + $0x110] sm:$0xf]  ;;  %v4437_v37 = vld [vmem:[%s7066_s0 + $0x118] sm:$0xf0]  ;;  %v3284_v49 = vld [vmem:[%s7066_s0 + $0xfc] sm:$0xf0] }
  0x19   :  { %3449 = vmatmul.msk.bf16.gmra.mxu2 %vm505_vm0, %v3183_v19  ;;  %v3243_v19 = vor.u32 %v4422_v18, %v3242_v17 }
  0x1a   :  { %1357 = vmatpush.bf16.msrb.mxu2 %v4723_v14  ;;  %566 = vmatpush.bf16.msra.mxu0 %v4750_v20 }
  0x1b   :  { %665 = vmatpush.bf16.msra.mxu1 %v4757_v21  ;;  %1260 = vmatpush.bf16.msra.mxu3 %v4750_v20 }
  0x1e   :  { %1358 = vmatpush.bf16.msrb.mxu2 %v4737_v16  ;;  %567 = vmatpush.bf16.msra.mxu0 %v4763_v22 }
  0x1f   :  { %666 = vmatpush.bf16.msra.mxu1 %v4768_v23  ;;  %1261 = vmatpush.bf16.msra.mxu3 %v4763_v22 }
  0x21   :  { %568 = vmatmul.bf16.vlgmr.msra.gmra.mxu0 %v3163_v30  ;;  %v4425_v30 = vld [vmem:[%s7066_s0 + $0xb8] sm:$0xf0] }
  0x22   :  { %1458 = vmatpush.bf16.msrb.mxu0 %v4655_v2  ;;  %667 = vmatmul.bf16.vlgmr.msra.gmra.mxu1 %v3167_v31  ;;  %v3255_v31 = vor.u32 %v4425_v30, %v3254_v29 }
  0x23   :  { %2083 = vmatpush.bf16.msrb.mxu3 %v4650_v1  ;;  %1984 = vmatpush.bf16.msrb.mxu1 %v4645_v0 }
  0x24   :  { %1262 = vmatmul.bf16.vlgmr.msra.gmra.mxu3 %v3541_v32  ;;  %1359 = vmatpush.bf16.msrb.mxu2 %v4757_v21  ;;  %v3234_v32 = vld [vmem:[%s7066_s0 + $0x90] sm:$0xf] }
  0x25   :  { %v3235_v38 = vor.u32 %v4421_v33, %v3234_v32 }
  0x26   :  { %1459 = vmatpush.bf16.msrb.mxu0 %v4674_v5 }
  0x27   :  { %2084 = vmatpush.bf16.msrb.mxu3 %v4667_v4  ;;  %1985 = vmatpush.bf16.msrb.mxu1 %v4662_v3 }
  0x28   :  { %1360 = vmatpush.bf16.msrb.mxu2 %v4768_v23 }
  0x29   :  { %3450 = vmatmul.msk.bf16.gmra.mxu2 %vm505_vm0, %v3195_v35  ;;  %v3236_v35 = vld [vmem:[%s7066_s0 + $0x9c] sm:$0xf0] }
  0x2a   :  { %2714 = vmatpush.bf16.msra.mxu0 %v4645_v0  ;;  %v3576_v0 = vld [vmem:[%s7066_s0 + $0x1f8] sm:$0xf]  ;;  %v3239_v39 = vor.u32 %v4420_v34, %v3236_v35 }
  0x2b   :  { %2085 = vmatpush.bf16.msrb.mxu3 %v4694_v10  ;;  %1986 = vmatpush.bf16.msrb.mxu1 %v4687_v9 }
  0x2c   :  { %2188 = vmatpush.bf16.msra.mxu2 %v4655_v2 }
  0x2e   :  { %2715 = vmatpush.bf16.msra.mxu0 %v4662_v3  ;;  %v3203_v3 = vor.u32 %v4411_v62, %v3200_v63  ;;  %v3260_v62 = vld [vmem:[%s7066_s0 + $0xcc] sm:$0xf0] }
  0x2f   :  { %2086 = vmatpush.bf16.msrb.mxu3 %v4709_v12  ;;  %1987 = vmatpush.bf16.msrb.mxu1 %v4702_v11  ;;  %v3636_v63 = vld [vmem:[%s7066_s0 + $0x270] sm:$0xf] }
  0x30   :  { %2189 = vmatpush.bf16.msra.mxu2 %v4674_v5 }
  0x31   :  { %573 = vmatmul.bf16.gmra.mxu0 %v3175_v42  ;;  %v4428_v42 = vld [vmem:[%s7066_s0 + $0xd0] sm:$0xf0] }
  0x32   :  { %2716 = vmatpush.bf16.msra.mxu0 %v4687_v9  ;;  %672 = vmatmul.bf16.gmra.mxu1 %v3179_v43  ;;  %v4415_v9 = vld [vmem:[%s7066_s0 + $0x68] sm:$0xf0]  ;;  %v3267_v43 = vor.u32 %v4428_v42, %v3266_v41  ;;  %v3303_v41 = vor.u32 %v4437_v37, %v3302_v36 }
  0x33   :  { %2087 = vmatpush.bf16.msrb.mxu3 %v4723_v14  ;;  %1988 = vmatpush.bf16.msrb.mxu1 %v4716_v13 }
  0x34   :  { %1267 = vmatmul.bf16.gmra.mxu3 %v3553_v44  ;;  %v3246_v44 = vld [vmem:[%s7066_s0 + $0xa8] sm:$0xf] }
  0x35   :  { %v3247_v51 = vor.u32 %v4424_v45, %v3246_v44  ;;  %v3282_v45 = vld [vmem:[%s7066_s0 + $0xf0] sm:$0xf] }
  0x36   :  { %2717 = vmatpush.bf16.msra.mxu0 %v4702_v11  ;;  %v3212_v11 = vld [vmem:[%s7066_s0 + $0x6c] sm:$0xf0] }
  0x37   :  { %2088 = vmatpush.bf16.msrb.mxu3 %v4737_v16  ;;  %1989 = vmatpush.bf16.msrb.mxu1 %v4730_v15 }
  0x39   :  { %3451 = vmatmul.msk.bf16.gmra.mxu2 %vm505_vm0, %v3207_v47  ;;  %v3248_v47 = vld [vmem:[%s7066_s0 + $0xb4] sm:$0xf0] }
  0x3a   :  { %2718 = vmatpush.bf16.msra.mxu0 %v4716_v13  ;;  %v4469_v13 = vld [vmem:[%s7066_s0 + $0x218] sm:$0xf0]  ;;  %v3251_v52 = vor.u32 %v4423_v46, %v3248_v47  ;;  %v4432_v47 = vld [vmem:[%s7066_s0 + $0xf4] sm:$0xf] }
  0x3b   :  { %2089 = vmatpush.bf16.msrb.mxu3 %v4757_v21  ;;  %1990 = vmatpush.bf16.msrb.mxu1 %v4750_v20  ;;  %v4433_v46 = vld [vmem:[%s7066_s0 + $0xf8] sm:$0xf0] }
  0x3e   :  { %2719 = vmatpush.bf16.msra.mxu0 %v4730_v15 }
  0x3f   :  { %2090 = vmatpush.bf16.msrb.mxu3 %v4768_v23  ;;  %1991 = vmatpush.bf16.msrb.mxu1 %v4763_v22 }
  0x41   :  { %578 = vmatmul.bf16.gmra.mxu0 %v3187_v54  ;;  %v3278_v54 = vld [vmem:[%s7066_s0 + $0xe0] sm:$0xf] }
  0x42   :  { %2720 = vmatpush.bf16.msra.mxu0 %v4750_v20  ;;  %677 = vmatmul.bf16.gmra.mxu1 %v3191_v55  ;;  %v3222_v20 = vld [vmem:[%s7066_s0 + $0x78] sm:$0xf]  ;;  %v4431_v55 = vld [vmem:[%s7066_s0 + $0xe8] sm:$0xf0] }
  0x43   :  { %2918 = vmatpush.bf16.msra.mxu3 %v4655_v2  ;;  %2813 = vmatpush.bf16.msra.mxu1 %v4650_v1  ;;  %v4466_v1 = vld [vmem:[%s7066_s0 + $0x200] sm:$0xf0]  ;;  %v3199_v2 = vor.u32 %v4412_v61, %v3198_v60  ;;  %v3279_v57 = vor.u32 %v4431_v55, %v3278_v54  ;;  %v4427_v60 = vld [vmem:[%s7066_s0 + $0xc8] sm:$0xf0]  ;;  %v3283_v54 = vor.u32 %v4433_v46, %v3282_v45  ;;  %v3684_v45 = vld [vmem:[%s7066_s0 + $0x2d0] sm:$0xf] }
  0x44   :  { %1272 = vmatmul.bf16.gmra.mxu3 %v3565_v56  ;;  %v4426_v61 = vld [vmem:[%s7066_s0 + $0xc4] sm:$0xf]  ;;  %v4493_v46 = vld [vmem:[%s7066_s0 + $0x2d8] sm:$0xf0] }
  0x46   :  { %2721 = vmatpush.bf16.msra.mxu0 %v4763_v22  ;;  %v4417_v22 = vld [vmem:[%s7066_s0 + $0x7c] sm:$0xf] }
  0x47   :  { %2919 = vmatpush.bf16.msra.mxu3 %v4674_v5  ;;  %2814 = vmatpush.bf16.msra.mxu1 %v4667_v4  ;;  %v3577_v4 = vor.u32 %v4466_v1, %v3576_v0  ;;  %v3230_v5 = vld [vmem:[%s7066_s0 + $0x80] sm:$0xf]  ;;  %v4481_v0 = vld [vmem:[%s7066_s0 + $0x278] sm:$0xf0] }
  0x48   :  { %v3231_v7 = vor.u32 %v4419_v6, %v3230_v5  ;;  %v3637_v5 = vor.u32 %v4481_v0, %v3636_v63  ;;  %v3314_v63 = vld [vmem:[%s7066_s0 + $0x128] sm:$0xf]  ;;  %v4440_v0 = vld [vmem:[%s7066_s0 + $0x130] sm:$0xf0] }
  0x49   :  { %3452 = vmatmul.msk.bf16.gmra.mxu2 %vm505_vm0, %v3219_v59  ;;  %v3258_v59 = vld [vmem:[%s7066_s0 + $0xc0] sm:$0xf] }
  0x4b   :  { %2815 = vmatpush.bf16.msra.mxu1 %v4694_v10  ;;  %v4414_v10 = vld [vmem:[%s7066_s0 + $0x64] sm:$0xf] }
  0x4c   :  { %v3215_v15 = vor.u32 %v4414_v10, %v3212_v11  ;;  %v3290_v10 = vld [vmem:[%s7066_s0 + $0xf8] sm:$0xf]  ;;  %v4434_v11 = vld [vmem:[%s7066_s0 + $0x100] sm:$0xf0] }
  0x4f   :  { %2816 = vmatpush.bf16.msra.mxu1 %v4709_v12  ;;  %v3588_v12 = vld [vmem:[%s7066_s0 + $0x210] sm:$0xf] }
  0x51   :  { %583 = vmatmul.bf16.gmra.mxu0 %v3199_v2  ;;  %v3259_v2 = vor.u32 %v4427_v60, %v3258_v59 }
  0x52   :  { %682 = vmatmul.bf16.gmra.mxu1 %v3203_v3 }
  0x53   :  { %2817 = vmatpush.bf16.msra.mxu1 %v4723_v14  ;;  %v3211_v14 = vor.u32 %v4415_v9, %v3210_v8 }
  0x54   :  { %1277 = vmatmul.bf16.gmra.mxu3 %v3577_v4  ;;  %v3263_v4 = vor.u32 %v4426_v61, %v3260_v62 }
  0x57   :  { %2818 = vmatpush.bf16.msra.mxu1 %v4737_v16  ;;  %v3589_v16 = vor.u32 %v4469_v13, %v3588_v12 }
  0x59   :  { %3453 = vmatmul.msk.bf16.gmra.mxu2 %vm505_vm0, %v3231_v7 }
  0x5b   :  { %2819 = vmatpush.bf16.msra.mxu1 %v4757_v21  ;;  %v4418_v21 = vld [vmem:[%s7066_s0 + $0x80] sm:$0xf0] }
  0x5c   :  { %v3223_v26 = vor.u32 %v4418_v21, %v3222_v20  ;;  %v4430_v20 = vld [vmem:[%s7066_s0 + $0xe0] sm:$0xf0]  ;;  %v4429_v21 = vld [vmem:[%s7066_s0 + $0xdc] sm:$0xf] }
  0x5f   :  { %2820 = vmatpush.bf16.msra.mxu1 %v4768_v23  ;;  %v3224_v23 = vld [vmem:[%s7066_s0 + $0x84] sm:$0xf0] }
  0x60   :  { %v3227_v27 = vor.u32 %v4417_v22, %v3224_v23  ;;  %v3272_v23 = vld [vmem:[%s7066_s0 + $0xe4] sm:$0xf0] }
  0x61   :  { %588 = vmatmul.bf16.gmra.mxu0 %v3211_v14  ;;  %v3275_v30 = vor.u32 %v4429_v21, %v3272_v23 }
  0x62   :  { %687 = vmatmul.bf16.gmra.mxu1 %v3215_v15  ;;  %v3291_v15 = vor.u32 %v4434_v11, %v3290_v10  ;;  %v4436_v10 = vld [vmem:[%s7066_s0 + $0x110] sm:$0xf0]  ;;  %v4435_v11 = vld [vmem:[%s7066_s0 + $0x10c] sm:$0xf] }
  0x64   :  { %1282 = vmatmul.bf16.gmra.mxu3 %v3589_v16 }
  0x69   :  { %3454 = vmatmul.msk.bf16.gmra.mxu2 %vm505_vm0, %v3243_v19  ;;  %v3270_v19 = vld [vmem:[%s7066_s0 + $0xd8] sm:$0xf] }
  0x71   :  { %593 = vmatmul.bf16.gmra.mxu0 %v3223_v26 }
  0x72   :  { %692 = vmatmul.bf16.gmra.mxu1 %v3227_v27 }
  0x74   :  { %1287 = vmatmul.bf16.gmra.mxu3 %v3601_v28  ;;  %v3271_v28 = vor.u32 %v4430_v20, %v3270_v19 }
  0x79   :  { %3455 = vmatmul.msk.bf16.gmra.mxu2 %vm505_vm0, %v3255_v31  ;;  %v3649_v31 = vor.u32 %v4484_v25, %v3648_v24 }
  0x81   :  { %598 = vmatmul.bf16.gmra.mxu0 %v3235_v38 }
  0x82   :  { %697 = vmatmul.bf16.gmra.mxu1 %v3239_v39 }
  0x84   :  { %1292 = vmatmul.bf16.gmra.mxu3 %v3613_v40 }
  0x89   :  { %3456 = vmatmul.msk.bf16.gmra.mxu2 %vm505_vm0, %v3267_v43 }
  0x8c   :  { %v767_v50 = vpop.f32.mrf.mxu2 }
  0x91   :  { %603 = vmatmul.bf16.gmra.mxu0 %v3247_v51  ;;  %v4487_v51 = vld [vmem:[%s7066_s0 + $0x2a8] sm:$0xf0] }
  0x92   :  { %702 = vmatmul.bf16.gmra.mxu1 %v3251_v52 }
  0x94   :  { %1297 = vmatmul.bf16.gmra.mxu3 %v3625_v53  ;;  %v769_v56 = vpop.f32.mrf.mxu2 }
  0x99   :  { %3457 = vmatmul.msk.bf16.gmra.mxu2 %vm505_vm0, %v3279_v57 }
  0x9c   :  { %v772_v1 = vpop.f32.mrf.mxu2 }
  0x9e   :  { %v569_v3 = vpop.f32.mrf.mxu0 }
  0x9f   :  { %v570_v6 = vadd.f32 %v5020_v58, %v569_v3  ;;  %v668_v7 = vpop.f32.mrf.mxu1 }
  0xa1   :  { %v669_v8 = vadd.f32 %v668_v7, %v570_v6  ;;  %608 = vmatmul.bf16.gmra.mxu0 %v3259_v2 }
  0xa2   :  { %707 = vmatmul.bf16.gmra.mxu1 %v3263_v4  ;;  %v3315_v4 = vor.u32 %v4440_v0, %v3314_v63 }
  0xa3   :  { %v5042_v9 = vadd.f32 %v767_v50, %v669_v8  ;;  %v3660_v50 = vld [vmem:[%s7066_s0 + $0x2a0] sm:$0xf]  ;;  %v3294_v8 = vld [vmem:[%s7066_s0 + $0x108] sm:$0xf] }
  0xa4   :  { %1302 = vmatmul.bf16.gmra.mxu3 %v3637_v5  ;;  %v774_v12 = vpop.f32.mrf.mxu2  ;;  %v3661_v57 = vor.u32 %v4487_v51, %v3660_v50  ;;  %v3295_v19 = vor.u32 %v4436_v10, %v3294_v8  ;;  %v4442_v8 = vld [vmem:[%s7066_s0 + $0x140] sm:$0xf0]  ;;  %v4441_v10 = vld [vmem:[%s7066_s0 + $0x13c] sm:$0xf] }
  0xa5   :  { %7123 = vst [vmem:[#allocation2_spill] sm:$0xff] %v5042_v9 }
  0xa6   :  { %v571_v14 = vpop.f32.mrf.mxu0 }
  0xa7   :  { %v5050_v13 = vpop.f32.mrf.mxu3  ;;  %v572_v16 = vadd.f32 %v5020_v58, %v571_v14  ;;  %v670_v17 = vpop.f32.mrf.mxu1  ;;  %v3296_v14 = vld [vmem:[%s7066_s0 + $0x114] sm:$0xf0] }
  0xa8   :  { %v3299_v21 = vor.u32 %v4435_v11, %v3296_v14  ;;  %v3320_v14 = vld [vmem:[%s7066_s0 + $0x144] sm:$0xf0] }
  0xa9   :  { %v671_v18 = vadd.f32 %v670_v17, %v572_v16  ;;  %3458 = vmatmul.msk.bf16.gmra.mxu2 %vm505_vm0, %v3291_v15  ;;  %v3672_v15 = vld [vmem:[%s7066_s0 + $0x2b8] sm:$0xf]  ;;  %v4490_v16 = vld [vmem:[%s7066_s0 + $0x2c0] sm:$0xf0] }
  0xaa   :  { %v3673_v23 = vor.u32 %v4490_v16, %v3672_v15  ;;  %v3696_v15 = vld [vmem:[%s7066_s0 + $0x2e8] sm:$0xf]  ;;  %v4496_v16 = vld [vmem:[%s7066_s0 + $0x2f0] sm:$0xf0] }
  0xab   :  { %v5063_v22 = vadd.f32 %v769_v56, %v671_v18  ;;  %v3287_v56 = vor.u32 %v4432_v47, %v3284_v49 }
  0xac   :  { %v777_v26 = vpop.f32.mrf.mxu2 }
  0xad   :  { %7124 = vst [vmem:[#allocation3_spill] sm:$0xff] %v5063_v22 }
  0xae   :  { %v574_v29 = vpop.f32.mrf.mxu0 }
  0xaf   :  { %v5074_v27 = vpop.f32.mrf.mxu3  ;;  %v575_v32 = vadd.f32 %v5020_v58, %v574_v29  ;;  %v673_v33 = vpop.f32.mrf.mxu1  ;;  %v3326_v29 = vld [vmem:[%s7066_s0 + $0x140] sm:$0xf] }
  0xb1   :  { %v674_v34 = vadd.f32 %v673_v33, %v575_v32  ;;  %613 = vmatmul.bf16.gmra.mxu0 %v3271_v28 }
  0xb2   :  { %712 = vmatmul.bf16.gmra.mxu1 %v3275_v30  ;;  %v4443_v30 = vld [vmem:[%s7066_s0 + $0x148] sm:$0xf0] }
  0xb3   :  { %v5077_v35 = vadd.f32 %v772_v1, %v674_v34  ;;  %v3327_v34 = vor.u32 %v4443_v30, %v3326_v29 }
  0xb4   :  { %1307 = vmatmul.bf16.gmra.mxu3 %v3649_v31  ;;  %v779_v38 = vpop.f32.mrf.mxu2 }
  0xb6   :  { %v576_v40 = vpop.f32.mrf.mxu0 }
  0xb7   :  { %v5085_v39 = vpop.f32.mrf.mxu3  ;;  %v577_v42 = vadd.f32 %v5020_v58, %v576_v40  ;;  %v675_v43 = vpop.f32.mrf.mxu1  ;;  %v3306_v40 = vld [vmem:[%s7066_s0 + $0x120] sm:$0xf] }
  0xb9   :  { %v676_v44 = vadd.f32 %v675_v43, %v577_v42  ;;  %3459 = vmatmul.msk.bf16.gmra.mxu2 %vm505_vm0, %v3303_v41  ;;  %v4439_v41 = vld [vmem:[%s7066_s0 + $0x128] sm:$0xf0]  ;;  %v4438_v42 = vld [vmem:[%s7066_s0 + $0x124] sm:$0xf] }
  0xba   :  { %v3307_v50 = vor.u32 %v4439_v41, %v3306_v40 }
  0xbb   :  { %v5098_v48 = vadd.f32 %v774_v12, %v676_v44  ;;  %v3308_v44 = vld [vmem:[%s7066_s0 + $0x12c] sm:$0xf0] }
  0xbc   :  { %v782_v52 = vpop.f32.mrf.mxu2 }
  0xbd   :  { %7125 = vst [vmem:[#allocation4_spill] sm:$0xff] %v5098_v48 }
  0xbe   :  { %v579_v55 = vpop.f32.mrf.mxu0 }
  0xbf   :  { %v5109_v53 = vpop.f32.mrf.mxu3  ;;  %v580_v59 = vadd.f32 %v5020_v58, %v579_v55  ;;  %v678_v60 = vpop.f32.mrf.mxu1 }
  0xc1   :  { %v679_v61 = vadd.f32 %v678_v60, %v580_v59  ;;  %618 = vmatmul.bf16.gmra.mxu0 %v3283_v54  ;;  %v3685_v54 = vor.u32 %v4493_v46, %v3684_v45  ;;  %v3338_v60 = vld [vmem:[%s7066_s0 + $0x158] sm:$0xf]  ;;  %v4445_v45 = vld [vmem:[%s7066_s0 + $0x158] sm:$0xf0]  ;;  %v4444_v46 = vld [vmem:[%s7066_s0 + $0x154] sm:$0xf] }
  0xc2   :  { %717 = vmatmul.bf16.gmra.mxu1 %v3287_v56 }
  0xc3   :  { %v5112_v62 = vadd.f32 %v777_v26, %v679_v61  ;;  %v4446_v61 = vld [vmem:[%s7066_s0 + $0x160] sm:$0xf0] }
  0xc4   :  { %1312 = vmatmul.bf16.gmra.mxu3 %v3661_v57  ;;  %v784_v1 = vpop.f32.mrf.mxu2 }
  0xc6   :  { %v581_v3 = vpop.f32.mrf.mxu0 }
  0xc7   :  { %v5120_v2 = vpop.f32.mrf.mxu3  ;;  %v582_v5 = vadd.f32 %v5020_v58, %v581_v3  ;;  %v680_v6 = vpop.f32.mrf.mxu1  ;;  %v3339_v3 = vor.u32 %v4446_v61, %v3338_v60 }
  0xc9   :  { %v681_v7 = vadd.f32 %v680_v6, %v582_v5  ;;  %3460 = vmatmul.msk.bf16.gmra.mxu2 %vm505_vm0, %v3315_v4 }
  0xcb   :  { %v5133_v12 = vadd.f32 %v779_v38, %v681_v7  ;;  %v3318_v7 = vld [vmem:[%s7066_s0 + $0x138] sm:$0xf] }
  0xcc   :  { %v787_v17 = vpop.f32.mrf.mxu2 }
  0xcd   :  { %7126 = vst [vmem:[#allocation5_spill] sm:$0xff] %v5133_v12 }
  0xce   :  { %v584_v20 = vpop.f32.mrf.mxu0 }
  0xcf   :  { %v5144_v18 = vpop.f32.mrf.mxu3  ;;  %v585_v24 = vadd.f32 %v5020_v58, %v584_v20  ;;  %v683_v25 = vpop.f32.mrf.mxu1  ;;  %v3319_v20 = vor.u32 %v4442_v8, %v3318_v7 }
  0xd1   :  { %v684_v26 = vadd.f32 %v683_v25, %v585_v24  ;;  %623 = vmatmul.bf16.gmra.mxu0 %v3295_v19  ;;  %v3697_v24 = vor.u32 %v4496_v16, %v3696_v15 }
  0xd2   :  { %722 = vmatmul.bf16.gmra.mxu1 %v3299_v21 }
  0xd3   :  { %v5147_v28 = vadd.f32 %v782_v52, %v684_v26  ;;  %v3311_v52 = vor.u32 %v4438_v42, %v3308_v44  ;;  %v3330_v44 = vld [vmem:[%s7066_s0 + $0x150] sm:$0xf] }
  0xd4   :  { %1317 = vmatmul.bf16.gmra.mxu3 %v3673_v23  ;;  %v789_v31 = vpop.f32.mrf.mxu2  ;;  %v3323_v23 = vor.u32 %v4441_v10, %v3320_v14 }
  0xd6   :  { %v586_v33 = vpop.f32.mrf.mxu0 }
  0xd7   :  { %v5155_v32 = vpop.f32.mrf.mxu3  ;;  %v587_v36 = vadd.f32 %v5020_v58, %v586_v33  ;;  %v685_v37 = vpop.f32.mrf.mxu1  ;;  %v4449_v33 = vld [vmem:[%s7066_s0 + $0x178] sm:$0xf0] }
  0xd9   :  { %v686_v38 = vadd.f32 %v685_v37, %v587_v36  ;;  %3461 = vmatmul.msk.bf16.gmra.mxu2 %vm505_vm0, %v3327_v34 }
  0xdb   :  { %v5168_v43 = vadd.f32 %v784_v1, %v686_v38 }
  0xdc   :  { %v792_v47 = vpop.f32.mrf.mxu2 }
  0xdd   :  { %7127 = vst [vmem:[#allocation6_spill] sm:$0xff] %v5168_v43 }
  0xde   :  { %v589_v51 = vpop.f32.mrf.mxu0 }
  0xdf   :  { %v5179_v49 = vpop.f32.mrf.mxu3  ;;  %v590_v55 = vadd.f32 %v5020_v58, %v589_v51  ;;  %v688_v56 = vpop.f32.mrf.mxu1  ;;  %v3708_v51 = vld [vmem:[%s7066_s0 + $0x300] sm:$0xf] }
  0xe1   :  { %v689_v57 = vadd.f32 %v688_v56, %v590_v55  ;;  %628 = vmatmul.bf16.gmra.mxu0 %v3307_v50  ;;  %v3332_v50 = vld [vmem:[%s7066_s0 + $0x15c] sm:$0xf0]  ;;  %v3331_v56 = vor.u32 %v4445_v45, %v3330_v44 }
  0xe2   :  { %727 = vmatmul.bf16.gmra.mxu1 %v3311_v52  ;;  %v4499_v52 = vld [vmem:[%s7066_s0 + $0x308] sm:$0xf0]  ;;  %v3335_v60 = vor.u32 %v4444_v46, %v3332_v50  ;;  %v3374_v46 = vld [vmem:[%s7066_s0 + $0x1a0] sm:$0xf] }
  0xe3   :  { %v5182_v59 = vadd.f32 %v787_v17, %v689_v57  ;;  %v3709_v61 = vor.u32 %v4499_v52, %v3708_v51  ;;  %v4455_v50 = vld [vmem:[%s7066_s0 + $0x1a8] sm:$0xf0] }
  0xe4   :  { %1322 = vmatmul.bf16.gmra.mxu3 %v3685_v54  ;;  %v794_v63 = vpop.f32.mrf.mxu2 }
  0xe6   :  { %v591_v1 = vpop.f32.mrf.mxu0 }
  0xe7   :  { %v5190_v0 = vpop.f32.mrf.mxu3  ;;  %v592_v4 = vadd.f32 %v5020_v58, %v591_v1  ;;  %v690_v5 = vpop.f32.mrf.mxu1 }
  0xe9   :  { %v691_v6 = vadd.f32 %v690_v5, %v592_v4  ;;  %3462 = vmatmul.msk.bf16.gmra.mxu2 %vm505_vm0, %v3339_v3  ;;  %v3362_v5 = vld [vmem:[%s7066_s0 + $0x188] sm:$0xf] }
  0xeb   :  { %v5203_v11 = vadd.f32 %v789_v31, %v691_v6  ;;  %v3350_v31 = vld [vmem:[%s7066_s0 + $0x170] sm:$0xf]  ;;  %v4452_v6 = vld [vmem:[%s7066_s0 + $0x190] sm:$0xf0] }
  0xec   :  { %v797_v17 = vpop.f32.mrf.mxu2  ;;  %v3351_v38 = vor.u32 %v4449_v33, %v3350_v31  ;;  %v3363_v14 = vor.u32 %v4452_v6, %v3362_v5  ;;  %v3356_v6 = vld [vmem:[%s7066_s0 + $0x18c] sm:$0xf0] }
  0xed   :  { %7128 = vst [vmem:[#allocation7_spill] sm:$0xff] %v5203_v11 }
  0xee   :  { %v594_v21 = vpop.f32.mrf.mxu0 }
  0xef   :  { %v5214_v19 = vpop.f32.mrf.mxu3  ;;  %v595_v25 = vadd.f32 %v5020_v58, %v594_v21  ;;  %v693_v26 = vpop.f32.mrf.mxu1  ;;  %v4448_v21 = vld [vmem:[%s7066_s0 + $0x170] sm:$0xf0] }
  0xf1   :  { %v694_v29 = vadd.f32 %v693_v26, %v595_v25  ;;  %633 = vmatmul.bf16.gmra.mxu0 %v3319_v20  ;;  %v3344_v25 = vld [vmem:[%s7066_s0 + $0x174] sm:$0xf0] }
  0xf2   :  { %732 = vmatmul.bf16.gmra.mxu1 %v3323_v23  ;;  %v4447_v23 = vld [vmem:[%s7066_s0 + $0x16c] sm:$0xf]  ;;  %v3720_v26 = vld [vmem:[%s7066_s0 + $0x318] sm:$0xf] }
  0xf3   :  { %v5217_v30 = vadd.f32 %v792_v47, %v694_v29  ;;  %v4502_v29 = vld [vmem:[%s7066_s0 + $0x320] sm:$0xf0] }
  0xf4   :  { %1327 = vmatmul.bf16.gmra.mxu3 %v3697_v24  ;;  %v799_v34 = vpop.f32.mrf.mxu2 }
  0xf6   :  { %v596_v37 = vpop.f32.mrf.mxu0 }
  0xf7   :  { %v5225_v36 = vpop.f32.mrf.mxu3  ;;  %v597_v40 = vadd.f32 %v5020_v58, %v596_v37  ;;  %v695_v41 = vpop.f32.mrf.mxu1 }
  0xf9   :  { %v696_v42 = vadd.f32 %v695_v41, %v597_v40  ;;  %3463 = vmatmul.msk.bf16.gmra.mxu2 %vm505_vm0, %v3351_v38  ;;  %v3347_v40 = vor.u32 %v4447_v23, %v3344_v25 }
  0xfb   :  { %v5238_v47 = vadd.f32 %v794_v63, %v696_v42 }
  0xfc   :  { %v802_v54 = vpop.f32.mrf.mxu2 }
  0xfd   :  { %7129 = vst [vmem:[#allocation8_spill] sm:$0xff] %v5238_v47 }
  0xfe   :  { %v599_v57 = vpop.f32.mrf.mxu0 }
  0xff   :  { %v5249_v55 = vpop.f32.mrf.mxu3  ;;  %v600_v63 = vadd.f32 %v5020_v58, %v599_v57  ;;  %v698_v1 = vpop.f32.mrf.mxu1  ;;  %v3375_v57 = vor.u32 %v4455_v50, %v3374_v46 }
 0x101   :  { %v699_v3 = vadd.f32 %v698_v1, %v600_v63  ;;  %638 = vmatmul.bf16.gmra.mxu0 %v3331_v56  ;;  %v4451_v1 = vld [vmem:[%s7066_s0 + $0x188] sm:$0xf0] }
 0x102   :  { %737 = vmatmul.bf16.gmra.mxu1 %v3335_v60 }
 0x103   :  { %v5252_v4 = vadd.f32 %v797_v17, %v699_v3  ;;  %v3342_v17 = vld [vmem:[%s7066_s0 + $0x168] sm:$0xf]  ;;  %v4450_v3 = vld [vmem:[%s7066_s0 + $0x184] sm:$0xf] }
 0x104   :  { %1332 = vmatmul.bf16.gmra.mxu3 %v3709_v61  ;;  %v804_v7 = vpop.f32.mrf.mxu2  ;;  %v3343_v37 = vor.u32 %v4448_v21, %v3342_v17  ;;  %v3359_v21 = vor.u32 %v4450_v3, %v3356_v6 }
 0x106   :  { %v601_v10 = vpop.f32.mrf.mxu0 }
 0x107   :  { %v5260_v8 = vpop.f32.mrf.mxu3  ;;  %v602_v15 = vadd.f32 %v5020_v58, %v601_v10  ;;  %v700_v16 = vpop.f32.mrf.mxu1  ;;  %v3732_v10 = vld [vmem:[%s7066_s0 + $0x330] sm:$0xf] }
 0x109   :  { %v701_v20 = vadd.f32 %v700_v16, %v602_v15  ;;  %3464 = vmatmul.msk.bf16.gmra.mxu2 %vm505_vm0, %v3363_v14  ;;  %v4505_v14 = vld [vmem:[%s7066_s0 + $0x338] sm:$0xf0] }
 0x10b   :  { %v5273_v24 = vadd.f32 %v799_v34, %v701_v20  ;;  %v3721_v34 = vor.u32 %v4502_v29, %v3720_v26 }
 0x10c   :  { %v807_v31 = vpop.f32.mrf.mxu2 }
 0x10d   :  { %7130 = vst [vmem:[#allocation9_spill] sm:$0xff] %v5273_v24 }
 0x10e   :  { %v604_v38 = vpop.f32.mrf.mxu0 }
 0x10f   :  { %v5284_v33 = vpop.f32.mrf.mxu3  ;;  %v605_v41 = vadd.f32 %v5020_v58, %v604_v38  ;;  %v703_v42 = vpop.f32.mrf.mxu1  ;;  %v3542_v38 = vld [vmem:[%s7066_s0 + $0x1bc] sm:$0xf0] }
 0x111   :  { %v704_v44 = vadd.f32 %v703_v42, %v605_v41  ;;  %643 = vmatmul.bf16.gmra.mxu0 %v3343_v37  ;;  %v4456_v37 = vld [vmem:[%s7066_s0 + $0x1b4] sm:$0xf] }
 0x112   :  { %742 = vmatmul.bf16.gmra.mxu1 %v3347_v40  ;;  %v3545_v42 = vor.u32 %v4456_v37, %v3542_v38 }
 0x113   :  { %v5287_v45 = vadd.f32 %v802_v54, %v704_v44  ;;  %v3354_v54 = vld [vmem:[%s7066_s0 + $0x180] sm:$0xf] }
 0x114   :  { %1337 = vmatmul.bf16.gmra.mxu3 %v3721_v34  ;;  %v809_v51 = vpop.f32.mrf.mxu2  ;;  %v3355_v20 = vor.u32 %v4451_v1, %v3354_v54  ;;  %v4508_v54 = vld [vmem:[%s7066_s0 + $0x350] sm:$0xf0] }
 0x116   :  { %v606_v56 = vpop.f32.mrf.mxu0 }
 0x117   :  { %v5295_v52 = vpop.f32.mrf.mxu3  ;;  %v607_v60 = vadd.f32 %v5020_v58, %v606_v56  ;;  %v705_v61 = vpop.f32.mrf.mxu1  ;;  %v4454_v56 = vld [vmem:[%s7066_s0 + $0x1a0] sm:$0xf0] }
 0x119   :  { %v706_v63 = vadd.f32 %v705_v61, %v607_v60  ;;  %3465 = vmatmul.msk.bf16.gmra.mxu2 %vm505_vm0, %v3375_v57  ;;  %v4453_v57 = vld [vmem:[%s7066_s0 + $0x19c] sm:$0xf]  ;;  %v3368_v61 = vld [vmem:[%s7066_s0 + $0x1a4] sm:$0xf0] }
 0x11b   :  { %v5308_v5 = vadd.f32 %v804_v7, %v706_v63  ;;  %v3733_v7 = vor.u32 %v4505_v14, %v3732_v10  ;;  %v3744_v63 = vld [vmem:[%s7066_s0 + $0x348] sm:$0xf]  ;;  %v3371_v14 = vor.u32 %v4453_v57, %v3368_v61  ;;  %v4511_v57 = vld [vmem:[%s7066_s0 + $0x368] sm:$0xf0]  ;;  %v4510_v61 = vld [vmem:[%s7066_s0 + $0x364] sm:$0xf] }
 0x11c   :  { %v812_v15 = vpop.f32.mrf.mxu2 }
 0x11d   :  { %7131 = vst [vmem:[#allocation10_spill] sm:$0xff] %v5308_v5 }
 0x11e   :  { %v609_v17 = vpop.f32.mrf.mxu0 }
 0x11f   :  { %v5319_v16 = vpop.f32.mrf.mxu3  ;;  %v610_v23 = vadd.f32 %v5020_v58, %v609_v17  ;;  %v708_v25 = vpop.f32.mrf.mxu1 }
 0x121   :  { %v709_v26 = vadd.f32 %v708_v25, %v610_v23  ;;  %648 = vmatmul.bf16.gmra.mxu0 %v3355_v20  ;;  %v4459_v23 = vld [vmem:[%s7066_s0 + $0x1cc] sm:$0xf]  ;;  %v3554_v25 = vld [vmem:[%s7066_s0 + $0x1d4] sm:$0xf0] }
 0x122   :  { %747 = vmatmul.bf16.gmra.mxu1 %v3359_v21 }
 0x123   :  { %v5322_v29 = vadd.f32 %v807_v31, %v709_v26  ;;  %v3366_v31 = vld [vmem:[%s7066_s0 + $0x198] sm:$0xf] }
 0x124   :  { %1342 = vmatmul.bf16.gmra.mxu3 %v3733_v7  ;;  %v814_v40 = vpop.f32.mrf.mxu2  ;;  %v3367_v6 = vor.u32 %v4454_v56, %v3366_v31  ;;  %v3846_v31 = vld [vmem:[%s7066_s0 + $0x360] sm:$0xf] }
 0x126   :  { %v611_v41 = vpop.f32.mrf.mxu0 }
 0x127   :  { %v5330_v34 = vpop.f32.mrf.mxu3  ;;  %v612_v44 = vadd.f32 %v5020_v58, %v611_v41  ;;  %v710_v46 = vpop.f32.mrf.mxu1  ;;  %v3557_v41 = vor.u32 %v4459_v23, %v3554_v25  ;;  %v4462_v25 = vld [vmem:[%s7066_s0 + $0x1e4] sm:$0xf] }
 0x129   :  { %v711_v50 = vadd.f32 %v710_v46, %v612_v44  ;;  %1361 = vmatmul.bf16.vlgmr.msrb.gmra.mxu2 %v3545_v42 }
 0x12b   :  { %v5342_v60 = vadd.f32 %v809_v51, %v711_v50  ;;  %v3745_v51 = vor.u32 %v4508_v54, %v3744_v63  ;;  %v4458_v50 = vld [vmem:[%s7066_s0 + $0x1c0] sm:$0xf0]  ;;  %v3848_v63 = vld [vmem:[%s7066_s0 + $0x36c] sm:$0xf0] }
 0x12c   :  { %v817_v1 = vpop.f32.mrf.mxu2 }
 0x12d   :  { %7132 = vst [vmem:[#allocation11_spill] sm:$0xff] %v5342_v60 }
 0x12e   :  { %v614_v10 = vpop.f32.mrf.mxu0 }
 0x12f   :  { %v5353_v3 = vpop.f32.mrf.mxu3  ;;  %v615_v20 = vadd.f32 %v5020_v58, %v614_v10  ;;  %v713_v17 = vpop.f32.mrf.mxu1 }
 0x131   :  { %v714_v21 = vadd.f32 %v713_v17, %v615_v20  ;;  %653 = vmatmul.bf16.gmra.mxu0 %v3367_v6 }
 0x132   :  { %752 = vmatmul.bf16.gmra.mxu1 %v3371_v14 }
 0x133   :  { %v5356_v7 = vadd.f32 %v812_v15, %v714_v21  ;;  %v3548_v15 = vld [vmem:[%s7066_s0 + $0x1b8] sm:$0xf] }
 0x134   :  { %1347 = vmatmul.bf16.gmra.mxu3 %v3745_v51  ;;  %v819_v26 = vpop.f32.mrf.mxu2  ;;  %v3549_v10 = vor.u32 %v4458_v50, %v3548_v15  ;;  %v3847_v51 = vor.u32 %v4511_v57, %v3846_v31  ;;  %v4461_v57 = vld [vmem:[%s7066_s0 + $0x1d8] sm:$0xf0] }
 0x136   :  { %v616_v38 = vpop.f32.mrf.mxu0 }
 0x137   :  { %v5364_v37 = vpop.f32.mrf.mxu3  ;;  %v617_v42 = vadd.f32 %v5020_v58, %v616_v38  ;;  %v715_v44 = vpop.f32.mrf.mxu1  ;;  %v3566_v38 = vld [vmem:[%s7066_s0 + $0x1ec] sm:$0xf0] }
 0x139   :  { %v716_v46 = vadd.f32 %v715_v44, %v617_v42  ;;  %1366 = vmatmul.bf16.gmra.mxu2 %v3557_v41 }
 0x13b   :  { %v5376_v56 = vadd.f32 %v814_v40, %v716_v46  ;;  %v3851_v40 = vor.u32 %v4510_v61, %v3848_v63  ;;  %v3569_v46 = vor.u32 %v4462_v25, %v3566_v38  ;;  %v3858_v61 = vld [vmem:[%s7066_s0 + $0x378] sm:$0xf] }
 0x13c   :  { %v822_v54 = vpop.f32.mrf.mxu2 }
 0x13d   :  { %7133 = vst [vmem:[#allocation12_spill] sm:$0xff] %v5376_v56 }
 0x13e   :  { %v619_v14 = vpop.f32.mrf.mxu0 }
 0x13f   :  { %v5387_v6 = vpop.f32.mrf.mxu3  ;;  %v620_v20 = vadd.f32 %v5020_v58, %v619_v14  ;;  %v718_v17 = vpop.f32.mrf.mxu1  ;;  %v4513_v14 = vld [vmem:[%s7066_s0 + $0x37c] sm:$0xf] }
 0x141   :  { %v719_v21 = vadd.f32 %v718_v17, %v620_v20  ;;  %3754 = vmatmul.msk.bf16.vlgmr.msrb.gmra.mxu0 %vm505_vm0, %v3549_v10  ;;  %v4514_v10 = vld [vmem:[%s7066_s0 + $0x380] sm:$0xf0] }
 0x142   :  { %1992 = vmatmul.bf16.vlgmr.msrb.gmra.mxu1 %v3847_v51  ;;  %v3860_v51 = vld [vmem:[%s7066_s0 + $0x384] sm:$0xf0]  ;;  %v3859_v25 = vor.u32 %v4514_v10, %v3858_v61 }
 0x143   :  { %v5391_v23 = vadd.f32 %v817_v1, %v719_v21  ;;  %v3560_v1 = vld [vmem:[%s7066_s0 + $0x1d0] sm:$0xf] }
 0x144   :  { %2091 = vmatmul.bf16.vlgmr.msrb.gmra.mxu3 %v3851_v40  ;;  %v824_v41 = vpop.f32.mrf.mxu2  ;;  %v3561_v17 = vor.u32 %v4461_v57, %v3560_v1 }
 0x145   :  { %7134 = vst [vmem:[#allocation13_spill] sm:$0xff] %v5391_v23 }
 0x146   :  { %v621_v44 = vpop.f32.mrf.mxu0 }
 0x147   :  { %v5399_v42 = vpop.f32.mrf.mxu3  ;;  %v622_v15 = vadd.f32 %v5020_v58, %v621_v44  ;;  %v720_v50 = vpop.f32.mrf.mxu1 }
 0x149   :  { %v721_v31 = vadd.f32 %v720_v50, %v622_v15  ;;  %1371 = vmatmul.bf16.gmra.mxu2 %v3569_v46  ;;  %v4465_v50 = vld [vmem:[%s7066_s0 + $0x1fc] sm:$0xf] }
 0x14b   :  { %v5411_v63 = vadd.f32 %v819_v26, %v721_v31  ;;  %v3863_v26 = vor.u32 %v4513_v14, %v3860_v51  ;;  %v3578_v31 = vld [vmem:[%s7066_s0 + $0x204] sm:$0xf0] }
 0x14c   :  { %v827_v40 = vpop.f32.mrf.mxu2  ;;  %v3581_v10 = vor.u32 %v4465_v50, %v3578_v31 }
 0x14d   :  { %7135 = vst [vmem:[#allocation14_spill] sm:$0xff] %v5411_v63  ;;  %v4468_v63 = vld [vmem:[%s7066_s0 + $0x214] sm:$0xf] }
 0x14e   :  { %v624_v21 = vpop.f32.mrf.mxu0 }
 0x14f   :  { %v5422_v20 = vpop.f32.mrf.mxu3  ;;  %v625_v38 = vadd.f32 %v5020_v58, %v624_v21  ;;  %v723_v44 = vpop.f32.mrf.mxu1  ;;  %v4464_v21 = vld [vmem:[%s7066_s0 + $0x1f0] sm:$0xf0] }
 0x151   :  { %v724_v46 = vadd.f32 %v723_v44, %v625_v38  ;;  %3755 = vmatmul.msk.bf16.gmra.mxu0 %vm505_vm0, %v3561_v17  ;;  %v4517_v38 = vld [vmem:[%s7066_s0 + $0x398] sm:$0xf0]  ;;  %v4516_v44 = vld [vmem:[%s7066_s0 + $0x394] sm:$0xf] }
 0x152   :  { %1997 = vmatmul.bf16.gmra.mxu1 %v3859_v25  ;;  %v3870_v25 = vld [vmem:[%s7066_s0 + $0x390] sm:$0xf] }
 0x153   :  { %v5426_v15 = vadd.f32 %v822_v54, %v724_v46  ;;  %v3572_v54 = vld [vmem:[%s7066_s0 + $0x1e8] sm:$0xf]  ;;  %v3872_v46 = vld [vmem:[%s7066_s0 + $0x39c] sm:$0xf0] }
 0x154   :  { %2096 = vmatmul.bf16.gmra.mxu3 %v3863_v26  ;;  %v829_v1 = vpop.f32.mrf.mxu2 }
 0x155   :  { %7136 = vst [vmem:[#allocation15_spill] sm:$0xff] %v5426_v15 }
 0x156   :  { %v626_v61 = vpop.f32.mrf.mxu0 }
 0x157   :  { %v5434_v57 = vpop.f32.mrf.mxu3  ;;  %v627_v14 = vadd.f32 %v5020_v58, %v626_v61  ;;  %v725_v51 = vpop.f32.mrf.mxu1  ;;  %v3573_v61 = vor.u32 %v4464_v21, %v3572_v54  ;;  %v3590_v54 = vld [vmem:[%s7066_s0 + $0x21c] sm:$0xf0] }
 0x159   :  { %v726_v17 = vadd.f32 %v725_v51, %v627_v14  ;;  %1376 = vmatmul.bf16.gmra.mxu2 %v3581_v10  ;;  %v3871_v14 = vor.u32 %v4517_v38, %v3870_v25 }
 0x15b   :  { %v5446_v26 = vadd.f32 %v824_v41, %v726_v17  ;;  %v3875_v41 = vor.u32 %v4516_v44, %v3872_v46  ;;  %v3593_v44 = vor.u32 %v4468_v63, %v3590_v54  ;;  %v4520_v63 = vld [vmem:[%s7066_s0 + $0x3b0] sm:$0xf0] }
 0x15c   :  { %v832_v50 = vpop.f32.mrf.mxu2 }
 0x15d   :  { %7137 = vst [vmem:[#allocation16_spill] sm:$0xff] %v5446_v26 }
 0x15e   :  { %v629_v10 = vpop.f32.mrf.mxu0 }
 0x15f   :  { %v5457_v31 = vpop.f32.mrf.mxu3  ;;  %v630_v51 = vadd.f32 %v5020_v58, %v629_v10  ;;  %v728_v17 = vpop.f32.mrf.mxu1 }
 0x160   :  { %7138 = vst [vmem:[#allocation17_spill] sm:$0xff] %v5457_v31  ;;  %v4471_v31 = vld [vmem:[%s7066_s0 + $0x22c] sm:$0xf] }
 0x161   :  { %v729_v26 = vadd.f32 %v728_v17, %v630_v51  ;;  %3756 = vmatmul.msk.bf16.gmra.mxu0 %vm505_vm0, %v3573_v61  ;;  %v4519_v51 = vld [vmem:[%s7066_s0 + $0x3ac] sm:$0xf]  ;;  %v3884_v17 = vld [vmem:[%s7066_s0 + $0x3b4] sm:$0xf0] }
 0x162   :  { %2002 = vmatmul.bf16.gmra.mxu1 %v3871_v14  ;;  %v3882_v14 = vld [vmem:[%s7066_s0 + $0x3a8] sm:$0xf] }
 0x163   :  { %v5461_v15 = vadd.f32 %v827_v40, %v729_v26  ;;  %v3584_v40 = vld [vmem:[%s7066_s0 + $0x200] sm:$0xf]  ;;  %v4467_v26 = vld [vmem:[%s7066_s0 + $0x208] sm:$0xf0] }
 0x164   :  { %2101 = vmatmul.bf16.gmra.mxu3 %v3875_v41  ;;  %v834_v21 = vpop.f32.mrf.mxu2 }
 0x165   :  { %7139 = vst [vmem:[#allocation18_spill] sm:$0xff] %v5461_v15 }
 0x166   :  { %v631_v38 = vpop.f32.mrf.mxu0 }
 0x167   :  { %v5469_v25 = vpop.f32.mrf.mxu3  ;;  %v632_v46 = vadd.f32 %v5020_v58, %v631_v38  ;;  %v730_v61 = vpop.f32.mrf.mxu1 }
 0x168   :  { %7140 = vst [vmem:[#allocation19_spill] sm:$0xff] %v5469_v25 }
 0x169   :  { %v731_v10 = vadd.f32 %v730_v61, %v632_v46  ;;  %1381 = vmatmul.bf16.gmra.mxu2 %v3593_v44  ;;  %v3585_v44 = vor.u32 %v4467_v26, %v3584_v40  ;;  %v3883_v61 = vor.u32 %v4520_v63, %v3882_v14  ;;  %v3602_v40 = vld [vmem:[%s7066_s0 + $0x234] sm:$0xf0] }
 0x16b   :  { %v5481_v41 = vadd.f32 %v829_v1, %v731_v10  ;;  %v3887_v1 = vor.u32 %v4519_v51, %v3884_v17  ;;  %v3605_v51 = vor.u32 %v4471_v31, %v3602_v40  ;;  %v4523_v31 = vld [vmem:[%s7066_s0 + $0x3c8] sm:$0xf0] }
 0x16c   :  { %v837_v54 = vpop.f32.mrf.mxu2 }
 0x16d   :  { %7141 = vst [vmem:[#allocation20_spill] sm:$0xff] %v5481_v41 }
 0x16e   :  { %v634_v46 = vpop.f32.mrf.mxu0 }
 0x16f   :  { %v5492_v38 = vpop.f32.mrf.mxu3  ;;  %v635_v10 = vadd.f32 %v5020_v58, %v634_v46  ;;  %v733_v41 = vpop.f32.mrf.mxu1  ;;  %v3894_v46 = vld [vmem:[%s7066_s0 + $0x3c0] sm:$0xf] }
 0x170   :  { %7142 = vst [vmem:[#allocation21_spill] sm:$0xff] %v5492_v38  ;;  %v4474_v38 = vld [vmem:[%s7066_s0 + $0x244] sm:$0xf] }
 0x171   :  { %v734_v15 = vadd.f32 %v733_v41, %v635_v10  ;;  %3757 = vmatmul.msk.bf16.gmra.mxu0 %vm505_vm0, %v3585_v44  ;;  %v3896_v10 = vld [vmem:[%s7066_s0 + $0x3cc] sm:$0xf0] }
 0x172   :  { %2007 = vmatmul.bf16.gmra.mxu1 %v3883_v61 }
 0x173   :  { %v5496_v25 = vadd.f32 %v832_v50, %v734_v15  ;;  %v3596_v15 = vld [vmem:[%s7066_s0 + $0x218] sm:$0xf]  ;;  %v4470_v50 = vld [vmem:[%s7066_s0 + $0x220] sm:$0xf0] }
 0x174   :  { %2106 = vmatmul.bf16.gmra.mxu3 %v3887_v1  ;;  %v839_v26 = vpop.f32.mrf.mxu2  ;;  %v4522_v1 = vld [vmem:[%s7066_s0 + $0x3c4] sm:$0xf] }
 0x175   :  { %7143 = vst [vmem:[#allocation22_spill] sm:$0xff] %v5496_v25 }
 0x176   :  { %v636_v63 = vpop.f32.mrf.mxu0 }
 0x177   :  { %v5504_v14 = vpop.f32.mrf.mxu3  ;;  %v637_v41 = vadd.f32 %v5020_v58, %v636_v63  ;;  %v735_v17 = vpop.f32.mrf.mxu1 }
 0x178   :  { %7144 = vst [vmem:[#allocation23_spill] sm:$0xff] %v5504_v14 }
 0x179   :  { %v736_v44 = vadd.f32 %v735_v17, %v637_v41  ;;  %1386 = vmatmul.bf16.gmra.mxu2 %v3605_v51  ;;  %v3597_v51 = vor.u32 %v4470_v50, %v3596_v15  ;;  %v3895_v17 = vor.u32 %v4523_v31, %v3894_v46  ;;  %v3614_v15 = vld [vmem:[%s7066_s0 + $0x24c] sm:$0xf0] }
 0x17b   :  { %v5516_v61 = vadd.f32 %v834_v21, %v736_v44  ;;  %v3899_v21 = vor.u32 %v4522_v1, %v3896_v10  ;;  %v3617_v1 = vor.u32 %v4474_v38, %v3614_v15  ;;  %v4526_v38 = vld [vmem:[%s7066_s0 + $0x3e0] sm:$0xf0] }
 0x17c   :  { %v842_v40 = vpop.f32.mrf.mxu2 }
 0x17d   :  { %7145 = vst [vmem:[#allocation24_spill] sm:$0xff] %v5516_v61 }
 0x17e   :  { %v639_v41 = vpop.f32.mrf.mxu0 }
 0x17f   :  { %v5527_v63 = vpop.f32.mrf.mxu3  ;;  %v640_v44 = vadd.f32 %v5020_v58, %v639_v41  ;;  %v738_v61 = vpop.f32.mrf.mxu1  ;;  %v3906_v41 = vld [vmem:[%s7066_s0 + $0x3d8] sm:$0xf] }
 0x180   :  { %7146 = vst [vmem:[#allocation25_spill] sm:$0xff] %v5527_v63  ;;  %v4477_v63 = vld [vmem:[%s7066_s0 + $0x25c] sm:$0xf] }
 0x181   :  { %v739_v25 = vadd.f32 %v738_v61, %v640_v44  ;;  %3758 = vmatmul.msk.bf16.gmra.mxu0 %vm505_vm0, %v3597_v51  ;;  %v3908_v44 = vld [vmem:[%s7066_s0 + $0x3e4] sm:$0xf0] }
 0x182   :  { %2012 = vmatmul.bf16.gmra.mxu1 %v3895_v17 }
 0x183   :  { %v5531_v14 = vadd.f32 %v837_v54, %v739_v25  ;;  %v3608_v25 = vld [vmem:[%s7066_s0 + $0x230] sm:$0xf]  ;;  %v4473_v54 = vld [vmem:[%s7066_s0 + $0x238] sm:$0xf0] }
 0x184   :  { %2111 = vmatmul.bf16.gmra.mxu3 %v3899_v21  ;;  %v844_v50 = vpop.f32.mrf.mxu2  ;;  %v4525_v21 = vld [vmem:[%s7066_s0 + $0x3dc] sm:$0xf] }
 0x185   :  { %7147 = vst [vmem:[#allocation26_spill] sm:$0xff] %v5531_v14 }
 0x186   :  { %v641_v31 = vpop.f32.mrf.mxu0 }
 0x187   :  { %v5539_v46 = vpop.f32.mrf.mxu3  ;;  %v642_v61 = vadd.f32 %v5020_v58, %v641_v31  ;;  %v740_v10 = vpop.f32.mrf.mxu1 }
 0x188   :  { %7148 = vst [vmem:[#allocation27_spill] sm:$0xff] %v5539_v46 }
 0x189   :  { %v741_v51 = vadd.f32 %v740_v10, %v642_v61  ;;  %1391 = vmatmul.bf16.gmra.mxu2 %v3617_v1  ;;  %v3609_v1 = vor.u32 %v4473_v54, %v3608_v25  ;;  %v3907_v10 = vor.u32 %v4526_v38, %v3906_v41  ;;  %v3626_v25 = vld [vmem:[%s7066_s0 + $0x264] sm:$0xf0] }
 0x18b   :  { %v5551_v17 = vadd.f32 %v839_v26, %v741_v51  ;;  %v3911_v26 = vor.u32 %v4525_v21, %v3908_v44  ;;  %v3629_v21 = vor.u32 %v4477_v63, %v3626_v25  ;;  %v4529_v63 = vld [vmem:[%s7066_s0 + $0x3f8] sm:$0xf0] }
 0x18c   :  { %v847_v15 = vpop.f32.mrf.mxu2 }
 0x18d   :  { %7149 = vst [vmem:[#allocation28_spill] sm:$0xff] %v5551_v17 }
 0x18e   :  { %v644_v61 = vpop.f32.mrf.mxu0 }
 0x18f   :  { %v5562_v31 = vpop.f32.mrf.mxu3  ;;  %v645_v51 = vadd.f32 %v5020_v58, %v644_v61  ;;  %v743_v17 = vpop.f32.mrf.mxu1  ;;  %v3918_v61 = vld [vmem:[%s7066_s0 + $0x3f0] sm:$0xf] }
 0x190   :  { %7150 = vst [vmem:[#allocation29_spill] sm:$0xff] %v5562_v31  ;;  %v4480_v31 = vld [vmem:[%s7066_s0 + $0x274] sm:$0xf] }
 0x191   :  { %v744_v14 = vadd.f32 %v743_v17, %v645_v51  ;;  %3759 = vmatmul.msk.bf16.gmra.mxu0 %vm505_vm0, %v3609_v1  ;;  %v3920_v51 = vld [vmem:[%s7066_s0 + $0x3fc] sm:$0xf0] }
 0x192   :  { %2017 = vmatmul.bf16.gmra.mxu1 %v3907_v10 }
 0x193   :  { %v5566_v46 = vadd.f32 %v842_v40, %v744_v14  ;;  %v3620_v14 = vld [vmem:[%s7066_s0 + $0x248] sm:$0xf]  ;;  %v4476_v40 = vld [vmem:[%s7066_s0 + $0x250] sm:$0xf0] }
 0x194   :  { %2116 = vmatmul.bf16.gmra.mxu3 %v3911_v26  ;;  %v849_v54 = vpop.f32.mrf.mxu2  ;;  %v4528_v26 = vld [vmem:[%s7066_s0 + $0x3f4] sm:$0xf] }
 0x195   :  { %7151 = vst [vmem:[#allocation30_spill] sm:$0xff] %v5566_v46 }
 0x196   :  { %v646_v38 = vpop.f32.mrf.mxu0 }
 0x197   :  { %v5574_v41 = vpop.f32.mrf.mxu3  ;;  %v647_v17 = vadd.f32 %v5020_v58, %v646_v38  ;;  %v745_v44 = vpop.f32.mrf.mxu1 }
 0x198   :  { %7152 = vst [vmem:[#allocation31_spill] sm:$0xff] %v5574_v41 }
 0x199   :  { %v746_v1 = vadd.f32 %v745_v44, %v647_v17  ;;  %1396 = vmatmul.bf16.gmra.mxu2 %v3629_v21  ;;  %v3621_v21 = vor.u32 %v4476_v40, %v3620_v14  ;;  %v3919_v44 = vor.u32 %v4529_v63, %v3918_v61  ;;  %v3638_v14 = vld [vmem:[%s7066_s0 + $0x27c] sm:$0xf0] }
 0x19b   :  { %v5586_v10 = vadd.f32 %v844_v50, %v746_v1  ;;  %v3923_v50 = vor.u32 %v4528_v26, %v3920_v51  ;;  %v3641_v26 = vor.u32 %v4480_v31, %v3638_v14  ;;  %v4531_v31 = vld [vmem:[%s7066_s0 + $0x40c] sm:$0xf] }
 0x19c   :  { %v852_v25 = vpop.f32.mrf.mxu2 }
 0x19d   :  { %7153 = vst [vmem:[#allocation32_spill] sm:$0xff] %v5586_v10 }
 0x19e   :  { %v649_v17 = vpop.f32.mrf.mxu0 }
 0x19f   :  { %v5597_v38 = vpop.f32.mrf.mxu3  ;;  %v650_v1 = vadd.f32 %v5020_v58, %v649_v17  ;;  %v748_v10 = vpop.f32.mrf.mxu1  ;;  %v3930_v17 = vld [vmem:[%s7066_s0 + $0x408] sm:$0xf] }
 0x1a0   :  { %7154 = vst [vmem:[#allocation33_spill] sm:$0xff] %v5597_v38 }
 0x1a1   :  { %v749_v46 = vadd.f32 %v748_v10, %v650_v1  ;;  %3760 = vmatmul.msk.bf16.gmra.mxu0 %vm505_vm0, %v3621_v21  ;;  %v5635_v1 = vld [vmem:[%s7067_s2] ss:$0 sm:$0xff] }
 0x1a2   :  { %2022 = vmatmul.bf16.gmra.mxu1 %v3919_v44 }
 0x1a3   :  { %v5601_v41 = vadd.f32 %v847_v15, %v749_v46  ;;  %v3632_v46 = vld [vmem:[%s7066_s0 + $0x260] sm:$0xf]  ;;  %v4479_v15 = vld [vmem:[%s7066_s0 + $0x268] sm:$0xf0] }
 0x1a4   :  { %2121 = vmatmul.bf16.gmra.mxu3 %v3923_v50  ;;  %v854_v40 = vpop.f32.mrf.mxu2  ;;  %v3932_v50 = vld [vmem:[%s7066_s0 + $0x414] sm:$0xf0] }
 0x1a5   :  { %7155 = vst [vmem:[#allocation34_spill] sm:$0xff] %v5601_v41 }
 0x1a6   :  { %v651_v63 = vpop.f32.mrf.mxu0 }
 0x1a7   :  { %v5609_v61 = vpop.f32.mrf.mxu3  ;;  %v652_v10 = vadd.f32 %v5020_v58, %v651_v63  ;;  %v750_v51 = vpop.f32.mrf.mxu1  ;;  %v4532_v58 = vld [vmem:[%s7066_s0 + $0x410] sm:$0xf0] }
 0x1a8   :  { %7156 = vst [vmem:[#allocation35_spill] sm:$0xff] %v5609_v61 }
 0x1a9   :  { %v751_v21 = vadd.f32 %v750_v51, %v652_v10  ;;  %1401 = vmatmul.bf16.gmra.mxu2 %v3641_v26  ;;  %v3633_v26 = vor.u32 %v4479_v15, %v3632_v46  ;;  %v3650_v46 = vld [vmem:[%s7066_s0 + $0x294] sm:$0xf0]  ;;  %v1266_v15 = vadd.f32 %v5635_v1, %v5074_v27  ;;  %v3942_v27 = vld [vmem:[%s7066_s0 + $0x420] sm:$0xf] }
 0x1ab   :  { %v5621_v44 = vadd.f32 %v849_v54, %v751_v21  ;;  %v1264_v54 = vadd.f32 %v5635_v1, %v5050_v13  ;;  %v3931_v21 = vor.u32 %v4532_v58, %v3930_v17  ;;  %v4483_v13 = vld [vmem:[%s7066_s0 + $0x28c] sm:$0xf] }
 0x1ac   :  { %v1362_v63 = vpop.f32.mrf.mxu2 }
 0x1ad   :  { %7157 = vst [vmem:[#allocation36_spill] sm:$0xff] %v5621_v44  ;;  %v1363_v10 = vadd.f32 %v1362_v63, %v1264_v54  ;;  %v3935_v44 = vor.u32 %v4531_v31, %v3932_v50  ;;  %v3653_v31 = vor.u32 %v4483_v13, %v3650_v46  ;;  %v3644_v50 = vld [vmem:[%s7066_s0 + $0x278] sm:$0xf]  ;;  %v4482_v54 = vld [vmem:[%s7066_s0 + $0x280] sm:$0xf0]  ;;  %v1269_v13 = vadd.f32 %v5635_v1, %v5085_v39 }
 0x1ae   :  { %v654_v51 = vpop.f32.mrf.mxu0  ;;  %v4486_v39 = vld [vmem:[%s7066_s0 + $0x2a4] sm:$0xf] }
 0x1af   :  { %v5639_v14 = vpop.f32.mrf.mxu3  ;;  %v655_v41 = vadd.f32 %v5635_v1, %v654_v51  ;;  %v753_v61 = vpop.f32.mrf.mxu1  ;;  %v4534_v51 = vld [vmem:[%s7066_s0 + $0x424] sm:$0xf] }
 0x1b1   :  { %v754_v38 = vadd.f32 %v753_v61, %v655_v41  ;;  %3761 = vmatmul.msk.bf16.gmra.mxu0 %vm505_vm0, %v3633_v26  ;;  %v4535_v26 = vld [vmem:[%s7066_s0 + $0x428] sm:$0xf0] }
 0x1b2   :  { %2027 = vmatmul.bf16.gmra.mxu1 %v3931_v21  ;;  %v3944_v21 = vld [vmem:[%s7066_s0 + $0x42c] sm:$0xf0] }
 0x1b3   :  { %v5643_v23 = vadd.f32 %v852_v25, %v754_v38 }
 0x1b4   :  { %2126 = vmatmul.bf16.gmra.mxu3 %v3935_v44  ;;  %v1364_v41 = vpop.f32.mrf.mxu2 }
 0x1b5   :  { %7158 = vst [vmem:[#allocation37_spill] sm:$0xff] %v5643_v23  ;;  %v1365_v61 = vadd.f32 %v1364_v41, %v1266_v15 }
 0x1b6   :  { %v656_v58 = vpop.f32.mrf.mxu0 }
 0x1b7   :  { %v5653_v17 = vpop.f32.mrf.mxu3  ;;  %v657_v25 = vadd.f32 %v5635_v1, %v656_v58  ;;  %v755_v38 = vpop.f32.mrf.mxu1 }
 0x1b9   :  { %v756_v44 = vadd.f32 %v755_v38, %v657_v25  ;;  %1406 = vmatmul.bf16.gmra.mxu2 %v3653_v31  ;;  %v3943_v31 = vor.u32 %v4535_v26, %v3942_v27  ;;  %v3947_v25 = vor.u32 %v4534_v51, %v3944_v21 }
 0x1bb   :  { %v5665_v63 = vadd.f32 %v854_v40, %v756_v44  ;;  %v3645_v40 = vor.u32 %v4482_v54, %v3644_v50  ;;  %v3662_v50 = vld [vmem:[%s7066_s0 + $0x2ac] sm:$0xf0] }
 0x1bc   :  { %v1367_v15 = vpop.f32.mrf.mxu2 }
 0x1bd   :  { %7159 = vst [vmem:[#allocation38_spill] sm:$0xff] %v5665_v63  ;;  %v1368_v41 = vadd.f32 %v1367_v15, %v1269_v13  ;;  %v3665_v13 = vor.u32 %v4486_v39, %v3662_v50  ;;  %v1274_v39 = vadd.f32 %v5635_v1, %v5120_v2 }
 0x1be   :  { %v1461_v58 = vpop.f32.mrf.mxu0 }
 0x1bf   :  { %v5678_v46 = vpop.f32.mrf.mxu3  ;;  %v5680_v38 = vadd.f32 %v1461_v58, %v1363_v10  ;;  %v1993_v44 = vpop.f32.mrf.mxu1  ;;  %v1271_v10 = vadd.f32 %v5635_v1, %v5109_v53  ;;  %v4485_v53 = vld [vmem:[%s7066_s0 + $0x298] sm:$0xf0] }
 0x1c0   :  { %v1994_v23 = vadd.f32 %v5635_v1, %v1993_v44  ;;  %v3956_v44 = vld [vmem:[%s7066_s0 + $0x444] sm:$0xf0] }
 0x1c1   :  { %7160 = vst [vmem:[#allocation39_spill] sm:$0xff] %v5680_v38  ;;  %3762 = vmatmul.msk.bf16.gmra.mxu0 %vm505_vm0, %v3645_v40 }
 0x1c2   :  { %2032 = vmatmul.bf16.gmra.mxu1 %v3943_v31  ;;  %v3656_v31 = vld [vmem:[%s7066_s0 + $0x290] sm:$0xf] }
 0x1c4   :  { %2131 = vmatmul.bf16.gmra.mxu3 %v3947_v25  ;;  %v1369_v54 = vpop.f32.mrf.mxu2  ;;  %v4537_v25 = vld [vmem:[%s7066_s0 + $0x43c] sm:$0xf] }
 0x1c5   :  { %v1370_v26 = vadd.f32 %v1369_v54, %v1271_v10 }
 0x1c6   :  { %v1463_v21 = vpop.f32.mrf.mxu0 }
 0x1c7   :  { %v2092_v27 = vpop.f32.mrf.mxu3  ;;  %v5696_v15 = vadd.f32 %v1463_v21, %v1365_v61  ;;  %v1995_v40 = vpop.f32.mrf.mxu1  ;;  %v4538_v61 = vld [vmem:[%s7066_s0 + $0x440] sm:$0xf0] }
 0x1c8   :  { %v5694_v51 = vadd.f32 %v2092_v27, %v1994_v23  ;;  %v3954_v23 = vld [vmem:[%s7066_s0 + $0x438] sm:$0xf]  ;;  %v1996_v50 = vadd.f32 %v5635_v1, %v1995_v40  ;;  %v3657_v27 = vor.u32 %v4485_v53, %v3656_v31  ;;  %v4489_v40 = vld [vmem:[%s7066_s0 + $0x2bc] sm:$0xf]  ;;  %v3674_v31 = vld [vmem:[%s7066_s0 + $0x2c4] sm:$0xf0] }
 0x1c9   :  { %7161 = vst [vmem:[#allocation40_spill] sm:$0xff] %v5696_v15  ;;  %1411 = vmatmul.bf16.gmra.mxu2 %v3665_v13  ;;  %v3955_v63 = vor.u32 %v4538_v61, %v3954_v23  ;;  %v3959_v15 = vor.u32 %v4537_v25, %v3956_v44 }
 0x1cc   :  { %v1372_v10 = vpop.f32.mrf.mxu2 }
 0x1cd   :  { %v1373_v21 = vadd.f32 %v1372_v10, %v1274_v39  ;;  %v3668_v39 = vld [vmem:[%s7066_s0 + $0x2a8] sm:$0xf]  ;;  %v4540_v10 = vld [vmem:[%s7066_s0 + $0x454] sm:$0xf] }
 0x1ce   :  { %v1466_v58 = vpop.f32.mrf.mxu0 }
 0x1cf   :  { %v2094_v54 = vpop.f32.mrf.mxu3  ;;  %v5723_v22 = vadd.f32 %v1466_v58, %v1368_v41  ;;  %v1998_v38 = vpop.f32.mrf.mxu1  ;;  %v1276_v41 = vadd.f32 %v5635_v1, %v5144_v18  ;;  %v4488_v18 = vld [vmem:[%s7066_s0 + $0x2b0] sm:$0xf0] }
 0x1d0   :  { %v5721_v13 = vadd.f32 %v2094_v54, %v1996_v50  ;;  %v1999_v2 = vadd.f32 %v5635_v1, %v1998_v38  ;;  %v3677_v38 = vor.u32 %v4489_v40, %v3674_v31  ;;  %v3966_v50 = vld [vmem:[%s7066_s0 + $0x450] sm:$0xf]  ;;  %v3968_v54 = vld [vmem:[%s7066_s0 + $0x45c] sm:$0xf0] }
 0x1d1   :  { %3763 = vmatmul.msk.bf16.gmra.mxu0 %vm505_vm0, %v3657_v27  ;;  %v1279_v27 = vadd.f32 %v5635_v1, %v5155_v32  ;;  %v3971_v44 = vor.u32 %v4540_v10, %v3968_v54 }
 0x1d2   :  { %2037 = vmatmul.bf16.gmra.mxu1 %v3955_v63 }
 0x1d4   :  { %2136 = vmatmul.bf16.gmra.mxu3 %v3959_v15  ;;  %v1374_v58 = vpop.f32.mrf.mxu2 }
 0x1d5   :  { %v1375_v23 = vadd.f32 %v1374_v58, %v1276_v41  ;;  %v3669_v41 = vor.u32 %v4488_v18, %v3668_v39  ;;  %v3686_v39 = vld [vmem:[%s7066_s0 + $0x2dc] sm:$0xf0] }
 0x1d6   :  { %v1468_v25 = vpop.f32.mrf.mxu0 }
 0x1d7   :  { %v2097_v53 = vpop.f32.mrf.mxu3  ;;  %v5739_v63 = vadd.f32 %v1468_v25, %v1370_v26  ;;  %v2000_v15 = vpop.f32.mrf.mxu1  ;;  %v4541_v26 = vld [vmem:[%s7066_s0 + $0x458] sm:$0xf0] }
 0x1d8   :  { %v5737_v61 = vadd.f32 %v2097_v53, %v1999_v2  ;;  %v2001_v2 = vadd.f32 %v5635_v1, %v2000_v15  ;;  %v4492_v15 = vld [vmem:[%s7066_s0 + $0x2d4] sm:$0xf] }
 0x1d9   :  { %7162 = vst [vmem:[#allocation41_spill] sm:$0xff] %v5739_v63  ;;  %1416 = vmatmul.bf16.gmra.mxu2 %v3677_v38  ;;  %v3967_v38 = vor.u32 %v4541_v26, %v3966_v50 }
 0x1dc   :  { %v1377_v40 = vpop.f32.mrf.mxu2 }
 0x1dd   :  { %v1378_v58 = vadd.f32 %v1377_v40, %v1279_v27  ;;  %v3680_v40 = vld [vmem:[%s7066_s0 + $0x2c0] sm:$0xf] }
 0x1de   :  { %v1471_v25 = vpop.f32.mrf.mxu0 }
 0x1df   :  { %v2099_v31 = vpop.f32.mrf.mxu3  ;;  %v5766_v9 = vadd.f32 %v1471_v25, %v1373_v21  ;;  %v2003_v63 = vpop.f32.mrf.mxu1  ;;  %v1281_v21 = vadd.f32 %v5635_v1, %v5179_v49  ;;  %v4491_v49 = vld [vmem:[%s7066_s0 + $0x2c8] sm:$0xf0]  ;;  %v3980_v25 = vld [vmem:[%s7066_s0 + $0x474] sm:$0xf0] }
 0x1e0   :  { %v5764_v53 = vadd.f32 %v2099_v31, %v2001_v2  ;;  %v2004_v32 = vadd.f32 %v5635_v1, %v2003_v63  ;;  %v3689_v63 = vor.u32 %v4492_v15, %v3686_v39  ;;  %v3978_v31 = vld [vmem:[%s7066_s0 + $0x468] sm:$0xf] }
 0x1e1   :  { %3764 = vmatmul.msk.bf16.gmra.mxu0 %vm505_vm0, %v3669_v41  ;;  %v4543_v41 = vld [vmem:[%s7066_s0 + $0x46c] sm:$0xf] }
 0x1e2   :  { %2042 = vmatmul.bf16.gmra.mxu1 %v3967_v38  ;;  %v1284_v38 = vadd.f32 %v5635_v1, %v5190_v0  ;;  %v3983_v2 = vor.u32 %v4543_v41, %v3980_v25 }
 0x1e4   :  { %2141 = vmatmul.bf16.gmra.mxu3 %v3971_v44  ;;  %v1379_v18 = vpop.f32.mrf.mxu2 }
 0x1e5   :  { %v1380_v26 = vadd.f32 %v1379_v18, %v1281_v21  ;;  %v3681_v21 = vor.u32 %v4491_v49, %v3680_v40  ;;  %v3698_v40 = vld [vmem:[%s7066_s0 + $0x2f4] sm:$0xf0] }
 0x1e6   :  { %v1473_v54 = vpop.f32.mrf.mxu0 }
 0x1e7   :  { %v2102_v50 = vpop.f32.mrf.mxu3  ;;  %v5782_v27 = vadd.f32 %v1473_v54, %v1375_v23  ;;  %v2005_v44 = vpop.f32.mrf.mxu1  ;;  %v4544_v23 = vld [vmem:[%s7066_s0 + $0x470] sm:$0xf0] }
 0x1e8   :  { %v5780_v10 = vadd.f32 %v2102_v50, %v2004_v32  ;;  %v2006_v32 = vadd.f32 %v5635_v1, %v2005_v44  ;;  %v4495_v44 = vld [vmem:[%s7066_s0 + $0x2ec] sm:$0xf] }
 0x1e9   :  { %7163 = vst [vmem:[#allocation42_spill] sm:$0xff] %v5782_v27  ;;  %1421 = vmatmul.bf16.gmra.mxu2 %v3689_v63  ;;  %v3979_v63 = vor.u32 %v4544_v23, %v3978_v31 }
 0x1ec   :  { %v1382_v15 = vpop.f32.mrf.mxu2 }
 0x1ed   :  { %v1383_v18 = vadd.f32 %v1382_v15, %v1284_v38  ;;  %v3692_v15 = vld [vmem:[%s7066_s0 + $0x2d8] sm:$0xf] }
 0x1ee   :  { %v1476_v54 = vpop.f32.mrf.mxu0 }
 0x1ef   :  { %v2104_v39 = vpop.f32.mrf.mxu3  ;;  %v5809_v48 = vadd.f32 %v1476_v54, %v1378_v58  ;;  %v2008_v27 = vpop.f32.mrf.mxu1  ;;  %v1286_v58 = vadd.f32 %v5635_v1, %v5214_v19  ;;  %v4494_v19 = vld [vmem:[%s7066_s0 + $0x2e0] sm:$0xf0]  ;;  %v3992_v54 = vld [vmem:[%s7066_s0 + $0x48c] sm:$0xf0] }
 0x1f0   :  { %v5807_v50 = vadd.f32 %v2104_v39, %v2006_v32  ;;  %v2009_v0 = vadd.f32 %v5635_v1, %v2008_v27  ;;  %v3701_v27 = vor.u32 %v4495_v44, %v3698_v40  ;;  %v3990_v39 = vld [vmem:[%s7066_s0 + $0x480] sm:$0xf] }
 0x1f1   :  { %3765 = vmatmul.msk.bf16.gmra.mxu0 %vm505_vm0, %v3681_v21  ;;  %v4546_v21 = vld [vmem:[%s7066_s0 + $0x484] sm:$0xf] }
 0x1f2   :  { %2047 = vmatmul.bf16.gmra.mxu1 %v3979_v63  ;;  %v1289_v63 = vadd.f32 %v5635_v1, %v5225_v36  ;;  %v3995_v32 = vor.u32 %v4546_v21, %v3992_v54 }
 0x1f4   :  { %2146 = vmatmul.bf16.gmra.mxu3 %v3983_v2  ;;  %v1384_v49 = vpop.f32.mrf.mxu2 }
 0x1f5   :  { %v1385_v23 = vadd.f32 %v1384_v49, %v1286_v58  ;;  %v3693_v58 = vor.u32 %v4494_v19, %v3692_v15  ;;  %v3710_v15 = vld [vmem:[%s7066_s0 + $0x30c] sm:$0xf0] }
 0x1f6   :  { %v1478_v25 = vpop.f32.mrf.mxu0 }
 0x1f7   :  { %v2107_v31 = vpop.f32.mrf.mxu3  ;;  %v5825_v38 = vadd.f32 %v1478_v25, %v1380_v26  ;;  %v2010_v2 = vpop.f32.mrf.mxu1  ;;  %v4547_v26 = vld [vmem:[%s7066_s0 + $0x488] sm:$0xf0] }
 0x1f8   :  { %v5823_v41 = vadd.f32 %v2107_v31, %v2009_v0  ;;  %v2011_v0 = vadd.f32 %v5635_v1, %v2010_v2  ;;  %v4498_v2 = vld [vmem:[%s7066_s0 + $0x304] sm:$0xf] }
 0x1f9   :  { %7164 = vst [vmem:[#allocation43_spill] sm:$0xff] %v5825_v38  ;;  %1426 = vmatmul.bf16.gmra.mxu2 %v3701_v27  ;;  %v3991_v27 = vor.u32 %v4547_v26, %v3990_v39 }
 0x1fc   :  { %v1387_v44 = vpop.f32.mrf.mxu2 }
 0x1fd   :  { %v1388_v49 = vadd.f32 %v1387_v44, %v1289_v63  ;;  %v3704_v44 = vld [vmem:[%s7066_s0 + $0x2f0] sm:$0xf] }
 0x1fe   :  { %v1481_v25 = vpop.f32.mrf.mxu0 }
 0x1ff   :  { %v2109_v40 = vpop.f32.mrf.mxu3  ;;  %v5852_v12 = vadd.f32 %v1481_v25, %v1383_v18  ;;  %v2013_v38 = vpop.f32.mrf.mxu1  ;;  %v1291_v18 = vadd.f32 %v5635_v1, %v5249_v55  ;;  %v4497_v55 = vld [vmem:[%s7066_s0 + $0x2f8] sm:$0xf0]  ;;  %v4004_v25 = vld [vmem:[%s7066_s0 + $0x4a4] sm:$0xf0] }
 0x200   :  { %v5850_v31 = vadd.f32 %v2109_v40, %v2011_v0  ;;  %v2014_v36 = vadd.f32 %v5635_v1, %v2013_v38  ;;  %v3713_v38 = vor.u32 %v4498_v2, %v3710_v15  ;;  %v4002_v40 = vld [vmem:[%s7066_s0 + $0x498] sm:$0xf] }
 0x201   :  { %3766 = vmatmul.msk.bf16.gmra.mxu0 %vm505_vm0, %v3693_v58  ;;  %v4549_v58 = vld [vmem:[%s7066_s0 + $0x49c] sm:$0xf] }
 0x202   :  { %2052 = vmatmul.bf16.gmra.mxu1 %v3991_v27  ;;  %v1294_v27 = vadd.f32 %v5635_v1, %v5260_v8  ;;  %v4007_v0 = vor.u32 %v4549_v58, %v4004_v25 }
 0x204   :  { %2151 = vmatmul.bf16.gmra.mxu3 %v3995_v32  ;;  %v1389_v19 = vpop.f32.mrf.mxu2 }
 0x205   :  { %v1390_v26 = vadd.f32 %v1389_v19, %v1291_v18  ;;  %v3705_v18 = vor.u32 %v4497_v55, %v3704_v44  ;;  %v3722_v44 = vld [vmem:[%s7066_s0 + $0x324] sm:$0xf0] }
 0x206   :  { %v1483_v54 = vpop.f32.mrf.mxu0 }
 0x207   :  { %v2112_v39 = vpop.f32.mrf.mxu3  ;;  %v5868_v63 = vadd.f32 %v1483_v54, %v1385_v23  ;;  %v2015_v32 = vpop.f32.mrf.mxu1  ;;  %v4550_v23 = vld [vmem:[%s7066_s0 + $0x4a0] sm:$0xf0] }
 0x208   :  { %v5866_v21 = vadd.f32 %v2112_v39, %v2014_v36  ;;  %v2016_v36 = vadd.f32 %v5635_v1, %v2015_v32  ;;  %v4501_v32 = vld [vmem:[%s7066_s0 + $0x31c] sm:$0xf] }
 0x209   :  { %7165 = vst [vmem:[#allocation44_spill] sm:$0xff] %v5868_v63  ;;  %1431 = vmatmul.bf16.gmra.mxu2 %v3713_v38  ;;  %v4003_v38 = vor.u32 %v4550_v23, %v4002_v40 }
 0x20c   :  { %v1392_v2 = vpop.f32.mrf.mxu2 }
 0x20d   :  { %v1393_v19 = vadd.f32 %v1392_v2, %v1294_v27  ;;  %v3716_v2 = vld [vmem:[%s7066_s0 + $0x308] sm:$0xf] }
 0x20e   :  { %v1486_v54 = vpop.f32.mrf.mxu0 }
 0x20f   :  { %v2114_v15 = vpop.f32.mrf.mxu3  ;;  %v5895_v43 = vadd.f32 %v1486_v54, %v1388_v49  ;;  %v2018_v63 = vpop.f32.mrf.mxu1  ;;  %v1296_v49 = vadd.f32 %v5635_v1, %v5284_v33  ;;  %v4500_v33 = vld [vmem:[%s7066_s0 + $0x310] sm:$0xf0]  ;;  %v4016_v54 = vld [vmem:[%s7066_s0 + $0x4bc] sm:$0xf0] }
 0x210   :  { %v5893_v39 = vadd.f32 %v2114_v15, %v2016_v36  ;;  %v2019_v8 = vadd.f32 %v5635_v1, %v2018_v63  ;;  %v3725_v63 = vor.u32 %v4501_v32, %v3722_v44  ;;  %v4014_v15 = vld [vmem:[%s7066_s0 + $0x4b0] sm:$0xf] }
 0x211   :  { %3767 = vmatmul.msk.bf16.gmra.mxu0 %vm505_vm0, %v3705_v18  ;;  %v4552_v18 = vld [vmem:[%s7066_s0 + $0x4b4] sm:$0xf] }
 0x212   :  { %2057 = vmatmul.bf16.gmra.mxu1 %v4003_v38  ;;  %v1299_v38 = vadd.f32 %v5635_v1, %v5295_v52  ;;  %v4019_v36 = vor.u32 %v4552_v18, %v4016_v54 }
 0x214   :  { %2156 = vmatmul.bf16.gmra.mxu3 %v4007_v0  ;;  %v1394_v55 = vpop.f32.mrf.mxu2 }
 0x215   :  { %v1395_v23 = vadd.f32 %v1394_v55, %v1296_v49  ;;  %v3717_v49 = vor.u32 %v4500_v33, %v3716_v2  ;;  %v3734_v2 = vld [vmem:[%s7066_s0 + $0x33c] sm:$0xf0] }
 0x216   :  { %v1488_v25 = vpop.f32.mrf.mxu0 }
 0x217   :  { %v2117_v40 = vpop.f32.mrf.mxu3  ;;  %v5911_v27 = vadd.f32 %v1488_v25, %v1390_v26  ;;  %v2020_v0 = vpop.f32.mrf.mxu1  ;;  %v4553_v26 = vld [vmem:[%s7066_s0 + $0x4b8] sm:$0xf0] }
 0x218   :  { %v5909_v58 = vadd.f32 %v2117_v40, %v2019_v8  ;;  %v2021_v8 = vadd.f32 %v5635_v1, %v2020_v0  ;;  %v4504_v0 = vld [vmem:[%s7066_s0 + $0x334] sm:$0xf] }
 0x219   :  { %7166 = vst [vmem:[#allocation45_spill] sm:$0xff] %v5911_v27  ;;  %1436 = vmatmul.bf16.gmra.mxu2 %v3725_v63  ;;  %v4015_v63 = vor.u32 %v4553_v26, %v4014_v15 }
 0x21c   :  { %v1397_v32 = vpop.f32.mrf.mxu2 }
 0x21d   :  { %v1398_v55 = vadd.f32 %v1397_v32, %v1299_v38  ;;  %v3728_v32 = vld [vmem:[%s7066_s0 + $0x320] sm:$0xf] }
 0x21e   :  { %v1491_v25 = vpop.f32.mrf.mxu0 }
 0x21f   :  { %v2119_v44 = vpop.f32.mrf.mxu3  ;;  %v5938_v11 = vadd.f32 %v1491_v25, %v1393_v19  ;;  %v2023_v27 = vpop.f32.mrf.mxu1  ;;  %v1301_v19 = vadd.f32 %v5635_v1, %v5319_v16  ;;  %v4503_v16 = vld [vmem:[%s7066_s0 + $0x328] sm:$0xf0]  ;;  %v4028_v25 = vld [vmem:[%s7066_s0 + $0x4d4] sm:$0xf0] }
 0x220   :  { %v5936_v40 = vadd.f32 %v2119_v44, %v2021_v8  ;;  %v2024_v52 = vadd.f32 %v5635_v1, %v2023_v27  ;;  %v3737_v27 = vor.u32 %v4504_v0, %v3734_v2  ;;  %v4026_v44 = vld [vmem:[%s7066_s0 + $0x4c8] sm:$0xf] }
 0x221   :  { %3768 = vmatmul.msk.bf16.gmra.mxu0 %vm505_vm0, %v3717_v49  ;;  %v4555_v49 = vld [vmem:[%s7066_s0 + $0x4cc] sm:$0xf] }
 0x222   :  { %2062 = vmatmul.bf16.gmra.mxu1 %v4015_v63  ;;  %v1304_v63 = vadd.f32 %v5635_v1, %v5330_v34  ;;  %v4031_v8 = vor.u32 %v4555_v49, %v4028_v25 }
 0x224   :  { %2161 = vmatmul.bf16.gmra.mxu3 %v4019_v36  ;;  %v1399_v33 = vpop.f32.mrf.mxu2 }
 0x225   :  { %v1400_v26 = vadd.f32 %v1399_v33, %v1301_v19  ;;  %v3729_v19 = vor.u32 %v4503_v16, %v3728_v32  ;;  %v3746_v32 = vld [vmem:[%s7066_s0 + $0x354] sm:$0xf0] }
 0x226   :  { %v1493_v54 = vpop.f32.mrf.mxu0 }
 0x227   :  { %v2122_v15 = vpop.f32.mrf.mxu3  ;;  %v5954_v38 = vadd.f32 %v1493_v54, %v1395_v23  ;;  %v2025_v36 = vpop.f32.mrf.mxu1  ;;  %v4556_v23 = vld [vmem:[%s7066_s0 + $0x4d0] sm:$0xf0] }
 0x228   :  { %v5952_v18 = vadd.f32 %v2122_v15, %v2024_v52  ;;  %v2026_v52 = vadd.f32 %v5635_v1, %v2025_v36  ;;  %v4507_v36 = vld [vmem:[%s7066_s0 + $0x34c] sm:$0xf] }
 0x229   :  { %7167 = vst [vmem:[#allocation46_spill] sm:$0xff] %v5954_v38  ;;  %1441 = vmatmul.bf16.gmra.mxu2 %v3737_v27  ;;  %v4027_v27 = vor.u32 %v4556_v23, %v4026_v44 }
 0x22c   :  { %v1402_v0 = vpop.f32.mrf.mxu2 }
 0x22d   :  { %v1403_v33 = vadd.f32 %v1402_v0, %v1304_v63  ;;  %v3740_v0 = vld [vmem:[%s7066_s0 + $0x338] sm:$0xf] }
 0x22e   :  { %v1496_v54 = vpop.f32.mrf.mxu0 }
 0x22f   :  { %v2124_v2 = vpop.f32.mrf.mxu3  ;;  %v5981_v47 = vadd.f32 %v1496_v54, %v1398_v55  ;;  %v2028_v38 = vpop.f32.mrf.mxu1  ;;  %v1306_v55 = vadd.f32 %v5635_v1, %v5353_v3  ;;  %v4506_v3 = vld [vmem:[%s7066_s0 + $0x340] sm:$0xf0]  ;;  %v4040_v54 = vld [vmem:[%s7066_s0 + $0x4ec] sm:$0xf0] }
 0x230   :  { %v5979_v15 = vadd.f32 %v2124_v2, %v2026_v52  ;;  %v2029_v34 = vadd.f32 %v5635_v1, %v2028_v38  ;;  %v3749_v38 = vor.u32 %v4507_v36, %v3746_v32  ;;  %v4038_v2 = vld [vmem:[%s7066_s0 + $0x4e0] sm:$0xf] }
 0x231   :  { %3769 = vmatmul.msk.bf16.gmra.mxu0 %vm505_vm0, %v3729_v19  ;;  %v4558_v19 = vld [vmem:[%s7066_s0 + $0x4e4] sm:$0xf] }
 0x232   :  { %2067 = vmatmul.bf16.gmra.mxu1 %v4027_v27  ;;  %v1309_v27 = vadd.f32 %v5635_v1, %v5364_v37  ;;  %v4043_v52 = vor.u32 %v4558_v19, %v4040_v54 }
 0x234   :  { %2166 = vmatmul.bf16.gmra.mxu3 %v4031_v8  ;;  %v1404_v16 = vpop.f32.mrf.mxu2 }
 0x235   :  { %v1405_v23 = vadd.f32 %v1404_v16, %v1306_v55  ;;  %v3741_v55 = vor.u32 %v4506_v3, %v3740_v0  ;;  %v4512_v0 = vld [vmem:[%s7066_s0 + $0x370] sm:$0xf0] }
 0x236   :  { %v1498_v25 = vpop.f32.mrf.mxu0 }
 0x237   :  { %v2127_v44 = vpop.f32.mrf.mxu3  ;;  %v5997_v63 = vadd.f32 %v1498_v25, %v1400_v26  ;;  %v2030_v8 = vpop.f32.mrf.mxu1  ;;  %v4559_v26 = vld [vmem:[%s7066_s0 + $0x4e8] sm:$0xf0] }
 0x238   :  { %v5995_v49 = vadd.f32 %v2127_v44, %v2029_v34  ;;  %v2031_v34 = vadd.f32 %v5635_v1, %v2030_v8  ;;  %v3854_v8 = vld [vmem:[%s7066_s0 + $0x368] sm:$0xf] }
 0x239   :  { %7168 = vst [vmem:[#allocation47_spill] sm:$0xff] %v5997_v63  ;;  %1446 = vmatmul.bf16.gmra.mxu2 %v3749_v38  ;;  %v4039_v38 = vor.u32 %v4559_v26, %v4038_v2 }
 0x23c   :  { %v1407_v36 = vpop.f32.mrf.mxu2 }
 0x23d   :  { %v1408_v16 = vadd.f32 %v1407_v36, %v1309_v27  ;;  %v3752_v36 = vld [vmem:[%s7066_s0 + $0x350] sm:$0xf] }
 0x23e   :  { %v1501_v25 = vpop.f32.mrf.mxu0 }
 0x23f   :  { %v2129_v32 = vpop.f32.mrf.mxu3  ;;  %v6024_v24 = vadd.f32 %v1501_v25, %v1403_v33  ;;  %v2033_v63 = vpop.f32.mrf.mxu1  ;;  %v1311_v33 = vadd.f32 %v5635_v1, %v5387_v6  ;;  %v4509_v6 = vld [vmem:[%s7066_s0 + $0x358] sm:$0xf0]  ;;  %v4052_v25 = vld [vmem:[%s7066_s0 + $0x504] sm:$0xf0] }
 0x240   :  { %v6022_v44 = vadd.f32 %v2129_v32, %v2031_v34  ;;  %v2034_v37 = vadd.f32 %v5635_v1, %v2033_v63  ;;  %v3855_v63 = vor.u32 %v4512_v0, %v3854_v8  ;;  %v4050_v32 = vld [vmem:[%s7066_s0 + $0x4f8] sm:$0xf] }
 0x241   :  { %3770 = vmatmul.msk.bf16.gmra.mxu0 %vm505_vm0, %v3741_v55  ;;  %v4561_v55 = vld [vmem:[%s7066_s0 + $0x4fc] sm:$0xf] }
 0x242   :  { %2072 = vmatmul.bf16.gmra.mxu1 %v4039_v38  ;;  %v1314_v38 = vadd.f32 %v5635_v1, %v5399_v42  ;;  %v4055_v34 = vor.u32 %v4561_v55, %v4052_v25 }
 0x244   :  { %2171 = vmatmul.bf16.gmra.mxu3 %v4043_v52  ;;  %v1409_v3 = vpop.f32.mrf.mxu2 }
 0x245   :  { %v1410_v26 = vadd.f32 %v1409_v3, %v1311_v33  ;;  %v3753_v33 = vor.u32 %v4509_v6, %v3752_v36  ;;  %v4515_v36 = vld [vmem:[%s7066_s0 + $0x388] sm:$0xf0] }
 0x246   :  { %v1503_v54 = vpop.f32.mrf.mxu0 }
 0x247   :  { %v2132_v2 = vpop.f32.mrf.mxu3  ;;  %v6040_v27 = vadd.f32 %v1503_v54, %v1405_v23  ;;  %v2035_v52 = vpop.f32.mrf.mxu1  ;;  %v4562_v23 = vld [vmem:[%s7066_s0 + $0x500] sm:$0xf0] }
 0x248   :  { %v6038_v19 = vadd.f32 %v2132_v2, %v2034_v37  ;;  %v2036_v37 = vadd.f32 %v5635_v1, %v2035_v52  ;;  %v3866_v52 = vld [vmem:[%s7066_s0 + $0x380] sm:$0xf] }
 0x249   :  { %7169 = vst [vmem:[#allocation48_spill] sm:$0xff] %v6040_v27  ;;  %4060 = vmatmul.msk.bf16.vlgmr.msra.gmra.mxu2 %vm505_vm0, %v3855_v63  ;;  %v4051_v63 = vor.u32 %v4562_v23, %v4050_v32 }
 0x24c   :  { %v1412_v8 = vpop.f32.mrf.mxu2 }
 0x24d   :  { %v1413_v3 = vadd.f32 %v1412_v8, %v1314_v38  ;;  %v4152_v8 = vld [vmem:[%s7066_s0 + $0x510] sm:$0xf] }
 0x24e   :  { %v1506_v54 = vpop.f32.mrf.mxu0 }
 0x24f   :  { %v2134_v0 = vpop.f32.mrf.mxu3  ;;  %v6068_v5 = vadd.f32 %v1506_v54, %v1408_v16  ;;  %v2038_v27 = vpop.f32.mrf.mxu1  ;;  %v1316_v16 = vadd.f32 %v5635_v1, %v5422_v20  ;;  %v4565_v20 = vld [vmem:[%s7066_s0 + $0x518] sm:$0xf0]  ;;  %v4566_v54 = vld [vmem:[%s7066_s0 + $0x520] sm:$0xf0] }
 0x250   :  { %v6066_v2 = vadd.f32 %v2134_v0, %v2036_v37  ;;  %v2039_v42 = vadd.f32 %v5635_v1, %v2038_v27  ;;  %v3867_v27 = vor.u32 %v4515_v36, %v3866_v52  ;;  %v4564_v0 = vld [vmem:[%s7066_s0 + $0x514] sm:$0xf] }
 0x251   :  { %7170 = vst [vmem:[#allocation49_spill] sm:$0xff] %v6068_v5  ;;  %3771 = vmatmul.msk.bf16.gmra.mxu0 %vm505_vm0, %v3753_v33  ;;  %v4160_v33 = vld [vmem:[%s7066_s0 + $0x518] sm:$0xf] }
 0x252   :  { %2077 = vmatmul.bf16.gmra.mxu1 %v4051_v63  ;;  %v1319_v63 = vadd.f32 %v5635_v1, %v5434_v57  ;;  %v4161_v37 = vor.u32 %v4566_v54, %v4160_v33 }
 0x254   :  { %2176 = vmatmul.bf16.gmra.mxu3 %v4055_v34  ;;  %v1414_v6 = vpop.f32.mrf.mxu2 }
 0x255   :  { %v1415_v23 = vadd.f32 %v1414_v6, %v1316_v16  ;;  %v4153_v16 = vor.u32 %v4565_v20, %v4152_v8  ;;  %v4518_v8 = vld [vmem:[%s7066_s0 + $0x3a0] sm:$0xf0] }
 0x256   :  { %v1508_v25 = vpop.f32.mrf.mxu0 }
 0x257   :  { %v2137_v32 = vpop.f32.mrf.mxu3  ;;  %v6084_v38 = vadd.f32 %v1508_v25, %v1410_v26  ;;  %v2040_v34 = vpop.f32.mrf.mxu1  ;;  %v4154_v26 = vld [vmem:[%s7066_s0 + $0x51c] sm:$0xf0] }
 0x258   :  { %v6082_v55 = vadd.f32 %v2137_v32, %v2039_v42  ;;  %v2041_v42 = vadd.f32 %v5635_v1, %v2040_v34  ;;  %v3878_v34 = vld [vmem:[%s7066_s0 + $0x398] sm:$0xf] }
 0x259   :  { %7171 = vst [vmem:[#allocation50_spill] sm:$0xff] %v6084_v38  ;;  %4061 = vmatmul.msk.bf16.gmra.mxu2 %vm505_vm0, %v3867_v27  ;;  %v4157_v27 = vor.u32 %v4564_v0, %v4154_v26 }
 0x25c   :  { %v1417_v52 = vpop.f32.mrf.mxu2 }
 0x25d   :  { %v1418_v6 = vadd.f32 %v1417_v52, %v1319_v63  ;;  %v3879_v63 = vor.u32 %v4518_v8, %v3878_v34  ;;  %v4569_v34 = vld [vmem:[%s7066_s0 + $0x538] sm:$0xf0]  ;;  %v7179_v8 = vld [vmem:[#allocation19_spill] sm:$0xff] }
 0x25e   :  { %v1511_v25 = vpop.f32.mrf.mxu0 }
 0x25f   :  { %v2139_v36 = vpop.f32.mrf.mxu3  ;;  %v6112_v60 = vadd.f32 %v1511_v25, %v1413_v3  ;;  %v2043_v38 = vpop.f32.mrf.mxu1  ;;  %v7175_v3 = vld [vmem:[#allocation17_spill] sm:$0xff]  ;;  %v4568_v25 = vld [vmem:[%s7066_s0 + $0x530] sm:$0xf0] }
 0x260   :  { %v6110_v32 = vadd.f32 %v2139_v36, %v2041_v42  ;;  %v2044_v57 = vadd.f32 %v5635_v1, %v2043_v38  ;;  %v1321_v20 = vadd.f32 %v5635_v1, %v7175_v3  ;;  %v1324_v3 = vadd.f32 %v5635_v1, %v7179_v8 }
 0x261   :  { %7173 = vst [vmem:[#allocation52_spill] sm:$0xff] %v6112_v60  ;;  %2722 = vmatmul.bf16.vlgmr.msra.gmra.mxu0 %v4153_v16  ;;  %v4164_v16 = vld [vmem:[%s7066_s0 + $0x528] sm:$0xf] }
 0x262   :  { %7172 = vst [vmem:[#allocation51_spill] sm:$0xff] %v6110_v32  ;;  %2821 = vmatmul.bf16.vlgmr.msra.gmra.mxu1 %v4157_v27  ;;  %v4567_v27 = vld [vmem:[%s7066_s0 + $0x52c] sm:$0xf] }
 0x264   :  { %4366 = vmatmul.msk.bf16.vlgmr.msra.gmra.mxu3 %vm505_vm0, %v4161_v37  ;;  %v1419_v0 = vpop.f32.mrf.mxu2 }
 0x265   :  { %v1420_v33 = vadd.f32 %v1419_v0, %v1321_v20 }
 0x266   :  { %v1513_v38 = vpop.f32.mrf.mxu0 }
 0x267   :  { %v2142_v26 = vpop.f32.mrf.mxu3  ;;  %v6128_v42 = vadd.f32 %v1513_v38, %v1415_v23  ;;  %v2045_v37 = vpop.f32.mrf.mxu1  ;;  %v4166_v23 = vld [vmem:[%s7066_s0 + $0x534] sm:$0xf0]  ;;  %v4165_v38 = vor.u32 %v4568_v25, %v4164_v16  ;;  %v4521_v16 = vld [vmem:[%s7066_s0 + $0x3b8] sm:$0xf0] }
 0x268   :  { %v6126_v54 = vadd.f32 %v2142_v26, %v2044_v57  ;;  %v4172_v57 = vld [vmem:[%s7066_s0 + $0x530] sm:$0xf]  ;;  %v2046_v20 = vadd.f32 %v5635_v1, %v2045_v37 }
 0x269   :  { %7177 = vst [vmem:[#allocation53_spill] sm:$0xff] %v6128_v42  ;;  %4062 = vmatmul.msk.bf16.gmra.mxu2 %vm505_vm0, %v3879_v63  ;;  %v4169_v42 = vor.u32 %v4567_v27, %v4166_v23  ;;  %v4173_v52 = vor.u32 %v4569_v34, %v4172_v57  ;;  %v3890_v37 = vld [vmem:[%s7066_s0 + $0x3b0] sm:$0xf] }
 0x26a   :  { %7176 = vst [vmem:[#allocation17_spill] sm:$0xff] %v6126_v54 }
 0x26c   :  { %v1422_v0 = vpop.f32.mrf.mxu2 }
 0x26d   :  { %v1423_v63 = vadd.f32 %v1422_v0, %v1324_v3  ;;  %v4176_v0 = vld [vmem:[%s7066_s0 + $0x540] sm:$0xf] }
 0x26e   :  { %v1516_v5 = vpop.f32.mrf.mxu0 }
 0x26f   :  { %v2144_v26 = vpop.f32.mrf.mxu3  ;;  %v6156_v60 = vadd.f32 %v1516_v5, %v1418_v6  ;;  %v2048_v56 = vpop.f32.mrf.mxu1  ;;  %v7183_v5 = vld [vmem:[#allocation21_spill] sm:$0xff] }
 0x270   :  { %v6154_v36 = vadd.f32 %v2144_v26, %v2046_v20  ;;  %v2049_v8 = vadd.f32 %v5635_v1, %v2048_v56  ;;  %v1326_v6 = vadd.f32 %v5635_v1, %v7183_v5  ;;  %v4571_v26 = vld [vmem:[%s7066_s0 + $0x548] sm:$0xf0] }
 0x271   :  { %7181 = vst [vmem:[#allocation54_spill] sm:$0xff] %v6156_v60  ;;  %2727 = vmatmul.bf16.gmra.mxu0 %v4165_v38  ;;  %v4570_v38 = vld [vmem:[%s7066_s0 + $0x544] sm:$0xf] }
 0x272   :  { %7180 = vst [vmem:[#allocation19_spill] sm:$0xff] %v6154_v36  ;;  %2826 = vmatmul.bf16.gmra.mxu1 %v4169_v42  ;;  %v3891_v42 = vor.u32 %v4521_v16, %v3890_v37  ;;  %v4572_v37 = vld [vmem:[%s7066_s0 + $0x550] sm:$0xf0]  ;;  %v7187_v16 = vld [vmem:[#allocation23_spill] sm:$0xff] }
 0x273   :  { %v1329_v5 = vadd.f32 %v5635_v1, %v7187_v16 }
 0x274   :  { %4367 = vmatmul.msk.bf16.gmra.mxu3 %vm505_vm0, %v4173_v52  ;;  %v1424_v25 = vpop.f32.mrf.mxu2 }
 0x275   :  { %v1425_v23 = vadd.f32 %v1424_v25, %v1326_v6 }
 0x276   :  { %v1518_v56 = vpop.f32.mrf.mxu0 }
 0x277   :  { %v2147_v27 = vpop.f32.mrf.mxu3  ;;  %v6172_v34 = vadd.f32 %v1518_v56, %v1420_v33  ;;  %v2050_v52 = vpop.f32.mrf.mxu1  ;;  %v4178_v33 = vld [vmem:[%s7066_s0 + $0x54c] sm:$0xf0]  ;;  %v4177_v56 = vor.u32 %v4571_v26, %v4176_v0  ;;  %v4524_v0 = vld [vmem:[%s7066_s0 + $0x3d0] sm:$0xf0] }
 0x278   :  { %v6170_v57 = vadd.f32 %v2147_v27, %v2049_v8  ;;  %v4184_v8 = vld [vmem:[%s7066_s0 + $0x548] sm:$0xf]  ;;  %v2051_v6 = vadd.f32 %v5635_v1, %v2050_v52 }
 0x279   :  { %7185 = vst [vmem:[#allocation55_spill] sm:$0xff] %v6172_v34  ;;  %4063 = vmatmul.msk.bf16.gmra.mxu2 %vm505_vm0, %v3891_v42  ;;  %v4181_v34 = vor.u32 %v4570_v38, %v4178_v33  ;;  %v4185_v3 = vor.u32 %v4572_v37, %v4184_v8  ;;  %v3902_v52 = vld [vmem:[%s7066_s0 + $0x3c8] sm:$0xf] }
 0x27a   :  { %7184 = vst [vmem:[#allocation21_spill] sm:$0xff] %v6170_v57 }
 0x27c   :  { %v1427_v25 = vpop.f32.mrf.mxu2 }
 0x27d   :  { %v1428_v42 = vadd.f32 %v1427_v25, %v1329_v5  ;;  %v4188_v25 = vld [vmem:[%s7066_s0 + $0x558] sm:$0xf] }
 0x27e   :  { %v1521_v32 = vpop.f32.mrf.mxu0 }
 0x27f   :  { %v2149_v27 = vpop.f32.mrf.mxu3  ;;  %v6200_v60 = vadd.f32 %v1521_v32, %v1423_v63  ;;  %v2053_v54 = vpop.f32.mrf.mxu1  ;;  %v7191_v32 = vld [vmem:[#allocation25_spill] sm:$0xff] }
 0x280   :  { %v6198_v20 = vadd.f32 %v2149_v27, %v2051_v6  ;;  %v2054_v16 = vadd.f32 %v5635_v1, %v2053_v54  ;;  %v1331_v63 = vadd.f32 %v5635_v1, %v7191_v32  ;;  %v4574_v27 = vld [vmem:[%s7066_s0 + $0x560] sm:$0xf0] }
 0x281   :  { %7189 = vst [vmem:[#allocation56_spill] sm:$0xff] %v6200_v60  ;;  %2732 = vmatmul.bf16.gmra.mxu0 %v4177_v56  ;;  %v4573_v56 = vld [vmem:[%s7066_s0 + $0x55c] sm:$0xf] }
 0x282   :  { %7188 = vst [vmem:[#allocation23_spill] sm:$0xff] %v6198_v20  ;;  %2831 = vmatmul.bf16.gmra.mxu1 %v4181_v34  ;;  %v3903_v34 = vor.u32 %v4524_v0, %v3902_v52  ;;  %v4575_v52 = vld [vmem:[%s7066_s0 + $0x568] sm:$0xf0] }
 0x283   :  { %v7195_v0 = vld [vmem:[#allocation27_spill] sm:$0xff] }
 0x284   :  { %4368 = vmatmul.msk.bf16.gmra.mxu3 %vm505_vm0, %v4185_v3  ;;  %v1429_v26 = vpop.f32.mrf.mxu2  ;;  %v1334_v32 = vadd.f32 %v5635_v1, %v7195_v0 }
 0x285   :  { %v1430_v33 = vadd.f32 %v1429_v26, %v1331_v63 }
 0x286   :  { %v1523_v54 = vpop.f32.mrf.mxu0 }
 0x287   :  { %v2152_v38 = vpop.f32.mrf.mxu3  ;;  %v6216_v37 = vadd.f32 %v1523_v54, %v1425_v23  ;;  %v2055_v3 = vpop.f32.mrf.mxu1  ;;  %v4190_v23 = vld [vmem:[%s7066_s0 + $0x564] sm:$0xf0]  ;;  %v4189_v54 = vor.u32 %v4574_v27, %v4188_v25  ;;  %v7199_v25 = vld [vmem:[#allocation29_spill] sm:$0xff] }
 0x288   :  { %v6214_v8 = vadd.f32 %v2152_v38, %v2054_v16  ;;  %v4196_v16 = vld [vmem:[%s7066_s0 + $0x560] sm:$0xf]  ;;  %v2056_v63 = vadd.f32 %v5635_v1, %v2055_v3 }
 0x289   :  { %7193 = vst [vmem:[#allocation57_spill] sm:$0xff] %v6216_v37  ;;  %4064 = vmatmul.msk.bf16.gmra.mxu2 %vm505_vm0, %v3903_v34  ;;  %v4193_v37 = vor.u32 %v4573_v56, %v4190_v23  ;;  %v4197_v5 = vor.u32 %v4575_v52, %v4196_v16  ;;  %v6251_v1 = vld [vmem:[%s7067_s2] ss:$0 sm:$0xff] }
 0x28a   :  { %7192 = vst [vmem:[#allocation25_spill] sm:$0xff] %v6214_v8  ;;  %v1336_v27 = vadd.f32 %v6251_v1, %v7199_v25 }
 0x28c   :  { %v1432_v26 = vpop.f32.mrf.mxu2 }
 0x28d   :  { %v1433_v34 = vadd.f32 %v1432_v26, %v1334_v32  ;;  %v4200_v26 = vld [vmem:[%s7066_s0 + $0x570] sm:$0xf] }
 0x28e   :  { %v1526_v36 = vpop.f32.mrf.mxu0 }
 0x28f   :  { %v2154_v38 = vpop.f32.mrf.mxu3  ;;  %v6244_v60 = vadd.f32 %v1526_v36, %v1428_v42  ;;  %v2058_v57 = vpop.f32.mrf.mxu1  ;;  %v3914_v36 = vld [vmem:[%s7066_s0 + $0x3e0] sm:$0xf]  ;;  %v4527_v42 = vld [vmem:[%s7066_s0 + $0x3e8] sm:$0xf0] }
 0x290   :  { %v6242_v6 = vadd.f32 %v2154_v38, %v2056_v63  ;;  %v2059_v3 = vadd.f32 %v6251_v1, %v2058_v57  ;;  %v4577_v38 = vld [vmem:[%s7066_s0 + $0x578] sm:$0xf0] }
 0x291   :  { %7197 = vst [vmem:[#allocation58_spill] sm:$0xff] %v6244_v60  ;;  %2737 = vmatmul.bf16.gmra.mxu0 %v4189_v54  ;;  %v4576_v54 = vld [vmem:[%s7066_s0 + $0x574] sm:$0xf] }
 0x292   :  { %7196 = vst [vmem:[#allocation27_spill] sm:$0xff] %v6242_v6  ;;  %2836 = vmatmul.bf16.gmra.mxu1 %v4193_v37  ;;  %v3915_v37 = vor.u32 %v4527_v42, %v3914_v36  ;;  %v4578_v36 = vld [vmem:[%s7066_s0 + $0x580] sm:$0xf0]  ;;  %v7203_v42 = vld [vmem:[#allocation31_spill] sm:$0xff] }
 0x293   :  { %v1339_v25 = vadd.f32 %v6251_v1, %v7203_v42 }
 0x294   :  { %4369 = vmatmul.msk.bf16.gmra.mxu3 %vm505_vm0, %v4197_v5  ;;  %v1434_v56 = vpop.f32.mrf.mxu2 }
 0x295   :  { %v1435_v16 = vadd.f32 %v1434_v56, %v1336_v27 }
 0x296   :  { %v1528_v57 = vpop.f32.mrf.mxu0 }
 0x297   :  { %v2157_v23 = vpop.f32.mrf.mxu3  ;;  %v6265_v0 = vadd.f32 %v1528_v57, %v1430_v33  ;;  %v2060_v5 = vpop.f32.mrf.mxu1  ;;  %v4202_v33 = vld [vmem:[%s7066_s0 + $0x57c] sm:$0xf0]  ;;  %v4201_v57 = vor.u32 %v4577_v38, %v4200_v26  ;;  %v4530_v26 = vld [vmem:[%s7066_s0 + $0x400] sm:$0xf0] }
 0x298   :  { %v6263_v52 = vadd.f32 %v2157_v23, %v2059_v3  ;;  %v4208_v3 = vld [vmem:[%s7066_s0 + $0x578] sm:$0xf]  ;;  %v2061_v27 = vadd.f32 %v6251_v1, %v2060_v5 }
 0x299   :  { %7201 = vst [vmem:[#allocation59_spill] sm:$0xff] %v6265_v0  ;;  %4065 = vmatmul.msk.bf16.gmra.mxu2 %vm505_vm0, %v3915_v37  ;;  %v4205_v0 = vor.u32 %v4576_v54, %v4202_v33  ;;  %v4209_v32 = vor.u32 %v4578_v36, %v4208_v3  ;;  %v3926_v5 = vld [vmem:[%s7066_s0 + $0x3f8] sm:$0xf] }
 0x29a   :  { %7200 = vst [vmem:[#allocation29_spill] sm:$0xff] %v6263_v52 }
 0x29c   :  { %v1437_v56 = vpop.f32.mrf.mxu2 }
 0x29d   :  { %v1438_v37 = vadd.f32 %v1437_v56, %v1339_v25  ;;  %v4212_v56 = vld [vmem:[%s7066_s0 + $0x588] sm:$0xf] }
 0x29e   :  { %v1531_v20 = vpop.f32.mrf.mxu0 }
 0x29f   :  { %v2159_v23 = vpop.f32.mrf.mxu3  ;;  %v6293_v60 = vadd.f32 %v1531_v20, %v1433_v34  ;;  %v2063_v8 = vpop.f32.mrf.mxu1  ;;  %v7207_v20 = vld [vmem:[#allocation33_spill] sm:$0xff] }
 0x2a0   :  { %v6291_v63 = vadd.f32 %v2159_v23, %v2061_v27  ;;  %v2064_v42 = vadd.f32 %v6251_v1, %v2063_v8  ;;  %v1341_v34 = vadd.f32 %v6251_v1, %v7207_v20  ;;  %v4580_v23 = vld [vmem:[%s7066_s0 + $0x590] sm:$0xf0] }
 0x2a1   :  { %7205 = vst [vmem:[#allocation60_spill] sm:$0xff] %v6293_v60  ;;  %2742 = vmatmul.bf16.gmra.mxu0 %v4201_v57  ;;  %v4579_v57 = vld [vmem:[%s7066_s0 + $0x58c] sm:$0xf] }
 0x2a2   :  { %7204 = vst [vmem:[#allocation31_spill] sm:$0xff] %v6291_v63  ;;  %2841 = vmatmul.bf16.gmra.mxu1 %v4205_v0  ;;  %v3927_v0 = vor.u32 %v4530_v26, %v3926_v5  ;;  %v4581_v5 = vld [vmem:[%s7066_s0 + $0x598] sm:$0xf0]  ;;  %v7211_v26 = vld [vmem:[#allocation35_spill] sm:$0xff] }
 0x2a3   :  { %v1344_v20 = vadd.f32 %v6251_v1, %v7211_v26 }
 0x2a4   :  { %4370 = vmatmul.msk.bf16.gmra.mxu3 %vm505_vm0, %v4209_v32  ;;  %v1439_v38 = vpop.f32.mrf.mxu2 }
 0x2a5   :  { %v1440_v33 = vadd.f32 %v1439_v38, %v1341_v34 }
 0x2a6   :  { %v1533_v8 = vpop.f32.mrf.mxu0 }
 0x2a7   :  { %v2162_v54 = vpop.f32.mrf.mxu3  ;;  %v6309_v36 = vadd.f32 %v1533_v8, %v1435_v16  ;;  %v2065_v32 = vpop.f32.mrf.mxu1  ;;  %v4214_v16 = vld [vmem:[%s7066_s0 + $0x594] sm:$0xf0]  ;;  %v4213_v8 = vor.u32 %v4580_v23, %v4212_v56  ;;  %v4533_v56 = vld [vmem:[%s7066_s0 + $0x418] sm:$0xf0] }
 0x2a8   :  { %v6307_v3 = vadd.f32 %v2162_v54, %v2064_v42  ;;  %v4220_v42 = vld [vmem:[%s7066_s0 + $0x590] sm:$0xf]  ;;  %v2066_v34 = vadd.f32 %v6251_v1, %v2065_v32 }
 0x2a9   :  { %7209 = vst [vmem:[#allocation61_spill] sm:$0xff] %v6309_v36  ;;  %4066 = vmatmul.msk.bf16.gmra.mxu2 %vm505_vm0, %v3927_v0  ;;  %v4217_v36 = vor.u32 %v4579_v57, %v4214_v16  ;;  %v4221_v25 = vor.u32 %v4581_v5, %v4220_v42  ;;  %v3938_v32 = vld [vmem:[%s7066_s0 + $0x410] sm:$0xf] }
 0x2aa   :  { %7208 = vst [vmem:[#allocation33_spill] sm:$0xff] %v6307_v3 }
 0x2ac   :  { %v1442_v38 = vpop.f32.mrf.mxu2 }
 0x2ad   :  { %v1443_v0 = vadd.f32 %v1442_v38, %v1344_v20  ;;  %v4582_v38 = vld [vmem:[%s7066_s0 + $0x5a4] sm:$0xf] }
 0x2ae   :  { %v1536_v6 = vpop.f32.mrf.mxu0 }
 0x2af   :  { %v2164_v54 = vpop.f32.mrf.mxu3  ;;  %v6337_v60 = vadd.f32 %v1536_v6, %v1438_v37  ;;  %v2068_v52 = vpop.f32.mrf.mxu1  ;;  %v1346_v6 = vadd.f32 %v6251_v1, %v5639_v14  ;;  %v4583_v14 = vld [vmem:[%s7066_s0 + $0x5a8] sm:$0xf0] }
 0x2b0   :  { %v6335_v27 = vadd.f32 %v2164_v54, %v2066_v34  ;;  %v2069_v26 = vadd.f32 %v6251_v1, %v2068_v52  ;;  %v4224_v34 = vld [vmem:[%s7066_s0 + $0x5a0] sm:$0xf]  ;;  %v4232_v54 = vld [vmem:[%s7066_s0 + $0x5a8] sm:$0xf] }
 0x2b1   :  { %7212 = vst [vmem:[#allocation35_spill] sm:$0xff] %v6337_v60  ;;  %2747 = vmatmul.bf16.gmra.mxu0 %v4213_v8  ;;  %v4584_v8 = vld [vmem:[%s7066_s0 + $0x5b0] sm:$0xf0] }
 0x2b2   :  { %2846 = vmatmul.bf16.gmra.mxu1 %v4217_v36  ;;  %v3939_v36 = vor.u32 %v4533_v56, %v3938_v32  ;;  %v4233_v63 = vor.u32 %v4584_v8, %v4232_v54 }
 0x2b4   :  { %4371 = vmatmul.msk.bf16.gmra.mxu3 %vm505_vm0, %v4221_v25  ;;  %v1444_v37 = vpop.f32.mrf.mxu2 }
 0x2b5   :  { %v1445_v57 = vadd.f32 %v1444_v37, %v1346_v6  ;;  %v4225_v37 = vor.u32 %v4583_v14, %v4224_v34  ;;  %v4536_v34 = vld [vmem:[%s7066_s0 + $0x430] sm:$0xf0] }
 0x2b6   :  { %v1538_v52 = vpop.f32.mrf.mxu0 }
 0x2b7   :  { %v2167_v23 = vpop.f32.mrf.mxu3  ;;  %v6353_v42 = vadd.f32 %v1538_v52, %v1440_v33  ;;  %v2070_v25 = vpop.f32.mrf.mxu1  ;;  %v4226_v33 = vld [vmem:[%s7066_s0 + $0x5ac] sm:$0xf0] }
 0x2b8   :  { %v6351_v16 = vadd.f32 %v2167_v23, %v2069_v26  ;;  %v1349_v26 = vadd.f32 %v6251_v1, %v5653_v17  ;;  %v2071_v32 = vadd.f32 %v6251_v1, %v2070_v25  ;;  %v4229_v20 = vor.u32 %v4582_v38, %v4226_v33  ;;  %v3950_v25 = vld [vmem:[%s7066_s0 + $0x428] sm:$0xf] }
 0x2b9   :  { %7214 = vst [vmem:[#allocation62_spill] sm:$0xff] %v6353_v42  ;;  %4067 = vmatmul.msk.bf16.gmra.mxu2 %vm505_vm0, %v3939_v36 }
 0x2bc   :  { %v1447_v56 = vpop.f32.mrf.mxu2 }
 0x2bd   :  { %v1448_v23 = vadd.f32 %v1447_v56, %v1349_v26  ;;  %v4236_v56 = vld [vmem:[%s7066_s0 + $0x5b8] sm:$0xf]  ;;  %v7222_v26 = vld [vmem:[#allocation2_spill] sm:$0xff] }
 0x2be   :  { %v1541_v36 = vpop.f32.mrf.mxu0 }
 0x2bf   :  { %v2169_v6 = vpop.f32.mrf.mxu3  ;;  %v6381_v42 = vadd.f32 %v1541_v36, %v1443_v0  ;;  %v2073_v5 = vpop.f32.mrf.mxu1  ;;  %v1351_v0 = vadd.f32 %v6251_v1, %v5678_v46  ;;  %v4586_v46 = vld [vmem:[%s7066_s0 + $0x5c0] sm:$0xf0]  ;;  %v4587_v36 = vld [vmem:[%s7066_s0 + $0x5c8] sm:$0xf0] }
 0x2c0   :  { %v6379_v52 = vadd.f32 %v2169_v6, %v2071_v32  ;;  %v2074_v17 = vadd.f32 %v6251_v1, %v2073_v5  ;;  %v4585_v6 = vld [vmem:[%s7066_s0 + $0x5bc] sm:$0xf] }
 0x2c1   :  { %7217 = vst [vmem:[#allocation64_spill] sm:$0xff] %v6381_v42  ;;  %2752 = vmatmul.bf16.gmra.mxu0 %v4225_v37  ;;  %v4244_v37 = vld [vmem:[%s7066_s0 + $0x5c0] sm:$0xf]  ;;  %v7223_v42 = vld [vmem:[#allocation39_spill] sm:$0xff] }
 0x2c2   :  { %7216 = vst [vmem:[#allocation63_spill] sm:$0xff] %v6379_v52  ;;  %2851 = vmatmul.bf16.gmra.mxu1 %v4229_v20  ;;  %v3951_v20 = vor.u32 %v4536_v34, %v3950_v25  ;;  %v4245_v32 = vor.u32 %v4587_v36, %v4244_v37  ;;  %v7224_v60 = vmax.f32 %v7222_v26, %v7223_v42  ;;  %v7225_v52 = vld [vmem:[#allocation37_spill] sm:$0xff]  ;;  %v7228_v36 = vld [vmem:[#allocation40_spill] sm:$0xff] }
 0x2c4   :  { %4372 = vmatmul.msk.bf16.gmra.mxu3 %vm505_vm0, %v4233_v63  ;;  %v1449_v14 = vpop.f32.mrf.mxu2 }
 0x2c5   :  { %v1450_v33 = vadd.f32 %v1449_v14, %v1351_v0  ;;  %v4237_v0 = vor.u32 %v4586_v46, %v4236_v56 }
 0x2c6   :  { %v1543_v5 = vpop.f32.mrf.mxu0 }
 0x2c7   :  { %v2172_v38 = vpop.f32.mrf.mxu3  ;;  %v6397_v8 = vadd.f32 %v1543_v5, %v1445_v57  ;;  %v2075_v63 = vpop.f32.mrf.mxu1  ;;  %v4238_v57 = vld [vmem:[%s7066_s0 + $0x5c4] sm:$0xf0] }
 0x2c8   :  { %v6395_v54 = vadd.f32 %v2172_v38, %v2074_v17  ;;  %v2076_v17 = vadd.f32 %v6251_v1, %v2075_v63  ;;  %v7231_v63 = vmax.f32 %v5077_v35, %v5723_v22 }
 0x2c9   :  { %7220 = vst [vmem:[#allocation66_spill] sm:$0xff] %v6397_v8  ;;  %4068 = vmatmul.msk.bf16.gmra.mxu2 %vm505_vm0, %v3951_v20  ;;  %v4241_v20 = vor.u32 %v4585_v6, %v4238_v57 }
 0x2ca   :  { %7219 = vst [vmem:[#allocation65_spill] sm:$0xff] %v6395_v54 }
 0x2cc   :  { %v2191_v34 = vpop.f32.mrf.mxu2 }
 0x2cd   :  { %v2192_v38 = vadd.f32 %v2191_v34, %v5694_v51  ;;  %v3962_v51 = vld [vmem:[%s7066_s0 + $0x440] sm:$0xf] }
 0x2ce   :  { %v1546_v5 = vpop.f32.mrf.mxu0 }
 0x2cf   :  { %v2174_v25 = vpop.f32.mrf.mxu3  ;;  %v6424_v3 = vadd.f32 %v1546_v5, %v1448_v23  ;;  %v2078_v8 = vpop.f32.mrf.mxu1  ;;  %v2281_v54 = vmax.f32 %v7224_v60, %v2192_v38  ;;  %v4539_v23 = vld [vmem:[%s7066_s0 + $0x448] sm:$0xf0]  ;;  %v4248_v38 = vld [vmem:[%s7066_s0 + $0x5d0] sm:$0xf]  ;;  %v4250_v5 = vld [vmem:[%s7066_s0 + $0x5dc] sm:$0xf0] }
 0x2d0   :  { %v6421_v14 = vadd.f32 %v2174_v25, %v2076_v17  ;;  %v2079_v56 = vadd.f32 %v6251_v1, %v2078_v8  ;;  %v3963_v57 = vor.u32 %v4539_v23, %v3962_v51 }
 0x2d1   :  { %2757 = vmatmul.bf16.gmra.mxu0 %v4237_v0 }
 0x2d2   :  { %2856 = vmatmul.bf16.gmra.mxu1 %v4241_v20  ;;  %v4256_v20 = vld [vmem:[%s7066_s0 + $0x5d8] sm:$0xf] }
 0x2d4   :  { %4373 = vmatmul.msk.bf16.gmra.mxu3 %vm505_vm0, %v4245_v32  ;;  %v2193_v42 = vpop.f32.mrf.mxu2  ;;  %v7227_v32 = vld [vmem:[#allocation3_spill] sm:$0xff] }
 0x2d5   :  { %v2194_v26 = vadd.f32 %v2193_v42, %v5721_v13  ;;  %v7229_v17 = vmax.f32 %v7227_v32, %v7228_v36  ;;  %v4589_v13 = vld [vmem:[%s7066_s0 + $0x5d8] sm:$0xf0] }
 0x2d6   :  { %v1548_v6 = vpop.f32.mrf.mxu0  ;;  %v4249_v42 = vor.u32 %v4589_v13, %v4248_v38 }
 0x2d7   :  { %v2177_v46 = vpop.f32.mrf.mxu3  ;;  %v6442_v8 = vadd.f32 %v1548_v6, %v1450_v33  ;;  %v2080_v37 = vpop.f32.mrf.mxu1  ;;  %v6447_v25 = vmax.f32 %v7229_v17, %v2194_v26  ;;  %v4588_v33 = vld [vmem:[%s7066_s0 + $0x5d4] sm:$0xf] }
 0x2d8   :  { %v6439_v60 = vadd.f32 %v2177_v46, %v2079_v56  ;;  %v4590_v56 = vld [vmem:[%s7066_s0 + $0x5e0] sm:$0xf0]  ;;  %v2081_v51 = vadd.f32 %v6251_v1, %v2080_v37  ;;  %v4253_v32 = vor.u32 %v4588_v33, %v4250_v5  ;;  %v3974_v37 = vld [vmem:[%s7066_s0 + $0x458] sm:$0xf] }
 0x2d9   :  { %7226 = vst [vmem:[#allocation2_spill] sm:$0xff] %v6442_v8  ;;  %4069 = vmatmul.msk.bf16.gmra.mxu2 %vm505_vm0, %v3963_v57  ;;  %v4257_v36 = vor.u32 %v4590_v56, %v4256_v20  ;;  %v7233_v20 = vld [vmem:[#allocation41_spill] sm:$0xff] }
 0x2dc   :  { %v2196_v46 = vpop.f32.mrf.mxu2 }
 0x2dd   :  { %v2197_v6 = vadd.f32 %v2196_v46, %v5737_v61  ;;  %v4542_v61 = vld [vmem:[%s7066_s0 + $0x460] sm:$0xf0] }
 0x2de   :  { %v2723_v57 = vpop.f32.mrf.mxu0  ;;  %v3975_v35 = vor.u32 %v4542_v61, %v3974_v37 }
 0x2df   :  { %v2179_v23 = vpop.f32.mrf.mxu3  ;;  %v2724_v17 = vadd.f32 %v6251_v1, %v2723_v57  ;;  %v2822_v0 = vpop.f32.mrf.mxu1  ;;  %v2283_v8 = vmax.f32 %v7231_v63, %v2197_v6  ;;  %v4268_v57 = vld [vmem:[%s7066_s0 + $0x5f0] sm:$0xf] }
 0x2e0   :  { %v6471_v26 = vadd.f32 %v2179_v23, %v2081_v51 }
 0x2e1   :  { %2762 = vmatmul.bf16.gmra.mxu0 %v4249_v42  ;;  %v2823_v34 = vadd.f32 %v2822_v0, %v2724_v17  ;;  %v7232_v0 = vld [vmem:[#allocation4_spill] sm:$0xff]  ;;  %v4260_v42 = vld [vmem:[%s7066_s0 + $0x5e8] sm:$0xf] }
 0x2e2   :  { %2861 = vmatmul.bf16.gmra.mxu1 %v4253_v32  ;;  %v7234_v56 = vmax.f32 %v7232_v0, %v7233_v20  ;;  %v4593_v32 = vld [vmem:[%s7066_s0 + $0x5f8] sm:$0xf0] }
 0x2e4   :  { %4374 = vmatmul.msk.bf16.gmra.mxu3 %vm505_vm0, %v4257_v36  ;;  %v2198_v38 = vpop.f32.mrf.mxu2 }
 0x2e5   :  { %v2199_v33 = vadd.f32 %v2198_v38, %v5764_v53  ;;  %v4592_v53 = vld [vmem:[%s7066_s0 + $0x5f0] sm:$0xf0] }
 0x2e6   :  { %v2725_v22 = vpop.f32.mrf.mxu0  ;;  %v4261_v38 = vor.u32 %v4592_v53, %v4260_v42 }
 0x2e7   :  { %v2921_v13 = vpop.f32.mrf.mxu3  ;;  %v2824_v63 = vpop.f32.mrf.mxu1  ;;  %v6489_v51 = vmax.f32 %v7234_v56, %v2199_v33  ;;  %v2726_v46 = vadd.f32 %v6251_v1, %v2725_v22 }
 0x2e8   :  { %v2922_v5 = vadd.f32 %v2921_v13, %v2823_v34  ;;  %v4591_v34 = vld [vmem:[%s7066_s0 + $0x5ec] sm:$0xf] }
 0x2e9   :  { %4070 = vmatmul.msk.bf16.gmra.mxu2 %vm505_vm0, %v3975_v35  ;;  %v2825_v17 = vadd.f32 %v2824_v63, %v2726_v46  ;;  %v4269_v35 = vor.u32 %v4593_v32, %v4268_v57  ;;  %v7235_v63 = vmax.f32 %v5112_v62, %v5766_v9 }
 0x2ea   :  { %v3011_v23 = vmax.f32 %v2281_v54, %v2922_v5  ;;  %v4262_v54 = vld [vmem:[%s7066_s0 + $0x5f4] sm:$0xf0] }
 0x2eb   :  { %v4265_v22 = vor.u32 %v4591_v34, %v4262_v54 }
 0x2ec   :  { %v3047_v6 = vmax.f32 %v3011_v23, 0.0  ;;  %v2201_v37 = vpop.f32.mrf.mxu2 }
 0x2ed   :  { %v2202_v13 = vadd.f32 %v2201_v37, %v5780_v10  ;;  %v3986_v10 = vld [vmem:[%s7066_s0 + $0x470] sm:$0xf] }
 0x2ee   :  { %v3083_v36 = vpack.c.bf16 %v3047_v6, %v3047_v6  ;;  %v2728_v5 = vpop.f32.mrf.mxu0  ;;  %v4545_v6 = vld [vmem:[%s7066_s0 + $0x478] sm:$0xf0] }
 0x2ef   :  { %v2923_v61 = vpop.f32.mrf.mxu3  ;;  %v2729_v0 = vadd.f32 %v6251_v1, %v2728_v5  ;;  %v2827_v20 = vpop.f32.mrf.mxu1  ;;  %v6520_v56 = vmax.f32 %v7235_v63, %v2202_v13  ;;  %v3987_v57 = vor.u32 %v4545_v6, %v3986_v10 }
 0x2f0   :  { %3120 = vst.msk [vmem:[%s7068_s3] sm:$0xf] %vm3119_vm1, %v3083_v36  ;;  %v2924_v33 = vadd.f32 %v2923_v61, %v2825_v17  ;;  %v7236_v36 = vld [vmem:[#allocation5_spill] sm:$0xff]  ;;  %v7237_v17 = vld [vmem:[#allocation42_spill] sm:$0xff] }
 0x2f1   :  { %2767 = vmatmul.bf16.gmra.mxu0 %v4261_v38  ;;  %v2828_v42 = vadd.f32 %v2827_v20, %v2729_v0  ;;  %v7238_v37 = vmax.f32 %v7236_v36, %v7237_v17  ;;  %v4596_v0 = vld [vmem:[%s7066_s0 + $0x610] sm:$0xf0] }
 0x2f2   :  { %v3012_v23 = vmax.f32 %v6447_v25, %v2924_v33  ;;  %2866 = vmatmul.bf16.gmra.mxu1 %v4265_v22  ;;  %v4272_v33 = vld [vmem:[%s7066_s0 + $0x600] sm:$0xf]  ;;  %v4594_v22 = vld [vmem:[%s7066_s0 + $0x604] sm:$0xf] }
 0x2f4   :  { %v3048_v46 = vmax.f32 %v3012_v23, 0.0  ;;  %4375 = vmatmul.msk.bf16.gmra.mxu3 %vm505_vm0, %v4269_v35  ;;  %v2203_v9 = vpop.f32.mrf.mxu2  ;;  %v4280_v35 = vld [vmem:[%s7066_s0 + $0x608] sm:$0xf] }
 0x2f5   :  { %v2204_v25 = vadd.f32 %v2203_v9, %v5807_v50  ;;  %v4595_v50 = vld [vmem:[%s7066_s0 + $0x608] sm:$0xf0] }
 0x2f6   :  { %v3084_v53 = vpack.c.bf16 %v3048_v46, %v3048_v46  ;;  %v2730_v54 = vpop.f32.mrf.mxu0 }
 0x2f7   :  { %v2926_v62 = vpop.f32.mrf.mxu3  ;;  %v2829_v32 = vpop.f32.mrf.mxu1  ;;  %v6538_v61 = vmax.f32 %v7238_v37, %v2204_v25  ;;  %v2731_v13 = vadd.f32 %v6251_v1, %v2730_v54  ;;  %v7239_v54 = vmax.f32 %v5147_v28, %v5809_v48  ;;  %v4548_v37 = vld [vmem:[%s7066_s0 + $0x490] sm:$0xf0] }
 0x2f8   :  { %3121 = vst.msk [vmem:[%s7068_s3 + $0x4] sm:$0xf] %vm3119_vm1, %v3084_v53  ;;  %v2927_v34 = vadd.f32 %v2926_v62, %v2828_v42  ;;  %v4273_v42 = vor.u32 %v4595_v50, %v4272_v33  ;;  %v4281_v62 = vor.u32 %v4596_v0, %v4280_v35 }
 0x2f9   :  { %4071 = vmatmul.msk.bf16.gmra.mxu2 %vm505_vm0, %v3987_v57  ;;  %v2830_v63 = vadd.f32 %v2829_v32, %v2731_v13 }
 0x2fa   :  { %v3013_v38 = vmax.f32 %v2283_v8, %v2927_v34  ;;  %v4274_v8 = vld [vmem:[%s7066_s0 + $0x60c] sm:$0xf0] }
 0x2fb   :  { %v4277_v9 = vor.u32 %v4594_v22, %v4274_v8  ;;  %v7240_v22 = vld [vmem:[#allocation6_spill] sm:$0xff]  ;;  %v7241_v8 = vld [vmem:[#allocation43_spill] sm:$0xff] }
 0x2fc   :  { %v3049_v5 = vmax.f32 %v3013_v38, 0.0  ;;  %v2206_v23 = vpop.f32.mrf.mxu2  ;;  %v7242_v35 = vmax.f32 %v7240_v22, %v7241_v8 }
 0x2fd   :  { %v2207_v10 = vadd.f32 %v2206_v23, %v5823_v41  ;;  %v3998_v41 = vld [vmem:[%s7066_s0 + $0x488] sm:$0xf]  ;;  %v4284_v23 = vld [vmem:[%s7066_s0 + $0x618] sm:$0xf] }
 0x2fe   :  { %v3085_v20 = vpack.c.bf16 %v3049_v5, %v3049_v5  ;;  %v2733_v53 = vpop.f32.mrf.mxu0  ;;  %v3999_v5 = vor.u32 %v4548_v37, %v3998_v41 }
 0x2ff   :  { %v2928_v46 = vpop.f32.mrf.mxu3  ;;  %v2734_v25 = vadd.f32 %v6251_v1, %v2733_v53  ;;  %v2832_v34 = vpop.f32.mrf.mxu1  ;;  %v6569_v57 = vmax.f32 %v7239_v54, %v2207_v10  ;;  %v4292_v10 = vld [vmem:[%s7066_s0 + $0x620] sm:$0xf] }
 0x300   :  { %3122 = vst.msk [vmem:[%s7068_s3 + $0x8] sm:$0xf] %vm3119_vm1, %v3085_v20  ;;  %v2929_v6 = vadd.f32 %v2928_v46, %v2830_v63 }
 0x301   :  { %2772 = vmatmul.bf16.gmra.mxu0 %v4273_v42  ;;  %v2833_v17 = vadd.f32 %v2832_v34, %v2734_v25  ;;  %v4597_v42 = vld [vmem:[%s7066_s0 + $0x61c] sm:$0xf] }
 0x302   :  { %v3014_v32 = vmax.f32 %v6489_v51, %v2929_v6  ;;  %2871 = vmatmul.bf16.gmra.mxu1 %v4277_v9  ;;  %v4599_v6 = vld [vmem:[%s7066_s0 + $0x628] sm:$0xf0] }
 0x303   :  { %v4293_v41 = vor.u32 %v4599_v6, %v4292_v10  ;;  %v4296_v10 = vld [vmem:[%s7066_s0 + $0x630] sm:$0xf] }
 0x304   :  { %v3050_v36 = vmax.f32 %v3014_v32, 0.0  ;;  %4376 = vmatmul.msk.bf16.gmra.mxu3 %vm505_vm0, %v4281_v62  ;;  %v2208_v48 = vpop.f32.mrf.mxu2 }
 0x305   :  { %v2209_v51 = vadd.f32 %v2208_v48, %v5850_v31  ;;  %v4598_v31 = vld [vmem:[%s7066_s0 + $0x620] sm:$0xf0]  ;;  %v7243_v48 = vmax.f32 %v5182_v59, %v5852_v12 }
 0x306   :  { %v3086_v38 = vpack.c.bf16 %v3050_v36, %v3050_v36  ;;  %v2735_v33 = vpop.f32.mrf.mxu0  ;;  %v4285_v34 = vor.u32 %v4598_v31, %v4284_v23  ;;  %v7245_v23 = vld [vmem:[#allocation44_spill] sm:$0xff] }
 0x307   :  { %v2931_v28 = vpop.f32.mrf.mxu3  ;;  %v2834_v50 = vpop.f32.mrf.mxu1  ;;  %v6587_v0 = vmax.f32 %v7242_v35, %v2209_v51  ;;  %v2736_v63 = vadd.f32 %v6251_v1, %v2735_v33 }
 0x308   :  { %3123 = vst.msk [vmem:[%s7068_s3 + $0xc] sm:$0xf] %vm3119_vm1, %v3086_v38  ;;  %v2932_v13 = vadd.f32 %v2931_v28, %v2833_v17 }
 0x309   :  { %4072 = vmatmul.msk.bf16.gmra.mxu2 %vm505_vm0, %v3999_v5  ;;  %v2835_v9 = vadd.f32 %v2834_v50, %v2736_v63  ;;  %v4551_v5 = vld [vmem:[%s7066_s0 + $0x4a8] sm:$0xf0] }
 0x30a   :  { %v3015_v20 = vmax.f32 %v6520_v56, %v2932_v13  ;;  %v4286_v56 = vld [vmem:[%s7066_s0 + $0x624] sm:$0xf0] }
 0x30b   :  { %v4289_v17 = vor.u32 %v4597_v42, %v4286_v56  ;;  %v7244_v63 = vld [vmem:[#allocation7_spill] sm:$0xff] }
 0x30c   :  { %v3051_v46 = vmax.f32 %v3015_v20, 0.0  ;;  %v2211_v62 = vpop.f32.mrf.mxu2 }
 0x30d   :  { %v2212_v54 = vadd.f32 %v2211_v62, %v5866_v21  ;;  %v4010_v21 = vld [vmem:[%s7066_s0 + $0x4a0] sm:$0xf]  ;;  %v4602_v62 = vld [vmem:[%s7066_s0 + $0x640] sm:$0xf0] }
 0x30e   :  { %v3087_v53 = vpack.c.bf16 %v3051_v46, %v3051_v46  ;;  %v2738_v36 = vpop.f32.mrf.mxu0  ;;  %v4011_v35 = vor.u32 %v4551_v5, %v4010_v21  ;;  %v7246_v46 = vmax.f32 %v7244_v63, %v7245_v23  ;;  %v7248_v63 = vld [vmem:[#allocation8_spill] sm:$0xff]  ;;  %v7249_v23 = vld [vmem:[#allocation45_spill] sm:$0xff] }
 0x30f   :  { %v2933_v25 = vpop.f32.mrf.mxu3  ;;  %v2739_v37 = vadd.f32 %v6251_v1, %v2738_v36  ;;  %v2837_v38 = vpop.f32.mrf.mxu1  ;;  %v6619_v28 = vmax.f32 %v7243_v48, %v2212_v54 }
 0x310   :  { %3124 = vst.msk [vmem:[%s7068_s3 + $0x10] sm:$0xf] %vm3119_vm1, %v3087_v53  ;;  %v2934_v32 = vadd.f32 %v2933_v25, %v2835_v9  ;;  %v4600_v53 = vld [vmem:[%s7066_s0 + $0x634] sm:$0xf]  ;;  %v4304_v9 = vld [vmem:[%s7066_s0 + $0x638] sm:$0xf] }
 0x311   :  { %2777 = vmatmul.bf16.gmra.mxu0 %v4285_v34  ;;  %v2838_v33 = vadd.f32 %v2837_v38, %v2739_v37  ;;  %v4305_v48 = vor.u32 %v4602_v62, %v4304_v9  ;;  %v4605_v9 = vld [vmem:[%s7066_s0 + $0x658] sm:$0xf0] }
 0x312   :  { %v3016_v51 = vmax.f32 %v6538_v61, %v2934_v32  ;;  %2876 = vmatmul.bf16.gmra.mxu1 %v4289_v17 }
 0x314   :  { %v3052_v13 = vmax.f32 %v3016_v51, 0.0  ;;  %4377 = vmatmul.msk.bf16.gmra.mxu3 %vm505_vm0, %v4293_v41  ;;  %v2213_v12 = vpop.f32.mrf.mxu2 }
 0x315   :  { %v2214_v61 = vadd.f32 %v2213_v12, %v5893_v39  ;;  %v4601_v39 = vld [vmem:[%s7066_s0 + $0x638] sm:$0xf0] }
 0x316   :  { %v3088_v50 = vpack.c.bf16 %v3052_v13, %v3052_v13  ;;  %v2740_v8 = vpop.f32.mrf.mxu0  ;;  %v4297_v36 = vor.u32 %v4601_v39, %v4296_v10 }
 0x317   :  { %v2936_v59 = vpop.f32.mrf.mxu3  ;;  %v2839_v20 = vpop.f32.mrf.mxu1  ;;  %v6637_v31 = vmax.f32 %v7246_v46, %v2214_v61  ;;  %v2741_v56 = vadd.f32 %v6251_v1, %v2740_v8  ;;  %v7250_v46 = vmax.f32 %v7248_v63, %v7249_v23 }
 0x318   :  { %3125 = vst.msk [vmem:[%s7068_s3 + $0x14] sm:$0xf] %vm3119_vm1, %v3088_v50  ;;  %v2937_v22 = vadd.f32 %v2936_v59, %v2838_v33  ;;  %v7247_v33 = vmax.f32 %v5217_v30, %v5895_v43  ;;  %v4554_v59 = vld [vmem:[%s7066_s0 + $0x4c0] sm:$0xf0] }
 0x319   :  { %4073 = vmatmul.msk.bf16.gmra.mxu2 %vm505_vm0, %v4011_v35  ;;  %v2840_v34 = vadd.f32 %v2839_v20, %v2741_v56 }
 0x31a   :  { %v3017_v42 = vmax.f32 %v6569_v57, %v2937_v22  ;;  %v4298_v57 = vld [vmem:[%s7066_s0 + $0x63c] sm:$0xf0] }
 0x31b   :  { %v4301_v38 = vor.u32 %v4600_v53, %v4298_v57  ;;  %v4603_v53 = vld [vmem:[%s7066_s0 + $0x64c] sm:$0xf]  ;;  %v4316_v57 = vld [vmem:[%s7066_s0 + $0x650] sm:$0xf] }
 0x31c   :  { %v3053_v6 = vmax.f32 %v3017_v42, 0.0  ;;  %v2216_v54 = vpop.f32.mrf.mxu2 }
 0x31d   :  { %v2217_v17 = vadd.f32 %v2216_v54, %v5909_v58  ;;  %v4022_v58 = vld [vmem:[%s7066_s0 + $0x4b8] sm:$0xf] }
 0x31e   :  { %v3089_v25 = vpack.c.bf16 %v3053_v6, %v3053_v6  ;;  %v2743_v37 = vpop.f32.mrf.mxu0  ;;  %v4023_v35 = vor.u32 %v4554_v59, %v4022_v58  ;;  %v4308_v6 = vld [vmem:[%s7066_s0 + $0x648] sm:$0xf]  ;;  %v4557_v58 = vld [vmem:[%s7066_s0 + $0x4d8] sm:$0xf0] }
 0x31f   :  { %v2938_v32 = vpop.f32.mrf.mxu3  ;;  %v2744_v51 = vadd.f32 %v6251_v1, %v2743_v37  ;;  %v2842_v13 = vpop.f32.mrf.mxu1  ;;  %v6669_v21 = vmax.f32 %v7247_v33, %v2217_v17 }
 0x320   :  { %3126 = vst.msk [vmem:[%s7068_s3 + $0x18] sm:$0xf] %vm3119_vm1, %v3089_v25  ;;  %v2939_v41 = vadd.f32 %v2938_v32, %v2840_v34 }
 0x321   :  { %2782 = vmatmul.bf16.gmra.mxu0 %v4297_v36  ;;  %v2843_v12 = vadd.f32 %v2842_v13, %v2744_v51  ;;  %v7251_v13 = vmax.f32 %v5252_v4, %v5938_v11 }
 0x322   :  { %v3018_v5 = vmax.f32 %v6587_v0, %v2939_v41  ;;  %2881 = vmatmul.bf16.gmra.mxu1 %v4301_v38  ;;  %v4317_v38 = vor.u32 %v4605_v9, %v4316_v57 }
 0x324   :  { %v3054_v50 = vmax.f32 %v3018_v5, 0.0  ;;  %4378 = vmatmul.msk.bf16.gmra.mxu3 %vm505_vm0, %v4305_v48  ;;  %v2218_v43 = vpop.f32.mrf.mxu2 }
 0x325   :  { %v2219_v0 = vadd.f32 %v2218_v43, %v5936_v40  ;;  %v4604_v40 = vld [vmem:[%s7066_s0 + $0x650] sm:$0xf0] }
 0x326   :  { %v3090_v61 = vpack.c.bf16 %v3054_v50, %v3054_v50  ;;  %v2745_v8 = vpop.f32.mrf.mxu0  ;;  %v4309_v32 = vor.u32 %v4604_v40, %v4308_v6  ;;  %v4328_v6 = vld [vmem:[%s7066_s0 + $0x668] sm:$0xf] }
 0x327   :  { %v2941_v30 = vpop.f32.mrf.mxu3  ;;  %v2844_v20 = vpop.f32.mrf.mxu1  ;;  %v6687_v42 = vmax.f32 %v7250_v46, %v2219_v0  ;;  %v2746_v10 = vadd.f32 %v6251_v1, %v2745_v8  ;;  %v7253_v8 = vld [vmem:[#allocation46_spill] sm:$0xff] }
 0x328   :  { %3127 = vst.msk [vmem:[%s7068_s3 + $0x1c] sm:$0xf] %vm3119_vm1, %v3090_v61  ;;  %v2942_v22 = vadd.f32 %v2941_v30, %v2843_v12  ;;  %v4320_v46 = vld [vmem:[%s7066_s0 + $0x660] sm:$0xf] }
 0x329   :  { %4074 = vmatmul.msk.bf16.gmra.mxu2 %vm505_vm0, %v4023_v35  ;;  %v2845_v25 = vadd.f32 %v2844_v20, %v2746_v10  ;;  %v4606_v10 = vld [vmem:[%s7066_s0 + $0x664] sm:$0xf] }
 0x32a   :  { %v3019_v56 = vmax.f32 %v6619_v28, %v2942_v22  ;;  %v4310_v28 = vld [vmem:[%s7066_s0 + $0x654] sm:$0xf0] }
 0x32b   :  { %v4313_v37 = vor.u32 %v4603_v53, %v4310_v28  ;;  %v7252_v22 = vld [vmem:[#allocation9_spill] sm:$0xff] }
 0x32c   :  { %v3055_v39 = vmax.f32 %v3019_v56, 0.0  ;;  %v2221_v34 = vpop.f32.mrf.mxu2  ;;  %v7254_v35 = vmax.f32 %v7252_v22, %v7253_v8  ;;  %v4609_v22 = vld [vmem:[%s7066_s0 + $0x67c] sm:$0xf]  ;;  %v4340_v8 = vld [vmem:[%s7066_s0 + $0x680] sm:$0xf] }
 0x32d   :  { %v2222_v36 = vadd.f32 %v2221_v34, %v5952_v18  ;;  %v4034_v18 = vld [vmem:[%s7066_s0 + $0x4d0] sm:$0xf] }
 0x32e   :  { %v3091_v62 = vpack.c.bf16 %v3055_v39, %v3055_v39  ;;  %v2748_v41 = vpop.f32.mrf.mxu0  ;;  %v4035_v30 = vor.u32 %v4557_v58, %v4034_v18  ;;  %v4608_v39 = vld [vmem:[%s7066_s0 + $0x670] sm:$0xf0] }
 0x32f   :  { %v2943_v54 = vpop.f32.mrf.mxu3  ;;  %v2749_v48 = vadd.f32 %v6251_v1, %v2748_v41  ;;  %v2847_v51 = vpop.f32.mrf.mxu1  ;;  %v6719_v33 = vmax.f32 %v7251_v13, %v2222_v36  ;;  %v7255_v41 = vmax.f32 %v5287_v45, %v5981_v47  ;;  %v4560_v13 = vld [vmem:[%s7066_s0 + $0x4f0] sm:$0xf0] }
 0x330   :  { %3128 = vst.msk [vmem:[%s7068_s3 + $0x20] sm:$0xf] %vm3119_vm1, %v3091_v62  ;;  %v2944_v17 = vadd.f32 %v2943_v54, %v2845_v25 }
 0x331   :  { %2787 = vmatmul.bf16.gmra.mxu0 %v4309_v32  ;;  %v2848_v12 = vadd.f32 %v2847_v51, %v2749_v48  ;;  %v4329_v32 = vor.u32 %v4608_v39, %v4328_v6 }
 0x332   :  { %v3020_v5 = vmax.f32 %v6637_v31, %v2944_v17  ;;  %2886 = vmatmul.bf16.gmra.mxu1 %v4313_v37 }
 0x334   :  { %v3056_v50 = vmax.f32 %v3020_v5, 0.0  ;;  %4379 = vmatmul.msk.bf16.gmra.mxu3 %vm505_vm0, %v4317_v38  ;;  %v2223_v11 = vpop.f32.mrf.mxu2 }
 0x335   :  { %v2224_v31 = vadd.f32 %v2223_v11, %v5979_v15  ;;  %v4607_v15 = vld [vmem:[%s7066_s0 + $0x668] sm:$0xf0] }
 0x336   :  { %v3092_v59 = vpack.c.bf16 %v3056_v50, %v3056_v50  ;;  %v2750_v43 = vpop.f32.mrf.mxu0  ;;  %v4321_v9 = vor.u32 %v4607_v15, %v4320_v46  ;;  %v7257_v11 = vld [vmem:[#allocation47_spill] sm:$0xff] }
 0x337   :  { %v2946_v4 = vpop.f32.mrf.mxu3  ;;  %v2849_v0 = vpop.f32.mrf.mxu1  ;;  %v6737_v20 = vmax.f32 %v7254_v35, %v2224_v31  ;;  %v2751_v23 = vadd.f32 %v6251_v1, %v2750_v43  ;;  %v4611_v35 = vld [vmem:[%s7066_s0 + $0x688] sm:$0xf0] }
 0x338   :  { %3129 = vst.msk [vmem:[%s7068_s3 + $0x24] sm:$0xf] %vm3119_vm1, %v3092_v59  ;;  %v2947_v61 = vadd.f32 %v2946_v4, %v2848_v12  ;;  %v7256_v59 = vld [vmem:[#allocation10_spill] sm:$0xff] }
 0x339   :  { %4075 = vmatmul.msk.bf16.gmra.mxu2 %vm505_vm0, %v4035_v30  ;;  %v2850_v53 = vadd.f32 %v2849_v0, %v2751_v23  ;;  %v7258_v4 = vmax.f32 %v7256_v59, %v7257_v11  ;;  %v4332_v30 = vld [vmem:[%s7066_s0 + $0x678] sm:$0xf] }
 0x33a   :  { %v3021_v63 = vmax.f32 %v6669_v21, %v2947_v61  ;;  %v4322_v21 = vld [vmem:[%s7066_s0 + $0x66c] sm:$0xf0] }
 0x33b   :  { %v4325_v54 = vor.u32 %v4606_v10, %v4322_v21 }
 0x33c   :  { %v3057_v56 = vmax.f32 %v3021_v63, 0.0  ;;  %v2226_v28 = vpop.f32.mrf.mxu2 }
 0x33d   :  { %v2227_v62 = vadd.f32 %v2226_v28, %v5995_v49  ;;  %v4046_v49 = vld [vmem:[%s7066_s0 + $0x4e8] sm:$0xf] }
 0x33e   :  { %v3093_v40 = vpack.c.bf16 %v3057_v56, %v3057_v56  ;;  %v2753_v34 = vpop.f32.mrf.mxu0  ;;  %v4047_v18 = vor.u32 %v4560_v13, %v4046_v49 }
 0x33f   :  { %v2948_v57 = vpop.f32.mrf.mxu3  ;;  %v2754_v36 = vadd.f32 %v6251_v1, %v2753_v34  ;;  %v2852_v17 = vpop.f32.mrf.mxu1  ;;  %v6769_v37 = vmax.f32 %v7255_v41, %v2227_v62 }
 0x340   :  { %3130 = vst.msk [vmem:[%s7068_s3 + $0x28] sm:$0xf] %vm3119_vm1, %v3093_v40  ;;  %v2949_v25 = vadd.f32 %v2948_v57, %v2850_v53  ;;  %v4341_v40 = vor.u32 %v4611_v35, %v4340_v8  ;;  %v7259_v57 = vmax.f32 %v5322_v29, %v6024_v24  ;;  %v7263_v35 = vld [vmem:[#allocation49_spill] sm:$0xff] }
 0x341   :  { %2792 = vmatmul.bf16.gmra.mxu0 %v4321_v9  ;;  %v2853_v51 = vadd.f32 %v2852_v17, %v2754_v36 }
 0x342   :  { %v3022_v38 = vmax.f32 %v6687_v42, %v2949_v25  ;;  %2891 = vmatmul.bf16.gmra.mxu1 %v4325_v54  ;;  %v4563_v54 = vld [vmem:[%s7066_s0 + $0x508] sm:$0xf0] }
 0x344   :  { %v3058_v48 = vmax.f32 %v3022_v38, 0.0  ;;  %4380 = vmatmul.msk.bf16.gmra.mxu3 %vm505_vm0, %v4329_v32  ;;  %v2228_v47 = vpop.f32.mrf.mxu2 }
 0x345   :  { %v2229_v42 = vadd.f32 %v2228_v47, %v6022_v44  ;;  %v4610_v44 = vld [vmem:[%s7066_s0 + $0x680] sm:$0xf0] }
 0x346   :  { %v3094_v5 = vpack.c.bf16 %v3058_v48, %v3058_v48  ;;  %v2755_v12 = vpop.f32.mrf.mxu0  ;;  %v4333_v15 = vor.u32 %v4610_v44, %v4332_v30  ;;  %v7260_v48 = vld [vmem:[#allocation11_spill] sm:$0xff] }
 0x347   :  { %v2951_v45 = vpop.f32.mrf.mxu3  ;;  %v2854_v58 = vpop.f32.mrf.mxu1  ;;  %v6787_v31 = vmax.f32 %v7258_v4, %v2229_v42  ;;  %v2756_v43 = vadd.f32 %v6251_v1, %v2755_v12  ;;  %v4352_v12 = vld [vmem:[%s7066_s0 + $0x698] sm:$0xf] }
 0x348   :  { %3131 = vst.msk [vmem:[%s7068_s3 + $0x2c] sm:$0xf] %vm3119_vm1, %v3094_v5  ;;  %v2952_v50 = vadd.f32 %v2951_v45, %v2853_v51  ;;  %v7261_v51 = vld [vmem:[#allocation48_spill] sm:$0xff] }
 0x349   :  { %4076 = vmatmul.msk.bf16.gmra.mxu2 %vm505_vm0, %v4047_v18  ;;  %v2855_v23 = vadd.f32 %v2854_v58, %v2756_v43  ;;  %v7262_v49 = vmax.f32 %v7260_v48, %v7261_v51  ;;  %v4344_v45 = vld [vmem:[%s7066_s0 + $0x690] sm:$0xf]  ;;  %v4614_v18 = vld [vmem:[%s7066_s0 + $0x6a0] sm:$0xf0]  ;;  %v7269_v51 = vld [vmem:[#allocation17_spill] sm:$0xff] }
 0x34a   :  { %v3023_v61 = vmax.f32 %v6719_v33, %v2952_v50  ;;  %v4334_v33 = vld [vmem:[%s7066_s0 + $0x684] sm:$0xf0]  ;;  %v4612_v50 = vld [vmem:[%s7066_s0 + $0x694] sm:$0xf] }
 0x34b   :  { %v4337_v39 = vor.u32 %v4609_v22, %v4334_v33  ;;  %v4353_v22 = vor.u32 %v4614_v18, %v4352_v12  ;;  %v7271_v12 = vld [vmem:[#allocation52_spill] sm:$0xff] }
 0x34c   :  { %v3059_v0 = vmax.f32 %v3023_v61, 0.0  ;;  %v2231_v46 = vpop.f32.mrf.mxu2 }
 0x34d   :  { %v2232_v10 = vadd.f32 %v2231_v46, %v6038_v19  ;;  %v4058_v19 = vld [vmem:[%s7066_s0 + $0x500] sm:$0xf] }
 0x34e   :  { %v3095_v63 = vpack.c.bf16 %v3059_v0, %v3059_v0  ;;  %v2758_v6 = vpop.f32.mrf.mxu0  ;;  %v4059_v41 = vor.u32 %v4563_v54, %v4058_v19  ;;  %v4356_v19 = vld [vmem:[%s7066_s0 + $0x6a8] sm:$0xf] }
 0x34f   :  { %v2953_v56 = vpop.f32.mrf.mxu3  ;;  %v2759_v53 = vadd.f32 %v6251_v1, %v2758_v6  ;;  %v2857_v28 = vpop.f32.mrf.mxu1  ;;  %v2297_v9 = vmax.f32 %v7259_v57, %v2232_v10 }
 0x350   :  { %3132 = vst.msk [vmem:[%s7068_s3 + $0x30] sm:$0xf] %vm3119_vm1, %v3095_v63  ;;  %v2954_v21 = vadd.f32 %v2953_v56, %v2855_v23  ;;  %v7264_v63 = vmax.f32 %v5356_v7, %v7263_v35  ;;  %v7275_v35 = vld [vmem:[#allocation53_spill] sm:$0xff] }
 0x351   :  { %2797 = vmatmul.bf16.gmra.mxu0 %v4333_v15  ;;  %v2858_v34 = vadd.f32 %v2857_v28, %v2759_v53  ;;  %v7267_v53 = vld [vmem:[#allocation50_spill] sm:$0xff] }
 0x352   :  { %v3024_v62 = vmax.f32 %v6737_v20, %v2954_v21  ;;  %2896 = vmatmul.bf16.gmra.mxu1 %v4337_v39 }
 0x354   :  { %v3060_v25 = vmax.f32 %v3024_v62, 0.0  ;;  %4381 = vmatmul.msk.bf16.gmra.mxu3 %vm505_vm0, %v4341_v40  ;;  %v2233_v36 = vpop.f32.mrf.mxu2 }
 0x355   :  { %v2234_v29 = vadd.f32 %v2233_v36, %v6066_v2  ;;  %v4613_v2 = vld [vmem:[%s7066_s0 + $0x698] sm:$0xf0]  ;;  %v4358_v36 = vld [vmem:[%s7066_s0 + $0x6b4] sm:$0xf0] }
 0x356   :  { %v3096_v32 = vpack.c.bf16 %v3060_v25, %v3060_v25  ;;  %v2760_v17 = vpop.f32.mrf.mxu0  ;;  %v4345_v61 = vor.u32 %v4613_v2, %v4344_v45  ;;  %v6880_v25 = vld [vmem:[%s7067_s2] ss:$0 sm:$0xff] }
 0x357   :  { %v2956_v24 = vpop.f32.mrf.mxu3  ;;  %v2859_v38 = vpop.f32.mrf.mxu1  ;;  %v6835_v13 = vmax.f32 %v7262_v49, %v2234_v29  ;;  %v2761_v47 = vadd.f32 %v6251_v1, %v2760_v17  ;;  %v4617_v29 = vld [vmem:[%s7066_s0 + $0x6b8] sm:$0xf0] }
 0x358   :  { %3133 = vst.msk [vmem:[%s7068_s3 + $0x34] sm:$0xf] %vm3119_vm1, %v3096_v32  ;;  %v2957_v20 = vadd.f32 %v2956_v24, %v2858_v34  ;;  %v4616_v32 = vld [vmem:[%s7066_s0 + $0x6b0] sm:$0xf0]  ;;  %v4364_v24 = vld [vmem:[%s7066_s0 + $0x6b0] sm:$0xf] }
 0x359   :  { %4077 = vmatmul.msk.bf16.gmra.mxu2 %vm505_vm0, %v4059_v41  ;;  %v2860_v59 = vadd.f32 %v2859_v38, %v2761_v47  ;;  %v4357_v48 = vor.u32 %v4616_v32, %v4356_v19 }
 0x35a   :  { %v3025_v5 = vmax.f32 %v6769_v37, %v2957_v20  ;;  %v4346_v37 = vld [vmem:[%s7066_s0 + $0x69c] sm:$0xf0] }
 0x35b   :  { %v4349_v44 = vor.u32 %v4612_v50, %v4346_v37  ;;  %v7270_v37 = vld [vmem:[#allocation13_spill] sm:$0xff] }
 0x35c   :  { %v3061_v42 = vmax.f32 %v3025_v5, 0.0  ;;  %v2236_v11 = vpop.f32.mrf.mxu2  ;;  %v7272_v18 = vmax.f32 %v7270_v37, %v7271_v12 }
 0x35d   :  { %v2237_v43 = vadd.f32 %v2236_v11, %v6082_v55 }
 0x35e   :  { %v3097_v58 = vpack.c.bf16 %v3061_v42, %v3061_v42  ;;  %v2763_v0 = vpop.f32.mrf.mxu0  ;;  %v4365_v42 = vor.u32 %v4617_v29, %v4364_v24 }
 0x35f   :  { %v2958_v4 = vpop.f32.mrf.mxu3  ;;  %v2764_v33 = vadd.f32 %v6251_v1, %v2763_v0  ;;  %v2862_v8 = vpop.f32.mrf.mxu1  ;;  %v2299_v23 = vmax.f32 %v7264_v63, %v2237_v43  ;;  %v7265_v1 = vld [vmem:[#allocation51_spill] sm:$0xff] }
 0x360   :  { %3134 = vst.msk [vmem:[%s7068_s3 + $0x38] sm:$0xf] %vm3119_vm1, %v3097_v58  ;;  %v2959_v30 = vadd.f32 %v2958_v4, %v2860_v59  ;;  %v7273_v0 = vld [vmem:[#allocation19_spill] sm:$0xff] }
 0x361   :  { %2802 = vmatmul.bf16.gmra.mxu0 %v4345_v61  ;;  %v2863_v15 = vadd.f32 %v2862_v8, %v2764_v33 }
 0x362   :  { %v3026_v46 = vmax.f32 %v6787_v31, %v2959_v30  ;;  %2901 = vmatmul.bf16.gmra.mxu1 %v4349_v44  ;;  %v7266_v31 = vld [vmem:[#allocation12_spill] sm:$0xff] }
 0x363   :  { %v7268_v28 = vmax.f32 %v7266_v31, %v7267_v53 }
 0x364   :  { %v3062_v56 = vmax.f32 %v3026_v46, 0.0  ;;  %4382 = vmatmul.msk.bf16.gmra.mxu3 %vm505_vm0, %v4353_v22  ;;  %v2238_v10 = vpop.f32.mrf.mxu2 }
 0x365   :  { %v2239_v6 = vadd.f32 %v2238_v10, %v7265_v1 }
 0x366   :  { %v3098_v55 = vpack.c.bf16 %v3062_v56, %v3062_v56  ;;  %v2765_v39 = vpop.f32.mrf.mxu0 }
 0x367   :  { %v2961_v21 = vpop.f32.mrf.mxu3  ;;  %v2864_v40 = vpop.f32.mrf.mxu1  ;;  %v2300_v57 = vmax.f32 %v7268_v28, %v2239_v6  ;;  %v2766_v34 = vadd.f32 %v6880_v25, %v2765_v39 }
 0x368   :  { %3135 = vst.msk [vmem:[%s7068_s3 + $0x3c] sm:$0xf] %vm3119_vm1, %v3098_v55  ;;  %v2962_v7 = vadd.f32 %v2961_v21, %v2863_v15 }
 0x369   :  { %v2865_v17 = vadd.f32 %v2864_v40, %v2766_v34 }
 0x36a   :  { %v3027_v62 = vmax.f32 %v2297_v9, %v2962_v7  ;;  %v4615_v9 = vld [vmem:[%s7066_s0 + $0x6ac] sm:$0xf]  ;;  %v7277_v7 = vld [vmem:[#allocation21_spill] sm:$0xff] }
 0x36b   :  { %v4361_v45 = vor.u32 %v4615_v9, %v4358_v36 }
 0x36c   :  { %v3063_v54 = vmax.f32 %v3027_v62, 0.0  ;;  %v2241_v41 = vpop.f32.mrf.mxu2  ;;  %v7279_v62 = vld [vmem:[#allocation54_spill] sm:$0xff] }
 0x36d   :  { %v2242_v49 = vadd.f32 %v2241_v41, %v7269_v51  ;;  %v7282_v51 = vld [vmem:[#allocation16_spill] sm:$0xff] }
 0x36e   :  { %v3099_v20 = vpack.c.bf16 %v3063_v54, %v3063_v54  ;;  %v2768_v47 = vpop.f32.mrf.mxu0 }
 0x36f   :  { %v2963_v38 = vpop.f32.mrf.mxu3  ;;  %v2769_v2 = vadd.f32 %v6880_v25, %v2768_v47  ;;  %v2867_v50 = vpop.f32.mrf.mxu1  ;;  %v2301_v58 = vmax.f32 %v7272_v18, %v2242_v49  ;;  %v7283_v49 = vld [vmem:[#allocation55_spill] sm:$0xff]  ;;  %v7285_v18 = vld [vmem:[#allocation25_spill] sm:$0xff] }
 0x370   :  { %3136 = vst.msk [vmem:[%s7068_s3 + $0x40] sm:$0xf] %vm3119_vm1, %v3099_v20  ;;  %v2964_v5 = vadd.f32 %v2963_v38, %v2865_v17  ;;  %v7281_v20 = vld [vmem:[#allocation23_spill] sm:$0xff] }
 0x371   :  { %2807 = vmatmul.bf16.gmra.mxu0 %v4357_v48  ;;  %v2868_v4 = vadd.f32 %v2867_v50, %v2769_v2 }
 0x372   :  { %v3028_v59 = vmax.f32 %v6835_v13, %v2964_v5  ;;  %2906 = vmatmul.bf16.gmra.mxu1 %v4361_v45  ;;  %v7274_v13 = vld [vmem:[#allocation14_spill] sm:$0xff]  ;;  %v7284_v5 = vmax.f32 %v7282_v51, %v7283_v49 }
 0x373   :  { %v7276_v63 = vmax.f32 %v7274_v13, %v7275_v35 }
 0x374   :  { %v3064_v11 = vmax.f32 %v3028_v59, 0.0  ;;  %4383 = vmatmul.msk.bf16.gmra.mxu3 %vm505_vm0, %v4365_v42  ;;  %v2243_v43 = vpop.f32.mrf.mxu2 }
 0x375   :  { %v2244_v44 = vadd.f32 %v2243_v43, %v7273_v0 }
 0x376   :  { %v3100_v61 = vpack.c.bf16 %v3064_v11, %v3064_v11  ;;  %v2770_v33 = vpop.f32.mrf.mxu0 }
 0x377   :  { %v2966_v30 = vpop.f32.mrf.mxu3  ;;  %v2869_v8 = vpop.f32.mrf.mxu1  ;;  %v2302_v46 = vmax.f32 %v7276_v63, %v2244_v44  ;;  %v2771_v15 = vadd.f32 %v6880_v25, %v2770_v33 }
 0x378   :  { %3137 = vst.msk [vmem:[%s7068_s3 + $0x44] sm:$0xf] %vm3119_vm1, %v3100_v61  ;;  %v2967_v22 = vadd.f32 %v2966_v30, %v2868_v4  ;;  %v7287_v30 = vld [vmem:[#allocation56_spill] sm:$0xff] }
 0x379   :  { %v2870_v21 = vadd.f32 %v2869_v8, %v2771_v15 }
 0x37a   :  { %v3029_v56 = vmax.f32 %v2299_v23, %v2967_v22  ;;  %v7278_v23 = vld [vmem:[#allocation15_spill] sm:$0xff] }
 0x37b   :  { %v7280_v34 = vmax.f32 %v7278_v23, %v7279_v62 }
 0x37c   :  { %v3065_v55 = vmax.f32 %v3029_v56, 0.0  ;;  %v2246_v1 = vpop.f32.mrf.mxu2  ;;  %v7289_v56 = vld [vmem:[#allocation27_spill] sm:$0xff] }
 0x37d   :  { %v2247_v39 = vadd.f32 %v2246_v1, %v7277_v7  ;;  %v7290_v1 = vld [vmem:[#allocation20_spill] sm:$0xff] }
 0x37e   :  { %v3101_v10 = vpack.c.bf16 %v3065_v55, %v3065_v55  ;;  %v2773_v31 = vpop.f32.mrf.mxu0 }
 0x37f   :  { %v2968_v6 = vpop.f32.mrf.mxu3  ;;  %v2774_v53 = vadd.f32 %v6880_v25, %v2773_v31  ;;  %v2872_v28 = vpop.f32.mrf.mxu1  ;;  %v2303_v19 = vmax.f32 %v7280_v34, %v2247_v39  ;;  %v7293_v34 = vld [vmem:[#allocation29_spill] sm:$0xff] }
 0x380   :  { %3138 = vst.msk [vmem:[%s7068_s3 + $0x48] sm:$0xf] %vm3119_vm1, %v3101_v10  ;;  %v2969_v40 = vadd.f32 %v2968_v6, %v2870_v21  ;;  %v7291_v6 = vld [vmem:[#allocation57_spill] sm:$0xff] }
 0x381   :  { %v2873_v9 = vadd.f32 %v2872_v28, %v2774_v53  ;;  %v7292_v7 = vmax.f32 %v7290_v1, %v7291_v6 }
 0x382   :  { %v3030_v54 = vmax.f32 %v2300_v57, %v2969_v40 }
 0x384   :  { %v3066_v32 = vmax.f32 %v3030_v54, 0.0  ;;  %v2248_v24 = vpop.f32.mrf.mxu2 }
 0x385   :  { %v2249_v17 = vadd.f32 %v2248_v24, %v7281_v20 }
 0x386   :  { %v3102_v36 = vpack.c.bf16 %v3066_v32, %v3066_v32  ;;  %v2775_v38 = vpop.f32.mrf.mxu0 }
 0x387   :  { %v2971_v29 = vpop.f32.mrf.mxu3  ;;  %v2874_v48 = vpop.f32.mrf.mxu1  ;;  %v2304_v47 = vmax.f32 %v7284_v5, %v2249_v17  ;;  %v2776_v45 = vadd.f32 %v6880_v25, %v2775_v38 }
 0x388   :  { %3139 = vst.msk [vmem:[%s7068_s3 + $0x4c] sm:$0xf] %vm3119_vm1, %v3102_v36  ;;  %v2972_v41 = vadd.f32 %v2971_v29, %v2873_v9  ;;  %v7295_v29 = vld [vmem:[#allocation58_spill] sm:$0xff] }
 0x389   :  { %v2875_v50 = vadd.f32 %v2874_v48, %v2776_v45 }
 0x38a   :  { %v3031_v57 = vmax.f32 %v2301_v58, %v2972_v41  ;;  %v7286_v58 = vld [vmem:[#allocation18_spill] sm:$0xff] }
 0x38b   :  { %v7288_v0 = vmax.f32 %v7286_v58, %v7287_v30 }
 0x38c   :  { %v3067_v42 = vmax.f32 %v3031_v57, 0.0  ;;  %v2251_v37 = vpop.f32.mrf.mxu2  ;;  %v7297_v57 = vld [vmem:[#allocation31_spill] sm:$0xff] }
 0x38d   :  { %v2252_v59 = vadd.f32 %v2251_v37, %v7285_v18  ;;  %v7298_v37 = vld [vmem:[#allocation24_spill] sm:$0xff] }
 0x38e   :  { %v3103_v2 = vpack.c.bf16 %v3067_v42, %v3067_v42  ;;  %v2778_v4 = vpop.f32.mrf.mxu0 }
 0x38f   :  { %v2973_v12 = vpop.f32.mrf.mxu3  ;;  %v2779_v61 = vadd.f32 %v6880_v25, %v2778_v4  ;;  %v2877_v43 = vpop.f32.mrf.mxu1  ;;  %v2305_v44 = vmax.f32 %v7288_v0, %v2252_v59  ;;  %v7301_v0 = vld [vmem:[#allocation33_spill] sm:$0xff] }
 0x390   :  { %3140 = vst.msk [vmem:[%s7068_s3 + $0x50] sm:$0xf] %vm3119_vm1, %v3103_v2  ;;  %v2974_v11 = vadd.f32 %v2973_v12, %v2875_v50  ;;  %v7299_v12 = vld [vmem:[#allocation59_spill] sm:$0xff] }
 0x391   :  { %v2878_v8 = vadd.f32 %v2877_v43, %v2779_v61  ;;  %v7300_v18 = vmax.f32 %v7298_v37, %v7299_v12 }
 0x392   :  { %v3032_v22 = vmax.f32 %v2302_v46, %v2974_v11 }
 0x394   :  { %v3068_v33 = vmax.f32 %v3032_v22, 0.0  ;;  %v2253_v35 = vpop.f32.mrf.mxu2 }
 0x395   :  { %v2254_v15 = vadd.f32 %v2253_v35, %v7289_v56 }
 0x396   :  { %v3104_v13 = vpack.c.bf16 %v3068_v33, %v3068_v33  ;;  %v2780_v10 = vpop.f32.mrf.mxu0 }
 0x397   :  { %v2976_v63 = vpop.f32.mrf.mxu3  ;;  %v2879_v21 = vpop.f32.mrf.mxu1  ;;  %v2306_v39 = vmax.f32 %v7292_v7, %v2254_v15  ;;  %v2781_v40 = vadd.f32 %v6880_v25, %v2780_v10 }
 0x398   :  { %3141 = vst.msk [vmem:[%s7068_s3 + $0x54] sm:$0xf] %vm3119_vm1, %v3104_v13  ;;  %v2977_v55 = vadd.f32 %v2976_v63, %v2878_v8  ;;  %v7303_v63 = vld [vmem:[#allocation60_spill] sm:$0xff] }
 0x399   :  { %v2880_v28 = vadd.f32 %v2879_v21, %v2781_v40 }
 0x39a   :  { %v3033_v46 = vmax.f32 %v2303_v19, %v2977_v55  ;;  %v7294_v19 = vld [vmem:[#allocation22_spill] sm:$0xff] }
 0x39b   :  { %v7296_v20 = vmax.f32 %v7294_v19, %v7295_v29 }
 0x39c   :  { %v3069_v31 = vmax.f32 %v3033_v46, 0.0  ;;  %v2256_v23 = vpop.f32.mrf.mxu2 }
 0x39d   :  { %v2257_v54 = vadd.f32 %v2256_v23, %v7293_v34  ;;  %v7306_v23 = vld [vmem:[#allocation61_spill] sm:$0xff] }
 0x39e   :  { %v3105_v53 = vpack.c.bf16 %v3069_v31, %v3069_v31  ;;  %v2783_v9 = vpop.f32.mrf.mxu0 }
 0x39f   :  { %v2978_v62 = vpop.f32.mrf.mxu3  ;;  %v2784_v36 = vadd.f32 %v6880_v25, %v2783_v9  ;;  %v2882_v24 = vpop.f32.mrf.mxu1  ;;  %v2307_v17 = vmax.f32 %v7296_v20, %v2257_v54 }
 0x3a0   :  { %3142 = vst.msk [vmem:[%s7068_s3 + $0x58] sm:$0xf] %vm3119_vm1, %v3105_v53  ;;  %v2979_v32 = vadd.f32 %v2978_v62, %v2880_v28  ;;  %v7305_v28 = vld [vmem:[#allocation28_spill] sm:$0xff] }
 0x3a1   :  { %v2883_v48 = vadd.f32 %v2882_v24, %v2784_v36  ;;  %v7307_v62 = vmax.f32 %v7305_v28, %v7306_v23 }
 0x3a2   :  { %v3034_v41 = vmax.f32 %v2304_v47, %v2979_v32 }
 0x3a4   :  { %v3070_v38 = vmax.f32 %v3034_v41, 0.0  ;;  %v2258_v49 = vpop.f32.mrf.mxu2 }
 0x3a5   :  { %v2259_v45 = vadd.f32 %v2258_v49, %v7297_v57 }
 0x3a6   :  { %v3106_v51 = vpack.c.bf16 %v3070_v38, %v3070_v38  ;;  %v2785_v2 = vpop.f32.mrf.mxu0 }
 0x3a7   :  { %v2981_v5 = vpop.f32.mrf.mxu3  ;;  %v2884_v50 = vpop.f32.mrf.mxu1  ;;  %v2308_v59 = vmax.f32 %v7300_v18, %v2259_v45  ;;  %v2786_v11 = vadd.f32 %v6880_v25, %v2785_v2 }
 0x3a8   :  { %3143 = vst.msk [vmem:[%s7068_s3 + $0x5c] sm:$0xf] %vm3119_vm1, %v3106_v51  ;;  %v2982_v42 = vadd.f32 %v2981_v5, %v2883_v48  ;;  %v7309_v48 = vld [vmem:[#allocation35_spill] sm:$0xff] }
 0x3a9   :  { %v2885_v43 = vadd.f32 %v2884_v50, %v2786_v11  ;;  %v7312_v11 = vld [vmem:[#allocation32_spill] sm:$0xff] }
 0x3aa   :  { %v3035_v47 = vmax.f32 %v2305_v44, %v2982_v42  ;;  %v7302_v44 = vld [vmem:[#allocation26_spill] sm:$0xff] }
 0x3ab   :  { %v7304_v56 = vmax.f32 %v7302_v44, %v7303_v63 }
 0x3ac   :  { %v3071_v4 = vmax.f32 %v3035_v47, 0.0  ;;  %v2261_v58 = vpop.f32.mrf.mxu2 }
 0x3ad   :  { %v2262_v22 = vadd.f32 %v2261_v58, %v7301_v0 }
 0x3ae   :  { %v3107_v61 = vpack.c.bf16 %v3071_v4, %v3071_v4  ;;  %v2788_v8 = vpop.f32.mrf.mxu0  ;;  %v7313_v4 = vld [vmem:[#allocation62_spill] sm:$0xff] }
 0x3af   :  { %v2983_v30 = vpop.f32.mrf.mxu3  ;;  %v2789_v13 = vadd.f32 %v6880_v25, %v2788_v8  ;;  %v2887_v35 = vpop.f32.mrf.mxu1  ;;  %v2309_v15 = vmax.f32 %v7304_v56, %v2262_v22 }
 0x3b0   :  { %3144 = vst.msk [vmem:[%s7068_s3 + $0x60] sm:$0xf] %vm3119_vm1, %v3107_v61  ;;  %v2984_v33 = vadd.f32 %v2983_v30, %v2885_v43  ;;  %v7314_v61 = vmax.f32 %v7312_v11, %v7313_v4  ;;  %v7324_v11 = vld [vmem:[#allocation2_spill] sm:$0xff] }
 0x3b1   :  { %v2888_v21 = vadd.f32 %v2887_v35, %v2789_v13  ;;  %v7315_v13 = vld [vmem:[#allocation65_spill] sm:$0xff] }
 0x3b2   :  { %v3036_v55 = vmax.f32 %v2306_v39, %v2984_v33 }
 0x3b4   :  { %v3072_v10 = vmax.f32 %v3036_v55, 0.0  ;;  %v2263_v6 = vpop.f32.mrf.mxu2 }
 0x3b5   :  { %v2264_v46 = vadd.f32 %v2263_v6, %v6335_v27 }
 0x3b6   :  { %v3108_v1 = vpack.c.bf16 %v3072_v10, %v3072_v10  ;;  %v2790_v31 = vpop.f32.mrf.mxu0  ;;  %v7317_v10 = vld [vmem:[#allocation64_spill] sm:$0xff] }
 0x3b7   :  { %v2986_v7 = vpop.f32.mrf.mxu3  ;;  %v2889_v53 = vpop.f32.mrf.mxu1  ;;  %v2310_v34 = vmax.f32 %v7307_v62, %v2264_v46  ;;  %v2791_v54 = vadd.f32 %v6880_v25, %v2790_v31 }
 0x3b8   :  { %3145 = vst.msk [vmem:[%s7068_s3 + $0x64] sm:$0xf] %vm3119_vm1, %v3108_v1  ;;  %v2987_v40 = vadd.f32 %v2986_v7, %v2888_v21 }
 0x3b9   :  { %v2890_v36 = vadd.f32 %v2889_v53, %v2791_v54  ;;  %v7319_v54 = vld [vmem:[#allocation36_spill] sm:$0xff] }
 0x3ba   :  { %v3037_v39 = vmax.f32 %v2307_v17, %v2987_v40  ;;  %v7308_v17 = vld [vmem:[#allocation30_spill] sm:$0xff] }
 0x3bb   :  { %v7310_v51 = vmax.f32 %v7308_v17, %v7309_v48 }
 0x3bc   :  { %v3073_v32 = vmax.f32 %v3037_v39, 0.0  ;;  %v2266_v24 = vpop.f32.mrf.mxu2 }
 0x3bd   :  { %v2267_v27 = vadd.f32 %v2266_v24, %v6351_v16  ;;  %v7311_v16 = vld [vmem:[#allocation63_spill] sm:$0xff] }
 0x3be   :  { %v3109_v9 = vpack.c.bf16 %v3073_v32, %v3073_v32  ;;  %v2793_v20 = vpop.f32.mrf.mxu0  ;;  %v7320_v32 = vld [vmem:[#allocation66_spill] sm:$0xff] }
 0x3bf   :  { %v2988_v19 = vpop.f32.mrf.mxu3  ;;  %v2794_v41 = vadd.f32 %v6880_v25, %v2793_v20  ;;  %v2892_v38 = vpop.f32.mrf.mxu1  ;;  %v2311_v49 = vmax.f32 %v7310_v51, %v2267_v27 }
 0x3c0   :  { %3146 = vst.msk [vmem:[%s7068_s3 + $0x68] sm:$0xf] %vm3119_vm1, %v3109_v9  ;;  %v2989_v29 = vadd.f32 %v2988_v19, %v2890_v36  ;;  %v7321_v9 = vmax.f32 %v7319_v54, %v7320_v32 }
 0x3c1   :  { %v2893_v45 = vadd.f32 %v2892_v38, %v2794_v41 }
 0x3c2   :  { %v3038_v5 = vmax.f32 %v2308_v59, %v2989_v29 }
 0x3c4   :  { %v3074_v57 = vmax.f32 %v3038_v5, 0.0  ;;  %v2268_v2 = vpop.f32.mrf.mxu2 }
 0x3c5   :  { %v2269_v37 = vadd.f32 %v2268_v2, %v7311_v16 }
 0x3c6   :  { %v3110_v42 = vpack.c.bf16 %v3074_v57, %v3074_v57  ;;  %v2795_v18 = vpop.f32.mrf.mxu0 }
 0x3c7   :  { %v2991_v50 = vpop.f32.mrf.mxu3  ;;  %v2894_v47 = vpop.f32.mrf.mxu1  ;;  %v2312_v43 = vmax.f32 %v7314_v61, %v2269_v37  ;;  %v2796_v58 = vadd.f32 %v6880_v25, %v2795_v18 }
 0x3c8   :  { %3147 = vst.msk [vmem:[%s7068_s3 + $0x6c] sm:$0xf] %vm3119_vm1, %v3110_v42  ;;  %v2992_v12 = vadd.f32 %v2991_v50, %v2893_v45 }
 0x3c9   :  { %v2895_v22 = vadd.f32 %v2894_v47, %v2796_v58  ;;  %v7323_v47 = vld [vmem:[#allocation38_spill] sm:$0xff] }
 0x3ca   :  { %v3039_v59 = vmax.f32 %v2309_v15, %v2992_v12  ;;  %v7316_v15 = vld [vmem:[#allocation34_spill] sm:$0xff] }
 0x3cb   :  { %v7318_v21 = vmax.f32 %v7316_v15, %v7317_v10 }
 0x3cc   :  { %v3075_v30 = vmax.f32 %v3039_v59, 0.0  ;;  %v2271_v33 = vpop.f32.mrf.mxu2 }
 0x3cd   :  { %v2272_v35 = vadd.f32 %v2271_v33, %v7315_v13 }
 0x3ce   :  { %v3111_v0 = vpack.c.bf16 %v3075_v30, %v3075_v30  ;;  %v2798_v63 = vpop.f32.mrf.mxu0 }
 0x3cf   :  { %v2993_v8 = vpop.f32.mrf.mxu3  ;;  %v2799_v56 = vadd.f32 %v6880_v25, %v2798_v63  ;;  %v2897_v55 = vpop.f32.mrf.mxu1  ;;  %v2313_v1 = vmax.f32 %v7318_v21, %v2272_v35 }
 0x3d0   :  { %3148 = vst.msk [vmem:[%s7068_s3 + $0x70] sm:$0xf] %vm3119_vm1, %v3111_v0  ;;  %v2994_v44 = vadd.f32 %v2993_v8, %v2895_v22 }
 0x3d1   :  { %v2898_v46 = vadd.f32 %v2897_v55, %v2799_v56 }
 0x3d2   :  { %v3040_v6 = vmax.f32 %v2310_v34, %v2994_v44 }
 0x3d4   :  { %v3076_v7 = vmax.f32 %v3040_v6, 0.0  ;;  %v2273_v31 = vpop.f32.mrf.mxu2 }
 0x3d5   :  { %v2274_v28 = vadd.f32 %v2273_v31, %v6421_v14 }
 0x3d6   :  { %v3112_v40 = vpack.c.bf16 %v3076_v7, %v3076_v7  ;;  %v2800_v62 = vpop.f32.mrf.mxu0 }
 0x3d7   :  { %v2996_v53 = vpop.f32.mrf.mxu3  ;;  %v2899_v39 = vpop.f32.mrf.mxu1  ;;  %v2314_v36 = vmax.f32 %v7321_v9, %v2274_v28  ;;  %v2801_v24 = vadd.f32 %v6880_v25, %v2800_v62 }
 0x3d8   :  { %3149 = vst.msk [vmem:[%s7068_s3 + $0x74] sm:$0xf] %vm3119_vm1, %v3112_v40  ;;  %v2997_v23 = vadd.f32 %v2996_v53, %v2898_v46 }
 0x3d9   :  { %v2900_v29 = vadd.f32 %v2899_v39, %v2801_v24 }
 0x3da   :  { %v3041_v34 = vmax.f32 %v2311_v49, %v2997_v23  ;;  %v7322_v49 = vmax.f32 %v7225_v52, %v6424_v3  ;;  %v7325_v3 = vmax.f32 %v7323_v47, %v7324_v11 }
 0x3dc   :  { %v3077_v19 = vmax.f32 %v3041_v34, 0.0  ;;  %v2276_v20 = vpop.f32.mrf.mxu2 }
 0x3dd   :  { %v2277_v14 = vadd.f32 %v2276_v20, %v6439_v60 }
 0x3de   :  { %v3113_v27 = vpack.c.bf16 %v3077_v19, %v3077_v19  ;;  %v2803_v17 = vpop.f32.mrf.mxu0 }
 0x3df   :  { %v2998_v41 = vpop.f32.mrf.mxu3  ;;  %v2804_v48 = vadd.f32 %v6880_v25, %v2803_v17  ;;  %v2902_v51 = vpop.f32.mrf.mxu1  ;;  %v2315_v5 = vmax.f32 %v7322_v49, %v2277_v14 }
 0x3e0   :  { %3150 = vst.msk [vmem:[%s7068_s3 + $0x78] sm:$0xf] %vm3119_vm1, %v3113_v27  ;;  %v2999_v38 = vadd.f32 %v2998_v41, %v2900_v29 }
 0x3e1   :  { %v2903_v42 = vadd.f32 %v2902_v51, %v2804_v48 }
 0x3e2   :  { %v3042_v57 = vmax.f32 %v2312_v43, %v2999_v38 }
 0x3e4   :  { %v3078_v45 = vmax.f32 %v3042_v57, 0.0  ;;  %v2278_v50 = vpop.f32.mrf.mxu2 }
 0x3e5   :  { %v2279_v60 = vadd.f32 %v2278_v50, %v6471_v26 }
 0x3e6   :  { %v3114_v2 = vpack.c.bf16 %v3078_v45, %v3078_v45  ;;  %v2805_v12 = vpop.f32.mrf.mxu0 }
 0x3e7   :  { %v3001_v16 = vpop.f32.mrf.mxu3  ;;  %v2904_v18 = vpop.f32.mrf.mxu1  ;;  %v2316_v52 = vmax.f32 %v7325_v3, %v2279_v60  ;;  %v2806_v61 = vadd.f32 %v6880_v25, %v2805_v12 }
 0x3e8   :  { %3151 = vst.msk [vmem:[%s7068_s3 + $0x7c] sm:$0xf] %vm3119_vm1, %v3114_v2  ;;  %v3002_v37 = vadd.f32 %v3001_v16, %v2903_v42 }
 0x3e9   :  { %v2905_v58 = vadd.f32 %v2904_v18, %v2806_v61 }
 0x3ea   :  { %v3043_v4 = vmax.f32 %v2313_v1, %v3002_v37 }
 0x3ec   :  { %v3079_v43 = vmax.f32 %v3043_v4, 0.0 }
 0x3ee   :  { %v3115_v59 = vpack.c.bf16 %v3079_v43, %v3079_v43  ;;  %v2808_v0 = vpop.f32.mrf.mxu0 }
 0x3ef   :  { %v3003_v30 = vpop.f32.mrf.mxu3  ;;  %v2809_v22 = vadd.f32 %v6880_v25, %v2808_v0  ;;  %v2907_v8 = vpop.f32.mrf.mxu1 }
 0x3f0   :  { %3152 = vst.msk [vmem:[%s7068_s3 + $0x80] sm:$0xf] %vm3119_vm1, %v3115_v59  ;;  %v3004_v26 = vadd.f32 %v3003_v30, %v2905_v58 }
 0x3f1   :  { %v2908_v35 = vadd.f32 %v2907_v8, %v2809_v22 }
 0x3f2   :  { %v3044_v33 = vmax.f32 %v2314_v36, %v3004_v26 }
 0x3f4   :  { %v3080_v13 = vmax.f32 %v3044_v33, 0.0 }
 0x3f6   :  { %v3116_v44 = vpack.c.bf16 %v3080_v13, %v3080_v13  ;;  %v2810_v55 = vpop.f32.mrf.mxu0 }
 0x3f7   :  { %v3006_v63 = vpop.f32.mrf.mxu3  ;;  %v2811_v10 = vadd.f32 %v6880_v25, %v2810_v55  ;;  %v2909_v1 = vpop.f32.mrf.mxu1 }
 0x3f8   :  { %3153 = vst.msk [vmem:[%s7068_s3 + $0x84] sm:$0xf] %vm3119_vm1, %v3116_v44  ;;  %v3007_v56 = vadd.f32 %v3006_v63, %v2908_v35 }
 0x3f9   :  { %v2910_v7 = vadd.f32 %v2909_v1, %v2811_v10 }
 0x3fa   :  { %v3045_v15 = vmax.f32 %v2315_v5, %v3007_v56 }
 0x3fc   :  { %v3081_v21 = vmax.f32 %v3045_v15, 0.0 }
 0x3fe   :  { %v3117_v6 = vpack.c.bf16 %v3081_v21, %v3081_v21 }
 0x3ff   :  { %v3008_v46 = vpop.f32.mrf.mxu3 }
 0x400   :  { %3154 = vst.msk [vmem:[%s7068_s3 + $0x88] sm:$0xf] %vm3119_vm1, %v3117_v6  ;;  %v3009_v40 = vadd.f32 %v3008_v46, %v2910_v7 }
 0x402   :  { %v3046_v31 = vmax.f32 %v2316_v52, %v3009_v40 }
 0x404   :  { %v3082_v53 = vmax.f32 %v3046_v31, 0.0 }
 0x406   :  { %v3118_v28 = vpack.c.bf16 %v3082_v53, %v3082_v53 }
 0x408   :  { %3155 = vst.msk [vmem:[%s7068_s3 + $0x8c] sm:$0xf] %vm3119_vm1, %v3118_v28 }

// kernel: cnn_forward.5
= control target key start
LH: loop header
LB: loop body
LE: loop exit
PB: predicated region body
PF: predicated region fallthrough
CT: control target
= control target key end

     0   :  { %s10627_s0 = inlined_call_operand.vmem [shape: bf16[2,9216], index: 0, kind: input, shape index: {}]   ;;  %s10628_s1 = inlined_call_operand.vmem [shape: bf16[9216,128], index: 1, kind: input, shape index: {}]   ;;  %s10629_s2 = inlined_call_operand.vmem [shape: f32[1,128], index: 2, kind: input, shape index: {}]   ;;  %s10630_s3 = inlined_call_operand.vmem [shape: bf16[128,10], index: 3, kind: input, shape index: {}]   ;;  %s10631_s4 = inlined_call_operand.vmem [shape: f32[1,10], index: 4, kind: input, shape index: {}]   ;;  %s10632_s5 = inlined_call_operand.hbm [shape: f32[2,10], index: 5, kind: output, shape index: {}]  }
   0x1   :  { %v8184_v0 = vld [vmem:[%s10628_s1 + $0x38] sm:$0xff]  ;;  %v8183_v4 = vld [vmem:[%s10628_s1 + $0x30] sm:$0xff]  ;;  %v8182_v8 = vld [vmem:[%s10628_s1 + $0x28] sm:$0xff] }
   0x2   :  { %v8192_v1 = vld [vmem:[%s10628_s1 + $0x78] sm:$0xff]  ;;  %4804 = vmatpush.bf16.msra.mxu0 %v8184_v0  ;;  %v8191_v5 = vld [vmem:[%s10628_s1 + $0x70] sm:$0xff]  ;;  %v8190_v9 = vld [vmem:[%s10628_s1 + $0x68] sm:$0xff] }
   0x3   :  { %v8200_v2 = vld [vmem:[%s10628_s1 + $0xb8] sm:$0xff]  ;;  %4817 = vmatpush.bf16.msra.mxu1 %v8192_v1  ;;  %v8199_v6 = vld [vmem:[%s10628_s1 + $0xb0] sm:$0xff]  ;;  %v8198_v10 = vld [vmem:[%s10628_s1 + $0xa8] sm:$0xff] }
   0x4   :  { %v8208_v3 = vld [vmem:[%s10628_s1 + $0xf8] sm:$0xff]  ;;  %4830 = vmatpush.bf16.msra.mxu2 %v8200_v2  ;;  %v8207_v7 = vld [vmem:[%s10628_s1 + $0xf0] sm:$0xff]  ;;  %v8206_v11 = vld [vmem:[%s10628_s1 + $0xe8] sm:$0xff] }
   0x5   :  { %4843 = vmatpush.bf16.msra.mxu3 %v8208_v3  ;;  %v8181_v12 = vld [vmem:[%s10628_s1 + $0x20] sm:$0xff]  ;;  %v8180_v16 = vld [vmem:[%s10628_s1 + $0x18] sm:$0xff]  ;;  %v8179_v20 = vld [vmem:[%s10628_s1 + $0x10] sm:$0xff] }
   0x6   :  { %4805 = vmatpush.bf16.msra.mxu0 %v8183_v4  ;;  %v8189_v13 = vld [vmem:[%s10628_s1 + $0x60] sm:$0xff]  ;;  %v8188_v17 = vld [vmem:[%s10628_s1 + $0x58] sm:$0xff]  ;;  %v8187_v21 = vld [vmem:[%s10628_s1 + $0x50] sm:$0xff] }
   0x7   :  { %4818 = vmatpush.bf16.msra.mxu1 %v8191_v5  ;;  %v8197_v14 = vld [vmem:[%s10628_s1 + $0xa0] sm:$0xff]  ;;  %v8196_v18 = vld [vmem:[%s10628_s1 + $0x98] sm:$0xff]  ;;  %v8195_v23 = vld [vmem:[%s10628_s1 + $0x90] sm:$0xff] }
   0x8   :  { %4831 = vmatpush.bf16.msra.mxu2 %v8199_v6  ;;  %v8205_v15 = vld [vmem:[%s10628_s1 + $0xe0] sm:$0xff]  ;;  %v8204_v19 = vld [vmem:[%s10628_s1 + $0xd8] sm:$0xff]  ;;  %v8203_v24 = vld [vmem:[%s10628_s1 + $0xd0] sm:$0xff] }
   0x9   :  { %4844 = vmatpush.bf16.msra.mxu3 %v8207_v7  ;;  %v21_v22 = vld [vmem:[%s10627_s0] sm:$0xff] }
   0xa   :  { %4806 = vmatpush.bf16.msra.mxu0 %v8182_v8  ;;  %1187 = vst [vmem:[#allocation1] ss:$9 sm:$0xff] %v21_v22 }
   0xb   :  { %4819 = vmatpush.bf16.msra.mxu1 %v8190_v9 }
   0xc   :  { %4832 = vmatpush.bf16.msra.mxu2 %v8198_v10 }
   0xd   :  { %4845 = vmatpush.bf16.msra.mxu3 %v8206_v11 }
   0xe   :  { %4807 = vmatpush.bf16.msra.mxu0 %v8181_v12 }
   0xf   :  { %4820 = vmatpush.bf16.msra.mxu1 %v8189_v13 }
  0x10   :  { %4833 = vmatpush.bf16.msra.mxu2 %v8197_v14 }
  0x11   :  { %4846 = vmatpush.bf16.msra.mxu3 %v8205_v15 }
  0x12   :  { %4808 = vmatpush.bf16.msra.mxu0 %v8180_v16 }
  0x13   :  { %4821 = vmatpush.bf16.msra.mxu1 %v8188_v17 }
  0x14   :  { %4834 = vmatpush.bf16.msra.mxu2 %v8196_v18 }
  0x15   :  { %4847 = vmatpush.bf16.msra.mxu3 %v8204_v19 }
  0x16   :  { %10 = vsyncpa [#allocation3], 0  ;;  %4809 = vmatpush.bf16.msra.mxu0 %v8179_v20  ;;  %v8178_v25 = vld [vmem:[%s10628_s1 + $0x8] sm:$0xff]  ;;  %v8177_v29 = vld [vmem:[%s10628_s1] sm:$0xff]  ;;  %s8790_s18 = smov [#allocation2]   ;;  %s5832_s22 = sshll.u32 %s10632_s5, 4  ;;  %s5833_s22 = int_to_ptr.hbm [resolvable:$true] %s5832_s22 }
  0x17   :  { %4822 = vmatpush.bf16.msra.mxu1 %v8187_v21  ;;  %v8186_v26 = vld [vmem:[%s10628_s1 + $0x48] sm:$0xff]  ;;  %v8185_v30 = vld [vmem:[%s10628_s1 + $0x40] sm:$0xff]  ;;  %v8216_v33 = vld [vmem:[%s10628_s1 + $0x138] sm:$0xff]  ;;  %s5830_s19 = sshll.u32 %s8790_s18, 4  ;;  %vm5823_vm0 = vcmask 74752   ;;  %s5831_s19 = int_to_ptr.vmem [resolvable:$true] %s5830_s19 }
  0x18   :  { %4835 = vmatpush.bf16.msra.mxu2 %v8195_v23  ;;  %v8194_v27 = vld [vmem:[%s10628_s1 + $0x88] sm:$0xff]  ;;  %v8193_v31 = vld [vmem:[%s10628_s1 + $0x80] sm:$0xff]  ;;  %v8224_v34 = vld [vmem:[%s10628_s1 + $0x178] sm:$0xff] }
  0x19   :  { %4848 = vmatpush.bf16.msra.mxu3 %v8203_v24  ;;  %v8202_v28 = vld [vmem:[%s10628_s1 + $0xc8] sm:$0xff]  ;;  %v8201_v32 = vld [vmem:[%s10628_s1 + $0xc0] sm:$0xff]  ;;  %v8232_v35 = vld [vmem:[%s10628_s1 + $0x1b8] sm:$0xff] }
  0x1a   :  { %4810 = vmatpush.bf16.msra.mxu0 %v8178_v25  ;;  %v8240_v36 = vld [vmem:[%s10628_s1 + $0x1f8] sm:$0xff]  ;;  %v8215_v37 = vld [vmem:[%s10628_s1 + $0x130] sm:$0xff]  ;;  %v1188_v39 = vld [vmem:[#allocation1] sm:$0xff] }
  0x1b   :  { %4823 = vmatpush.bf16.msra.mxu1 %v8186_v26  ;;  %v1190_v38 = vld [vmem:[#allocation1 + $0x12] sm:$0xff]  ;;  %v1191_v41 = vld [vmem:[#allocation1 + $0x1b] sm:$0xff]  ;;  %v1189_v42 = vld [vmem:[#allocation1 + $0x9] sm:$0xff] }
  0x1c   :  { %4836 = vmatpush.bf16.msra.mxu2 %v8194_v27  ;;  %v8223_v40 = vld [vmem:[%s10628_s1 + $0x170] sm:$0xff]  ;;  %v8214_v45 = vld [vmem:[%s10628_s1 + $0x128] sm:$0xff]  ;;  %v8213_v49 = vld [vmem:[%s10628_s1 + $0x120] sm:$0xff] }
  0x1d   :  { %4849 = vmatpush.bf16.msra.mxu3 %v8202_v28  ;;  %v8231_v43 = vld [vmem:[%s10628_s1 + $0x1b0] sm:$0xff]  ;;  %v8222_v46 = vld [vmem:[%s10628_s1 + $0x168] sm:$0xff]  ;;  %v8221_v50 = vld [vmem:[%s10628_s1 + $0x160] sm:$0xff] }
  0x1e   :  { %4811 = vmatpush.bf16.msra.mxu0 %v8177_v29  ;;  %v8239_v44 = vld [vmem:[%s10628_s1 + $0x1f0] sm:$0xff]  ;;  %v8230_v47 = vld [vmem:[%s10628_s1 + $0x1a8] sm:$0xff]  ;;  %v1195_v54 = vld [vmem:[#allocation1 + $0x3f] sm:$0xff] }
  0x1f   :  { %4824 = vmatpush.bf16.msra.mxu1 %v8185_v30  ;;  %v8238_v48 = vld [vmem:[%s10628_s1 + $0x1e8] sm:$0xff]  ;;  %v1194_v51 = vld [vmem:[#allocation1 + $0x36] sm:$0xff]  ;;  %v8229_v56 = vld [vmem:[%s10628_s1 + $0x1a0] sm:$0xff] }
  0x20   :  { %4837 = vmatpush.bf16.msra.mxu2 %v8193_v31  ;;  %v22_v52 = vld [vmem:[%s10627_s0 + $0x8] sm:$0xff]  ;;  %v8237_v57 = vld [vmem:[%s10628_s1 + $0x1e0] sm:$0xff]  ;;  %v8212_v58 = vld [vmem:[%s10628_s1 + $0x118] sm:$0xff] }
  0x21   :  { %4850 = vmatpush.bf16.msra.mxu3 %v8201_v32  ;;  %4812 = vmatmul.bf16.vlgmr.msra.gmra.mxu0 %v1188_v39  ;;  %v1192_v53 = vld [vmem:[#allocation1 + $0x24] sm:$0xff]  ;;  %v1193_v55 = vld [vmem:[#allocation1 + $0x2d] sm:$0xff]  ;;  %v8220_v59 = vld [vmem:[%s10628_s1 + $0x158] sm:$0xff] }
  0x22   :  { %4856 = vmatpush.bf16.msrb.mxu0 %v8216_v33  ;;  %4825 = vmatmul.bf16.vlgmr.msra.gmra.mxu1 %v1189_v42  ;;  %1197 = vst [vmem:[#allocation1] ss:$9 sm:$0xff] %v22_v52  ;;  %v8228_v60 = vld [vmem:[%s10628_s1 + $0x198] sm:$0xff]  ;;  %v8211_v62 = vld [vmem:[%s10628_s1 + $0x110] sm:$0xff]  ;;  %v8210_v2 = vld [vmem:[%s10628_s1 + $0x108] sm:$0xff] }
  0x23   :  { %4869 = vmatpush.bf16.msrb.mxu1 %v8224_v34  ;;  %4838 = vmatmul.bf16.vlgmr.msra.gmra.mxu2 %v1190_v38  ;;  %v8236_v61 = vld [vmem:[%s10628_s1 + $0x1d8] sm:$0xff]  ;;  %v8219_v63 = vld [vmem:[%s10628_s1 + $0x150] sm:$0xff]  ;;  %v8218_v3 = vld [vmem:[%s10628_s1 + $0x148] sm:$0xff] }
  0x24   :  { %4882 = vmatpush.bf16.msrb.mxu2 %v8232_v35  ;;  %4851 = vmatmul.bf16.vlgmr.msra.gmra.mxu3 %v1191_v41  ;;  %v8227_v0 = vld [vmem:[%s10628_s1 + $0x190] sm:$0xff]  ;;  %v8226_v4 = vld [vmem:[%s10628_s1 + $0x188] sm:$0xff]  ;;  %v8209_v6 = vld [vmem:[%s10628_s1 + $0x100] sm:$0xff] }
  0x25   :  { %4895 = vmatpush.bf16.msrb.mxu3 %v8240_v36  ;;  %v8235_v1 = vld [vmem:[%s10628_s1 + $0x1d0] sm:$0xff]  ;;  %v8234_v5 = vld [vmem:[%s10628_s1 + $0x1c8] sm:$0xff]  ;;  %v8217_v7 = vld [vmem:[%s10628_s1 + $0x140] sm:$0xff] }
  0x26   :  { %4857 = vmatpush.bf16.msrb.mxu0 %v8215_v37  ;;  %v8225_v8 = vld [vmem:[%s10628_s1 + $0x180] sm:$0xff]  ;;  %v8248_v10 = vld [vmem:[%s10628_s1 + $0x238] sm:$0xff]  ;;  %v8247_v14 = vld [vmem:[%s10628_s1 + $0x230] sm:$0xff] }
  0x27   :  { %4870 = vmatpush.bf16.msrb.mxu1 %v8223_v40  ;;  %v8233_v9 = vld [vmem:[%s10628_s1 + $0x1c0] sm:$0xff]  ;;  %v8256_v11 = vld [vmem:[%s10628_s1 + $0x278] sm:$0xff]  ;;  %v8255_v15 = vld [vmem:[%s10628_s1 + $0x270] sm:$0xff] }
  0x28   :  { %4883 = vmatpush.bf16.msrb.mxu2 %v8231_v43  ;;  %v8264_v12 = vld [vmem:[%s10628_s1 + $0x2b8] sm:$0xff]  ;;  %v8263_v16 = vld [vmem:[%s10628_s1 + $0x2b0] sm:$0xff]  ;;  %v8246_v18 = vld [vmem:[%s10628_s1 + $0x228] sm:$0xff] }
  0x29   :  { %4896 = vmatpush.bf16.msrb.mxu3 %v8239_v44  ;;  %v8272_v13 = vld [vmem:[%s10628_s1 + $0x2f8] sm:$0xff]  ;;  %v8271_v17 = vld [vmem:[%s10628_s1 + $0x2f0] sm:$0xff]  ;;  %v8254_v19 = vld [vmem:[%s10628_s1 + $0x268] sm:$0xff] }
  0x2a   :  { %4858 = vmatpush.bf16.msrb.mxu0 %v8214_v45  ;;  %v8262_v20 = vld [vmem:[%s10628_s1 + $0x2a8] sm:$0xff]  ;;  %v8245_v22 = vld [vmem:[%s10628_s1 + $0x220] sm:$0xff]  ;;  %v8244_v26 = vld [vmem:[%s10628_s1 + $0x218] sm:$0xff] }
  0x2b   :  { %4871 = vmatpush.bf16.msrb.mxu1 %v8222_v46  ;;  %v8270_v21 = vld [vmem:[%s10628_s1 + $0x2e8] sm:$0xff]  ;;  %v8253_v23 = vld [vmem:[%s10628_s1 + $0x260] sm:$0xff]  ;;  %v8252_v27 = vld [vmem:[%s10628_s1 + $0x258] sm:$0xff] }
  0x2c   :  { %4884 = vmatpush.bf16.msrb.mxu2 %v8230_v47  ;;  %v8261_v24 = vld [vmem:[%s10628_s1 + $0x2a0] sm:$0xff]  ;;  %v8260_v28 = vld [vmem:[%s10628_s1 + $0x298] sm:$0xff]  ;;  %v8243_v30 = vld [vmem:[%s10628_s1 + $0x210] sm:$0xff] }
  0x2d   :  { %4897 = vmatpush.bf16.msrb.mxu3 %v8238_v48  ;;  %v8269_v25 = vld [vmem:[%s10628_s1 + $0x2e0] sm:$0xff]  ;;  %v8268_v29 = vld [vmem:[%s10628_s1 + $0x2d8] sm:$0xff]  ;;  %v8251_v31 = vld [vmem:[%s10628_s1 + $0x250] sm:$0xff] }
  0x2e   :  { %4859 = vmatpush.bf16.msrb.mxu0 %v8213_v49  ;;  %v8259_v32 = vld [vmem:[%s10628_s1 + $0x290] sm:$0xff]  ;;  %v8242_v34 = vld [vmem:[%s10628_s1 + $0x208] sm:$0xff]  ;;  %v8241_v38 = vld [vmem:[%s10628_s1 + $0x200] sm:$0xff] }
  0x2f   :  { %4872 = vmatpush.bf16.msrb.mxu1 %v8221_v50  ;;  %v8267_v33 = vld [vmem:[%s10628_s1 + $0x2d0] sm:$0xff]  ;;  %v8250_v35 = vld [vmem:[%s10628_s1 + $0x248] sm:$0xff]  ;;  %v8249_v39 = vld [vmem:[%s10628_s1 + $0x240] sm:$0xff] }
  0x30   :  { %4885 = vmatpush.bf16.msrb.mxu2 %v8229_v56  ;;  %v8258_v36 = vld [vmem:[%s10628_s1 + $0x288] sm:$0xff]  ;;  %v8257_v40 = vld [vmem:[%s10628_s1 + $0x280] sm:$0xff]  ;;  %v8280_v42 = vld [vmem:[%s10628_s1 + $0x338] sm:$0xff] }
  0x31   :  { %4898 = vmatpush.bf16.msrb.mxu3 %v8237_v57  ;;  %v8266_v37 = vld [vmem:[%s10628_s1 + $0x2c8] sm:$0xff]  ;;  %v8265_v41 = vld [vmem:[%s10628_s1 + $0x2c0] sm:$0xff]  ;;  %v8288_v43 = vld [vmem:[%s10628_s1 + $0x378] sm:$0xff] }
  0x32   :  { %4860 = vmatpush.bf16.msrb.mxu0 %v8212_v58  ;;  %v8296_v44 = vld [vmem:[%s10628_s1 + $0x3b8] sm:$0xff]  ;;  %v1198_v46 = vld [vmem:[#allocation1] sm:$0xff]  ;;  %v1199_v48 = vld [vmem:[#allocation1 + $0x9] sm:$0xff] }
  0x33   :  { %4873 = vmatpush.bf16.msrb.mxu1 %v8220_v59  ;;  %v8304_v45 = vld [vmem:[%s10628_s1 + $0x3f8] sm:$0xff]  ;;  %v8279_v50 = vld [vmem:[%s10628_s1 + $0x330] sm:$0xff]  ;;  %v8294_v56 = vld [vmem:[%s10628_s1 + $0x3a8] sm:$0xff] }
  0x34   :  { %4886 = vmatpush.bf16.msrb.mxu2 %v8228_v60  ;;  %v1200_v47 = vld [vmem:[#allocation1 + $0x12] sm:$0xff]  ;;  %v1201_v49 = vld [vmem:[#allocation1 + $0x1b] sm:$0xff]  ;;  %v8302_v57 = vld [vmem:[%s10628_s1 + $0x3e8] sm:$0xff] }
  0x35   :  { %4899 = vmatpush.bf16.msrb.mxu3 %v8236_v61  ;;  %v8295_v52 = vld [vmem:[%s10628_s1 + $0x3b0] sm:$0xff]  ;;  %v8277_v58 = vld [vmem:[%s10628_s1 + $0x320] sm:$0xff] }
  0x36   :  { %4861 = vmatpush.bf16.msrb.mxu0 %v8211_v62  ;;  %v8285_v59 = vld [vmem:[%s10628_s1 + $0x360] sm:$0xff]  ;;  %v8276_v62 = vld [vmem:[%s10628_s1 + $0x318] sm:$0xff] }
  0x37   :  { %4874 = vmatpush.bf16.msrb.mxu1 %v8219_v63  ;;  %v8293_v60 = vld [vmem:[%s10628_s1 + $0x3a0] sm:$0xff]  ;;  %v8284_v63 = vld [vmem:[%s10628_s1 + $0x358] sm:$0xff] }
  0x38   :  { %4887 = vmatpush.bf16.msrb.mxu2 %v8227_v0  ;;  %v8301_v61 = vld [vmem:[%s10628_s1 + $0x3e0] sm:$0xff]  ;;  %v8292_v0 = vld [vmem:[%s10628_s1 + $0x398] sm:$0xff] }
  0x39   :  { %4900 = vmatpush.bf16.msrb.mxu3 %v8235_v1  ;;  %v8300_v1 = vld [vmem:[%s10628_s1 + $0x3d8] sm:$0xff] }
  0x3a   :  { %4862 = vmatpush.bf16.msrb.mxu0 %v8210_v2  ;;  %v8275_v2 = vld [vmem:[%s10628_s1 + $0x310] sm:$0xff] }
  0x3b   :  { %4875 = vmatpush.bf16.msrb.mxu1 %v8218_v3  ;;  %v8283_v3 = vld [vmem:[%s10628_s1 + $0x350] sm:$0xff] }
  0x3c   :  { %4888 = vmatpush.bf16.msrb.mxu2 %v8226_v4  ;;  %v8291_v4 = vld [vmem:[%s10628_s1 + $0x390] sm:$0xff] }
  0x3d   :  { %4901 = vmatpush.bf16.msrb.mxu3 %v8234_v5  ;;  %v8299_v5 = vld [vmem:[%s10628_s1 + $0x3d0] sm:$0xff] }
  0x3e   :  { %4863 = vmatpush.bf16.msrb.mxu0 %v8209_v6  ;;  %v8274_v6 = vld [vmem:[%s10628_s1 + $0x308] sm:$0xff] }
  0x3f   :  { %4876 = vmatpush.bf16.msrb.mxu1 %v8217_v7  ;;  %v8282_v7 = vld [vmem:[%s10628_s1 + $0x348] sm:$0xff] }
  0x40   :  { %4889 = vmatpush.bf16.msrb.mxu2 %v8225_v8  ;;  %v8290_v8 = vld [vmem:[%s10628_s1 + $0x388] sm:$0xff] }
  0x41   :  { %4902 = vmatpush.bf16.msrb.mxu3 %v8233_v9  ;;  %4864 = vmatmul.bf16.vlgmr.msrb.gmra.mxu0 %v1192_v53  ;;  %v8303_v53 = vld [vmem:[%s10628_s1 + $0x3f0] sm:$0xff]  ;;  %v8298_v9 = vld [vmem:[%s10628_s1 + $0x3c8] sm:$0xff] }
  0x42   :  { %4908 = vmatpush.bf16.msra.mxu0 %v8248_v10  ;;  %4877 = vmatmul.bf16.vlgmr.msrb.gmra.mxu1 %v1193_v55  ;;  %v8286_v55 = vld [vmem:[%s10628_s1 + $0x368] sm:$0xff] }
  0x43   :  { %4921 = vmatpush.bf16.msra.mxu1 %v8256_v11  ;;  %4890 = vmatmul.bf16.vlgmr.msrb.gmra.mxu2 %v1194_v51  ;;  %v8287_v51 = vld [vmem:[%s10628_s1 + $0x370] sm:$0xff]  ;;  %v1202_v10 = vld [vmem:[#allocation1 + $0x24] sm:$0xff] }
  0x44   :  { %4934 = vmatpush.bf16.msra.mxu2 %v8264_v12  ;;  %4903 = vmatmul.bf16.vlgmr.msrb.gmra.mxu3 %v1195_v54  ;;  %v8278_v54 = vld [vmem:[%s10628_s1 + $0x328] sm:$0xff]  ;;  %v1204_v11 = vld [vmem:[#allocation1 + $0x36] sm:$0xff] }
  0x45   :  { %4947 = vmatpush.bf16.msra.mxu3 %v8272_v13  ;;  %v1203_v12 = vld [vmem:[#allocation1 + $0x2d] sm:$0xff]  ;;  %v1205_v13 = vld [vmem:[#allocation1 + $0x3f] sm:$0xff] }
  0x46   :  { %4909 = vmatpush.bf16.msra.mxu0 %v8247_v14  ;;  %v23_v14 = vld [vmem:[%s10627_s0 + $0x10] sm:$0xff] }
  0x47   :  { %4922 = vmatpush.bf16.msra.mxu1 %v8255_v15  ;;  %1207 = vst [vmem:[#allocation1] ss:$9 sm:$0xff] %v23_v14  ;;  %v8273_v15 = vld [vmem:[%s10628_s1 + $0x300] sm:$0xff]  ;;  %v8356_v14 = vld [vmem:[%s10628_s1 + $0x598] sm:$0xff] }
  0x48   :  { %4935 = vmatpush.bf16.msra.mxu2 %v8263_v16  ;;  %v8281_v16 = vld [vmem:[%s10628_s1 + $0x340] sm:$0xff] }
  0x49   :  { %4948 = vmatpush.bf16.msra.mxu3 %v8271_v17  ;;  %v8289_v17 = vld [vmem:[%s10628_s1 + $0x380] sm:$0xff] }
  0x4a   :  { %4910 = vmatpush.bf16.msra.mxu0 %v8246_v18  ;;  %v8297_v18 = vld [vmem:[%s10628_s1 + $0x3c0] sm:$0xff] }
  0x4b   :  { %4923 = vmatpush.bf16.msra.mxu1 %v8254_v19  ;;  %v8312_v19 = vld [vmem:[%s10628_s1 + $0x438] sm:$0xff] }
  0x4c   :  { %4936 = vmatpush.bf16.msra.mxu2 %v8262_v20  ;;  %v8320_v20 = vld [vmem:[%s10628_s1 + $0x478] sm:$0xff] }
  0x4d   :  { %4949 = vmatpush.bf16.msra.mxu3 %v8270_v21  ;;  %v8328_v21 = vld [vmem:[%s10628_s1 + $0x4b8] sm:$0xff] }
  0x4e   :  { %4911 = vmatpush.bf16.msra.mxu0 %v8245_v22  ;;  %v8336_v22 = vld [vmem:[%s10628_s1 + $0x4f8] sm:$0xff] }
  0x4f   :  { %4924 = vmatpush.bf16.msra.mxu1 %v8253_v23  ;;  %v8311_v23 = vld [vmem:[%s10628_s1 + $0x430] sm:$0xff] }
  0x50   :  { %4937 = vmatpush.bf16.msra.mxu2 %v8261_v24  ;;  %v8319_v24 = vld [vmem:[%s10628_s1 + $0x470] sm:$0xff] }
  0x51   :  { %4950 = vmatpush.bf16.msra.mxu3 %v8269_v25  ;;  %v8327_v25 = vld [vmem:[%s10628_s1 + $0x4b0] sm:$0xff] }
  0x52   :  { %4912 = vmatpush.bf16.msra.mxu0 %v8244_v26  ;;  %v8335_v26 = vld [vmem:[%s10628_s1 + $0x4f0] sm:$0xff] }
  0x53   :  { %4925 = vmatpush.bf16.msra.mxu1 %v8252_v27  ;;  %v8310_v27 = vld [vmem:[%s10628_s1 + $0x428] sm:$0xff] }
  0x54   :  { %4938 = vmatpush.bf16.msra.mxu2 %v8260_v28  ;;  %v8318_v28 = vld [vmem:[%s10628_s1 + $0x468] sm:$0xff] }
  0x55   :  { %4951 = vmatpush.bf16.msra.mxu3 %v8268_v29  ;;  %v8326_v29 = vld [vmem:[%s10628_s1 + $0x4a8] sm:$0xff] }
  0x56   :  { %4913 = vmatpush.bf16.msra.mxu0 %v8243_v30  ;;  %v8334_v30 = vld [vmem:[%s10628_s1 + $0x4e8] sm:$0xff] }
  0x57   :  { %4926 = vmatpush.bf16.msra.mxu1 %v8251_v31  ;;  %v8309_v31 = vld [vmem:[%s10628_s1 + $0x420] sm:$0xff] }
  0x58   :  { %4939 = vmatpush.bf16.msra.mxu2 %v8259_v32  ;;  %v8317_v32 = vld [vmem:[%s10628_s1 + $0x460] sm:$0xff] }
  0x59   :  { %4952 = vmatpush.bf16.msra.mxu3 %v8267_v33  ;;  %v8325_v33 = vld [vmem:[%s10628_s1 + $0x4a0] sm:$0xff] }
  0x5a   :  { %4914 = vmatpush.bf16.msra.mxu0 %v8242_v34  ;;  %v8333_v34 = vld [vmem:[%s10628_s1 + $0x4e0] sm:$0xff] }
  0x5b   :  { %4927 = vmatpush.bf16.msra.mxu1 %v8250_v35  ;;  %v8308_v35 = vld [vmem:[%s10628_s1 + $0x418] sm:$0xff] }
  0x5c   :  { %4940 = vmatpush.bf16.msra.mxu2 %v8258_v36  ;;  %v8316_v36 = vld [vmem:[%s10628_s1 + $0x458] sm:$0xff] }
  0x5d   :  { %4953 = vmatpush.bf16.msra.mxu3 %v8266_v37  ;;  %v8324_v37 = vld [vmem:[%s10628_s1 + $0x498] sm:$0xff] }
  0x5e   :  { %4915 = vmatpush.bf16.msra.mxu0 %v8241_v38  ;;  %v8332_v38 = vld [vmem:[%s10628_s1 + $0x4d8] sm:$0xff] }
  0x5f   :  { %4928 = vmatpush.bf16.msra.mxu1 %v8249_v39  ;;  %v8307_v39 = vld [vmem:[%s10628_s1 + $0x410] sm:$0xff] }
  0x60   :  { %4941 = vmatpush.bf16.msra.mxu2 %v8257_v40  ;;  %v8315_v40 = vld [vmem:[%s10628_s1 + $0x450] sm:$0xff] }
  0x61   :  { %4954 = vmatpush.bf16.msra.mxu3 %v8265_v41  ;;  %4916 = vmatmul.bf16.vlgmr.msra.gmra.mxu0 %v1198_v46  ;;  %v8323_v41 = vld [vmem:[%s10628_s1 + $0x490] sm:$0xff]  ;;  %v8330_v46 = vld [vmem:[%s10628_s1 + $0x4c8] sm:$0xff] }
  0x62   :  { %4960 = vmatpush.bf16.msrb.mxu0 %v8280_v42  ;;  %4929 = vmatmul.bf16.vlgmr.msra.gmra.mxu1 %v1199_v48  ;;  %v8331_v42 = vld [vmem:[%s10628_s1 + $0x4d0] sm:$0xff]  ;;  %v8313_v48 = vld [vmem:[%s10628_s1 + $0x440] sm:$0xff] }
  0x63   :  { %4973 = vmatpush.bf16.msrb.mxu1 %v8288_v43  ;;  %4942 = vmatmul.bf16.vlgmr.msra.gmra.mxu2 %v1200_v47  ;;  %v8306_v43 = vld [vmem:[%s10628_s1 + $0x408] sm:$0xff]  ;;  %v8305_v47 = vld [vmem:[%s10628_s1 + $0x400] sm:$0xff] }
  0x64   :  { %4986 = vmatpush.bf16.msrb.mxu2 %v8296_v44  ;;  %4955 = vmatmul.bf16.vlgmr.msra.gmra.mxu3 %v1201_v49  ;;  %v8314_v44 = vld [vmem:[%s10628_s1 + $0x448] sm:$0xff]  ;;  %v8321_v49 = vld [vmem:[%s10628_s1 + $0x480] sm:$0xff] }
  0x65   :  { %4999 = vmatpush.bf16.msrb.mxu3 %v8304_v45  ;;  %v8322_v45 = vld [vmem:[%s10628_s1 + $0x488] sm:$0xff] }
  0x66   :  { %4961 = vmatpush.bf16.msrb.mxu0 %v8279_v50  ;;  %v8329_v50 = vld [vmem:[%s10628_s1 + $0x4c0] sm:$0xff] }
  0x67   :  { %4974 = vmatpush.bf16.msrb.mxu1 %v8287_v51  ;;  %v8344_v51 = vld [vmem:[%s10628_s1 + $0x538] sm:$0xff] }
  0x68   :  { %4987 = vmatpush.bf16.msrb.mxu2 %v8295_v52  ;;  %v8352_v52 = vld [vmem:[%s10628_s1 + $0x578] sm:$0xff] }
  0x69   :  { %5000 = vmatpush.bf16.msrb.mxu3 %v8303_v53  ;;  %v8360_v53 = vld [vmem:[%s10628_s1 + $0x5b8] sm:$0xff] }
  0x6a   :  { %4962 = vmatpush.bf16.msrb.mxu0 %v8278_v54  ;;  %v8368_v54 = vld [vmem:[%s10628_s1 + $0x5f8] sm:$0xff] }
  0x6b   :  { %4975 = vmatpush.bf16.msrb.mxu1 %v8286_v55  ;;  %v1208_v55 = vld [vmem:[#allocation1] sm:$0xff] }
  0x6c   :  { %4988 = vmatpush.bf16.msrb.mxu2 %v8294_v56  ;;  %v1210_v56 = vld [vmem:[#allocation1 + $0x12] sm:$0xff] }
  0x6d   :  { %5001 = vmatpush.bf16.msrb.mxu3 %v8302_v57  ;;  %v1209_v57 = vld [vmem:[#allocation1 + $0x9] sm:$0xff] }
  0x6e   :  { %4963 = vmatpush.bf16.msrb.mxu0 %v8277_v58  ;;  %v1211_v58 = vld [vmem:[#allocation1 + $0x1b] sm:$0xff] }
  0x6f   :  { %4976 = vmatpush.bf16.msrb.mxu1 %v8285_v59  ;;  %v8343_v59 = vld [vmem:[%s10628_s1 + $0x530] sm:$0xff] }
  0x70   :  { %4989 = vmatpush.bf16.msrb.mxu2 %v8293_v60  ;;  %v8351_v60 = vld [vmem:[%s10628_s1 + $0x570] sm:$0xff] }
  0x71   :  { %5002 = vmatpush.bf16.msrb.mxu3 %v8301_v61  ;;  %v8359_v61 = vld [vmem:[%s10628_s1 + $0x5b0] sm:$0xff] }
  0x72   :  { %4964 = vmatpush.bf16.msrb.mxu0 %v8276_v62  ;;  %v8367_v62 = vld [vmem:[%s10628_s1 + $0x5f0] sm:$0xff] }
  0x73   :  { %4977 = vmatpush.bf16.msrb.mxu1 %v8284_v63  ;;  %v8342_v63 = vld [vmem:[%s10628_s1 + $0x528] sm:$0xff] }
  0x74   :  { %4990 = vmatpush.bf16.msrb.mxu2 %v8292_v0  ;;  %v8350_v0 = vld [vmem:[%s10628_s1 + $0x568] sm:$0xff] }
  0x75   :  { %5003 = vmatpush.bf16.msrb.mxu3 %v8300_v1  ;;  %v8762_v1 = vld [vmem:[%s10629_s2] ss:$0 sm:$0xff] }
  0x76   :  { %4965 = vmatpush.bf16.msrb.mxu0 %v8275_v2  ;;  %v8358_v2 = vld [vmem:[%s10628_s1 + $0x5a8] sm:$0xff] }
  0x77   :  { %4978 = vmatpush.bf16.msrb.mxu1 %v8283_v3  ;;  %v8366_v3 = vld [vmem:[%s10628_s1 + $0x5e8] sm:$0xff] }
  0x78   :  { %4991 = vmatpush.bf16.msrb.mxu2 %v8291_v4 }
  0x79   :  { %5004 = vmatpush.bf16.msrb.mxu3 %v8299_v5  ;;  %v8341_v5 = vld [vmem:[%s10628_s1 + $0x520] sm:$0xff] }
  0x7a   :  { %4966 = vmatpush.bf16.msrb.mxu0 %v8274_v6  ;;  %v8349_v6 = vld [vmem:[%s10628_s1 + $0x560] sm:$0xff] }
  0x7b   :  { %4979 = vmatpush.bf16.msrb.mxu1 %v8282_v7 }
  0x7c   :  { %4992 = vmatpush.bf16.msrb.mxu2 %v8290_v8 }
  0x7d   :  { %5005 = vmatpush.bf16.msrb.mxu3 %v8298_v9  ;;  %v8357_v9 = vld [vmem:[%s10628_s1 + $0x5a0] sm:$0xff] }
  0x7e   :  { %4967 = vmatpush.bf16.msrb.mxu0 %v8273_v15  ;;  %v8364_v15 = vld [vmem:[%s10628_s1 + $0x5d8] sm:$0xff] }
  0x7f   :  { %4980 = vmatpush.bf16.msrb.mxu1 %v8281_v16 }
  0x80   :  { %4993 = vmatpush.bf16.msrb.mxu2 %v8289_v17 }
  0x81   :  { %5006 = vmatpush.bf16.msrb.mxu3 %v8297_v18  ;;  %4968 = vmatmul.bf16.vlgmr.msrb.gmra.mxu0 %v1202_v10  ;;  %v8365_v10 = vld [vmem:[%s10628_s1 + $0x5e0] sm:$0xff] }
  0x82   :  { %5012 = vmatpush.bf16.msra.mxu0 %v8312_v19  ;;  %4981 = vmatmul.bf16.vlgmr.msrb.gmra.mxu1 %v1203_v12  ;;  %v8340_v12 = vld [vmem:[%s10628_s1 + $0x518] sm:$0xff] }
  0x83   :  { %5025 = vmatpush.bf16.msra.mxu1 %v8320_v20  ;;  %4994 = vmatmul.bf16.vlgmr.msrb.gmra.mxu2 %v1204_v11  ;;  %v8339_v20 = vld [vmem:[%s10628_s1 + $0x510] sm:$0xff] }
  0x84   :  { %5038 = vmatpush.bf16.msra.mxu2 %v8328_v21  ;;  %5007 = vmatmul.bf16.vlgmr.msrb.gmra.mxu3 %v1205_v13  ;;  %v8348_v13 = vld [vmem:[%s10628_s1 + $0x558] sm:$0xff]  ;;  %v8347_v21 = vld [vmem:[%s10628_s1 + $0x550] sm:$0xff] }
  0x85   :  { %5051 = vmatpush.bf16.msra.mxu3 %v8336_v22 }
  0x86   :  { %5013 = vmatpush.bf16.msra.mxu0 %v8311_v23 }
  0x87   :  { %5026 = vmatpush.bf16.msra.mxu1 %v8319_v24  ;;  %v8355_v24 = vld [vmem:[%s10628_s1 + $0x590] sm:$0xff] }
  0x88   :  { %5039 = vmatpush.bf16.msra.mxu2 %v8327_v25  ;;  %v8363_v25 = vld [vmem:[%s10628_s1 + $0x5d0] sm:$0xff] }
  0x89   :  { %5052 = vmatpush.bf16.msra.mxu3 %v8335_v26  ;;  %v8338_v26 = vld [vmem:[%s10628_s1 + $0x508] sm:$0xff] }
  0x8a   :  { %5014 = vmatpush.bf16.msra.mxu0 %v8310_v27  ;;  %v8346_v27 = vld [vmem:[%s10628_s1 + $0x548] sm:$0xff] }
  0x8b   :  { %5027 = vmatpush.bf16.msra.mxu1 %v8318_v28  ;;  %v8354_v28 = vld [vmem:[%s10628_s1 + $0x588] sm:$0xff] }
  0x8c   :  { %5040 = vmatpush.bf16.msra.mxu2 %v8326_v29  ;;  %v8362_v29 = vld [vmem:[%s10628_s1 + $0x5c8] sm:$0xff] }
  0x8d   :  { %5053 = vmatpush.bf16.msra.mxu3 %v8334_v30  ;;  %v1212_v30 = vld [vmem:[#allocation1 + $0x24] sm:$0xff] }
  0x8e   :  { %5015 = vmatpush.bf16.msra.mxu0 %v8309_v31  ;;  %v1214_v31 = vld [vmem:[#allocation1 + $0x36] sm:$0xff] }
  0x8f   :  { %5028 = vmatpush.bf16.msra.mxu1 %v8317_v32 }
  0x90   :  { %5041 = vmatpush.bf16.msra.mxu2 %v8325_v33  ;;  %v1213_v33 = vld [vmem:[#allocation1 + $0x2d] sm:$0xff] }
  0x91   :  { %5054 = vmatpush.bf16.msra.mxu3 %v8333_v34  ;;  %v1215_v34 = vld [vmem:[#allocation1 + $0x3f] sm:$0xff] }
  0x92   :  { %5016 = vmatpush.bf16.msra.mxu0 %v8308_v35 }
  0x93   :  { %5029 = vmatpush.bf16.msra.mxu1 %v8316_v36  ;;  %v24_v36 = vld [vmem:[%s10627_s0 + $0x18] sm:$0xff] }
  0x94   :  { %5042 = vmatpush.bf16.msra.mxu2 %v8324_v37  ;;  %1217 = vst [vmem:[#allocation1] ss:$9 sm:$0xff] %v24_v36  ;;  %v8337_v37 = vld [vmem:[%s10628_s1 + $0x500] sm:$0xff]  ;;  %v8430_v36 = vld [vmem:[%s10628_s1 + $0x7e8] sm:$0xff] }
  0x95   :  { %5055 = vmatpush.bf16.msra.mxu3 %v8332_v38  ;;  %v8345_v38 = vld [vmem:[%s10628_s1 + $0x540] sm:$0xff] }
  0x96   :  { %5017 = vmatpush.bf16.msra.mxu0 %v8307_v39  ;;  %v8353_v39 = vld [vmem:[%s10628_s1 + $0x580] sm:$0xff] }
  0x97   :  { %5030 = vmatpush.bf16.msra.mxu1 %v8315_v40  ;;  %v8361_v40 = vld [vmem:[%s10628_s1 + $0x5c0] sm:$0xff] }
  0x98   :  { %5043 = vmatpush.bf16.msra.mxu2 %v8323_v41  ;;  %v8376_v41 = vld [vmem:[%s10628_s1 + $0x638] sm:$0xff] }
  0x99   :  { %5056 = vmatpush.bf16.msra.mxu3 %v8331_v42  ;;  %v8384_v42 = vld [vmem:[%s10628_s1 + $0x678] sm:$0xff] }
  0x9a   :  { %5018 = vmatpush.bf16.msra.mxu0 %v8306_v43  ;;  %v8392_v43 = vld [vmem:[%s10628_s1 + $0x6b8] sm:$0xff] }
  0x9b   :  { %5031 = vmatpush.bf16.msra.mxu1 %v8314_v44  ;;  %v8400_v44 = vld [vmem:[%s10628_s1 + $0x6f8] sm:$0xff] }
  0x9c   :  { %5044 = vmatpush.bf16.msra.mxu2 %v8322_v45  ;;  %v8375_v45 = vld [vmem:[%s10628_s1 + $0x630] sm:$0xff] }
  0x9d   :  { %5057 = vmatpush.bf16.msra.mxu3 %v8330_v46  ;;  %v8383_v46 = vld [vmem:[%s10628_s1 + $0x670] sm:$0xff] }
  0x9e   :  { %5019 = vmatpush.bf16.msra.mxu0 %v8305_v47  ;;  %v4813_v4 = vpop.f32.mrf.mxu0  ;;  %v8391_v47 = vld [vmem:[%s10628_s1 + $0x6b0] sm:$0xff] }
  0x9f   :  { %5032 = vmatpush.bf16.msra.mxu1 %v8313_v48  ;;  %v4814_v7 = vadd.f32 %v8762_v1, %v4813_v4  ;;  %v4826_v8 = vpop.f32.mrf.mxu1  ;;  %v8399_v48 = vld [vmem:[%s10628_s1 + $0x6f0] sm:$0xff] }
  0xa0   :  { %5045 = vmatpush.bf16.msra.mxu2 %v8321_v49  ;;  %v8374_v49 = vld [vmem:[%s10628_s1 + $0x628] sm:$0xff] }
  0xa1   :  { %5058 = vmatpush.bf16.msra.mxu3 %v8329_v50  ;;  %5020 = vmatmul.bf16.vlgmr.msra.gmra.mxu0 %v1208_v55  ;;  %v4827_v11 = vadd.f32 %v4826_v8, %v4814_v7  ;;  %v8382_v50 = vld [vmem:[%s10628_s1 + $0x668] sm:$0xff]  ;;  %v8381_v55 = vld [vmem:[%s10628_s1 + $0x660] sm:$0xff] }
  0xa2   :  { %5064 = vmatpush.bf16.msrb.mxu0 %v8344_v51  ;;  %5033 = vmatmul.bf16.vlgmr.msra.gmra.mxu1 %v1209_v57  ;;  %v8390_v51 = vld [vmem:[%s10628_s1 + $0x6a8] sm:$0xff] }
  0xa3   :  { %5077 = vmatpush.bf16.msrb.mxu1 %v8352_v52  ;;  %5046 = vmatmul.bf16.vlgmr.msra.gmra.mxu2 %v1210_v56  ;;  %v8398_v52 = vld [vmem:[%s10628_s1 + $0x6e8] sm:$0xff] }
  0xa4   :  { %5090 = vmatpush.bf16.msrb.mxu2 %v8360_v53  ;;  %5059 = vmatmul.bf16.vlgmr.msra.gmra.mxu3 %v1211_v58  ;;  %v8389_v58 = vld [vmem:[%s10628_s1 + $0x6a0] sm:$0xff] }
  0xa5   :  { %5103 = vmatpush.bf16.msrb.mxu3 %v8368_v54  ;;  %v8373_v54 = vld [vmem:[%s10628_s1 + $0x620] sm:$0xff] }
  0xa6   :  { %5065 = vmatpush.bf16.msrb.mxu0 %v8343_v59  ;;  %v4839_v16 = vpop.f32.mrf.mxu2  ;;  %v4815_v19 = vpop.f32.mrf.mxu0  ;;  %v8397_v59 = vld [vmem:[%s10628_s1 + $0x6e0] sm:$0xff] }
  0xa7   :  { %5078 = vmatpush.bf16.msrb.mxu1 %v8351_v60  ;;  %v4840_v17 = vadd.f32 %v4839_v16, %v4827_v11  ;;  %v4852_v18 = vpop.f32.mrf.mxu3  ;;  %v4828_v23 = vpop.f32.mrf.mxu1  ;;  %v8370_v11 = vld [vmem:[%s10628_s1 + $0x608] sm:$0xff]  ;;  %v8385_v19 = vld [vmem:[%s10628_s1 + $0x680] sm:$0xff] }
  0xa8   :  { %5091 = vmatpush.bf16.msrb.mxu2 %v8359_v61  ;;  %v8372_v61 = vld [vmem:[%s10628_s1 + $0x618] sm:$0xff] }
  0xa9   :  { %5104 = vmatpush.bf16.msrb.mxu3 %v8367_v62  ;;  %v9379_v22 = vadd.f32 %v4852_v18, %v4840_v17  ;;  %v8380_v62 = vld [vmem:[%s10628_s1 + $0x658] sm:$0xff]  ;;  %v8369_v17 = vld [vmem:[%s10628_s1 + $0x600] sm:$0xff] }
  0xaa   :  { %5066 = vmatpush.bf16.msrb.mxu0 %v8342_v63  ;;  %v8388_v63 = vld [vmem:[%s10628_s1 + $0x698] sm:$0xff]  ;;  %v8377_v18 = vld [vmem:[%s10628_s1 + $0x640] sm:$0xff] }
  0xab   :  { %5079 = vmatpush.bf16.msrb.mxu1 %v8350_v0  ;;  %v8396_v0 = vld [vmem:[%s10628_s1 + $0x6d8] sm:$0xff] }
  0xac   :  { %5092 = vmatpush.bf16.msrb.mxu2 %v8358_v2  ;;  %v8424_v23 = vld [vmem:[%s10628_s1 + $0x7b8] sm:$0xff] }
  0xad   :  { %5105 = vmatpush.bf16.msrb.mxu3 %v8366_v3 }
  0xae   :  { %5067 = vmatpush.bf16.msrb.mxu0 %v8341_v5  ;;  %v4841_v32 = vpop.f32.mrf.mxu2  ;;  %v8371_v5 = vld [vmem:[%s10628_s1 + $0x610] sm:$0xff] }
  0xaf   :  { %5080 = vmatpush.bf16.msrb.mxu1 %v8349_v6  ;;  %v4854_v35 = vpop.f32.mrf.mxu3  ;;  %v8379_v6 = vld [vmem:[%s10628_s1 + $0x650] sm:$0xff] }
  0xb0   :  { %5093 = vmatpush.bf16.msrb.mxu2 %v8357_v9  ;;  %v8387_v9 = vld [vmem:[%s10628_s1 + $0x690] sm:$0xff]  ;;  %v8422_v35 = vld [vmem:[%s10628_s1 + $0x7a8] sm:$0xff] }
  0xb1   :  { %5106 = vmatpush.bf16.msrb.mxu3 %v8365_v10  ;;  %v8395_v10 = vld [vmem:[%s10628_s1 + $0x6d0] sm:$0xff] }
  0xb2   :  { %5068 = vmatpush.bf16.msrb.mxu0 %v8340_v12  ;;  %v8378_v12 = vld [vmem:[%s10628_s1 + $0x648] sm:$0xff]  ;;  %v8431_v32 = vld [vmem:[%s10628_s1 + $0x7f0] sm:$0xff] }
  0xb3   :  { %5081 = vmatpush.bf16.msrb.mxu1 %v8348_v13  ;;  %v8386_v13 = vld [vmem:[%s10628_s1 + $0x688] sm:$0xff] }
  0xb4   :  { %5094 = vmatpush.bf16.msrb.mxu2 %v8356_v14  ;;  %v8394_v14 = vld [vmem:[%s10628_s1 + $0x6c8] sm:$0xff] }
  0xb5   :  { %5107 = vmatpush.bf16.msrb.mxu3 %v8364_v15 }
  0xb6   :  { %5069 = vmatpush.bf16.msrb.mxu0 %v8339_v20  ;;  %v8393_v20 = vld [vmem:[%s10628_s1 + $0x6c0] sm:$0xff] }
  0xb7   :  { %5082 = vmatpush.bf16.msrb.mxu1 %v8347_v21  ;;  %v8408_v21 = vld [vmem:[%s10628_s1 + $0x738] sm:$0xff] }
  0xb8   :  { %5095 = vmatpush.bf16.msrb.mxu2 %v8355_v24  ;;  %v8432_v24 = vld [vmem:[%s10628_s1 + $0x7f8] sm:$0xff] }
  0xb9   :  { %5108 = vmatpush.bf16.msrb.mxu3 %v8363_v25  ;;  %v1218_v25 = vld [vmem:[#allocation1] sm:$0xff] }
  0xba   :  { %5070 = vmatpush.bf16.msrb.mxu0 %v8338_v26  ;;  %v1220_v26 = vld [vmem:[#allocation1 + $0x12] sm:$0xff] }
  0xbb   :  { %5083 = vmatpush.bf16.msrb.mxu1 %v8346_v27  ;;  %v1219_v27 = vld [vmem:[#allocation1 + $0x9] sm:$0xff] }
  0xbc   :  { %5096 = vmatpush.bf16.msrb.mxu2 %v8354_v28  ;;  %v1221_v28 = vld [vmem:[#allocation1 + $0x1b] sm:$0xff] }
  0xbd   :  { %5109 = vmatpush.bf16.msrb.mxu3 %v8362_v29  ;;  %v8407_v29 = vld [vmem:[%s10628_s1 + $0x730] sm:$0xff] }
  0xbe   :  { %5071 = vmatpush.bf16.msrb.mxu0 %v8337_v37  ;;  %v4865_v53 = vpop.f32.mrf.mxu0 }
  0xbf   :  { %5084 = vmatpush.bf16.msrb.mxu1 %v8345_v38  ;;  %v4866_v56 = vadd.f32 %v4865_v53, %v9379_v22  ;;  %v4878_v57 = vpop.f32.mrf.mxu1  ;;  %v8416_v22 = vld [vmem:[%s10628_s1 + $0x778] sm:$0xff] }
  0xc0   :  { %5097 = vmatpush.bf16.msrb.mxu2 %v8353_v39  ;;  %v8405_v39 = vld [vmem:[%s10628_s1 + $0x720] sm:$0xff] }
  0xc1   :  { %5110 = vmatpush.bf16.msrb.mxu3 %v8361_v40  ;;  %5072 = vmatmul.bf16.vlgmr.msrb.gmra.mxu0 %v1212_v30  ;;  %v4879_v60 = vadd.f32 %v4878_v57, %v4866_v56  ;;  %v8415_v30 = vld [vmem:[%s10628_s1 + $0x770] sm:$0xff]  ;;  %v8413_v40 = vld [vmem:[%s10628_s1 + $0x760] sm:$0xff] }
  0xc2   :  { %5116 = vmatpush.bf16.msra.mxu0 %v8376_v41  ;;  %5085 = vmatmul.bf16.vlgmr.msrb.gmra.mxu1 %v1213_v33  ;;  %v8406_v33 = vld [vmem:[%s10628_s1 + $0x728] sm:$0xff]  ;;  %v8419_v57 = vld [vmem:[%s10628_s1 + $0x790] sm:$0xff] }
  0xc3   :  { %5129 = vmatpush.bf16.msra.mxu1 %v8384_v42  ;;  %5098 = vmatmul.bf16.vlgmr.msrb.gmra.mxu2 %v1214_v31  ;;  %v8423_v31 = vld [vmem:[%s10628_s1 + $0x7b0] sm:$0xff]  ;;  %v8421_v42 = vld [vmem:[%s10628_s1 + $0x7a0] sm:$0xff] }
  0xc4   :  { %5142 = vmatpush.bf16.msra.mxu2 %v8392_v43  ;;  %5111 = vmatmul.bf16.vlgmr.msrb.gmra.mxu3 %v1215_v34  ;;  %v8414_v34 = vld [vmem:[%s10628_s1 + $0x768] sm:$0xff]  ;;  %v8429_v43 = vld [vmem:[%s10628_s1 + $0x7e0] sm:$0xff] }
  0xc5   :  { %5155 = vmatpush.bf16.msra.mxu3 %v8400_v44 }
  0xc6   :  { %5117 = vmatpush.bf16.msra.mxu0 %v8375_v45  ;;  %v4891_v1 = vpop.f32.mrf.mxu2  ;;  %v4867_v4 = vpop.f32.mrf.mxu0  ;;  %v8404_v45 = vld [vmem:[%s10628_s1 + $0x718] sm:$0xff] }
  0xc7   :  { %5130 = vmatpush.bf16.msra.mxu1 %v8383_v46  ;;  %v4892_v2 = vadd.f32 %v4891_v1, %v4879_v60  ;;  %v4904_v3 = vpop.f32.mrf.mxu3  ;;  %v4880_v8 = vpop.f32.mrf.mxu1  ;;  %v8412_v46 = vld [vmem:[%s10628_s1 + $0x758] sm:$0xff]  ;;  %v8410_v60 = vld [vmem:[%s10628_s1 + $0x748] sm:$0xff] }
  0xc8   :  { %5143 = vmatpush.bf16.msra.mxu2 %v8391_v47  ;;  %v8420_v47 = vld [vmem:[%s10628_s1 + $0x798] sm:$0xff]  ;;  %v8417_v8 = vld [vmem:[%s10628_s1 + $0x780] sm:$0xff] }
  0xc9   :  { %5156 = vmatpush.bf16.msra.mxu3 %v8399_v48  ;;  %v4905_v7 = vadd.f32 %v4904_v3, %v4892_v2  ;;  %v8428_v48 = vld [vmem:[%s10628_s1 + $0x7d8] sm:$0xff]  ;;  %v1223_v2 = vld [vmem:[#allocation1 + $0x2d] sm:$0xff] }
  0xca   :  { %5118 = vmatpush.bf16.msra.mxu0 %v8374_v49  ;;  %v1225_v3 = vld [vmem:[#allocation1 + $0x3f] sm:$0xff] }
  0xcb   :  { %5131 = vmatpush.bf16.msra.mxu1 %v8382_v50 }
  0xcc   :  { %5144 = vmatpush.bf16.msra.mxu2 %v8390_v51 }
  0xcd   :  { %5157 = vmatpush.bf16.msra.mxu3 %v8398_v52 }
  0xce   :  { %5119 = vmatpush.bf16.msra.mxu0 %v8373_v54  ;;  %v4893_v15 = vpop.f32.mrf.mxu2  ;;  %v8403_v54 = vld [vmem:[%s10628_s1 + $0x710] sm:$0xff] }
  0xcf   :  { %5132 = vmatpush.bf16.msra.mxu1 %v8381_v55  ;;  %v4906_v16 = vpop.f32.mrf.mxu3  ;;  %v8411_v55 = vld [vmem:[%s10628_s1 + $0x750] sm:$0xff] }
  0xd0   :  { %5145 = vmatpush.bf16.msra.mxu2 %v8389_v58  ;;  %v8427_v58 = vld [vmem:[%s10628_s1 + $0x7d0] sm:$0xff] }
  0xd1   :  { %5158 = vmatpush.bf16.msra.mxu3 %v8397_v59  ;;  %v8402_v59 = vld [vmem:[%s10628_s1 + $0x708] sm:$0xff]  ;;  %v8447_v15 = vld [vmem:[%s10628_s1 + $0x870] sm:$0xff] }
  0xd2   :  { %5120 = vmatpush.bf16.msra.mxu0 %v8372_v61  ;;  %v8418_v61 = vld [vmem:[%s10628_s1 + $0x788] sm:$0xff]  ;;  %v8455_v16 = vld [vmem:[%s10628_s1 + $0x8b0] sm:$0xff] }
  0xd3   :  { %5133 = vmatpush.bf16.msra.mxu1 %v8380_v62  ;;  %v8426_v62 = vld [vmem:[%s10628_s1 + $0x7c8] sm:$0xff] }
  0xd4   :  { %5146 = vmatpush.bf16.msra.mxu2 %v8388_v63  ;;  %v1222_v63 = vld [vmem:[#allocation1 + $0x24] sm:$0xff] }
  0xd5   :  { %5159 = vmatpush.bf16.msra.mxu3 %v8396_v0  ;;  %v1224_v0 = vld [vmem:[#allocation1 + $0x36] sm:$0xff] }
  0xd6   :  { %5121 = vmatpush.bf16.msra.mxu0 %v8371_v5  ;;  %v25_v5 = vld [vmem:[%s10627_s0 + $0x20] sm:$0xff] }
  0xd7   :  { %5134 = vmatpush.bf16.msra.mxu1 %v8379_v6  ;;  %1227 = vst [vmem:[#allocation1] ss:$9 sm:$0xff] %v25_v5  ;;  %v8401_v6 = vld [vmem:[%s10628_s1 + $0x700] sm:$0xff]  ;;  %v8494_v5 = vld [vmem:[%s10628_s1 + $0x9e8] sm:$0xff] }
  0xd8   :  { %5147 = vmatpush.bf16.msra.mxu2 %v8387_v9  ;;  %v8425_v9 = vld [vmem:[%s10628_s1 + $0x7c0] sm:$0xff] }
  0xd9   :  { %5160 = vmatpush.bf16.msra.mxu3 %v8395_v10  ;;  %v8440_v10 = vld [vmem:[%s10628_s1 + $0x838] sm:$0xff] }
  0xda   :  { %5122 = vmatpush.bf16.msra.mxu0 %v8370_v11  ;;  %v8448_v11 = vld [vmem:[%s10628_s1 + $0x878] sm:$0xff] }
  0xdb   :  { %5135 = vmatpush.bf16.msra.mxu1 %v8378_v12  ;;  %v8456_v12 = vld [vmem:[%s10628_s1 + $0x8b8] sm:$0xff] }
  0xdc   :  { %5148 = vmatpush.bf16.msra.mxu2 %v8386_v13  ;;  %v8464_v13 = vld [vmem:[%s10628_s1 + $0x8f8] sm:$0xff] }
  0xdd   :  { %5161 = vmatpush.bf16.msra.mxu3 %v8394_v14  ;;  %v8439_v14 = vld [vmem:[%s10628_s1 + $0x830] sm:$0xff] }
  0xde   :  { %5123 = vmatpush.bf16.msra.mxu0 %v8369_v17  ;;  %v4917_v37 = vpop.f32.mrf.mxu0  ;;  %v8463_v17 = vld [vmem:[%s10628_s1 + $0x8f0] sm:$0xff] }
  0xdf   :  { %5136 = vmatpush.bf16.msra.mxu1 %v8377_v18  ;;  %v4918_v38 = vadd.f32 %v4917_v37, %v4905_v7  ;;  %v4930_v41 = vpop.f32.mrf.mxu1  ;;  %v8409_v7 = vld [vmem:[%s10628_s1 + $0x740] sm:$0xff]  ;;  %v8438_v18 = vld [vmem:[%s10628_s1 + $0x828] sm:$0xff] }
  0xe0   :  { %5149 = vmatpush.bf16.msra.mxu2 %v8385_v19  ;;  %v8446_v19 = vld [vmem:[%s10628_s1 + $0x868] sm:$0xff] }
  0xe1   :  { %5162 = vmatpush.bf16.msra.mxu3 %v8393_v20  ;;  %5124 = vmatmul.bf16.vlgmr.msra.gmra.mxu0 %v1218_v25  ;;  %v4931_v44 = vadd.f32 %v4930_v41, %v4918_v38  ;;  %v8454_v20 = vld [vmem:[%s10628_s1 + $0x8a8] sm:$0xff]  ;;  %v8445_v25 = vld [vmem:[%s10628_s1 + $0x860] sm:$0xff] }
  0xe2   :  { %5168 = vmatpush.bf16.msrb.mxu0 %v8408_v21  ;;  %5137 = vmatmul.bf16.vlgmr.msra.gmra.mxu1 %v1219_v27  ;;  %v8462_v21 = vld [vmem:[%s10628_s1 + $0x8e8] sm:$0xff]  ;;  %v8453_v27 = vld [vmem:[%s10628_s1 + $0x8a0] sm:$0xff] }
  0xe3   :  { %5181 = vmatpush.bf16.msrb.mxu1 %v8416_v22  ;;  %5150 = vmatmul.bf16.vlgmr.msra.gmra.mxu2 %v1220_v26 }
  0xe4   :  { %5194 = vmatpush.bf16.msrb.mxu2 %v8424_v23  ;;  %5163 = vmatmul.bf16.vlgmr.msra.gmra.mxu3 %v1221_v28  ;;  %v8461_v28 = vld [vmem:[%s10628_s1 + $0x8e0] sm:$0xff] }
  0xe5   :  { %5207 = vmatpush.bf16.msrb.mxu3 %v8432_v24  ;;  %v8437_v24 = vld [vmem:[%s10628_s1 + $0x820] sm:$0xff] }
  0xe6   :  { %5169 = vmatpush.bf16.msrb.mxu0 %v8407_v29  ;;  %v4943_v49 = vpop.f32.mrf.mxu2  ;;  %v4919_v52 = vpop.f32.mrf.mxu0 }
  0xe7   :  { %5182 = vmatpush.bf16.msrb.mxu1 %v8415_v30  ;;  %v4944_v50 = vadd.f32 %v4943_v49, %v4931_v44  ;;  %v4956_v51 = vpop.f32.mrf.mxu3  ;;  %v4932_v56 = vpop.f32.mrf.mxu1  ;;  %v8436_v30 = vld [vmem:[%s10628_s1 + $0x818] sm:$0xff]  ;;  %v8434_v44 = vld [vmem:[%s10628_s1 + $0x808] sm:$0xff]  ;;  %v8449_v52 = vld [vmem:[%s10628_s1 + $0x880] sm:$0xff] }
  0xe8   :  { %5195 = vmatpush.bf16.msrb.mxu2 %v8423_v31  ;;  %v8444_v31 = vld [vmem:[%s10628_s1 + $0x858] sm:$0xff] }
  0xe9   :  { %5208 = vmatpush.bf16.msrb.mxu3 %v8431_v32  ;;  %v9571_v53 = vadd.f32 %v4956_v51, %v4944_v50  ;;  %v8452_v32 = vld [vmem:[%s10628_s1 + $0x898] sm:$0xff]  ;;  %v8433_v50 = vld [vmem:[%s10628_s1 + $0x800] sm:$0xff] }
  0xea   :  { %5170 = vmatpush.bf16.msrb.mxu0 %v8406_v33  ;;  %v8460_v33 = vld [vmem:[%s10628_s1 + $0x8d8] sm:$0xff]  ;;  %v8441_v51 = vld [vmem:[%s10628_s1 + $0x840] sm:$0xff] }
  0xeb   :  { %5183 = vmatpush.bf16.msrb.mxu1 %v8414_v34  ;;  %v8488_v56 = vld [vmem:[%s10628_s1 + $0x9b8] sm:$0xff] }
  0xec   :  { %5196 = vmatpush.bf16.msrb.mxu2 %v8422_v35 }
  0xed   :  { %5209 = vmatpush.bf16.msrb.mxu3 %v8430_v36 }
  0xee   :  { %5171 = vmatpush.bf16.msrb.mxu0 %v8405_v39  ;;  %v4945_v1 = vpop.f32.mrf.mxu2  ;;  %v8435_v39 = vld [vmem:[%s10628_s1 + $0x810] sm:$0xff] }
  0xef   :  { %5184 = vmatpush.bf16.msrb.mxu1 %v8413_v40  ;;  %v4958_v4 = vpop.f32.mrf.mxu3  ;;  %v8443_v40 = vld [vmem:[%s10628_s1 + $0x850] sm:$0xff] }
  0xf0   :  { %5197 = vmatpush.bf16.msrb.mxu2 %v8421_v42  ;;  %v8451_v42 = vld [vmem:[%s10628_s1 + $0x890] sm:$0xff]  ;;  %v8486_v4 = vld [vmem:[%s10628_s1 + $0x9a8] sm:$0xff] }
  0xf1   :  { %5210 = vmatpush.bf16.msrb.mxu3 %v8429_v43  ;;  %v8459_v43 = vld [vmem:[%s10628_s1 + $0x8d0] sm:$0xff] }
  0xf2   :  { %5172 = vmatpush.bf16.msrb.mxu0 %v8404_v45  ;;  %v8442_v45 = vld [vmem:[%s10628_s1 + $0x848] sm:$0xff]  ;;  %v8495_v1 = vld [vmem:[%s10628_s1 + $0x9f0] sm:$0xff] }
  0xf3   :  { %5185 = vmatpush.bf16.msrb.mxu1 %v8412_v46  ;;  %v8450_v46 = vld [vmem:[%s10628_s1 + $0x888] sm:$0xff] }
  0xf4   :  { %5198 = vmatpush.bf16.msrb.mxu2 %v8420_v47  ;;  %v8458_v47 = vld [vmem:[%s10628_s1 + $0x8c8] sm:$0xff] }
  0xf5   :  { %5211 = vmatpush.bf16.msrb.mxu3 %v8428_v48 }
  0xf6   :  { %5173 = vmatpush.bf16.msrb.mxu0 %v8403_v54  ;;  %v8472_v54 = vld [vmem:[%s10628_s1 + $0x938] sm:$0xff] }
  0xf7   :  { %5186 = vmatpush.bf16.msrb.mxu1 %v8411_v55  ;;  %v8480_v55 = vld [vmem:[%s10628_s1 + $0x978] sm:$0xff] }
  0xf8   :  { %5199 = vmatpush.bf16.msrb.mxu2 %v8419_v57  ;;  %v8496_v57 = vld [vmem:[%s10628_s1 + $0x9f8] sm:$0xff] }
  0xf9   :  { %5212 = vmatpush.bf16.msrb.mxu3 %v8427_v58  ;;  %v1228_v58 = vld [vmem:[#allocation1] sm:$0xff] }
  0xfa   :  { %5174 = vmatpush.bf16.msrb.mxu0 %v8402_v59  ;;  %v1230_v59 = vld [vmem:[#allocation1 + $0x12] sm:$0xff] }
  0xfb   :  { %5187 = vmatpush.bf16.msrb.mxu1 %v8410_v60  ;;  %v1229_v60 = vld [vmem:[#allocation1 + $0x9] sm:$0xff] }
  0xfc   :  { %5200 = vmatpush.bf16.msrb.mxu2 %v8418_v61  ;;  %v1231_v61 = vld [vmem:[#allocation1 + $0x1b] sm:$0xff] }
  0xfd   :  { %5213 = vmatpush.bf16.msrb.mxu3 %v8426_v62  ;;  %v8471_v62 = vld [vmem:[%s10628_s1 + $0x930] sm:$0xff] }
  0xfe   :  { %5175 = vmatpush.bf16.msrb.mxu0 %v8401_v6  ;;  %v4969_v22 = vpop.f32.mrf.mxu0 }
  0xff   :  { %5188 = vmatpush.bf16.msrb.mxu1 %v8409_v7  ;;  %v4970_v23 = vadd.f32 %v4969_v22, %v9571_v53  ;;  %v4982_v26 = vpop.f32.mrf.mxu1  ;;  %v8457_v53 = vld [vmem:[%s10628_s1 + $0x8c0] sm:$0xff] }
 0x100   :  { %5201 = vmatpush.bf16.msrb.mxu2 %v8417_v8  ;;  %v8469_v8 = vld [vmem:[%s10628_s1 + $0x920] sm:$0xff] }
 0x101   :  { %5214 = vmatpush.bf16.msrb.mxu3 %v8425_v9  ;;  %5176 = vmatmul.bf16.vlgmr.msrb.gmra.mxu0 %v1222_v63  ;;  %v4983_v29 = vadd.f32 %v4982_v26, %v4970_v23  ;;  %v8479_v63 = vld [vmem:[%s10628_s1 + $0x970] sm:$0xff]  ;;  %v8477_v9 = vld [vmem:[%s10628_s1 + $0x960] sm:$0xff] }
 0x102   :  { %5220 = vmatpush.bf16.msra.mxu0 %v8440_v10  ;;  %5189 = vmatmul.bf16.vlgmr.msrb.gmra.mxu1 %v1223_v2  ;;  %v8470_v2 = vld [vmem:[%s10628_s1 + $0x928] sm:$0xff]  ;;  %v8467_v23 = vld [vmem:[%s10628_s1 + $0x910] sm:$0xff] }
 0x103   :  { %5233 = vmatpush.bf16.msra.mxu1 %v8448_v11  ;;  %5202 = vmatmul.bf16.vlgmr.msrb.gmra.mxu2 %v1224_v0  ;;  %v8487_v0 = vld [vmem:[%s10628_s1 + $0x9b0] sm:$0xff]  ;;  %v8485_v11 = vld [vmem:[%s10628_s1 + $0x9a0] sm:$0xff] }
 0x104   :  { %5246 = vmatpush.bf16.msra.mxu2 %v8456_v12  ;;  %5215 = vmatmul.bf16.vlgmr.msrb.gmra.mxu3 %v1225_v3  ;;  %v8478_v3 = vld [vmem:[%s10628_s1 + $0x968] sm:$0xff]  ;;  %v8493_v12 = vld [vmem:[%s10628_s1 + $0x9e0] sm:$0xff]  ;;  %v8483_v26 = vld [vmem:[%s10628_s1 + $0x990] sm:$0xff] }
 0x105   :  { %5259 = vmatpush.bf16.msra.mxu3 %v8464_v13 }
 0x106   :  { %5221 = vmatpush.bf16.msra.mxu0 %v8439_v14  ;;  %v4995_v34 = vpop.f32.mrf.mxu2  ;;  %v4971_v37 = vpop.f32.mrf.mxu0  ;;  %v8468_v14 = vld [vmem:[%s10628_s1 + $0x918] sm:$0xff] }
 0x107   :  { %5234 = vmatpush.bf16.msra.mxu1 %v8447_v15  ;;  %v4996_v35 = vadd.f32 %v4995_v34, %v4983_v29  ;;  %v5008_v36 = vpop.f32.mrf.mxu3  ;;  %v4984_v41 = vpop.f32.mrf.mxu1  ;;  %v8476_v15 = vld [vmem:[%s10628_s1 + $0x958] sm:$0xff]  ;;  %v8474_v29 = vld [vmem:[%s10628_s1 + $0x948] sm:$0xff] }
 0x108   :  { %5247 = vmatpush.bf16.msra.mxu2 %v8455_v16  ;;  %v8484_v16 = vld [vmem:[%s10628_s1 + $0x998] sm:$0xff]  ;;  %v8481_v41 = vld [vmem:[%s10628_s1 + $0x980] sm:$0xff] }
 0x109   :  { %5260 = vmatpush.bf16.msra.mxu3 %v8463_v17  ;;  %v5009_v38 = vadd.f32 %v5008_v36, %v4996_v35  ;;  %v8492_v17 = vld [vmem:[%s10628_s1 + $0x9d8] sm:$0xff]  ;;  %v1233_v35 = vld [vmem:[#allocation1 + $0x2d] sm:$0xff] }
 0x10a   :  { %5222 = vmatpush.bf16.msra.mxu0 %v8438_v18  ;;  %v1235_v36 = vld [vmem:[#allocation1 + $0x3f] sm:$0xff] }
 0x10b   :  { %5235 = vmatpush.bf16.msra.mxu1 %v8446_v19 }
 0x10c   :  { %5248 = vmatpush.bf16.msra.mxu2 %v8454_v20 }
 0x10d   :  { %5261 = vmatpush.bf16.msra.mxu3 %v8462_v21 }
 0x10e   :  { %5223 = vmatpush.bf16.msra.mxu0 %v8437_v24  ;;  %v4997_v48 = vpop.f32.mrf.mxu2  ;;  %v8475_v24 = vld [vmem:[%s10628_s1 + $0x950] sm:$0xff] }
 0x10f   :  { %5236 = vmatpush.bf16.msra.mxu1 %v8445_v25  ;;  %v5010_v49 = vpop.f32.mrf.mxu3  ;;  %v8511_v48 = vld [vmem:[%s10628_s1 + $0xa70] sm:$0xff] }
 0x110   :  { %5249 = vmatpush.bf16.msra.mxu2 %v8453_v27  ;;  %v8491_v27 = vld [vmem:[%s10628_s1 + $0x9d0] sm:$0xff] }
 0x111   :  { %5262 = vmatpush.bf16.msra.mxu3 %v8461_v28  ;;  %v8466_v28 = vld [vmem:[%s10628_s1 + $0x908] sm:$0xff]  ;;  %v8519_v49 = vld [vmem:[%s10628_s1 + $0xab0] sm:$0xff] }
 0x112   :  { %5224 = vmatpush.bf16.msra.mxu0 %v8436_v30  ;;  %v8482_v30 = vld [vmem:[%s10628_s1 + $0x988] sm:$0xff] }
 0x113   :  { %5237 = vmatpush.bf16.msra.mxu1 %v8444_v31  ;;  %v8490_v31 = vld [vmem:[%s10628_s1 + $0x9c8] sm:$0xff] }
 0x114   :  { %5250 = vmatpush.bf16.msra.mxu2 %v8452_v32  ;;  %v1232_v32 = vld [vmem:[#allocation1 + $0x24] sm:$0xff] }
 0x115   :  { %5263 = vmatpush.bf16.msra.mxu3 %v8460_v33  ;;  %v1234_v33 = vld [vmem:[#allocation1 + $0x36] sm:$0xff] }
 0x116   :  { %5225 = vmatpush.bf16.msra.mxu0 %v8435_v39  ;;  %v8465_v39 = vld [vmem:[%s10628_s1 + $0x900] sm:$0xff] }
 0x117   :  { %5238 = vmatpush.bf16.msra.mxu1 %v8443_v40  ;;  %v8473_v40 = vld [vmem:[%s10628_s1 + $0x940] sm:$0xff] }
 0x118   :  { %5251 = vmatpush.bf16.msra.mxu2 %v8451_v42  ;;  %v8489_v42 = vld [vmem:[%s10628_s1 + $0x9c0] sm:$0xff] }
 0x119   :  { %5264 = vmatpush.bf16.msra.mxu3 %v8459_v43  ;;  %v8504_v43 = vld [vmem:[%s10628_s1 + $0xa38] sm:$0xff] }
 0x11a   :  { %5226 = vmatpush.bf16.msra.mxu0 %v8434_v44  ;;  %v8512_v44 = vld [vmem:[%s10628_s1 + $0xa78] sm:$0xff] }
 0x11b   :  { %5239 = vmatpush.bf16.msra.mxu1 %v8442_v45  ;;  %v8520_v45 = vld [vmem:[%s10628_s1 + $0xab8] sm:$0xff] }
 0x11c   :  { %5252 = vmatpush.bf16.msra.mxu2 %v8450_v46  ;;  %v8528_v46 = vld [vmem:[%s10628_s1 + $0xaf8] sm:$0xff] }
 0x11d   :  { %5265 = vmatpush.bf16.msra.mxu3 %v8458_v47  ;;  %v8503_v47 = vld [vmem:[%s10628_s1 + $0xa30] sm:$0xff] }
 0x11e   :  { %5227 = vmatpush.bf16.msra.mxu0 %v8433_v50  ;;  %v5021_v6 = vpop.f32.mrf.mxu0  ;;  %v8527_v50 = vld [vmem:[%s10628_s1 + $0xaf0] sm:$0xff] }
 0x11f   :  { %5240 = vmatpush.bf16.msra.mxu1 %v8441_v51  ;;  %v5022_v7 = vadd.f32 %v5021_v6, %v5009_v38  ;;  %v5034_v10 = vpop.f32.mrf.mxu1  ;;  %v26_v38 = vld [vmem:[%s10627_s0 + $0x28] sm:$0xff] }
 0x120   :  { %5253 = vmatpush.bf16.msra.mxu2 %v8449_v52  ;;  %1237 = vst [vmem:[#allocation1] ss:$9 sm:$0xff] %v26_v38  ;;  %v8502_v51 = vld [vmem:[%s10628_s1 + $0xa28] sm:$0xff] }
 0x121   :  { %5266 = vmatpush.bf16.msra.mxu3 %v8457_v53  ;;  %5228 = vmatmul.bf16.vlgmr.msra.gmra.mxu0 %v1228_v58  ;;  %v5035_v13 = vadd.f32 %v5034_v10, %v5022_v7  ;;  %v8510_v52 = vld [vmem:[%s10628_s1 + $0xa68] sm:$0xff]  ;;  %v8509_v58 = vld [vmem:[%s10628_s1 + $0xa60] sm:$0xff] }
 0x122   :  { %5272 = vmatpush.bf16.msrb.mxu0 %v8472_v54  ;;  %5241 = vmatmul.bf16.vlgmr.msra.gmra.mxu1 %v1229_v60  ;;  %v8518_v53 = vld [vmem:[%s10628_s1 + $0xaa8] sm:$0xff]  ;;  %v8517_v60 = vld [vmem:[%s10628_s1 + $0xaa0] sm:$0xff] }
 0x123   :  { %5285 = vmatpush.bf16.msrb.mxu1 %v8480_v55  ;;  %5254 = vmatmul.bf16.vlgmr.msra.gmra.mxu2 %v1230_v59  ;;  %v8526_v54 = vld [vmem:[%s10628_s1 + $0xae8] sm:$0xff] }
 0x124   :  { %5298 = vmatpush.bf16.msrb.mxu2 %v8488_v56  ;;  %5267 = vmatmul.bf16.vlgmr.msra.gmra.mxu3 %v1231_v61  ;;  %v8525_v61 = vld [vmem:[%s10628_s1 + $0xae0] sm:$0xff]  ;;  %v8558_v38 = vld [vmem:[%s10628_s1 + $0xbe8] sm:$0xff] }
 0x125   :  { %5311 = vmatpush.bf16.msrb.mxu3 %v8496_v57  ;;  %v8501_v57 = vld [vmem:[%s10628_s1 + $0xa20] sm:$0xff] }
 0x126   :  { %5273 = vmatpush.bf16.msrb.mxu0 %v8471_v62  ;;  %v5047_v18 = vpop.f32.mrf.mxu2  ;;  %v5023_v21 = vpop.f32.mrf.mxu0 }
 0x127   :  { %5286 = vmatpush.bf16.msrb.mxu1 %v8479_v63  ;;  %v5048_v19 = vadd.f32 %v5047_v18, %v5035_v13  ;;  %v5060_v20 = vpop.f32.mrf.mxu3  ;;  %v5036_v25 = vpop.f32.mrf.mxu1  ;;  %v8500_v63 = vld [vmem:[%s10628_s1 + $0xa18] sm:$0xff]  ;;  %v8498_v13 = vld [vmem:[%s10628_s1 + $0xa08] sm:$0xff]  ;;  %v8513_v21 = vld [vmem:[%s10628_s1 + $0xa80] sm:$0xff] }
 0x128   :  { %5299 = vmatpush.bf16.msrb.mxu2 %v8487_v0  ;;  %v8508_v0 = vld [vmem:[%s10628_s1 + $0xa58] sm:$0xff] }
 0x129   :  { %5312 = vmatpush.bf16.msrb.mxu3 %v8495_v1  ;;  %v9769_v22 = vadd.f32 %v5060_v20, %v5048_v19  ;;  %v8516_v1 = vld [vmem:[%s10628_s1 + $0xa98] sm:$0xff]  ;;  %v8497_v19 = vld [vmem:[%s10628_s1 + $0xa00] sm:$0xff] }
 0x12a   :  { %5274 = vmatpush.bf16.msrb.mxu0 %v8470_v2  ;;  %v8524_v2 = vld [vmem:[%s10628_s1 + $0xad8] sm:$0xff]  ;;  %v8505_v20 = vld [vmem:[%s10628_s1 + $0xa40] sm:$0xff] }
 0x12b   :  { %5287 = vmatpush.bf16.msrb.mxu1 %v8478_v3  ;;  %v8552_v25 = vld [vmem:[%s10628_s1 + $0xbb8] sm:$0xff] }
 0x12c   :  { %5300 = vmatpush.bf16.msrb.mxu2 %v8486_v4 }
 0x12d   :  { %5313 = vmatpush.bf16.msrb.mxu3 %v8494_v5 }
 0x12e   :  { %5275 = vmatpush.bf16.msrb.mxu0 %v8469_v8  ;;  %v5049_v34 = vpop.f32.mrf.mxu2  ;;  %v8499_v8 = vld [vmem:[%s10628_s1 + $0xa10] sm:$0xff] }
 0x12f   :  { %5288 = vmatpush.bf16.msrb.mxu1 %v8477_v9  ;;  %v5062_v37 = vpop.f32.mrf.mxu3  ;;  %v8507_v9 = vld [vmem:[%s10628_s1 + $0xa50] sm:$0xff] }
 0x130   :  { %5301 = vmatpush.bf16.msrb.mxu2 %v8485_v11  ;;  %v8515_v11 = vld [vmem:[%s10628_s1 + $0xa90] sm:$0xff]  ;;  %v8550_v37 = vld [vmem:[%s10628_s1 + $0xba8] sm:$0xff] }
 0x131   :  { %5314 = vmatpush.bf16.msrb.mxu3 %v8493_v12  ;;  %v8523_v12 = vld [vmem:[%s10628_s1 + $0xad0] sm:$0xff] }
 0x132   :  { %5276 = vmatpush.bf16.msrb.mxu0 %v8468_v14  ;;  %v8506_v14 = vld [vmem:[%s10628_s1 + $0xa48] sm:$0xff]  ;;  %v8559_v34 = vld [vmem:[%s10628_s1 + $0xbf0] sm:$0xff] }
 0x133   :  { %5289 = vmatpush.bf16.msrb.mxu1 %v8476_v15  ;;  %v8514_v15 = vld [vmem:[%s10628_s1 + $0xa88] sm:$0xff] }
 0x134   :  { %5302 = vmatpush.bf16.msrb.mxu2 %v8484_v16  ;;  %v8522_v16 = vld [vmem:[%s10628_s1 + $0xac8] sm:$0xff] }
 0x135   :  { %5315 = vmatpush.bf16.msrb.mxu3 %v8492_v17 }
 0x136   :  { %5277 = vmatpush.bf16.msrb.mxu0 %v8467_v23  ;;  %v8536_v23 = vld [vmem:[%s10628_s1 + $0xb38] sm:$0xff] }
 0x137   :  { %5290 = vmatpush.bf16.msrb.mxu1 %v8475_v24  ;;  %v8544_v24 = vld [vmem:[%s10628_s1 + $0xb78] sm:$0xff] }
 0x138   :  { %5303 = vmatpush.bf16.msrb.mxu2 %v8483_v26  ;;  %v8560_v26 = vld [vmem:[%s10628_s1 + $0xbf8] sm:$0xff] }
 0x139   :  { %5316 = vmatpush.bf16.msrb.mxu3 %v8491_v27  ;;  %v1238_v27 = vld [vmem:[#allocation1] sm:$0xff] }
 0x13a   :  { %5278 = vmatpush.bf16.msrb.mxu0 %v8466_v28  ;;  %v1240_v28 = vld [vmem:[#allocation1 + $0x12] sm:$0xff] }
 0x13b   :  { %5291 = vmatpush.bf16.msrb.mxu1 %v8474_v29  ;;  %v1239_v29 = vld [vmem:[#allocation1 + $0x9] sm:$0xff] }
 0x13c   :  { %5304 = vmatpush.bf16.msrb.mxu2 %v8482_v30  ;;  %v1241_v30 = vld [vmem:[#allocation1 + $0x1b] sm:$0xff] }
 0x13d   :  { %5317 = vmatpush.bf16.msrb.mxu3 %v8490_v31  ;;  %v8535_v31 = vld [vmem:[%s10628_s1 + $0xb30] sm:$0xff] }
 0x13e   :  { %5279 = vmatpush.bf16.msrb.mxu0 %v8465_v39  ;;  %v5073_v55 = vpop.f32.mrf.mxu0 }
 0x13f   :  { %5292 = vmatpush.bf16.msrb.mxu1 %v8473_v40  ;;  %v5074_v56 = vadd.f32 %v5073_v55, %v9769_v22  ;;  %v5086_v59 = vpop.f32.mrf.mxu1  ;;  %v8521_v22 = vld [vmem:[%s10628_s1 + $0xac0] sm:$0xff] }
 0x140   :  { %5305 = vmatpush.bf16.msrb.mxu2 %v8481_v41  ;;  %v8533_v41 = vld [vmem:[%s10628_s1 + $0xb20] sm:$0xff] }
 0x141   :  { %5318 = vmatpush.bf16.msrb.mxu3 %v8489_v42  ;;  %5280 = vmatmul.bf16.vlgmr.msrb.gmra.mxu0 %v1232_v32  ;;  %v5087_v62 = vadd.f32 %v5086_v59, %v5074_v56  ;;  %v8543_v32 = vld [vmem:[%s10628_s1 + $0xb70] sm:$0xff]  ;;  %v8541_v42 = vld [vmem:[%s10628_s1 + $0xb60] sm:$0xff] }
 0x142   :  { %5324 = vmatpush.bf16.msra.mxu0 %v8504_v43  ;;  %5293 = vmatmul.bf16.vlgmr.msrb.gmra.mxu1 %v1233_v35  ;;  %v8534_v35 = vld [vmem:[%s10628_s1 + $0xb28] sm:$0xff]  ;;  %v8531_v56 = vld [vmem:[%s10628_s1 + $0xb10] sm:$0xff] }
 0x143   :  { %5337 = vmatpush.bf16.msra.mxu1 %v8512_v44  ;;  %5306 = vmatmul.bf16.vlgmr.msrb.gmra.mxu2 %v1234_v33  ;;  %v8551_v33 = vld [vmem:[%s10628_s1 + $0xbb0] sm:$0xff]  ;;  %v8549_v44 = vld [vmem:[%s10628_s1 + $0xba0] sm:$0xff] }
 0x144   :  { %5350 = vmatpush.bf16.msra.mxu2 %v8520_v45  ;;  %5319 = vmatmul.bf16.vlgmr.msrb.gmra.mxu3 %v1235_v36  ;;  %v8542_v36 = vld [vmem:[%s10628_s1 + $0xb68] sm:$0xff]  ;;  %v8557_v45 = vld [vmem:[%s10628_s1 + $0xbe0] sm:$0xff]  ;;  %v8547_v59 = vld [vmem:[%s10628_s1 + $0xb90] sm:$0xff] }
 0x145   :  { %5363 = vmatpush.bf16.msra.mxu3 %v8528_v46 }
 0x146   :  { %5325 = vmatpush.bf16.msra.mxu0 %v8503_v47  ;;  %v5099_v3 = vpop.f32.mrf.mxu2  ;;  %v5075_v6 = vpop.f32.mrf.mxu0  ;;  %v8532_v47 = vld [vmem:[%s10628_s1 + $0xb18] sm:$0xff] }
 0x147   :  { %5338 = vmatpush.bf16.msra.mxu1 %v8511_v48  ;;  %v5100_v4 = vadd.f32 %v5099_v3, %v5087_v62  ;;  %v5112_v5 = vpop.f32.mrf.mxu3  ;;  %v5088_v10 = vpop.f32.mrf.mxu1  ;;  %v8540_v48 = vld [vmem:[%s10628_s1 + $0xb58] sm:$0xff]  ;;  %v8538_v62 = vld [vmem:[%s10628_s1 + $0xb48] sm:$0xff] }
 0x148   :  { %5351 = vmatpush.bf16.msra.mxu2 %v8519_v49  ;;  %v8548_v49 = vld [vmem:[%s10628_s1 + $0xb98] sm:$0xff]  ;;  %v8545_v10 = vld [vmem:[%s10628_s1 + $0xb80] sm:$0xff] }
 0x149   :  { %5364 = vmatpush.bf16.msra.mxu3 %v8527_v50  ;;  %v5113_v7 = vadd.f32 %v5112_v5, %v5100_v4  ;;  %v8556_v50 = vld [vmem:[%s10628_s1 + $0xbd8] sm:$0xff]  ;;  %v1243_v4 = vld [vmem:[#allocation1 + $0x2d] sm:$0xff] }
 0x14a   :  { %5326 = vmatpush.bf16.msra.mxu0 %v8502_v51  ;;  %v1245_v5 = vld [vmem:[#allocation1 + $0x3f] sm:$0xff] }
 0x14b   :  { %5339 = vmatpush.bf16.msra.mxu1 %v8510_v52 }
 0x14c   :  { %5352 = vmatpush.bf16.msra.mxu2 %v8518_v53 }
 0x14d   :  { %5365 = vmatpush.bf16.msra.mxu3 %v8526_v54 }
 0x14e   :  { %5327 = vmatpush.bf16.msra.mxu0 %v8501_v57  ;;  %v5101_v17 = vpop.f32.mrf.mxu2  ;;  %v8539_v57 = vld [vmem:[%s10628_s1 + $0xb50] sm:$0xff] }
 0x14f   :  { %5340 = vmatpush.bf16.msra.mxu1 %v8509_v58  ;;  %v5114_v18 = vpop.f32.mrf.mxu3  ;;  %v8575_v17 = vld [vmem:[%s10628_s1 + $0xc70] sm:$0xff] }
 0x150   :  { %5353 = vmatpush.bf16.msra.mxu2 %v8517_v60  ;;  %v8555_v60 = vld [vmem:[%s10628_s1 + $0xbd0] sm:$0xff] }
 0x151   :  { %5366 = vmatpush.bf16.msra.mxu3 %v8525_v61  ;;  %v8530_v61 = vld [vmem:[%s10628_s1 + $0xb08] sm:$0xff]  ;;  %v8583_v18 = vld [vmem:[%s10628_s1 + $0xcb0] sm:$0xff] }
 0x152   :  { %5328 = vmatpush.bf16.msra.mxu0 %v8500_v63  ;;  %v8546_v63 = vld [vmem:[%s10628_s1 + $0xb88] sm:$0xff] }
 0x153   :  { %5341 = vmatpush.bf16.msra.mxu1 %v8508_v0  ;;  %v8554_v0 = vld [vmem:[%s10628_s1 + $0xbc8] sm:$0xff] }
 0x154   :  { %5354 = vmatpush.bf16.msra.mxu2 %v8516_v1  ;;  %v1242_v1 = vld [vmem:[#allocation1 + $0x24] sm:$0xff] }
 0x155   :  { %5367 = vmatpush.bf16.msra.mxu3 %v8524_v2  ;;  %v1244_v2 = vld [vmem:[#allocation1 + $0x36] sm:$0xff] }
 0x156   :  { %5329 = vmatpush.bf16.msra.mxu0 %v8499_v8  ;;  %v8529_v8 = vld [vmem:[%s10628_s1 + $0xb00] sm:$0xff] }
 0x157   :  { %5342 = vmatpush.bf16.msra.mxu1 %v8507_v9  ;;  %v8537_v9 = vld [vmem:[%s10628_s1 + $0xb40] sm:$0xff] }
 0x158   :  { %5355 = vmatpush.bf16.msra.mxu2 %v8515_v11  ;;  %v8553_v11 = vld [vmem:[%s10628_s1 + $0xbc0] sm:$0xff] }
 0x159   :  { %5368 = vmatpush.bf16.msra.mxu3 %v8523_v12  ;;  %v8568_v12 = vld [vmem:[%s10628_s1 + $0xc38] sm:$0xff] }
 0x15a   :  { %5330 = vmatpush.bf16.msra.mxu0 %v8498_v13  ;;  %v8576_v13 = vld [vmem:[%s10628_s1 + $0xc78] sm:$0xff] }
 0x15b   :  { %5343 = vmatpush.bf16.msra.mxu1 %v8506_v14  ;;  %v8584_v14 = vld [vmem:[%s10628_s1 + $0xcb8] sm:$0xff] }
 0x15c   :  { %5356 = vmatpush.bf16.msra.mxu2 %v8514_v15  ;;  %v8592_v15 = vld [vmem:[%s10628_s1 + $0xcf8] sm:$0xff] }
 0x15d   :  { %5369 = vmatpush.bf16.msra.mxu3 %v8522_v16  ;;  %v8567_v16 = vld [vmem:[%s10628_s1 + $0xc30] sm:$0xff] }
 0x15e   :  { %5331 = vmatpush.bf16.msra.mxu0 %v8497_v19  ;;  %v5125_v39 = vpop.f32.mrf.mxu0  ;;  %v8591_v19 = vld [vmem:[%s10628_s1 + $0xcf0] sm:$0xff] }
 0x15f   :  { %5344 = vmatpush.bf16.msra.mxu1 %v8505_v20  ;;  %v5126_v40 = vadd.f32 %v5125_v39, %v5113_v7  ;;  %v5138_v43 = vpop.f32.mrf.mxu1  ;;  %v27_v7 = vld [vmem:[%s10627_s0 + $0x30] sm:$0xff]  ;;  %v8566_v20 = vld [vmem:[%s10628_s1 + $0xc28] sm:$0xff] }
 0x160   :  { %5357 = vmatpush.bf16.msra.mxu2 %v8513_v21  ;;  %1247 = vst [vmem:[#allocation1] ss:$9 sm:$0xff] %v27_v7  ;;  %v8574_v21 = vld [vmem:[%s10628_s1 + $0xc68] sm:$0xff] }
 0x161   :  { %5370 = vmatpush.bf16.msra.mxu3 %v8521_v22  ;;  %5332 = vmatmul.bf16.vlgmr.msra.gmra.mxu0 %v1238_v27  ;;  %v5139_v46 = vadd.f32 %v5138_v43, %v5126_v40  ;;  %v8582_v22 = vld [vmem:[%s10628_s1 + $0xca8] sm:$0xff]  ;;  %v8573_v27 = vld [vmem:[%s10628_s1 + $0xc60] sm:$0xff] }
 0x162   :  { %5376 = vmatpush.bf16.msrb.mxu0 %v8536_v23  ;;  %5345 = vmatmul.bf16.vlgmr.msra.gmra.mxu1 %v1239_v29  ;;  %v8590_v23 = vld [vmem:[%s10628_s1 + $0xce8] sm:$0xff]  ;;  %v8581_v29 = vld [vmem:[%s10628_s1 + $0xca0] sm:$0xff] }
 0x163   :  { %5389 = vmatpush.bf16.msrb.mxu1 %v8544_v24  ;;  %5358 = vmatmul.bf16.vlgmr.msra.gmra.mxu2 %v1240_v28  ;;  %v8622_v7 = vld [vmem:[%s10628_s1 + $0xde8] sm:$0xff] }
 0x164   :  { %5402 = vmatpush.bf16.msrb.mxu2 %v8552_v25  ;;  %5371 = vmatmul.bf16.vlgmr.msra.gmra.mxu3 %v1241_v30  ;;  %v8589_v30 = vld [vmem:[%s10628_s1 + $0xce0] sm:$0xff] }
 0x165   :  { %5415 = vmatpush.bf16.msrb.mxu3 %v8560_v26  ;;  %v8565_v26 = vld [vmem:[%s10628_s1 + $0xc20] sm:$0xff] }
 0x166   :  { %5377 = vmatpush.bf16.msrb.mxu0 %v8535_v31  ;;  %v5151_v51 = vpop.f32.mrf.mxu2  ;;  %v5127_v54 = vpop.f32.mrf.mxu0 }
 0x167   :  { %5390 = vmatpush.bf16.msrb.mxu1 %v8543_v32  ;;  %v5152_v52 = vadd.f32 %v5151_v51, %v5139_v46  ;;  %v5164_v53 = vpop.f32.mrf.mxu3  ;;  %v5140_v58 = vpop.f32.mrf.mxu1  ;;  %v8564_v32 = vld [vmem:[%s10628_s1 + $0xc18] sm:$0xff]  ;;  %v8562_v46 = vld [vmem:[%s10628_s1 + $0xc08] sm:$0xff]  ;;  %v8577_v54 = vld [vmem:[%s10628_s1 + $0xc80] sm:$0xff] }
 0x168   :  { %5403 = vmatpush.bf16.msrb.mxu2 %v8551_v33  ;;  %v8572_v33 = vld [vmem:[%s10628_s1 + $0xc58] sm:$0xff] }
 0x169   :  { %5416 = vmatpush.bf16.msrb.mxu3 %v8559_v34  ;;  %v9967_v55 = vadd.f32 %v5164_v53, %v5152_v52  ;;  %v8580_v34 = vld [vmem:[%s10628_s1 + $0xc98] sm:$0xff]  ;;  %v8561_v52 = vld [vmem:[%s10628_s1 + $0xc00] sm:$0xff] }
 0x16a   :  { %5378 = vmatpush.bf16.msrb.mxu0 %v8534_v35  ;;  %v8588_v35 = vld [vmem:[%s10628_s1 + $0xcd8] sm:$0xff]  ;;  %v8569_v53 = vld [vmem:[%s10628_s1 + $0xc40] sm:$0xff] }
 0x16b   :  { %5391 = vmatpush.bf16.msrb.mxu1 %v8542_v36  ;;  %v8616_v58 = vld [vmem:[%s10628_s1 + $0xdb8] sm:$0xff] }
 0x16c   :  { %5404 = vmatpush.bf16.msrb.mxu2 %v8550_v37 }
 0x16d   :  { %5417 = vmatpush.bf16.msrb.mxu3 %v8558_v38 }
 0x16e   :  { %5379 = vmatpush.bf16.msrb.mxu0 %v8533_v41  ;;  %v5153_v3 = vpop.f32.mrf.mxu2  ;;  %v8563_v41 = vld [vmem:[%s10628_s1 + $0xc10] sm:$0xff] }
 0x16f   :  { %5392 = vmatpush.bf16.msrb.mxu1 %v8541_v42  ;;  %v5166_v6 = vpop.f32.mrf.mxu3  ;;  %v8571_v42 = vld [vmem:[%s10628_s1 + $0xc50] sm:$0xff] }
 0x170   :  { %5405 = vmatpush.bf16.msrb.mxu2 %v8549_v44  ;;  %v8579_v44 = vld [vmem:[%s10628_s1 + $0xc90] sm:$0xff]  ;;  %v8614_v6 = vld [vmem:[%s10628_s1 + $0xda8] sm:$0xff] }
 0x171   :  { %5418 = vmatpush.bf16.msrb.mxu3 %v8557_v45  ;;  %v8587_v45 = vld [vmem:[%s10628_s1 + $0xcd0] sm:$0xff] }
 0x172   :  { %5380 = vmatpush.bf16.msrb.mxu0 %v8532_v47  ;;  %v8570_v47 = vld [vmem:[%s10628_s1 + $0xc48] sm:$0xff]  ;;  %v8623_v3 = vld [vmem:[%s10628_s1 + $0xdf0] sm:$0xff] }
 0x173   :  { %5393 = vmatpush.bf16.msrb.mxu1 %v8540_v48  ;;  %v8578_v48 = vld [vmem:[%s10628_s1 + $0xc88] sm:$0xff] }
 0x174   :  { %5406 = vmatpush.bf16.msrb.mxu2 %v8548_v49  ;;  %v8586_v49 = vld [vmem:[%s10628_s1 + $0xcc8] sm:$0xff] }
 0x175   :  { %5419 = vmatpush.bf16.msrb.mxu3 %v8556_v50 }
 0x176   :  { %5381 = vmatpush.bf16.msrb.mxu0 %v8531_v56  ;;  %v8600_v56 = vld [vmem:[%s10628_s1 + $0xd38] sm:$0xff] }
 0x177   :  { %5394 = vmatpush.bf16.msrb.mxu1 %v8539_v57  ;;  %v8608_v57 = vld [vmem:[%s10628_s1 + $0xd78] sm:$0xff] }
 0x178   :  { %5407 = vmatpush.bf16.msrb.mxu2 %v8547_v59  ;;  %v8624_v59 = vld [vmem:[%s10628_s1 + $0xdf8] sm:$0xff] }
 0x179   :  { %5420 = vmatpush.bf16.msrb.mxu3 %v8555_v60  ;;  %v1248_v60 = vld [vmem:[#allocation1] sm:$0xff] }
 0x17a   :  { %5382 = vmatpush.bf16.msrb.mxu0 %v8530_v61  ;;  %v1250_v61 = vld [vmem:[#allocation1 + $0x12] sm:$0xff] }
 0x17b   :  { %5395 = vmatpush.bf16.msrb.mxu1 %v8538_v62  ;;  %v1249_v62 = vld [vmem:[#allocation1 + $0x9] sm:$0xff] }
 0x17c   :  { %5408 = vmatpush.bf16.msrb.mxu2 %v8546_v63  ;;  %v1251_v63 = vld [vmem:[#allocation1 + $0x1b] sm:$0xff] }
 0x17d   :  { %5421 = vmatpush.bf16.msrb.mxu3 %v8554_v0  ;;  %v8599_v0 = vld [vmem:[%s10628_s1 + $0xd30] sm:$0xff] }
 0x17e   :  { %5383 = vmatpush.bf16.msrb.mxu0 %v8529_v8  ;;  %v5177_v24 = vpop.f32.mrf.mxu0 }
 0x17f   :  { %5396 = vmatpush.bf16.msrb.mxu1 %v8537_v9  ;;  %v5178_v25 = vadd.f32 %v5177_v24, %v9967_v55  ;;  %v5190_v28 = vpop.f32.mrf.mxu1  ;;  %v8585_v55 = vld [vmem:[%s10628_s1 + $0xcc0] sm:$0xff] }
 0x180   :  { %5409 = vmatpush.bf16.msrb.mxu2 %v8545_v10  ;;  %v8597_v10 = vld [vmem:[%s10628_s1 + $0xd20] sm:$0xff] }
 0x181   :  { %5422 = vmatpush.bf16.msrb.mxu3 %v8553_v11  ;;  %5384 = vmatmul.bf16.vlgmr.msrb.gmra.mxu0 %v1242_v1  ;;  %v5191_v31 = vadd.f32 %v5190_v28, %v5178_v25  ;;  %v8607_v1 = vld [vmem:[%s10628_s1 + $0xd70] sm:$0xff]  ;;  %v8605_v11 = vld [vmem:[%s10628_s1 + $0xd60] sm:$0xff] }
 0x182   :  { %5428 = vmatpush.bf16.msra.mxu0 %v8568_v12  ;;  %5397 = vmatmul.bf16.vlgmr.msrb.gmra.mxu1 %v1243_v4  ;;  %v8598_v4 = vld [vmem:[%s10628_s1 + $0xd28] sm:$0xff]  ;;  %v8595_v25 = vld [vmem:[%s10628_s1 + $0xd10] sm:$0xff] }
 0x183   :  { %5441 = vmatpush.bf16.msra.mxu1 %v8576_v13  ;;  %5410 = vmatmul.bf16.vlgmr.msrb.gmra.mxu2 %v1244_v2  ;;  %v8615_v2 = vld [vmem:[%s10628_s1 + $0xdb0] sm:$0xff]  ;;  %v8613_v13 = vld [vmem:[%s10628_s1 + $0xda0] sm:$0xff] }
 0x184   :  { %5454 = vmatpush.bf16.msra.mxu2 %v8584_v14  ;;  %5423 = vmatmul.bf16.vlgmr.msrb.gmra.mxu3 %v1245_v5  ;;  %v8606_v5 = vld [vmem:[%s10628_s1 + $0xd68] sm:$0xff]  ;;  %v8621_v14 = vld [vmem:[%s10628_s1 + $0xde0] sm:$0xff]  ;;  %v8611_v28 = vld [vmem:[%s10628_s1 + $0xd90] sm:$0xff] }
 0x185   :  { %5467 = vmatpush.bf16.msra.mxu3 %v8592_v15 }
 0x186   :  { %5429 = vmatpush.bf16.msra.mxu0 %v8567_v16  ;;  %v5203_v36 = vpop.f32.mrf.mxu2  ;;  %v5179_v39 = vpop.f32.mrf.mxu0  ;;  %v8596_v16 = vld [vmem:[%s10628_s1 + $0xd18] sm:$0xff] }
 0x187   :  { %5442 = vmatpush.bf16.msra.mxu1 %v8575_v17  ;;  %v5204_v37 = vadd.f32 %v5203_v36, %v5191_v31  ;;  %v5216_v38 = vpop.f32.mrf.mxu3  ;;  %v5192_v43 = vpop.f32.mrf.mxu1  ;;  %v8604_v17 = vld [vmem:[%s10628_s1 + $0xd58] sm:$0xff]  ;;  %v8602_v31 = vld [vmem:[%s10628_s1 + $0xd48] sm:$0xff] }
 0x188   :  { %5455 = vmatpush.bf16.msra.mxu2 %v8583_v18  ;;  %v8612_v18 = vld [vmem:[%s10628_s1 + $0xd98] sm:$0xff]  ;;  %v8609_v43 = vld [vmem:[%s10628_s1 + $0xd80] sm:$0xff] }
 0x189   :  { %5468 = vmatpush.bf16.msra.mxu3 %v8591_v19  ;;  %v5217_v40 = vadd.f32 %v5216_v38, %v5204_v37  ;;  %v8620_v19 = vld [vmem:[%s10628_s1 + $0xdd8] sm:$0xff]  ;;  %v1253_v37 = vld [vmem:[#allocation1 + $0x2d] sm:$0xff] }
 0x18a   :  { %5430 = vmatpush.bf16.msra.mxu0 %v8566_v20  ;;  %v1255_v38 = vld [vmem:[#allocation1 + $0x3f] sm:$0xff] }
 0x18b   :  { %5443 = vmatpush.bf16.msra.mxu1 %v8574_v21 }
 0x18c   :  { %5456 = vmatpush.bf16.msra.mxu2 %v8582_v22 }
 0x18d   :  { %5469 = vmatpush.bf16.msra.mxu3 %v8590_v23 }
 0x18e   :  { %5431 = vmatpush.bf16.msra.mxu0 %v8565_v26  ;;  %v5205_v50 = vpop.f32.mrf.mxu2  ;;  %v8603_v26 = vld [vmem:[%s10628_s1 + $0xd50] sm:$0xff] }
 0x18f   :  { %5444 = vmatpush.bf16.msra.mxu1 %v8573_v27  ;;  %v5218_v51 = vpop.f32.mrf.mxu3  ;;  %v8639_v50 = vld [vmem:[%s10628_s1 + $0xe70] sm:$0xff] }
 0x190   :  { %5457 = vmatpush.bf16.msra.mxu2 %v8581_v29  ;;  %v8619_v29 = vld [vmem:[%s10628_s1 + $0xdd0] sm:$0xff] }
 0x191   :  { %5470 = vmatpush.bf16.msra.mxu3 %v8589_v30  ;;  %v8594_v30 = vld [vmem:[%s10628_s1 + $0xd08] sm:$0xff]  ;;  %v8647_v51 = vld [vmem:[%s10628_s1 + $0xeb0] sm:$0xff] }
 0x192   :  { %5432 = vmatpush.bf16.msra.mxu0 %v8564_v32  ;;  %v8610_v32 = vld [vmem:[%s10628_s1 + $0xd88] sm:$0xff] }
 0x193   :  { %5445 = vmatpush.bf16.msra.mxu1 %v8572_v33  ;;  %v8618_v33 = vld [vmem:[%s10628_s1 + $0xdc8] sm:$0xff] }
 0x194   :  { %5458 = vmatpush.bf16.msra.mxu2 %v8580_v34  ;;  %v1252_v34 = vld [vmem:[#allocation1 + $0x24] sm:$0xff] }
 0x195   :  { %5471 = vmatpush.bf16.msra.mxu3 %v8588_v35  ;;  %v1254_v35 = vld [vmem:[#allocation1 + $0x36] sm:$0xff] }
 0x196   :  { %5433 = vmatpush.bf16.msra.mxu0 %v8563_v41  ;;  %v8593_v41 = vld [vmem:[%s10628_s1 + $0xd00] sm:$0xff] }
 0x197   :  { %5446 = vmatpush.bf16.msra.mxu1 %v8571_v42  ;;  %v8601_v42 = vld [vmem:[%s10628_s1 + $0xd40] sm:$0xff] }
 0x198   :  { %5459 = vmatpush.bf16.msra.mxu2 %v8579_v44  ;;  %v8617_v44 = vld [vmem:[%s10628_s1 + $0xdc0] sm:$0xff] }
 0x199   :  { %5472 = vmatpush.bf16.msra.mxu3 %v8587_v45  ;;  %v8632_v45 = vld [vmem:[%s10628_s1 + $0xe38] sm:$0xff] }
 0x19a   :  { %5434 = vmatpush.bf16.msra.mxu0 %v8562_v46  ;;  %v8640_v46 = vld [vmem:[%s10628_s1 + $0xe78] sm:$0xff] }
 0x19b   :  { %5447 = vmatpush.bf16.msra.mxu1 %v8570_v47  ;;  %v8648_v47 = vld [vmem:[%s10628_s1 + $0xeb8] sm:$0xff] }
 0x19c   :  { %5460 = vmatpush.bf16.msra.mxu2 %v8578_v48  ;;  %v8656_v48 = vld [vmem:[%s10628_s1 + $0xef8] sm:$0xff] }
 0x19d   :  { %5473 = vmatpush.bf16.msra.mxu3 %v8586_v49  ;;  %v8631_v49 = vld [vmem:[%s10628_s1 + $0xe30] sm:$0xff] }
 0x19e   :  { %5435 = vmatpush.bf16.msra.mxu0 %v8561_v52  ;;  %v5229_v8 = vpop.f32.mrf.mxu0  ;;  %v8655_v52 = vld [vmem:[%s10628_s1 + $0xef0] sm:$0xff] }
 0x19f   :  { %5448 = vmatpush.bf16.msra.mxu1 %v8569_v53  ;;  %v5230_v9 = vadd.f32 %v5229_v8, %v5217_v40  ;;  %v5242_v12 = vpop.f32.mrf.mxu1  ;;  %v28_v40 = vld [vmem:[%s10627_s0 + $0x38] sm:$0xff]  ;;  %v8630_v53 = vld [vmem:[%s10628_s1 + $0xe28] sm:$0xff] }
 0x1a0   :  { %5461 = vmatpush.bf16.msra.mxu2 %v8577_v54  ;;  %1257 = vst [vmem:[#allocation1] ss:$9 sm:$0xff] %v28_v40  ;;  %v8638_v54 = vld [vmem:[%s10628_s1 + $0xe68] sm:$0xff] }
 0x1a1   :  { %5474 = vmatpush.bf16.msra.mxu3 %v8585_v55  ;;  %5436 = vmatmul.bf16.vlgmr.msra.gmra.mxu0 %v1248_v60  ;;  %v5243_v15 = vadd.f32 %v5242_v12, %v5230_v9  ;;  %v8646_v55 = vld [vmem:[%s10628_s1 + $0xea8] sm:$0xff]  ;;  %v8637_v60 = vld [vmem:[%s10628_s1 + $0xe60] sm:$0xff] }
 0x1a2   :  { %5480 = vmatpush.bf16.msrb.mxu0 %v8600_v56  ;;  %5449 = vmatmul.bf16.vlgmr.msra.gmra.mxu1 %v1249_v62  ;;  %v8654_v56 = vld [vmem:[%s10628_s1 + $0xee8] sm:$0xff]  ;;  %v8645_v62 = vld [vmem:[%s10628_s1 + $0xea0] sm:$0xff] }
 0x1a3   :  { %5493 = vmatpush.bf16.msrb.mxu1 %v8608_v57  ;;  %5462 = vmatmul.bf16.vlgmr.msra.gmra.mxu2 %v1250_v61  ;;  %v8686_v40 = vld [vmem:[%s10628_s1 + $0xfe8] sm:$0xff] }
 0x1a4   :  { %5506 = vmatpush.bf16.msrb.mxu2 %v8616_v58  ;;  %5475 = vmatmul.bf16.vlgmr.msra.gmra.mxu3 %v1251_v63  ;;  %v8653_v63 = vld [vmem:[%s10628_s1 + $0xee0] sm:$0xff] }
 0x1a5   :  { %5519 = vmatpush.bf16.msrb.mxu3 %v8624_v59  ;;  %v8629_v59 = vld [vmem:[%s10628_s1 + $0xe20] sm:$0xff] }
 0x1a6   :  { %5481 = vmatpush.bf16.msrb.mxu0 %v8599_v0  ;;  %v5255_v20 = vpop.f32.mrf.mxu2  ;;  %v5231_v23 = vpop.f32.mrf.mxu0 }
 0x1a7   :  { %5494 = vmatpush.bf16.msrb.mxu1 %v8607_v1  ;;  %v5256_v21 = vadd.f32 %v5255_v20, %v5243_v15  ;;  %v5268_v22 = vpop.f32.mrf.mxu3  ;;  %v5244_v27 = vpop.f32.mrf.mxu1  ;;  %v8628_v1 = vld [vmem:[%s10628_s1 + $0xe18] sm:$0xff]  ;;  %v8626_v15 = vld [vmem:[%s10628_s1 + $0xe08] sm:$0xff]  ;;  %v8641_v23 = vld [vmem:[%s10628_s1 + $0xe80] sm:$0xff] }
 0x1a8   :  { %5507 = vmatpush.bf16.msrb.mxu2 %v8615_v2  ;;  %v8636_v2 = vld [vmem:[%s10628_s1 + $0xe58] sm:$0xff] }
 0x1a9   :  { %5520 = vmatpush.bf16.msrb.mxu3 %v8623_v3  ;;  %v10165_v24 = vadd.f32 %v5268_v22, %v5256_v21  ;;  %v8644_v3 = vld [vmem:[%s10628_s1 + $0xe98] sm:$0xff]  ;;  %v8625_v21 = vld [vmem:[%s10628_s1 + $0xe00] sm:$0xff] }
 0x1aa   :  { %5482 = vmatpush.bf16.msrb.mxu0 %v8598_v4  ;;  %v8652_v4 = vld [vmem:[%s10628_s1 + $0xed8] sm:$0xff]  ;;  %v8633_v22 = vld [vmem:[%s10628_s1 + $0xe40] sm:$0xff] }
 0x1ab   :  { %5495 = vmatpush.bf16.msrb.mxu1 %v8606_v5  ;;  %v8680_v27 = vld [vmem:[%s10628_s1 + $0xfb8] sm:$0xff] }
 0x1ac   :  { %5508 = vmatpush.bf16.msrb.mxu2 %v8614_v6 }
 0x1ad   :  { %5521 = vmatpush.bf16.msrb.mxu3 %v8622_v7 }
 0x1ae   :  { %5483 = vmatpush.bf16.msrb.mxu0 %v8597_v10  ;;  %v5257_v36 = vpop.f32.mrf.mxu2  ;;  %v8627_v10 = vld [vmem:[%s10628_s1 + $0xe10] sm:$0xff] }
 0x1af   :  { %5496 = vmatpush.bf16.msrb.mxu1 %v8605_v11  ;;  %v5270_v39 = vpop.f32.mrf.mxu3  ;;  %v8635_v11 = vld [vmem:[%s10628_s1 + $0xe50] sm:$0xff] }
 0x1b0   :  { %5509 = vmatpush.bf16.msrb.mxu2 %v8613_v13  ;;  %v8643_v13 = vld [vmem:[%s10628_s1 + $0xe90] sm:$0xff]  ;;  %v8678_v39 = vld [vmem:[%s10628_s1 + $0xfa8] sm:$0xff] }
 0x1b1   :  { %5522 = vmatpush.bf16.msrb.mxu3 %v8621_v14  ;;  %v8651_v14 = vld [vmem:[%s10628_s1 + $0xed0] sm:$0xff] }
 0x1b2   :  { %5484 = vmatpush.bf16.msrb.mxu0 %v8596_v16  ;;  %v8634_v16 = vld [vmem:[%s10628_s1 + $0xe48] sm:$0xff]  ;;  %v8687_v36 = vld [vmem:[%s10628_s1 + $0xff0] sm:$0xff] }
 0x1b3   :  { %5497 = vmatpush.bf16.msrb.mxu1 %v8604_v17  ;;  %v8642_v17 = vld [vmem:[%s10628_s1 + $0xe88] sm:$0xff] }
 0x1b4   :  { %5510 = vmatpush.bf16.msrb.mxu2 %v8612_v18  ;;  %v8650_v18 = vld [vmem:[%s10628_s1 + $0xec8] sm:$0xff] }
 0x1b5   :  { %5523 = vmatpush.bf16.msrb.mxu3 %v8620_v19 }
 0x1b6   :  { %5485 = vmatpush.bf16.msrb.mxu0 %v8595_v25  ;;  %v8664_v25 = vld [vmem:[%s10628_s1 + $0xf38] sm:$0xff] }
 0x1b7   :  { %5498 = vmatpush.bf16.msrb.mxu1 %v8603_v26  ;;  %v8672_v26 = vld [vmem:[%s10628_s1 + $0xf78] sm:$0xff] }
 0x1b8   :  { %5511 = vmatpush.bf16.msrb.mxu2 %v8611_v28  ;;  %v8688_v28 = vld [vmem:[%s10628_s1 + $0xff8] sm:$0xff] }
 0x1b9   :  { %5524 = vmatpush.bf16.msrb.mxu3 %v8619_v29  ;;  %v1258_v29 = vld [vmem:[#allocation1] sm:$0xff] }
 0x1ba   :  { %5486 = vmatpush.bf16.msrb.mxu0 %v8594_v30  ;;  %v1260_v30 = vld [vmem:[#allocation1 + $0x12] sm:$0xff] }
 0x1bb   :  { %5499 = vmatpush.bf16.msrb.mxu1 %v8602_v31  ;;  %v1259_v31 = vld [vmem:[#allocation1 + $0x9] sm:$0xff] }
 0x1bc   :  { %5512 = vmatpush.bf16.msrb.mxu2 %v8610_v32  ;;  %v1261_v32 = vld [vmem:[#allocation1 + $0x1b] sm:$0xff] }
 0x1bd   :  { %5525 = vmatpush.bf16.msrb.mxu3 %v8618_v33  ;;  %v8663_v33 = vld [vmem:[%s10628_s1 + $0xf30] sm:$0xff] }
 0x1be   :  { %5487 = vmatpush.bf16.msrb.mxu0 %v8593_v41  ;;  %v5281_v57 = vpop.f32.mrf.mxu0 }
 0x1bf   :  { %5500 = vmatpush.bf16.msrb.mxu1 %v8601_v42  ;;  %v5282_v58 = vadd.f32 %v5281_v57, %v10165_v24  ;;  %v5294_v61 = vpop.f32.mrf.mxu1  ;;  %v8649_v24 = vld [vmem:[%s10628_s1 + $0xec0] sm:$0xff] }
 0x1c0   :  { %5513 = vmatpush.bf16.msrb.mxu2 %v8609_v43  ;;  %v8661_v43 = vld [vmem:[%s10628_s1 + $0xf20] sm:$0xff] }
 0x1c1   :  { %5526 = vmatpush.bf16.msrb.mxu3 %v8617_v44  ;;  %5488 = vmatmul.bf16.vlgmr.msrb.gmra.mxu0 %v1252_v34  ;;  %v5295_v0 = vadd.f32 %v5294_v61, %v5282_v58  ;;  %v8671_v34 = vld [vmem:[%s10628_s1 + $0xf70] sm:$0xff]  ;;  %v8669_v44 = vld [vmem:[%s10628_s1 + $0xf60] sm:$0xff] }
 0x1c2   :  { %5532 = vmatpush.bf16.msra.mxu0 %v8632_v45  ;;  %5501 = vmatmul.bf16.vlgmr.msrb.gmra.mxu1 %v1253_v37  ;;  %v8662_v37 = vld [vmem:[%s10628_s1 + $0xf28] sm:$0xff]  ;;  %v8659_v58 = vld [vmem:[%s10628_s1 + $0xf10] sm:$0xff] }
 0x1c3   :  { %5545 = vmatpush.bf16.msra.mxu1 %v8640_v46  ;;  %5514 = vmatmul.bf16.vlgmr.msrb.gmra.mxu2 %v1254_v35  ;;  %v8679_v35 = vld [vmem:[%s10628_s1 + $0xfb0] sm:$0xff]  ;;  %v8677_v46 = vld [vmem:[%s10628_s1 + $0xfa0] sm:$0xff] }
 0x1c4   :  { %5558 = vmatpush.bf16.msra.mxu2 %v8648_v47  ;;  %5527 = vmatmul.bf16.vlgmr.msrb.gmra.mxu3 %v1255_v38  ;;  %v8670_v38 = vld [vmem:[%s10628_s1 + $0xf68] sm:$0xff]  ;;  %v8685_v47 = vld [vmem:[%s10628_s1 + $0xfe0] sm:$0xff]  ;;  %v8675_v61 = vld [vmem:[%s10628_s1 + $0xf90] sm:$0xff] }
 0x1c5   :  { %5571 = vmatpush.bf16.msra.mxu3 %v8656_v48 }
 0x1c6   :  { %5533 = vmatpush.bf16.msra.mxu0 %v8631_v49  ;;  %v5307_v5 = vpop.f32.mrf.mxu2  ;;  %v5283_v8 = vpop.f32.mrf.mxu0  ;;  %v8660_v49 = vld [vmem:[%s10628_s1 + $0xf18] sm:$0xff] }
 0x1c7   :  { %5546 = vmatpush.bf16.msra.mxu1 %v8639_v50  ;;  %v5308_v6 = vadd.f32 %v5307_v5, %v5295_v0  ;;  %v5320_v7 = vpop.f32.mrf.mxu3  ;;  %v5296_v12 = vpop.f32.mrf.mxu1  ;;  %v8668_v50 = vld [vmem:[%s10628_s1 + $0xf58] sm:$0xff]  ;;  %v8666_v0 = vld [vmem:[%s10628_s1 + $0xf48] sm:$0xff] }
 0x1c8   :  { %5559 = vmatpush.bf16.msra.mxu2 %v8647_v51  ;;  %v8676_v51 = vld [vmem:[%s10628_s1 + $0xf98] sm:$0xff]  ;;  %v8673_v12 = vld [vmem:[%s10628_s1 + $0xf80] sm:$0xff] }
 0x1c9   :  { %5572 = vmatpush.bf16.msra.mxu3 %v8655_v52  ;;  %v5321_v9 = vadd.f32 %v5320_v7, %v5308_v6  ;;  %v8684_v52 = vld [vmem:[%s10628_s1 + $0xfd8] sm:$0xff]  ;;  %v1263_v6 = vld [vmem:[#allocation1 + $0x2d] sm:$0xff] }
 0x1ca   :  { %5534 = vmatpush.bf16.msra.mxu0 %v8630_v53  ;;  %v1265_v7 = vld [vmem:[#allocation1 + $0x3f] sm:$0xff] }
 0x1cb   :  { %5547 = vmatpush.bf16.msra.mxu1 %v8638_v54 }
 0x1cc   :  { %5560 = vmatpush.bf16.msra.mxu2 %v8646_v55 }
 0x1cd   :  { %5573 = vmatpush.bf16.msra.mxu3 %v8654_v56 }
 0x1ce   :  { %5535 = vmatpush.bf16.msra.mxu0 %v8629_v59  ;;  %v5309_v19 = vpop.f32.mrf.mxu2  ;;  %v8667_v59 = vld [vmem:[%s10628_s1 + $0xf50] sm:$0xff] }
 0x1cf   :  { %5548 = vmatpush.bf16.msra.mxu1 %v8637_v60  ;;  %v5322_v20 = vpop.f32.mrf.mxu3  ;;  %v8703_v19 = vld [vmem:[%s10628_s1 + $0x1070] sm:$0xff] }
 0x1d0   :  { %5561 = vmatpush.bf16.msra.mxu2 %v8645_v62  ;;  %v8683_v62 = vld [vmem:[%s10628_s1 + $0xfd0] sm:$0xff] }
 0x1d1   :  { %5574 = vmatpush.bf16.msra.mxu3 %v8653_v63  ;;  %v8658_v63 = vld [vmem:[%s10628_s1 + $0xf08] sm:$0xff]  ;;  %v8711_v20 = vld [vmem:[%s10628_s1 + $0x10b0] sm:$0xff] }
 0x1d2   :  { %5536 = vmatpush.bf16.msra.mxu0 %v8628_v1  ;;  %v8674_v1 = vld [vmem:[%s10628_s1 + $0xf88] sm:$0xff] }
 0x1d3   :  { %5549 = vmatpush.bf16.msra.mxu1 %v8636_v2  ;;  %v8682_v2 = vld [vmem:[%s10628_s1 + $0xfc8] sm:$0xff] }
 0x1d4   :  { %5562 = vmatpush.bf16.msra.mxu2 %v8644_v3  ;;  %v1262_v3 = vld [vmem:[#allocation1 + $0x24] sm:$0xff] }
 0x1d5   :  { %5575 = vmatpush.bf16.msra.mxu3 %v8652_v4  ;;  %v1264_v4 = vld [vmem:[#allocation1 + $0x36] sm:$0xff] }
 0x1d6   :  { %5537 = vmatpush.bf16.msra.mxu0 %v8627_v10  ;;  %v8657_v10 = vld [vmem:[%s10628_s1 + $0xf00] sm:$0xff] }
 0x1d7   :  { %5550 = vmatpush.bf16.msra.mxu1 %v8635_v11  ;;  %v8665_v11 = vld [vmem:[%s10628_s1 + $0xf40] sm:$0xff] }
 0x1d8   :  { %5563 = vmatpush.bf16.msra.mxu2 %v8643_v13  ;;  %v8681_v13 = vld [vmem:[%s10628_s1 + $0xfc0] sm:$0xff] }
 0x1d9   :  { %5576 = vmatpush.bf16.msra.mxu3 %v8651_v14  ;;  %v8696_v14 = vld [vmem:[%s10628_s1 + $0x1038] sm:$0xff] }
 0x1da   :  { %5538 = vmatpush.bf16.msra.mxu0 %v8626_v15  ;;  %v8704_v15 = vld [vmem:[%s10628_s1 + $0x1078] sm:$0xff] }
 0x1db   :  { %5551 = vmatpush.bf16.msra.mxu1 %v8634_v16  ;;  %v8712_v16 = vld [vmem:[%s10628_s1 + $0x10b8] sm:$0xff] }
 0x1dc   :  { %5564 = vmatpush.bf16.msra.mxu2 %v8642_v17  ;;  %v8720_v17 = vld [vmem:[%s10628_s1 + $0x10f8] sm:$0xff] }
 0x1dd   :  { %5577 = vmatpush.bf16.msra.mxu3 %v8650_v18  ;;  %v8695_v18 = vld [vmem:[%s10628_s1 + $0x1030] sm:$0xff] }
 0x1de   :  { %5539 = vmatpush.bf16.msra.mxu0 %v8625_v21  ;;  %v5333_v41 = vpop.f32.mrf.mxu0  ;;  %v8719_v21 = vld [vmem:[%s10628_s1 + $0x10f0] sm:$0xff] }
 0x1df   :  { %5552 = vmatpush.bf16.msra.mxu1 %v8633_v22  ;;  %v5334_v42 = vadd.f32 %v5333_v41, %v5321_v9  ;;  %v5346_v45 = vpop.f32.mrf.mxu1  ;;  %v29_v9 = vld [vmem:[%s10627_s0 + $0x40] sm:$0xff]  ;;  %v8694_v22 = vld [vmem:[%s10628_s1 + $0x1028] sm:$0xff] }
 0x1e0   :  { %5565 = vmatpush.bf16.msra.mxu2 %v8641_v23  ;;  %1267 = vst [vmem:[#allocation1] ss:$9 sm:$0xff] %v29_v9  ;;  %v8702_v23 = vld [vmem:[%s10628_s1 + $0x1068] sm:$0xff] }
 0x1e1   :  { %5578 = vmatpush.bf16.msra.mxu3 %v8649_v24  ;;  %5540 = vmatmul.bf16.vlgmr.msra.gmra.mxu0 %v1258_v29  ;;  %v5347_v48 = vadd.f32 %v5346_v45, %v5334_v42  ;;  %v8710_v24 = vld [vmem:[%s10628_s1 + $0x10a8] sm:$0xff]  ;;  %v8701_v29 = vld [vmem:[%s10628_s1 + $0x1060] sm:$0xff] }
 0x1e2   :  { %5584 = vmatpush.bf16.msrb.mxu0 %v8664_v25  ;;  %5553 = vmatmul.bf16.vlgmr.msra.gmra.mxu1 %v1259_v31  ;;  %v8718_v25 = vld [vmem:[%s10628_s1 + $0x10e8] sm:$0xff]  ;;  %v8709_v31 = vld [vmem:[%s10628_s1 + $0x10a0] sm:$0xff] }
 0x1e3   :  { %5597 = vmatpush.bf16.msrb.mxu1 %v8672_v26  ;;  %5566 = vmatmul.bf16.vlgmr.msra.gmra.mxu2 %v1260_v30  ;;  %v8750_v9 = vld [vmem:[%s10628_s1 + $0x11e8] sm:$0xff] }
 0x1e4   :  { %5610 = vmatpush.bf16.msrb.mxu2 %v8680_v27  ;;  %5579 = vmatmul.bf16.vlgmr.msra.gmra.mxu3 %v1261_v32  ;;  %v8717_v32 = vld [vmem:[%s10628_s1 + $0x10e0] sm:$0xff] }
 0x1e5   :  { %5623 = vmatpush.bf16.msrb.mxu3 %v8688_v28  ;;  %v8693_v28 = vld [vmem:[%s10628_s1 + $0x1020] sm:$0xff] }
 0x1e6   :  { %5585 = vmatpush.bf16.msrb.mxu0 %v8663_v33  ;;  %v5359_v53 = vpop.f32.mrf.mxu2  ;;  %v5335_v56 = vpop.f32.mrf.mxu0 }
 0x1e7   :  { %5598 = vmatpush.bf16.msrb.mxu1 %v8671_v34  ;;  %v5360_v54 = vadd.f32 %v5359_v53, %v5347_v48  ;;  %v5372_v55 = vpop.f32.mrf.mxu3  ;;  %v5348_v60 = vpop.f32.mrf.mxu1  ;;  %v8692_v34 = vld [vmem:[%s10628_s1 + $0x1018] sm:$0xff]  ;;  %v8690_v48 = vld [vmem:[%s10628_s1 + $0x1008] sm:$0xff]  ;;  %v8705_v56 = vld [vmem:[%s10628_s1 + $0x1080] sm:$0xff] }
 0x1e8   :  { %5611 = vmatpush.bf16.msrb.mxu2 %v8679_v35  ;;  %v8700_v35 = vld [vmem:[%s10628_s1 + $0x1058] sm:$0xff] }
 0x1e9   :  { %5624 = vmatpush.bf16.msrb.mxu3 %v8687_v36  ;;  %v10363_v57 = vadd.f32 %v5372_v55, %v5360_v54  ;;  %v8708_v36 = vld [vmem:[%s10628_s1 + $0x1098] sm:$0xff]  ;;  %v8689_v54 = vld [vmem:[%s10628_s1 + $0x1000] sm:$0xff] }
 0x1ea   :  { %5586 = vmatpush.bf16.msrb.mxu0 %v8662_v37  ;;  %v8716_v37 = vld [vmem:[%s10628_s1 + $0x10d8] sm:$0xff]  ;;  %v8697_v55 = vld [vmem:[%s10628_s1 + $0x1040] sm:$0xff] }
 0x1eb   :  { %5599 = vmatpush.bf16.msrb.mxu1 %v8670_v38  ;;  %v8744_v60 = vld [vmem:[%s10628_s1 + $0x11b8] sm:$0xff] }
 0x1ec   :  { %5612 = vmatpush.bf16.msrb.mxu2 %v8678_v39 }
 0x1ed   :  { %5625 = vmatpush.bf16.msrb.mxu3 %v8686_v40 }
 0x1ee   :  { %5587 = vmatpush.bf16.msrb.mxu0 %v8661_v43  ;;  %v5361_v5 = vpop.f32.mrf.mxu2  ;;  %v8691_v43 = vld [vmem:[%s10628_s1 + $0x1010] sm:$0xff] }
 0x1ef   :  { %5600 = vmatpush.bf16.msrb.mxu1 %v8669_v44  ;;  %v5374_v8 = vpop.f32.mrf.mxu3  ;;  %v8699_v44 = vld [vmem:[%s10628_s1 + $0x1050] sm:$0xff] }
 0x1f0   :  { %5613 = vmatpush.bf16.msrb.mxu2 %v8677_v46  ;;  %v8707_v46 = vld [vmem:[%s10628_s1 + $0x1090] sm:$0xff]  ;;  %v8742_v8 = vld [vmem:[%s10628_s1 + $0x11a8] sm:$0xff] }
 0x1f1   :  { %5626 = vmatpush.bf16.msrb.mxu3 %v8685_v47  ;;  %v8715_v47 = vld [vmem:[%s10628_s1 + $0x10d0] sm:$0xff] }
 0x1f2   :  { %5588 = vmatpush.bf16.msrb.mxu0 %v8660_v49  ;;  %v8698_v49 = vld [vmem:[%s10628_s1 + $0x1048] sm:$0xff]  ;;  %v8751_v5 = vld [vmem:[%s10628_s1 + $0x11f0] sm:$0xff] }
 0x1f3   :  { %5601 = vmatpush.bf16.msrb.mxu1 %v8668_v50  ;;  %v8706_v50 = vld [vmem:[%s10628_s1 + $0x1088] sm:$0xff] }
 0x1f4   :  { %5614 = vmatpush.bf16.msrb.mxu2 %v8676_v51  ;;  %v8714_v51 = vld [vmem:[%s10628_s1 + $0x10c8] sm:$0xff] }
 0x1f5   :  { %5627 = vmatpush.bf16.msrb.mxu3 %v8684_v52 }
 0x1f6   :  { %5589 = vmatpush.bf16.msrb.mxu0 %v8659_v58  ;;  %v8728_v58 = vld [vmem:[%s10628_s1 + $0x1138] sm:$0xff] }
 0x1f7   :  { %5602 = vmatpush.bf16.msrb.mxu1 %v8667_v59  ;;  %v8736_v59 = vld [vmem:[%s10628_s1 + $0x1178] sm:$0xff] }
 0x1f8   :  { %5615 = vmatpush.bf16.msrb.mxu2 %v8675_v61  ;;  %v8752_v61 = vld [vmem:[%s10628_s1 + $0x11f8] sm:$0xff] }
 0x1f9   :  { %5628 = vmatpush.bf16.msrb.mxu3 %v8683_v62  ;;  %v1268_v62 = vld [vmem:[#allocation1] sm:$0xff] }
 0x1fa   :  { %5590 = vmatpush.bf16.msrb.mxu0 %v8658_v63  ;;  %v1270_v63 = vld [vmem:[#allocation1 + $0x12] sm:$0xff] }
 0x1fb   :  { %5603 = vmatpush.bf16.msrb.mxu1 %v8666_v0  ;;  %v1269_v0 = vld [vmem:[#allocation1 + $0x9] sm:$0xff] }
 0x1fc   :  { %5616 = vmatpush.bf16.msrb.mxu2 %v8674_v1  ;;  %v1271_v1 = vld [vmem:[#allocation1 + $0x1b] sm:$0xff] }
 0x1fd   :  { %5629 = vmatpush.bf16.msrb.mxu3 %v8682_v2  ;;  %v8727_v2 = vld [vmem:[%s10628_s1 + $0x1130] sm:$0xff] }
 0x1fe   :  { %5591 = vmatpush.bf16.msrb.mxu0 %v8657_v10  ;;  %v5385_v26 = vpop.f32.mrf.mxu0 }
 0x1ff   :  { %5604 = vmatpush.bf16.msrb.mxu1 %v8665_v11  ;;  %v5386_v27 = vadd.f32 %v5385_v26, %v10363_v57  ;;  %v5398_v30 = vpop.f32.mrf.mxu1  ;;  %v8713_v57 = vld [vmem:[%s10628_s1 + $0x10c0] sm:$0xff] }
 0x200   :  { %5617 = vmatpush.bf16.msrb.mxu2 %v8673_v12  ;;  %v8725_v12 = vld [vmem:[%s10628_s1 + $0x1120] sm:$0xff] }
 0x201   :  { %5630 = vmatpush.bf16.msrb.mxu3 %v8681_v13  ;;  %5592 = vmatmul.bf16.vlgmr.msrb.gmra.mxu0 %v1262_v3  ;;  %v5399_v33 = vadd.f32 %v5398_v30, %v5386_v27  ;;  %v8735_v3 = vld [vmem:[%s10628_s1 + $0x1170] sm:$0xff]  ;;  %v8733_v13 = vld [vmem:[%s10628_s1 + $0x1160] sm:$0xff] }
 0x202   :  { %5636 = vmatpush.bf16.msra.mxu0 %v8696_v14  ;;  %5605 = vmatmul.bf16.vlgmr.msrb.gmra.mxu1 %v1263_v6  ;;  %v8726_v6 = vld [vmem:[%s10628_s1 + $0x1128] sm:$0xff]  ;;  %v8723_v27 = vld [vmem:[%s10628_s1 + $0x1110] sm:$0xff] }
 0x203   :  { %5649 = vmatpush.bf16.msra.mxu1 %v8704_v15  ;;  %5618 = vmatmul.bf16.vlgmr.msrb.gmra.mxu2 %v1264_v4  ;;  %v8743_v4 = vld [vmem:[%s10628_s1 + $0x11b0] sm:$0xff]  ;;  %v8741_v15 = vld [vmem:[%s10628_s1 + $0x11a0] sm:$0xff] }
 0x204   :  { %5662 = vmatpush.bf16.msra.mxu2 %v8712_v16  ;;  %5631 = vmatmul.bf16.vlgmr.msrb.gmra.mxu3 %v1265_v7  ;;  %v8734_v7 = vld [vmem:[%s10628_s1 + $0x1168] sm:$0xff]  ;;  %v8749_v16 = vld [vmem:[%s10628_s1 + $0x11e0] sm:$0xff]  ;;  %v8739_v30 = vld [vmem:[%s10628_s1 + $0x1190] sm:$0xff] }
 0x205   :  { %5675 = vmatpush.bf16.msra.mxu3 %v8720_v17 }
 0x206   :  { %5637 = vmatpush.bf16.msra.mxu0 %v8695_v18  ;;  %v5411_v38 = vpop.f32.mrf.mxu2  ;;  %v5387_v41 = vpop.f32.mrf.mxu0  ;;  %v8724_v18 = vld [vmem:[%s10628_s1 + $0x1118] sm:$0xff] }
 0x207   :  { %5650 = vmatpush.bf16.msra.mxu1 %v8703_v19  ;;  %v5412_v39 = vadd.f32 %v5411_v38, %v5399_v33  ;;  %v5424_v40 = vpop.f32.mrf.mxu3  ;;  %v5400_v45 = vpop.f32.mrf.mxu1  ;;  %v8732_v19 = vld [vmem:[%s10628_s1 + $0x1158] sm:$0xff]  ;;  %v8730_v33 = vld [vmem:[%s10628_s1 + $0x1148] sm:$0xff]  ;;  %v8721_v38 = vld [vmem:[%s10628_s1 + $0x1100] sm:$0xff] }
 0x208   :  { %5663 = vmatpush.bf16.msra.mxu2 %v8711_v20  ;;  %v8740_v20 = vld [vmem:[%s10628_s1 + $0x1198] sm:$0xff]  ;;  %v8745_v41 = vld [vmem:[%s10628_s1 + $0x11c0] sm:$0xff] }
 0x209   :  { %5676 = vmatpush.bf16.msra.mxu3 %v8719_v21  ;;  %v5425_v42 = vadd.f32 %v5424_v40, %v5412_v39  ;;  %v8748_v21 = vld [vmem:[%s10628_s1 + $0x11d8] sm:$0xff]  ;;  %v8729_v39 = vld [vmem:[%s10628_s1 + $0x1140] sm:$0xff] }
 0x20a   :  { %5638 = vmatpush.bf16.msra.mxu0 %v8694_v22  ;;  %v8737_v40 = vld [vmem:[%s10628_s1 + $0x1180] sm:$0xff] }
 0x20b   :  { %5651 = vmatpush.bf16.msra.mxu1 %v8702_v23  ;;  %v1275_v45 = vld [vmem:[#allocation1 + $0x3f] sm:$0xff] }
 0x20c   :  { %5664 = vmatpush.bf16.msra.mxu2 %v8710_v24 }
 0x20d   :  { %5677 = vmatpush.bf16.msra.mxu3 %v8718_v25 }
 0x20e   :  { %5639 = vmatpush.bf16.msra.mxu0 %v8693_v28  ;;  %v5413_v52 = vpop.f32.mrf.mxu2  ;;  %v8731_v28 = vld [vmem:[%s10628_s1 + $0x1150] sm:$0xff] }
 0x20f   :  { %5652 = vmatpush.bf16.msra.mxu1 %v8701_v29  ;;  %v5426_v53 = vpop.f32.mrf.mxu3 }
 0x210   :  { %5665 = vmatpush.bf16.msra.mxu2 %v8709_v31  ;;  %v8747_v31 = vld [vmem:[%s10628_s1 + $0x11d0] sm:$0xff] }
 0x211   :  { %5678 = vmatpush.bf16.msra.mxu3 %v8717_v32  ;;  %v8722_v32 = vld [vmem:[%s10628_s1 + $0x1108] sm:$0xff] }
 0x212   :  { %5640 = vmatpush.bf16.msra.mxu0 %v8692_v34  ;;  %v8738_v34 = vld [vmem:[%s10628_s1 + $0x1188] sm:$0xff] }
 0x213   :  { %5653 = vmatpush.bf16.msra.mxu1 %v8700_v35  ;;  %v8746_v35 = vld [vmem:[%s10628_s1 + $0x11c8] sm:$0xff] }
 0x214   :  { %5666 = vmatpush.bf16.msra.mxu2 %v8708_v36 }
 0x215   :  { %5679 = vmatpush.bf16.msra.mxu3 %v8716_v37 }
 0x216   :  { %5641 = vmatpush.bf16.msra.mxu0 %v8691_v43  ;;  %v1273_v43 = vld [vmem:[#allocation1 + $0x2d] sm:$0xff] }
 0x217   :  { %5654 = vmatpush.bf16.msra.mxu1 %v8699_v44  ;;  %v1274_v44 = vld [vmem:[#allocation1 + $0x36] sm:$0xff] }
 0x218   :  { %5667 = vmatpush.bf16.msra.mxu2 %v8707_v46 }
 0x219   :  { %5680 = vmatpush.bf16.msra.mxu3 %v8715_v47 }
 0x21a   :  { %5642 = vmatpush.bf16.msra.mxu0 %v8690_v48 }
 0x21b   :  { %5655 = vmatpush.bf16.msra.mxu1 %v8698_v49 }
 0x21c   :  { %5668 = vmatpush.bf16.msra.mxu2 %v8706_v50 }
 0x21d   :  { %5681 = vmatpush.bf16.msra.mxu3 %v8714_v51 }
 0x21e   :  { %5643 = vmatpush.bf16.msra.mxu0 %v8689_v54  ;;  %v5437_v10 = vpop.f32.mrf.mxu0 }
 0x21f   :  { %5656 = vmatpush.bf16.msra.mxu1 %v8697_v55  ;;  %v5438_v11 = vadd.f32 %v5437_v10, %v5425_v42  ;;  %v5450_v14 = vpop.f32.mrf.mxu1  ;;  %v1272_v42 = vld [vmem:[#allocation1 + $0x24] sm:$0xff]  ;;  %v8760_v10 = vld [vmem:[%s10630_s3 + $0x38] sm:$0xff] }
 0x220   :  { %5669 = vmatpush.bf16.msra.mxu2 %v8705_v56 }
 0x221   :  { %5682 = vmatpush.bf16.msra.mxu3 %v8713_v57  ;;  %5644 = vmatmul.bf16.vlgmr.msra.gmra.mxu0 %v1268_v62  ;;  %v5451_v17 = vadd.f32 %v5450_v14, %v5438_v11  ;;  %v8758_v14 = vld [vmem:[%s10630_s3 + $0x28] sm:$0xff] }
 0x222   :  { %5688 = vmatpush.bf16.msrb.mxu0 %v8728_v58  ;;  %5657 = vmatmul.bf16.vlgmr.msra.gmra.mxu1 %v1269_v0 }
 0x223   :  { %5701 = vmatpush.bf16.msrb.mxu1 %v8736_v59  ;;  %5670 = vmatmul.bf16.vlgmr.msra.gmra.mxu2 %v1270_v63 }
 0x224   :  { %5714 = vmatpush.bf16.msrb.mxu2 %v8744_v60  ;;  %5683 = vmatmul.bf16.vlgmr.msra.gmra.mxu3 %v1271_v1 }
 0x225   :  { %5727 = vmatpush.bf16.msrb.mxu3 %v8752_v61 }
 0x226   :  { %5689 = vmatpush.bf16.msrb.mxu0 %v8727_v2  ;;  %v5463_v22 = vpop.f32.mrf.mxu2  ;;  %v5439_v25 = vpop.f32.mrf.mxu0 }
 0x227   :  { %5702 = vmatpush.bf16.msrb.mxu1 %v8735_v3  ;;  %v5464_v23 = vadd.f32 %v5463_v22, %v5451_v17  ;;  %v5476_v24 = vpop.f32.mrf.mxu3  ;;  %v5452_v29 = vpop.f32.mrf.mxu1  ;;  %v8757_v17 = vld [vmem:[%s10630_s3 + $0x20] sm:$0xff]  ;;  %v8754_v22 = vld [vmem:[%s10630_s3 + $0x8] sm:$0xff] }
 0x228   :  { %5715 = vmatpush.bf16.msrb.mxu2 %v8743_v4 }
 0x229   :  { %5728 = vmatpush.bf16.msrb.mxu3 %v8751_v5  ;;  %v5477_v26 = vadd.f32 %v5476_v24, %v5464_v23 }
 0x22a   :  { %5690 = vmatpush.bf16.msrb.mxu0 %v8726_v6 }
 0x22b   :  { %5703 = vmatpush.bf16.msrb.mxu1 %v8734_v7 }
 0x22c   :  { %5716 = vmatpush.bf16.msrb.mxu2 %v8742_v8 }
 0x22d   :  { %5729 = vmatpush.bf16.msrb.mxu3 %v8750_v9 }
 0x22e   :  { %5691 = vmatpush.bf16.msrb.mxu0 %v8725_v12  ;;  %v5465_v36 = vpop.f32.mrf.mxu2 }
 0x22f   :  { %5704 = vmatpush.bf16.msrb.mxu1 %v8733_v13  ;;  %v5478_v37 = vpop.f32.mrf.mxu3  ;;  %v8759_v13 = vld [vmem:[%s10630_s3 + $0x30] sm:$0xff] }
 0x230   :  { %5717 = vmatpush.bf16.msrb.mxu2 %v8741_v15 }
 0x231   :  { %5730 = vmatpush.bf16.msrb.mxu3 %v8749_v16 }
 0x232   :  { %5692 = vmatpush.bf16.msrb.mxu0 %v8724_v18  ;;  %v8756_v18 = vld [vmem:[%s10630_s3 + $0x18] sm:$0xff] }
 0x233   :  { %5705 = vmatpush.bf16.msrb.mxu1 %v8732_v19 }
 0x234   :  { %5718 = vmatpush.bf16.msrb.mxu2 %v8740_v20  ;;  %v8755_v20 = vld [vmem:[%s10630_s3 + $0x10] sm:$0xff] }
 0x235   :  { %5731 = vmatpush.bf16.msrb.mxu3 %v8748_v21 }
 0x236   :  { %5693 = vmatpush.bf16.msrb.mxu0 %v8723_v27  ;;  %v8753_v27 = vld [vmem:[%s10630_s3] sm:$0xff] }
 0x237   :  { %5706 = vmatpush.bf16.msrb.mxu1 %v8731_v28 }
 0x238   :  { %5719 = vmatpush.bf16.msrb.mxu2 %v8739_v30 }
 0x239   :  { %5732 = vmatpush.bf16.msrb.mxu3 %v8747_v31 }
 0x23a   :  { %5694 = vmatpush.bf16.msrb.mxu0 %v8722_v32 }
 0x23b   :  { %5707 = vmatpush.bf16.msrb.mxu1 %v8730_v33 }
 0x23c   :  { %5720 = vmatpush.bf16.msrb.mxu2 %v8738_v34 }
 0x23d   :  { %5733 = vmatpush.bf16.msrb.mxu3 %v8746_v35 }
 0x23e   :  { %5695 = vmatpush.bf16.msrb.mxu0 %v8721_v38  ;;  %v5489_v46 = vpop.f32.mrf.mxu0 }
 0x23f   :  { %5708 = vmatpush.bf16.msrb.mxu1 %v8729_v39  ;;  %v5490_v47 = vadd.f32 %v5489_v46, %v5477_v26  ;;  %v5502_v48 = vpop.f32.mrf.mxu1 }
 0x240   :  { %5721 = vmatpush.bf16.msrb.mxu2 %v8737_v40 }
 0x241   :  { %5734 = vmatpush.bf16.msrb.mxu3 %v8745_v41  ;;  %5696 = vmatmul.bf16.vlgmr.msrb.gmra.mxu0 %v1272_v42  ;;  %v5503_v49 = vadd.f32 %v5502_v48, %v5490_v47 }
 0x242   :  { %5709 = vmatmul.bf16.vlgmr.msrb.gmra.mxu1 %v1273_v43  ;;  %5810 = vmatpush.bf16.msra.mxu0 %v8760_v10 }
 0x243   :  { %5722 = vmatmul.bf16.vlgmr.msrb.gmra.mxu2 %v1274_v44 }
 0x244   :  { %5735 = vmatmul.bf16.vlgmr.msrb.gmra.mxu3 %v1275_v45 }
 0x246   :  { %v5515_v50 = vpop.f32.mrf.mxu2  ;;  %v5491_v53 = vpop.f32.mrf.mxu0  ;;  %5811 = vmatpush.bf16.msra.mxu0 %v8759_v13 }
 0x247   :  { %v5516_v51 = vadd.f32 %v5515_v50, %v5503_v49  ;;  %v5528_v52 = vpop.f32.mrf.mxu3  ;;  %v5504_v55 = vpop.f32.mrf.mxu1 }
 0x249   :  { %v5529_v54 = vadd.f32 %v5528_v52, %v5516_v51  ;;  %v8763_v52 = vld [vmem:[%s10631_s4] ss:$0 sm:$0xff] }
 0x24a   :  { %5812 = vmatpush.bf16.msra.mxu0 %v8758_v14 }
 0x24e   :  { %v5517_v56 = vpop.f32.mrf.mxu2  ;;  %5813 = vmatpush.bf16.msra.mxu0 %v8757_v17 }
 0x24f   :  { %v5530_v57 = vpop.f32.mrf.mxu3 }
 0x252   :  { %5814 = vmatpush.bf16.msra.mxu0 %v8756_v18 }
 0x256   :  { %5815 = vmatpush.bf16.msra.mxu0 %v8755_v20 }
 0x25a   :  { %5816 = vmatpush.bf16.msra.mxu0 %v8754_v22 }
 0x25e   :  { %v5541_v58 = vpop.f32.mrf.mxu0  ;;  %5817 = vmatpush.bf16.msra.mxu0 %v8753_v27 }
 0x25f   :  { %v5542_v59 = vadd.f32 %v5541_v58, %v5529_v54  ;;  %v5554_v60 = vpop.f32.mrf.mxu1 }
 0x261   :  { %v5555_v61 = vadd.f32 %v5554_v60, %v5542_v59 }
 0x266   :  { %v5567_v62 = vpop.f32.mrf.mxu2  ;;  %v5543_v1 = vpop.f32.mrf.mxu0 }
 0x267   :  { %v5568_v63 = vadd.f32 %v5567_v62, %v5555_v61  ;;  %v5580_v0 = vpop.f32.mrf.mxu3  ;;  %v5556_v3 = vpop.f32.mrf.mxu1 }
 0x269   :  { %v5581_v2 = vadd.f32 %v5580_v0, %v5568_v63 }
 0x26e   :  { %v5569_v4 = vpop.f32.mrf.mxu2 }
 0x26f   :  { %v5582_v5 = vpop.f32.mrf.mxu3 }
 0x27e   :  { %v5593_v6 = vpop.f32.mrf.mxu0 }
 0x27f   :  { %v5606_v7 = vpop.f32.mrf.mxu1  ;;  %v5594_v24 = vadd.f32 %v5593_v6, %v5581_v2 }
 0x281   :  { %v5607_v29 = vadd.f32 %v5606_v7, %v5594_v24 }
 0x286   :  { %v5619_v8 = vpop.f32.mrf.mxu2  ;;  %v5595_v11 = vpop.f32.mrf.mxu0 }
 0x287   :  { %v5632_v9 = vpop.f32.mrf.mxu3  ;;  %v5608_v12 = vpop.f32.mrf.mxu1  ;;  %v5620_v30 = vadd.f32 %v5619_v8, %v5607_v29 }
 0x289   :  { %v5633_v33 = vadd.f32 %v5632_v9, %v5620_v30 }
 0x28e   :  { %v5621_v15 = vpop.f32.mrf.mxu2 }
 0x28f   :  { %v5634_v16 = vpop.f32.mrf.mxu3 }
 0x29e   :  { %v5645_v19 = vpop.f32.mrf.mxu0 }
 0x29f   :  { %v5658_v21 = vpop.f32.mrf.mxu1  ;;  %v5646_v34 = vadd.f32 %v5645_v19, %v5633_v33 }
 0x2a1   :  { %v5659_v35 = vadd.f32 %v5658_v21, %v5646_v34 }
 0x2a6   :  { %v5671_v23 = vpop.f32.mrf.mxu2  ;;  %v5647_v26 = vpop.f32.mrf.mxu0 }
 0x2a7   :  { %v5684_v25 = vpop.f32.mrf.mxu3  ;;  %v5660_v28 = vpop.f32.mrf.mxu1  ;;  %v5672_v36 = vadd.f32 %v5671_v23, %v5659_v35 }
 0x2a9   :  { %v5685_v37 = vadd.f32 %v5684_v25, %v5672_v36 }
 0x2ae   :  { %v5673_v31 = vpop.f32.mrf.mxu2 }
 0x2af   :  { %v5686_v32 = vpop.f32.mrf.mxu3 }
 0x2be   :  { %v5697_v38 = vpop.f32.mrf.mxu0 }
 0x2bf   :  { %v5710_v39 = vpop.f32.mrf.mxu1  ;;  %v5698_v40 = vadd.f32 %v5697_v38, %v5685_v37 }
 0x2c1   :  { %v5711_v41 = vadd.f32 %v5710_v39, %v5698_v40 }
 0x2c6   :  { %v5723_v42 = vpop.f32.mrf.mxu2  ;;  %v5699_v45 = vpop.f32.mrf.mxu0 }
 0x2c7   :  { %v5736_v43 = vpop.f32.mrf.mxu3  ;;  %v5724_v44 = vadd.f32 %v5723_v42, %v5711_v41  ;;  %v5712_v46 = vpop.f32.mrf.mxu1 }
 0x2c9   :  { %v5737_v47 = vadd.f32 %v5736_v43, %v5724_v44 }
 0x2cb   :  { %v5740_v48 = vmax.f32 %v5737_v47, 0.0 }
 0x2cd   :  { %v5741_v49 = vpack.c.bf16 %v5740_v48, %v5740_v48 }
 0x2ce   :  { %v5725_v50 = vpop.f32.mrf.mxu2 }
 0x2cf   :  { %v5738_v51 = vpop.f32.mrf.mxu3  ;;  %5818 = vmatmul.bf16.vlgmr.msra.gmra.mxu0 %v5741_v49 }
 0x34c   :  { %v5819_v53 = vpop.f32.mrf.mxu0 }
 0x34d   :  { %v5820_v54 = vadd.f32 %v8763_v52, %v5819_v53 }
 0x34f   :  { %5824 = vst.msk [vmem:[#allocation2] sm:$0x3] %vm5823_vm0, %v5820_v54 }
 0x350   :  { %5835 = dma.vmem_to_hbm [thread:$0]  %s5831_s19, 32, %s5833_s22, [#allocation3]  }
 0x354   :  { %v5821_v55 = vpop.f32.mrf.mxu0 }
 0x355   :  { %8788 = dma.done.wait [#allocation3], 32  }
 0x356   :  { %8789 = vsyncadd [#allocation3], 4294967264 }
 0x357   :  { %5840 = vsyncpa [#allocation3], 1 }

</bundles_post_ra>
